<compile_context>
chip_gen: v6e
topology: v6e:2x2x1
jax: 0.10.0
libtpu: 0.0.40
codegen_flags: <defaults>
</compile_context>

<pallas_src>
import math

import numpy as np
import jax
import jax.numpy as jnp
from jax import lax
from jax.experimental import pallas as pl
from jax.experimental.pallas import tpu as pltpu


# -----------------------------------------------------------------------------
# Fused kernel: conv1+pool -> conv2+pool -> fc1 -> fc2 -> fc3 for one batch tile
# -----------------------------------------------------------------------------
def _convnn_kernel(xc1_ref, m1_ref, b1_ref, m2_ref, b2_ref,
                   w1_ref, fb1_ref, w2_ref, fb2_ref, w3_ref, fb3_ref,
                   o_ref):
    nb = xc1_ref.shape[2]            # images in this batch tile

    # ---- conv1 (5x5, pad=2, 1->16) + bias + ReLU + 2x2 maxpool ----------------
    # xc1_ref[base, j, n, i*32+k] = padded_input[n, base + 4j + i, k],
    # base = 2*p + a (pooled-row parity p, in-window row a); tap rows are fused
    # into K = 160.  One matmul per pooled-column parity bq.
    xs1 = xc1_ref[...].reshape(4 * 7 * nb, 160)
    outs1 = [jnp.dot(xs1, m1_ref[bq, :, :], preferred_element_type=jnp.float32)
             .reshape(4, 7 * nb, 224) for bq in range(2)]
    b1 = b1_ref[...]                                           # (1, 224)
    y1 = []
    for p in range(2):               # row j*nb + n  <->  pooled row 2j + p of image n
        q = jnp.maximum(jnp.maximum(outs1[0][2 * p], outs1[0][2 * p + 1]),
                        jnp.maximum(outs1[1][2 * p], outs1[1][2 * p + 1]))
        y1.append(jnp.maximum(q + b1, 0.0).astype(jnp.bfloat16).reshape(7, nb, 224))

    # ---- conv2 (5x5, 16->32) + bias + ReLU + 2x2 maxpool ----------------------
    # For (in-window row a2, tap row i2): rows j2*nb+n of the (5*nb, 224) operand
    # hold conv1-pooled row a2+i2+2*j2; K = 224 already ~fills the MXU per tap.
    b2 = b2_ref[...]                                           # (1, 160)
    quad = None
    for a2 in range(2):
        accs = [None, None]
        for i2 in range(5):
            h = a2 + i2
            ys = y1[h % 2][(h // 2):(h // 2) + 5].reshape(5 * nb, 224)
            for bq in range(2):
                d = jnp.dot(ys, m2_ref[bq, i2, :, :],
                            preferred_element_type=jnp.float32)        # (5*nb, 160)
                accs[bq] = d if accs[bq] is None else accs[bq] + d
        for bq in range(2):
            quad = accs[bq] if quad is None else jnp.maximum(quad, accs[bq])
    pooled2 = jnp.maximum(quad + b2, 0.0)                      # (5*nb, 160) f32
    feats = pooled2.astype(jnp.bfloat16).reshape(5, nb, 160)   # (h2, n, w2*32 + c)

    # ---- fc1 + ReLU -> fc2 + ReLU -> fc3 (lane-dense, 128-lane blocks) --------
    h = None
    for j2 in range(5):              # feats already in the (h, w, c) order of fc1's columns
        d = jnp.dot(feats[j2], w1_ref[j2 * 160:(j2 + 1) * 160, :],
                    preferred_element_type=jnp.float32)        # (nb, 128)
        h = d if h is None else h + d
    h = jnp.maximum(h + fb1_ref[...], 0.0).astype(jnp.bfloat16)
    h = jnp.dot(h, w2_ref[...], preferred_element_type=jnp.float32) + fb2_ref[...]
    h = jnp.maximum(h, 0.0).astype(jnp.bfloat16)
    o_ref[...] = (jnp.dot(h, w3_ref[...], preferred_element_type=jnp.float32)
                  + fb3_ref[...]).astype(o_ref.dtype)


# -----------------------------------------------------------------------------
# Trace-time parameter prep (band matrices, tiled biases, permuted / padded FCs)
# -----------------------------------------------------------------------------
def _prepare_params(params):
    f32, bf16 = jnp.float32, jnp.bfloat16

    # conv1 band matrices: K = tap_row*32 + padded column, N = wo*16 + c.
    w1 = params["conv1_w"].astype(f32).reshape(16, 5, 5).transpose(1, 2, 0)   # (i, j, c)
    s1 = np.zeros((2, 32, 14, 5), np.float32)
    for bq in range(2):
        for wo in range(14):
            for j in range(5):
                s1[bq, 2 * wo + bq + j, wo, j] = 1.0
    m1 = jnp.einsum("bwuj,ijc->biwuc", jnp.asarray(s1), w1).reshape(2, 160, 224)

    # conv2 band matrices: K = w_in*16 + cin, N = wo*32 + cout (per tap row).
    w2 = params["conv2_w"].astype(f32)                                        # (co, ci, i, j)
    s2 = np.zeros((2, 14, 5, 5), np.float32)
    for bq in range(2):
        for wo in range(5):
            for j in range(5):
                s2[bq, 2 * wo + bq + j, wo, j] = 1.0
    m2 = jnp.einsum("bwuj,onij->biwnuo", jnp.asarray(s2), w2).reshape(2, 5, 224, 160)

    # fc1 columns permuted from torch's (c, h, w) flatten order to our (h, w, c) order.
    fc1 = params["fc1_w"].astype(f32).reshape(128, 32, 5, 5)
    fc1 = fc1.transpose(0, 2, 3, 1).reshape(128, 800)

    # fc2/fc3 zero-padded to 128 output lanes (lane-dense stores; slice logits outside).
    w2p = jnp.zeros((128, 128), f32).at[:, :64].set(params["fc2_w"].astype(f32).T)
    b2p = jnp.zeros((1, 128), f32).at[0, :64].set(params["fc2_b"].astype(f32))
    w3p = jnp.zeros((128, 128), f32).at[:64, :10].set(params["fc3_w"].astype(f32).T)
    b3p = jnp.zeros((1, 128), f32).at[0, :10].set(params["fc3_b"].astype(f32))

    return {
        "m1": m1.astype(bf16),
        "b1": jnp.tile(params["conv1_b"].astype(f32), 14).reshape(1, 224),
        "m2": m2.astype(bf16),
        "b2": jnp.tile(params["conv2_b"].astype(f32), 5).reshape(1, 160),
        "w1": fc1.T.astype(bf16),                                   # (800, 128)
        "fb1": params["fc1_b"].astype(f32).reshape(1, 128),
        "w2": w2p.astype(bf16),
        "fb2": b2p,
        "w3": w3p.astype(bf16),
        "fb3": b3p,
    }


# -----------------------------------------------------------------------------
# ConvNN forward (Pallas)
# -----------------------------------------------------------------------------
def convnn_forward(x, params):
    prep = _prepare_params(params)

    x = x.reshape(-1, 28, 28).astype(jnp.float32)      # x.view(-1, 1, 28, 28), C=1 squeezed
    B = x.shape[0]

    NB = 32 if B >= 32 else 16                         # images per grid step (multiple of 16)
    B_pad = ((B + NB - 1) // NB) * NB
    if B_pad != B:
        x = jnp.pad(x, ((0, B_pad - B), (0, 0), (0, 0)))

    # pad=2 -> 32x32, then pre-assemble conv1's K-fused operand (cheap, ~9 KiB/img):
    # xc1[base, j, n, i*32 + k] = xpad[n, base + 4*j + i, k]   with base = 2*p + a.
    xpad = jnp.pad(x, ((0, 0), (2, 2), (2, 2)))
    flat = xpad.reshape(B_pad, 32 * 32)
    xc1 = jnp.stack(
        [jnp.stack([flat[:, (base + 4 * j) * 32:(base + 4 * j) * 32 + 160]
                    for j in range(7)], axis=0)
         for base in range(4)], axis=0).astype(jnp.bfloat16)          # (4, 7, B_pad, 160)

    weight_args = (prep["m1"], prep["b1"], prep["m2"], prep["b2"],
                   prep["w1"], prep["fb1"], prep["w2"], prep["fb2"],
                   prep["w3"], prep["fb3"])

    const_maps = {2: lambda t: (0, 0),
                  3: lambda t: (0, 0, 0),
                  4: lambda t: (0, 0, 0, 0)}
    in_specs = [pl.BlockSpec((4, 7, NB, 160), lambda t: (0, 0, t, 0))]
    for w in weight_args:
        in_specs.append(pl.BlockSpec(w.shape, const_maps[w.ndim]))

    flops = B_pad * (4 * 28 * 160 * 224                 # conv1 (2 dots, M folded over batch)
                     + 20 * 2 * 5 * 224 * 160           # conv2 (20 accumulated dots)
                     + 2 * (800 * 128 + 128 * 128 + 128 * 128))
    bytes_accessed = B_pad * (4 * 7 * 160 * 2 + 128 * 4) + sum(
        int(np.prod(w.shape)) * w.dtype.itemsize for w in weight_args)

    out = pl.pallas_call(
        _convnn_kernel,
        out_shape=jax.ShapeDtypeStruct((B_pad, 128), jnp.float32),
        grid=(B_pad // NB,),
        in_specs=in_specs,
        out_specs=pl.BlockSpec((NB, 128), lambda t: (t, 0)),
        compiler_params=pltpu.CompilerParams(
            dimension_semantics=("parallel",),
            vmem_limit_bytes=32 * 1024 * 1024),
        cost_estimate=pl.CostEstimate(flops=flops, transcendentals=0,
                                      bytes_accessed=bytes_accessed),
    )(xc1, *weight_args)

    return out[:B, :10]


# -----------------------------------------------------------------------------
# Pure-JAX reference matching the kernel numerics (bf16 operands, f32 accumulate)
# -----------------------------------------------------------------------------
def convnn_reference(x, params):
    f = lambda t: t.astype(jnp.bfloat16).astype(jnp.float32)   # bf16 operand rounding
    x = x.reshape(-1, 1, 28, 28).astype(jnp.float32)

    def conv(t, w, pad):
        return lax.conv_general_dilated(
            f(t), f(w), window_strides=(1, 1), padding=[(pad, pad), (pad, pad)],
            dimension_numbers=("NCHW", "OIHW", "NCHW"))

    def pool(t):
        return lax.reduce_window(t, -jnp.inf, lax.max, (1, 1, 2, 2), (1, 1, 2, 2), "VALID")

    y = pool(jax.nn.relu(conv(x, params["conv1_w"], 2)
                         + params["conv1_b"][None, :, None, None]))
    y = pool(jax.nn.relu(conv(y, params["conv2_w"], 0)
                         + params["conv2_b"][None, :, None, None]))
    y = y.reshape(y.shape[0], -1)                      # torch.flatten(x, 1): (c, h, w) order
    y = jax.nn.relu(f(y) @ f(params["fc1_w"]).T + params["fc1_b"])
    y = jax.nn.relu(f(y) @ f(params["fc2_w"]).T + params["fc2_b"])
    return f(y) @ f(params["fc3_w"]).T + params["fc3_b"]


# -----------------------------------------------------------------------------
# Deterministic parameter init (PyTorch default: U(-1/sqrt(fan_in), 1/sqrt(fan_in)))
# -----------------------------------------------------------------------------
def init_params(key):
    def u(k, shape, fan_in):
        bound = 1.0 / math.sqrt(fan_in)
        return jax.random.uniform(k, shape, jnp.float32, -bound, bound)

    ks = jax.random.split(key, 10)
    return {
        "conv1_w": u(ks[0], (16, 1, 5, 5), 1 * 5 * 5),
        "conv1_b": u(ks[1], (16,), 1 * 5 * 5),
        "conv2_w": u(ks[2], (32, 16, 5, 5), 16 * 5 * 5),
        "conv2_b": u(ks[3], (32,), 16 * 5 * 5),
        "fc1_w":   u(ks[4], (128, 800), 800),
        "fc1_b":   u(ks[5], (128,), 800),
        "fc2_w":   u(ks[6], (64, 128), 128),
        "fc2_b":   u(ks[7], (64,), 128),
        "fc3_w":   u(ks[8], (10, 64), 64),
        "fc3_b":   u(ks[9], (10,), 64),
    }


if __name__ == "__main__":
    key = jax.random.PRNGKey(0)
    pkey, xkey = jax.random.split(key)
    params = init_params(pkey)

    # MNIST-shaped batch (the module hard-codes 1x28x28).
    x = jax.random.normal(xkey, (2, 1, 28, 28), jnp.float32)

    out = jax.jit(convnn_forward)(x, params)
    out = jax.block_until_ready(out)
    assert out.shape == (2, 10), out.shape

    ref = convnn_reference(x, params)
    err = float(jnp.max(jnp.abs(out - ref)))
    if not jnp.allclose(out, ref, atol=2e-3, rtol=2e-3):
        raise AssertionError(f"mismatch vs reference: max abs err {err}")
    print("KERNEL_OK")
</pallas_src>

<mosaic_0001>
module attributes {stable_mosaic.version = 11 : i64} {
  func.func @_convnn_kernel(%arg0: i32, %arg1: memref<4x7x16x160xbf16, #tpu.memory_space<vmem>>, %arg2: memref<2x160x224xbf16, #tpu.memory_space<vmem>>, %arg3: memref<1x224xf32, #tpu.memory_space<vmem>>, %arg4: memref<2x5x224x160xbf16, #tpu.memory_space<vmem>>, %arg5: memref<1x160xf32, #tpu.memory_space<vmem>>, %arg6: memref<800x128xbf16, #tpu.memory_space<vmem>>, %arg7: memref<1x128xf32, #tpu.memory_space<vmem>>, %arg8: memref<128x128xbf16, #tpu.memory_space<vmem>>, %arg9: memref<1x128xf32, #tpu.memory_space<vmem>>, %arg10: memref<128x128xbf16, #tpu.memory_space<vmem>>, %arg11: memref<1x128xf32, #tpu.memory_space<vmem>>, %arg12: memref<16x128xf32, #tpu.memory_space<vmem>>) attributes {dimension_semantics = [#tpu.dimension_semantics<parallel>], iteration_bounds = array<i64: 1>, scalar_prefetch = 0 : i64, scratch_operands = 0 : i64, tpu.core_type = #tpu.core_type<tc>, window_params = [{transform_indices = @transform_0, window_bounds = array<i64: 4, 7, 16, 160>}, {pipeline_mode = #tpu.pipeline_mode<synchronous>, transform_indices = @transform_1, window_bounds = array<i64: 2, 160, 224>}, {pipeline_mode = #tpu.pipeline_mode<synchronous>, transform_indices = @transform_2, window_bounds = array<i64: 1, 224>}, {pipeline_mode = #tpu.pipeline_mode<synchronous>, transform_indices = @transform_3, window_bounds = array<i64: 2, 5, 224, 160>}, {pipeline_mode = #tpu.pipeline_mode<synchronous>, transform_indices = @transform_4, window_bounds = array<i64: 1, 160>}, {pipeline_mode = #tpu.pipeline_mode<synchronous>, transform_indices = @transform_5, window_bounds = array<i64: 800, 128>}, {pipeline_mode = #tpu.pipeline_mode<synchronous>, transform_indices = @transform_6, window_bounds = array<i64: 1, 128>}, {pipeline_mode = #tpu.pipeline_mode<synchronous>, transform_indices = @transform_7, window_bounds = array<i64: 128, 128>}, {pipeline_mode = #tpu.pipeline_mode<synchronous>, transform_indices = @transform_8, window_bounds = array<i64: 1, 128>}, {pipeline_mode = #tpu.pipeline_mode<synchronous>, transform_indices = @transform_9, window_bounds = array<i64: 128, 128>}, {pipeline_mode = #tpu.pipeline_mode<synchronous>, transform_indices = @transform_10, window_bounds = array<i64: 1, 128>}, {transform_indices = @transform_11, window_bounds = array<i64: 16, 128>}]} {
    %c0 = arith.constant 0 : index
    %c0_0 = arith.constant 0 : index
    %c0_1 = arith.constant 0 : index
    %c0_2 = arith.constant 0 : index
    %0 = vector.load %arg1[%c0, %c0_0, %c0_1, %c0_2] : memref<4x7x16x160xbf16, #tpu.memory_space<vmem>>, vector<4x7x16x160xbf16>
    %1 = vector.shape_cast %0 : vector<4x7x16x160xbf16> to vector<448x160xbf16>
    %c0_3 = arith.constant 0 : index
    %c0_4 = arith.constant 0 : index
    %c0_5 = arith.constant 0 : index
    %2 = vector.load %arg2[%c0_3, %c0_4, %c0_5] : memref<2x160x224xbf16, #tpu.memory_space<vmem>>, vector<1x160x224xbf16>
    %3 = vector.shape_cast %2 : vector<1x160x224xbf16> to vector<160x224xbf16>
    %cst = arith.constant dense<0.000000e+00> : vector<448x224xf32>
    %4 = tpu.matmul %1, %3, %cst {dimension_numbers = #tpu.dot_dimension_numbers<[1], [0], [0], [1], [0, 0, 1, 1], [], []>} : vector<448x160xbf16>, vector<160x224xbf16>, vector<448x224xf32> -> vector<448x224xf32>
    %5 = vector.shape_cast %4 : vector<448x224xf32> to vector<4x112x224xf32>
    %c1 = arith.constant 1 : index
    %c0_6 = arith.constant 0 : index
    %c0_7 = arith.constant 0 : index
    %6 = vector.load %arg2[%c1, %c0_6, %c0_7] : memref<2x160x224xbf16, #tpu.memory_space<vmem>>, vector<1x160x224xbf16>
    %7 = vector.shape_cast %6 : vector<1x160x224xbf16> to vector<160x224xbf16>
    %cst_8 = arith.constant dense<0.000000e+00> : vector<448x224xf32>
    %8 = tpu.matmul %1, %7, %cst_8 {dimension_numbers = #tpu.dot_dimension_numbers<[1], [0], [0], [1], [0, 0, 1, 1], [], []>} : vector<448x160xbf16>, vector<160x224xbf16>, vector<448x224xf32> -> vector<448x224xf32>
    %9 = vector.shape_cast %8 : vector<448x224xf32> to vector<4x112x224xf32>
    %c0_9 = arith.constant 0 : index
    %c0_10 = arith.constant 0 : index
    %10 = vector.load %arg3[%c0_9, %c0_10] : memref<1x224xf32, #tpu.memory_space<vmem>>, vector<1x224xf32>
    %11 = vector.extract_strided_slice %5 {offsets = [0, 0, 0], sizes = [1, 112, 224], strides = [1, 1, 1]} : vector<4x112x224xf32> to vector<1x112x224xf32>
    %12 = vector.shape_cast %11 : vector<1x112x224xf32> to vector<112x224xf32>
    %13 = vector.extract_strided_slice %5 {offsets = [1, 0, 0], sizes = [1, 112, 224], strides = [1, 1, 1]} : vector<4x112x224xf32> to vector<1x112x224xf32>
    %14 = vector.shape_cast %13 : vector<1x112x224xf32> to vector<112x224xf32>
    %15 = arith.maximumf %12, %14 : vector<112x224xf32>
    %16 = vector.extract_strided_slice %9 {offsets = [0, 0, 0], sizes = [1, 112, 224], strides = [1, 1, 1]} : vector<4x112x224xf32> to vector<1x112x224xf32>
    %17 = vector.shape_cast %16 : vector<1x112x224xf32> to vector<112x224xf32>
    %18 = vector.extract_strided_slice %9 {offsets = [1, 0, 0], sizes = [1, 112, 224], strides = [1, 1, 1]} : vector<4x112x224xf32> to vector<1x112x224xf32>
    %19 = vector.shape_cast %18 : vector<1x112x224xf32> to vector<112x224xf32>
    %20 = arith.maximumf %17, %19 : vector<112x224xf32>
    %21 = arith.maximumf %15, %20 : vector<112x224xf32>
    %22 = vector.broadcast %10 : vector<1x224xf32> to vector<112x224xf32>
    %23 = arith.addf %21, %22 : vector<112x224xf32>
    %cst_11 = arith.constant 0.000000e+00 : f32
    %24 = vector.broadcast %cst_11 : f32 to vector<112x224xf32>
    %25 = arith.maximumf %23, %24 : vector<112x224xf32>
    %26 = arith.truncf %25 : vector<112x224xf32> to vector<112x224xbf16>
    %27 = vector.shape_cast %26 : vector<112x224xbf16> to vector<7x16x224xbf16>
    %28 = vector.extract_strided_slice %5 {offsets = [2, 0, 0], sizes = [1, 112, 224], strides = [1, 1, 1]} : vector<4x112x224xf32> to vector<1x112x224xf32>
    %29 = vector.shape_cast %28 : vector<1x112x224xf32> to vector<112x224xf32>
    %30 = vector.extract_strided_slice %5 {offsets = [3, 0, 0], sizes = [1, 112, 224], strides = [1, 1, 1]} : vector<4x112x224xf32> to vector<1x112x224xf32>
    %31 = vector.shape_cast %30 : vector<1x112x224xf32> to vector<112x224xf32>
    %32 = arith.maximumf %29, %31 : vector<112x224xf32>
    %33 = vector.extract_strided_slice %9 {offsets = [2, 0, 0], sizes = [1, 112, 224], strides = [1, 1, 1]} : vector<4x112x224xf32> to vector<1x112x224xf32>
    %34 = vector.shape_cast %33 : vector<1x112x224xf32> to vector<112x224xf32>
    %35 = vector.extract_strided_slice %9 {offsets = [3, 0, 0], sizes = [1, 112, 224], strides = [1, 1, 1]} : vector<4x112x224xf32> to vector<1x112x224xf32>
    %36 = vector.shape_cast %35 : vector<1x112x224xf32> to vector<112x224xf32>
    %37 = arith.maximumf %34, %36 : vector<112x224xf32>
    %38 = arith.maximumf %32, %37 : vector<112x224xf32>
    %39 = vector.broadcast %10 : vector<1x224xf32> to vector<112x224xf32>
    %40 = arith.addf %38, %39 : vector<112x224xf32>
    %cst_12 = arith.constant 0.000000e+00 : f32
    %41 = vector.broadcast %cst_12 : f32 to vector<112x224xf32>
    %42 = arith.maximumf %40, %41 : vector<112x224xf32>
    %43 = arith.truncf %42 : vector<112x224xf32> to vector<112x224xbf16>
    %44 = vector.shape_cast %43 : vector<112x224xbf16> to vector<7x16x224xbf16>
    %c0_13 = arith.constant 0 : index
    %c0_14 = arith.constant 0 : index
    %45 = vector.load %arg5[%c0_13, %c0_14] : memref<1x160xf32, #tpu.memory_space<vmem>>, vector<1x160xf32>
    %46 = vector.extract_strided_slice %27 {offsets = [0, 0, 0], sizes = [5, 16, 224], strides = [1, 1, 1]} : vector<7x16x224xbf16> to vector<5x16x224xbf16>
    %47 = vector.shape_cast %46 : vector<5x16x224xbf16> to vector<80x224xbf16>
    %c0_15 = arith.constant 0 : index
    %c0_16 = arith.constant 0 : index
    %c0_17 = arith.constant 0 : index
    %c0_18 = arith.constant 0 : index
    %48 = vector.load %arg4[%c0_15, %c0_16, %c0_17, %c0_18] : memref<2x5x224x160xbf16, #tpu.memory_space<vmem>>, vector<1x1x224x160xbf16>
    %49 = vector.shape_cast %48 : vector<1x1x224x160xbf16> to vector<224x160xbf16>
    %cst_19 = arith.constant dense<0.000000e+00> : vector<80x160xf32>
    %50 = tpu.matmul %47, %49, %cst_19 {dimension_numbers = #tpu.dot_dimension_numbers<[1], [0], [0], [1], [0, 0, 1, 1], [], []>} : vector<80x224xbf16>, vector<224x160xbf16>, vector<80x160xf32> -> vector<80x160xf32>
    %c1_20 = arith.constant 1 : index
    %c0_21 = arith.constant 0 : index
    %c0_22 = arith.constant 0 : index
    %c0_23 = arith.constant 0 : index
    %51 = vector.load %arg4[%c1_20, %c0_21, %c0_22, %c0_23] : memref<2x5x224x160xbf16, #tpu.memory_space<vmem>>, vector<1x1x224x160xbf16>
    %52 = vector.shape_cast %51 : vector<1x1x224x160xbf16> to vector<224x160xbf16>
    %cst_24 = arith.constant dense<0.000000e+00> : vector<80x160xf32>
    %53 = tpu.matmul %47, %52, %cst_24 {dimension_numbers = #tpu.dot_dimension_numbers<[1], [0], [0], [1], [0, 0, 1, 1], [], []>} : vector<80x224xbf16>, vector<224x160xbf16>, vector<80x160xf32> -> vector<80x160xf32>
    %54 = vector.extract_strided_slice %44 {offsets = [0, 0, 0], sizes = [5, 16, 224], strides = [1, 1, 1]} : vector<7x16x224xbf16> to vector<5x16x224xbf16>
    %55 = vector.shape_cast %54 : vector<5x16x224xbf16> to vector<80x224xbf16>
    %c0_25 = arith.constant 0 : index
    %c1_26 = arith.constant 1 : index
    %c0_27 = arith.constant 0 : index
    %c0_28 = arith.constant 0 : index
    %56 = vector.load %arg4[%c0_25, %c1_26, %c0_27, %c0_28] : memref<2x5x224x160xbf16, #tpu.memory_space<vmem>>, vector<1x1x224x160xbf16>
    %57 = vector.shape_cast %56 : vector<1x1x224x160xbf16> to vector<224x160xbf16>
    %cst_29 = arith.constant dense<0.000000e+00> : vector<80x160xf32>
    %58 = tpu.matmul %55, %57, %cst_29 {dimension_numbers = #tpu.dot_dimension_numbers<[1], [0], [0], [1], [0, 0, 1, 1], [], []>} : vector<80x224xbf16>, vector<224x160xbf16>, vector<80x160xf32> -> vector<80x160xf32>
    %59 = arith.addf %50, %58 : vector<80x160xf32>
    %c1_30 = arith.constant 1 : index
    %c1_31 = arith.constant 1 : index
    %c0_32 = arith.constant 0 : index
    %c0_33 = arith.constant 0 : index
    %60 = vector.load %arg4[%c1_30, %c1_31, %c0_32, %c0_33] : memref<2x5x224x160xbf16, #tpu.memory_space<vmem>>, vector<1x1x224x160xbf16>
    %61 = vector.shape_cast %60 : vector<1x1x224x160xbf16> to vector<224x160xbf16>
    %cst_34 = arith.constant dense<0.000000e+00> : vector<80x160xf32>
    %62 = tpu.matmul %55, %61, %cst_34 {dimension_numbers = #tpu.dot_dimension_numbers<[1], [0], [0], [1], [0, 0, 1, 1], [], []>} : vector<80x224xbf16>, vector<224x160xbf16>, vector<80x160xf32> -> vector<80x160xf32>
    %63 = arith.addf %53, %62 : vector<80x160xf32>
    %64 = vector.extract_strided_slice %27 {offsets = [1, 0, 0], sizes = [5, 16, 224], strides = [1, 1, 1]} : vector<7x16x224xbf16> to vector<5x16x224xbf16>
    %65 = vector.shape_cast %64 : vector<5x16x224xbf16> to vector<80x224xbf16>
    %c0_35 = arith.constant 0 : index
    %c2 = arith.constant 2 : index
    %c0_36 = arith.constant 0 : index
    %c0_37 = arith.constant 0 : index
    %66 = vector.load %arg4[%c0_35, %c2, %c0_36, %c0_37] : memref<2x5x224x160xbf16, #tpu.memory_space<vmem>>, vector<1x1x224x160xbf16>
    %67 = vector.shape_cast %66 : vector<1x1x224x160xbf16> to vector<224x160xbf16>
    %cst_38 = arith.constant dense<0.000000e+00> : vector<80x160xf32>
    %68 = tpu.matmul %65, %67, %cst_38 {dimension_numbers = #tpu.dot_dimension_numbers<[1], [0], [0], [1], [0, 0, 1, 1], [], []>} : vector<80x224xbf16>, vector<224x160xbf16>, vector<80x160xf32> -> vector<80x160xf32>
    %69 = arith.addf %59, %68 : vector<80x160xf32>
    %c1_39 = arith.constant 1 : index
    %c2_40 = arith.constant 2 : index
    %c0_41 = arith.constant 0 : index
    %c0_42 = arith.constant 0 : index
    %70 = vector.load %arg4[%c1_39, %c2_40, %c0_41, %c0_42] : memref<2x5x224x160xbf16, #tpu.memory_space<vmem>>, vector<1x1x224x160xbf16>
    %71 = vector.shape_cast %70 : vector<1x1x224x160xbf16> to vector<224x160xbf16>
    %cst_43 = arith.constant dense<0.000000e+00> : vector<80x160xf32>
    %72 = tpu.matmul %65, %71, %cst_43 {dimension_numbers = #tpu.dot_dimension_numbers<[1], [0], [0], [1], [0, 0, 1, 1], [], []>} : vector<80x224xbf16>, vector<224x160xbf16>, vector<80x160xf32> -> vector<80x160xf32>
    %73 = arith.addf %63, %72 : vector<80x160xf32>
    %74 = vector.extract_strided_slice %44 {offsets = [1, 0, 0], sizes = [5, 16, 224], strides = [1, 1, 1]} : vector<7x16x224xbf16> to vector<5x16x224xbf16>
    %75 = vector.shape_cast %74 : vector<5x16x224xbf16> to vector<80x224xbf16>
    %c0_44 = arith.constant 0 : index
    %c3 = arith.constant 3 : index
    %c0_45 = arith.constant 0 : index
    %c0_46 = arith.constant 0 : index
    %76 = vector.load %arg4[%c0_44, %c3, %c0_45, %c0_46] : memref<2x5x224x160xbf16, #tpu.memory_space<vmem>>, vector<1x1x224x160xbf16>
    %77 = vector.shape_cast %76 : vector<1x1x224x160xbf16> to vector<224x160xbf16>
    %cst_47 = arith.constant dense<0.000000e+00> : vector<80x160xf32>
    %78 = tpu.matmul %75, %77, %cst_47 {dimension_numbers = #tpu.dot_dimension_numbers<[1], [0], [0], [1], [0, 0, 1, 1], [], []>} : vector<80x224xbf16>, vector<224x160xbf16>, vector<80x160xf32> -> vector<80x160xf32>
    %79 = arith.addf %69, %78 : vector<80x160xf32>
    %c1_48 = arith.constant 1 : index
    %c3_49 = arith.constant 3 : index
    %c0_50 = arith.constant 0 : index
    %c0_51 = arith.constant 0 : index
    %80 = vector.load %arg4[%c1_48, %c3_49, %c0_50, %c0_51] : memref<2x5x224x160xbf16, #tpu.memory_space<vmem>>, vector<1x1x224x160xbf16>
    %81 = vector.shape_cast %80 : vector<1x1x224x160xbf16> to vector<224x160xbf16>
    %cst_52 = arith.constant dense<0.000000e+00> : vector<80x160xf32>
    %82 = tpu.matmul %75, %81, %cst_52 {dimension_numbers = #tpu.dot_dimension_numbers<[1], [0], [0], [1], [0, 0, 1, 1], [], []>} : vector<80x224xbf16>, vector<224x160xbf16>, vector<80x160xf32> -> vector<80x160xf32>
    %83 = arith.addf %73, %82 : vector<80x160xf32>
    %84 = vector.extract_strided_slice %27 {offsets = [2, 0, 0], sizes = [5, 16, 224], strides = [1, 1, 1]} : vector<7x16x224xbf16> to vector<5x16x224xbf16>
    %85 = vector.shape_cast %84 : vector<5x16x224xbf16> to vector<80x224xbf16>
    %c0_53 = arith.constant 0 : index
    %c4 = arith.constant 4 : index
    %c0_54 = arith.constant 0 : index
    %c0_55 = arith.constant 0 : index
    %86 = vector.load %arg4[%c0_53, %c4, %c0_54, %c0_55] : memref<2x5x224x160xbf16, #tpu.memory_space<vmem>>, vector<1x1x224x160xbf16>
    %87 = vector.shape_cast %86 : vector<1x1x224x160xbf16> to vector<224x160xbf16>
    %cst_56 = arith.constant dense<0.000000e+00> : vector<80x160xf32>
    %88 = tpu.matmul %85, %87, %cst_56 {dimension_numbers = #tpu.dot_dimension_numbers<[1], [0], [0], [1], [0, 0, 1, 1], [], []>} : vector<80x224xbf16>, vector<224x160xbf16>, vector<80x160xf32> -> vector<80x160xf32>
    %89 = arith.addf %79, %88 : vector<80x160xf32>
    %c1_57 = arith.constant 1 : index
    %c4_58 = arith.constant 4 : index
    %c0_59 = arith.constant 0 : index
    %c0_60 = arith.constant 0 : index
    %90 = vector.load %arg4[%c1_57, %c4_58, %c0_59, %c0_60] : memref<2x5x224x160xbf16, #tpu.memory_space<vmem>>, vector<1x1x224x160xbf16>
    %91 = vector.shape_cast %90 : vector<1x1x224x160xbf16> to vector<224x160xbf16>
    %cst_61 = arith.constant dense<0.000000e+00> : vector<80x160xf32>
    %92 = tpu.matmul %85, %91, %cst_61 {dimension_numbers = #tpu.dot_dimension_numbers<[1], [0], [0], [1], [0, 0, 1, 1], [], []>} : vector<80x224xbf16>, vector<224x160xbf16>, vector<80x160xf32> -> vector<80x160xf32>
    %93 = arith.addf %83, %92 : vector<80x160xf32>
    %94 = arith.maximumf %89, %93 : vector<80x160xf32>
    %95 = vector.extract_strided_slice %44 {offsets = [0, 0, 0], sizes = [5, 16, 224], strides = [1, 1, 1]} : vector<7x16x224xbf16> to vector<5x16x224xbf16>
    %96 = vector.shape_cast %95 : vector<5x16x224xbf16> to vector<80x224xbf16>
    %c0_62 = arith.constant 0 : index
    %c0_63 = arith.constant 0 : index
    %c0_64 = arith.constant 0 : index
    %c0_65 = arith.constant 0 : index
    %97 = vector.load %arg4[%c0_62, %c0_63, %c0_64, %c0_65] : memref<2x5x224x160xbf16, #tpu.memory_space<vmem>>, vector<1x1x224x160xbf16>
    %98 = vector.shape_cast %97 : vector<1x1x224x160xbf16> to vector<224x160xbf16>
    %cst_66 = arith.constant dense<0.000000e+00> : vector<80x160xf32>
    %99 = tpu.matmul %96, %98, %cst_66 {dimension_numbers = #tpu.dot_dimension_numbers<[1], [0], [0], [1], [0, 0, 1, 1], [], []>} : vector<80x224xbf16>, vector<224x160xbf16>, vector<80x160xf32> -> vector<80x160xf32>
    %c1_67 = arith.constant 1 : index
    %c0_68 = arith.constant 0 : index
    %c0_69 = arith.constant 0 : index
    %c0_70 = arith.constant 0 : index
    %100 = vector.load %arg4[%c1_67, %c0_68, %c0_69, %c0_70] : memref<2x5x224x160xbf16, #tpu.memory_space<vmem>>, vector<1x1x224x160xbf16>
    %101 = vector.shape_cast %100 : vector<1x1x224x160xbf16> to vector<224x160xbf16>
    %cst_71 = arith.constant dense<0.000000e+00> : vector<80x160xf32>
    %102 = tpu.matmul %96, %101, %cst_71 {dimension_numbers = #tpu.dot_dimension_numbers<[1], [0], [0], [1], [0, 0, 1, 1], [], []>} : vector<80x224xbf16>, vector<224x160xbf16>, vector<80x160xf32> -> vector<80x160xf32>
    %103 = vector.extract_strided_slice %27 {offsets = [1, 0, 0], sizes = [5, 16, 224], strides = [1, 1, 1]} : vector<7x16x224xbf16> to vector<5x16x224xbf16>
    %104 = vector.shape_cast %103 : vector<5x16x224xbf16> to vector<80x224xbf16>
    %c0_72 = arith.constant 0 : index
    %c1_73 = arith.constant 1 : index
    %c0_74 = arith.constant 0 : index
    %c0_75 = arith.constant 0 : index
    %105 = vector.load %arg4[%c0_72, %c1_73, %c0_74, %c0_75] : memref<2x5x224x160xbf16, #tpu.memory_space<vmem>>, vector<1x1x224x160xbf16>
    %106 = vector.shape_cast %105 : vector<1x1x224x160xbf16> to vector<224x160xbf16>
    %cst_76 = arith.constant dense<0.000000e+00> : vector<80x160xf32>
    %107 = tpu.matmul %104, %106, %cst_76 {dimension_numbers = #tpu.dot_dimension_numbers<[1], [0], [0], [1], [0, 0, 1, 1], [], []>} : vector<80x224xbf16>, vector<224x160xbf16>, vector<80x160xf32> -> vector<80x160xf32>
    %108 = arith.addf %99, %107 : vector<80x160xf32>
    %c1_77 = arith.constant 1 : index
    %c1_78 = arith.constant 1 : index
    %c0_79 = arith.constant 0 : index
    %c0_80 = arith.constant 0 : index
    %109 = vector.load %arg4[%c1_77, %c1_78, %c0_79, %c0_80] : memref<2x5x224x160xbf16, #tpu.memory_space<vmem>>, vector<1x1x224x160xbf16>
    %110 = vector.shape_cast %109 : vector<1x1x224x160xbf16> to vector<224x160xbf16>
    %cst_81 = arith.constant dense<0.000000e+00> : vector<80x160xf32>
    %111 = tpu.matmul %104, %110, %cst_81 {dimension_numbers = #tpu.dot_dimension_numbers<[1], [0], [0], [1], [0, 0, 1, 1], [], []>} : vector<80x224xbf16>, vector<224x160xbf16>, vector<80x160xf32> -> vector<80x160xf32>
    %112 = arith.addf %102, %111 : vector<80x160xf32>
    %113 = vector.extract_strided_slice %44 {offsets = [1, 0, 0], sizes = [5, 16, 224], strides = [1, 1, 1]} : vector<7x16x224xbf16> to vector<5x16x224xbf16>
    %114 = vector.shape_cast %113 : vector<5x16x224xbf16> to vector<80x224xbf16>
    %c0_82 = arith.constant 0 : index
    %c2_83 = arith.constant 2 : index
    %c0_84 = arith.constant 0 : index
    %c0_85 = arith.constant 0 : index
    %115 = vector.load %arg4[%c0_82, %c2_83, %c0_84, %c0_85] : memref<2x5x224x160xbf16, #tpu.memory_space<vmem>>, vector<1x1x224x160xbf16>
    %116 = vector.shape_cast %115 : vector<1x1x224x160xbf16> to vector<224x160xbf16>
    %cst_86 = arith.constant dense<0.000000e+00> : vector<80x160xf32>
    %117 = tpu.matmul %114, %116, %cst_86 {dimension_numbers = #tpu.dot_dimension_numbers<[1], [0], [0], [1], [0, 0, 1, 1], [], []>} : vector<80x224xbf16>, vector<224x160xbf16>, vector<80x160xf32> -> vector<80x160xf32>
    %118 = arith.addf %108, %117 : vector<80x160xf32>
    %c1_87 = arith.constant 1 : index
    %c2_88 = arith.constant 2 : index
    %c0_89 = arith.constant 0 : index
    %c0_90 = arith.constant 0 : index
    %119 = vector.load %arg4[%c1_87, %c2_88, %c0_89, %c0_90] : memref<2x5x224x160xbf16, #tpu.memory_space<vmem>>, vector<1x1x224x160xbf16>
    %120 = vector.shape_cast %119 : vector<1x1x224x160xbf16> to vector<224x160xbf16>
    %cst_91 = arith.constant dense<0.000000e+00> : vector<80x160xf32>
    %121 = tpu.matmul %114, %120, %cst_91 {dimension_numbers = #tpu.dot_dimension_numbers<[1], [0], [0], [1], [0, 0, 1, 1], [], []>} : vector<80x224xbf16>, vector<224x160xbf16>, vector<80x160xf32> -> vector<80x160xf32>
    %122 = arith.addf %112, %121 : vector<80x160xf32>
    %123 = vector.extract_strided_slice %27 {offsets = [2, 0, 0], sizes = [5, 16, 224], strides = [1, 1, 1]} : vector<7x16x224xbf16> to vector<5x16x224xbf16>
    %124 = vector.shape_cast %123 : vector<5x16x224xbf16> to vector<80x224xbf16>
    %c0_92 = arith.constant 0 : index
    %c3_93 = arith.constant 3 : index
    %c0_94 = arith.constant 0 : index
    %c0_95 = arith.constant 0 : index
    %125 = vector.load %arg4[%c0_92, %c3_93, %c0_94, %c0_95] : memref<2x5x224x160xbf16, #tpu.memory_space<vmem>>, vector<1x1x224x160xbf16>
    %126 = vector.shape_cast %125 : vector<1x1x224x160xbf16> to vector<224x160xbf16>
    %cst_96 = arith.constant dense<0.000000e+00> : vector<80x160xf32>
    %127 = tpu.matmul %124, %126, %cst_96 {dimension_numbers = #tpu.dot_dimension_numbers<[1], [0], [0], [1], [0, 0, 1, 1], [], []>} : vector<80x224xbf16>, vector<224x160xbf16>, vector<80x160xf32> -> vector<80x160xf32>
    %128 = arith.addf %118, %127 : vector<80x160xf32>
    %c1_97 = arith.constant 1 : index
    %c3_98 = arith.constant 3 : index
    %c0_99 = arith.constant 0 : index
    %c0_100 = arith.constant 0 : index
    %129 = vector.load %arg4[%c1_97, %c3_98, %c0_99, %c0_100] : memref<2x5x224x160xbf16, #tpu.memory_space<vmem>>, vector<1x1x224x160xbf16>
    %130 = vector.shape_cast %129 : vector<1x1x224x160xbf16> to vector<224x160xbf16>
    %cst_101 = arith.constant dense<0.000000e+00> : vector<80x160xf32>
    %131 = tpu.matmul %124, %130, %cst_101 {dimension_numbers = #tpu.dot_dimension_numbers<[1], [0], [0], [1], [0, 0, 1, 1], [], []>} : vector<80x224xbf16>, vector<224x160xbf16>, vector<80x160xf32> -> vector<80x160xf32>
    %132 = arith.addf %122, %131 : vector<80x160xf32>
    %133 = vector.extract_strided_slice %44 {offsets = [2, 0, 0], sizes = [5, 16, 224], strides = [1, 1, 1]} : vector<7x16x224xbf16> to vector<5x16x224xbf16>
    %134 = vector.shape_cast %133 : vector<5x16x224xbf16> to vector<80x224xbf16>
    %c0_102 = arith.constant 0 : index
    %c4_103 = arith.constant 4 : index
    %c0_104 = arith.constant 0 : index
    %c0_105 = arith.constant 0 : index
    %135 = vector.load %arg4[%c0_102, %c4_103, %c0_104, %c0_105] : memref<2x5x224x160xbf16, #tpu.memory_space<vmem>>, vector<1x1x224x160xbf16>
    %136 = vector.shape_cast %135 : vector<1x1x224x160xbf16> to vector<224x160xbf16>
    %cst_106 = arith.constant dense<0.000000e+00> : vector<80x160xf32>
    %137 = tpu.matmul %134, %136, %cst_106 {dimension_numbers = #tpu.dot_dimension_numbers<[1], [0], [0], [1], [0, 0, 1, 1], [], []>} : vector<80x224xbf16>, vector<224x160xbf16>, vector<80x160xf32> -> vector<80x160xf32>
    %138 = arith.addf %128, %137 : vector<80x160xf32>
    %c1_107 = arith.constant 1 : index
    %c4_108 = arith.constant 4 : index
    %c0_109 = arith.constant 0 : index
    %c0_110 = arith.constant 0 : index
    %139 = vector.load %arg4[%c1_107, %c4_108, %c0_109, %c0_110] : memref<2x5x224x160xbf16, #tpu.memory_space<vmem>>, vector<1x1x224x160xbf16>
    %140 = vector.shape_cast %139 : vector<1x1x224x160xbf16> to vector<224x160xbf16>
    %cst_111 = arith.constant dense<0.000000e+00> : vector<80x160xf32>
    %141 = tpu.matmul %134, %140, %cst_111 {dimension_numbers = #tpu.dot_dimension_numbers<[1], [0], [0], [1], [0, 0, 1, 1], [], []>} : vector<80x224xbf16>, vector<224x160xbf16>, vector<80x160xf32> -> vector<80x160xf32>
    %142 = arith.addf %132, %141 : vector<80x160xf32>
    %143 = arith.maximumf %94, %138 : vector<80x160xf32>
    %144 = arith.maximumf %143, %142 : vector<80x160xf32>
    %145 = vector.broadcast %45 : vector<1x160xf32> to vector<80x160xf32>
    %146 = arith.addf %144, %145 : vector<80x160xf32>
    %cst_112 = arith.constant 0.000000e+00 : f32
    %147 = vector.broadcast %cst_112 : f32 to vector<80x160xf32>
    %148 = arith.maximumf %146, %147 : vector<80x160xf32>
    %149 = arith.truncf %148 : vector<80x160xf32> to vector<80x160xbf16>
    %150 = vector.shape_cast %149 : vector<80x160xbf16> to vector<5x16x160xbf16>
    %151 = vector.extract_strided_slice %150 {offsets = [0, 0, 0], sizes = [1, 16, 160], strides = [1, 1, 1]} : vector<5x16x160xbf16> to vector<1x16x160xbf16>
    %152 = vector.shape_cast %151 : vector<1x16x160xbf16> to vector<16x160xbf16>
    %c0_113 = arith.constant 0 : index
    %c0_114 = arith.constant 0 : index
    %153 = vector.load %arg6[%c0_113, %c0_114] : memref<800x128xbf16, #tpu.memory_space<vmem>>, vector<160x128xbf16>
    %cst_115 = arith.constant dense<0.000000e+00> : vector<16x128xf32>
    %154 = tpu.matmul %152, %153, %cst_115 {dimension_numbers = #tpu.dot_dimension_numbers<[1], [0], [0], [1], [0, 0, 1, 1], [], []>} : vector<16x160xbf16>, vector<160x128xbf16>, vector<16x128xf32> -> vector<16x128xf32>
    %155 = vector.extract_strided_slice %150 {offsets = [1, 0, 0], sizes = [1, 16, 160], strides = [1, 1, 1]} : vector<5x16x160xbf16> to vector<1x16x160xbf16>
    %156 = vector.shape_cast %155 : vector<1x16x160xbf16> to vector<16x160xbf16>
    %c160 = arith.constant 160 : index
    %c0_116 = arith.constant 0 : index
    %157 = vector.load %arg6[%c160, %c0_116] : memref<800x128xbf16, #tpu.memory_space<vmem>>, vector<160x128xbf16>
    %cst_117 = arith.constant dense<0.000000e+00> : vector<16x128xf32>
    %158 = tpu.matmul %156, %157, %cst_117 {dimension_numbers = #tpu.dot_dimension_numbers<[1], [0], [0], [1], [0, 0, 1, 1], [], []>} : vector<16x160xbf16>, vector<160x128xbf16>, vector<16x128xf32> -> vector<16x128xf32>
    %159 = arith.addf %154, %158 : vector<16x128xf32>
    %160 = vector.extract_strided_slice %150 {offsets = [2, 0, 0], sizes = [1, 16, 160], strides = [1, 1, 1]} : vector<5x16x160xbf16> to vector<1x16x160xbf16>
    %161 = vector.shape_cast %160 : vector<1x16x160xbf16> to vector<16x160xbf16>
    %c320 = arith.constant 320 : index
    %c0_118 = arith.constant 0 : index
    %162 = vector.load %arg6[%c320, %c0_118] : memref<800x128xbf16, #tpu.memory_space<vmem>>, vector<160x128xbf16>
    %cst_119 = arith.constant dense<0.000000e+00> : vector<16x128xf32>
    %163 = tpu.matmul %161, %162, %cst_119 {dimension_numbers = #tpu.dot_dimension_numbers<[1], [0], [0], [1], [0, 0, 1, 1], [], []>} : vector<16x160xbf16>, vector<160x128xbf16>, vector<16x128xf32> -> vector<16x128xf32>
    %164 = arith.addf %159, %163 : vector<16x128xf32>
    %165 = vector.extract_strided_slice %150 {offsets = [3, 0, 0], sizes = [1, 16, 160], strides = [1, 1, 1]} : vector<5x16x160xbf16> to vector<1x16x160xbf16>
    %166 = vector.shape_cast %165 : vector<1x16x160xbf16> to vector<16x160xbf16>
    %c480 = arith.constant 480 : index
    %c0_120 = arith.constant 0 : index
    %167 = vector.load %arg6[%c480, %c0_120] : memref<800x128xbf16, #tpu.memory_space<vmem>>, vector<160x128xbf16>
    %cst_121 = arith.constant dense<0.000000e+00> : vector<16x128xf32>
    %168 = tpu.matmul %166, %167, %cst_121 {dimension_numbers = #tpu.dot_dimension_numbers<[1], [0], [0], [1], [0, 0, 1, 1], [], []>} : vector<16x160xbf16>, vector<160x128xbf16>, vector<16x128xf32> -> vector<16x128xf32>
    %169 = arith.addf %164, %168 : vector<16x128xf32>
    %170 = vector.extract_strided_slice %150 {offsets = [4, 0, 0], sizes = [1, 16, 160], strides = [1, 1, 1]} : vector<5x16x160xbf16> to vector<1x16x160xbf16>
    %171 = vector.shape_cast %170 : vector<1x16x160xbf16> to vector<16x160xbf16>
    %c640 = arith.constant 640 : index
    %c0_122 = arith.constant 0 : index
    %172 = vector.load %arg6[%c640, %c0_122] : memref<800x128xbf16, #tpu.memory_space<vmem>>, vector<160x128xbf16>
    %cst_123 = arith.constant dense<0.000000e+00> : vector<16x128xf32>
    %173 = tpu.matmul %171, %172, %cst_123 {dimension_numbers = #tpu.dot_dimension_numbers<[1], [0], [0], [1], [0, 0, 1, 1], [], []>} : vector<16x160xbf16>, vector<160x128xbf16>, vector<16x128xf32> -> vector<16x128xf32>
    %174 = arith.addf %169, %173 : vector<16x128xf32>
    %c0_124 = arith.constant 0 : index
    %c0_125 = arith.constant 0 : index
    %175 = vector.load %arg7[%c0_124, %c0_125] : memref<1x128xf32, #tpu.memory_space<vmem>>, vector<1x128xf32>
    %176 = vector.broadcast %175 : vector<1x128xf32> to vector<16x128xf32>
    %177 = arith.addf %174, %176 : vector<16x128xf32>
    %cst_126 = arith.constant 0.000000e+00 : f32
    %178 = vector.broadcast %cst_126 : f32 to vector<16x128xf32>
    %179 = arith.maximumf %177, %178 : vector<16x128xf32>
    %180 = arith.truncf %179 : vector<16x128xf32> to vector<16x128xbf16>
    %c0_127 = arith.constant 0 : index
    %c0_128 = arith.constant 0 : index
    %181 = vector.load %arg8[%c0_127, %c0_128] : memref<128x128xbf16, #tpu.memory_space<vmem>>, vector<128x128xbf16>
    %cst_129 = arith.constant dense<0.000000e+00> : vector<16x128xf32>
    %182 = tpu.matmul %180, %181, %cst_129 {dimension_numbers = #tpu.dot_dimension_numbers<[1], [0], [0], [1], [0, 0, 1, 1], [], []>} : vector<16x128xbf16>, vector<128x128xbf16>, vector<16x128xf32> -> vector<16x128xf32>
    %c0_130 = arith.constant 0 : index
    %c0_131 = arith.constant 0 : index
    %183 = vector.load %arg9[%c0_130, %c0_131] : memref<1x128xf32, #tpu.memory_space<vmem>>, vector<1x128xf32>
    %184 = vector.broadcast %183 : vector<1x128xf32> to vector<16x128xf32>
    %185 = arith.addf %182, %184 : vector<16x128xf32>
    %cst_132 = arith.constant 0.000000e+00 : f32
    %186 = vector.broadcast %cst_132 : f32 to vector<16x128xf32>
    %187 = arith.maximumf %185, %186 : vector<16x128xf32>
    %188 = arith.truncf %187 : vector<16x128xf32> to vector<16x128xbf16>
    %c0_133 = arith.constant 0 : index
    %c0_134 = arith.constant 0 : index
    %189 = vector.load %arg10[%c0_133, %c0_134] : memref<128x128xbf16, #tpu.memory_space<vmem>>, vector<128x128xbf16>
    %cst_135 = arith.constant dense<0.000000e+00> : vector<16x128xf32>
    %190 = tpu.matmul %188, %189, %cst_135 {dimension_numbers = #tpu.dot_dimension_numbers<[1], [0], [0], [1], [0, 0, 1, 1], [], []>} : vector<16x128xbf16>, vector<128x128xbf16>, vector<16x128xf32> -> vector<16x128xf32>
    %c0_136 = arith.constant 0 : index
    %c0_137 = arith.constant 0 : index
    %191 = vector.load %arg11[%c0_136, %c0_137] : memref<1x128xf32, #tpu.memory_space<vmem>>, vector<1x128xf32>
    %192 = vector.broadcast %191 : vector<1x128xf32> to vector<16x128xf32>
    %193 = arith.addf %190, %192 : vector<16x128xf32>
    %c0_138 = arith.constant 0 : index
    %c0_139 = arith.constant 0 : index
    %194 = vector.load %arg12[%c0_138, %c0_139] : memref<16x128xf32, #tpu.memory_space<vmem>>, vector<16x128xf32>
    tpu.vector_store %arg12[%c0_138, %c0_139], %193 {strides = array<i32>} : memref<16x128xf32, #tpu.memory_space<vmem>>, vector<16x128xf32>,
    return
  }
  func.func @transform_0(%arg0: i32) -> (i32, i32, i32, i32) {
    %c0_i32 = arith.constant 0 : i32
    %c0_i32_0 = arith.constant 0 : i32
    %c0_i32_1 = arith.constant 0 : i32
    %c0_i32_2 = arith.constant 0 : i32
    return %c0_i32, %c0_i32_0, %arg0, %c0_i32_1 : i32, i32, i32, i32
  }
  func.func @transform_1(%arg0: i32) -> (i32, i32, i32) {
    %c0_i32 = arith.constant 0 : i32
    %c0_i32_0 = arith.constant 0 : i32
    %c0_i32_1 = arith.constant 0 : i32
    %c0_i32_2 = arith.constant 0 : i32
    return %c0_i32, %c0_i32_0, %c0_i32_1 : i32, i32, i32
  }
  func.func @transform_2(%arg0: i32) -> (i32, i32) {
    %c0_i32 = arith.constant 0 : i32
    %c0_i32_0 = arith.constant 0 : i32
    %c0_i32_1 = arith.constant 0 : i32
    return %c0_i32, %c0_i32_0 : i32, i32
  }
  func.func @transform_3(%arg0: i32) -> (i32, i32, i32, i32) {
    %c0_i32 = arith.constant 0 : i32
    %c0_i32_0 = arith.constant 0 : i32
    %c0_i32_1 = arith.constant 0 : i32
    %c0_i32_2 = arith.constant 0 : i32
    %c0_i32_3 = arith.constant 0 : i32
    return %c0_i32, %c0_i32_0, %c0_i32_1, %c0_i32_2 : i32, i32, i32, i32
  }
  func.func @transform_4(%arg0: i32) -> (i32, i32) {
    %c0_i32 = arith.constant 0 : i32
    %c0_i32_0 = arith.constant 0 : i32
    %c0_i32_1 = arith.constant 0 : i32
    return %c0_i32, %c0_i32_0 : i32, i32
  }
  func.func @transform_5(%arg0: i32) -> (i32, i32) {
    %c0_i32 = arith.constant 0 : i32
    %c0_i32_0 = arith.constant 0 : i32
    %c0_i32_1 = arith.constant 0 : i32
    return %c0_i32, %c0_i32_0 : i32, i32
  }
  func.func @transform_6(%arg0: i32) -> (i32, i32) {
    %c0_i32 = arith.constant 0 : i32
    %c0_i32_0 = arith.constant 0 : i32
    %c0_i32_1 = arith.constant 0 : i32
    return %c0_i32, %c0_i32_0 : i32, i32
  }
  func.func @transform_7(%arg0: i32) -> (i32, i32) {
    %c0_i32 = arith.constant 0 : i32
    %c0_i32_0 = arith.constant 0 : i32
    %c0_i32_1 = arith.constant 0 : i32
    return %c0_i32, %c0_i32_0 : i32, i32
  }
  func.func @transform_8(%arg0: i32) -> (i32, i32) {
    %c0_i32 = arith.constant 0 : i32
    %c0_i32_0 = arith.constant 0 : i32
    %c0_i32_1 = arith.constant 0 : i32
    return %c0_i32, %c0_i32_0 : i32, i32
  }
  func.func @transform_9(%arg0: i32) -> (i32, i32) {
    %c0_i32 = arith.constant 0 : i32
    %c0_i32_0 = arith.constant 0 : i32
    %c0_i32_1 = arith.constant 0 : i32
    return %c0_i32, %c0_i32_0 : i32, i32
  }
  func.func @transform_10(%arg0: i32) -> (i32, i32) {
    %c0_i32 = arith.constant 0 : i32
    %c0_i32_0 = arith.constant 0 : i32
    %c0_i32_1 = arith.constant 0 : i32
    return %c0_i32, %c0_i32_0 : i32, i32
  }
  func.func @transform_11(%arg0: i32) -> (i32, i32) {
    %c0_i32 = arith.constant 0 : i32
    %c0_i32_0 = arith.constant 0 : i32
    return %arg0, %c0_i32 : i32, i32
  }
}

</mosaic_0001>

<bundles_post_ra>
// kernel: tile.13
= control target key start
LH: loop header
LB: loop body
LE: loop exit
PB: predicated region body
PF: predicated region fallthrough
CT: control target
= control target key end

     0   :  { %s28_s0 = inlined_call_operand.vmem [shape: f32[16], index: 0, kind: input, shape index: {}]   ;;  %s29_s1 = inlined_call_operand.vmem [shape: f32[14,16], index: 1, kind: output, shape index: {}]  }
   0x1   :  { %v4_v0 = vld [vmem:[%s28_s0] ss:$0 sm:$0xff] }
   0x2   :  { %5 = vst [vmem:[%s29_s1] sm:$0xff] %v4_v0  ;;  %8 = vst [vmem:[%s29_s1 + $0x8] sm:$0xff] %v4_v0 }

// kernel: tile.14
= control target key start
LH: loop header
LB: loop body
LE: loop exit
PB: predicated region body
PF: predicated region fallthrough
CT: control target
= control target key end

     0   :  { %s19_s8 = smov 3  ;;  %s82_s9 = smov 112   ;;  %vm4_vm0 = vcmask 130048   ;;  %vm10_vm1 = vcmask 1048448   ;;  %vm16_vm2 = vcmask 917248   ;;  %vm23_vm3 = vcmask 786048   ;;  %s129_s0 = inlined_call_operand.vmem [shape: f32[14,16], index: 0, kind: input, shape index: {}]   ;;  %s130_s1 = inlined_call_operand.vmem [shape: f32[1,224], index: 1, kind: output, shape index: {}]  }
   0x1   :  { %v67_v0 = vld [vmem:[%s129_s0 + $0x7] sm:$0x1]   ;;  %v69_v1 = vld [vmem:[%s129_s0 + $0x5] ss:$8 sm:%s19_s8]   ;;  %s83_s12 = smov 80   ;;  %s26_s15 = smov 3 }
   0x2   :  { %8 = vrot.lane.b32.xlu0 %v67_v0, %s82_s9  ;;  %21 = vrot.lane.b32.xlu1 %v69_v1, %s83_s12  ;;  %v68_v2 = vld [vmem:[%s129_s0 + $0x6] sm:$0x1]   ;;  %s33_s18 = smov 3  ;;  %s40_s19 = smov 3  ;;  %vm30_vm4 = vcmask 654848   ;;  %vm37_vm5 = vcmask 523648  }
   0x3   :  { %v70_v3 = vld [vmem:[%s129_s0 + $0x4] ss:$8 sm:%s26_s15]   ;;  %s84_s20 = smov 96   ;;  %s85_s21 = smov 64   ;;  %v71_v4 = vld [vmem:[%s129_s0 + $0x3] ss:$8 sm:%s33_s18]  }
   0x4   :  { %s2_s24 = smov 3  ;;  %v72_v5 = vld [vmem:[%s129_s0 + $0x2] ss:$8 sm:%s40_s19]   ;;  %s47_s27 = smov 3  ;;  %vm44_vm6 = vcmask 392448   ;;  %vm51_vm7 = vcmask 261248  }
   0x5   :  { %v3_v6 = vld [vmem:[%s129_s0] ss:$8 sm:%s2_s24]   ;;  %s86_s30 = smov 48   ;;  %s87_s2 = smov 32   ;;  %v73_v7 = vld [vmem:[%s129_s0 + $0x1] ss:$8 sm:%s47_s27]  }
   0x6   :  { %14 = vrot.lane.b32.xlu0 %v68_v2, %s84_s20  ;;  %28 = vrot.lane.b32.xlu1 %v70_v3, %s85_s21  ;;  %5 = vst.msk [vmem:[#allocation0] ss:$8 sm:$0x3] %vm4_vm0, %v3_v6   ;;  %s88_s0 = smov 16  }
   0xa   :  { %35 = vrot.lane.b32.xlu0 %v71_v4, %s86_s30  ;;  %42 = vrot.lane.b32.xlu1 %v72_v5, %s87_s2 }
   0xe   :  { %49 = vrot.lane.b32.xlu0 %v73_v7, %s88_s0 }
  0x74   :  { %v9_v8 = vpop.permute.xlu0 %8   ;;  %v22_v9 = vpop.permute.xlu1 %21  }
  0x75   :  { %11 = vst.msk [vmem:[#allocation0] sm:$0x1] %vm10_vm1, %v9_v8  }
  0x78   :  { %v15_v10 = vpop.permute.xlu0 %14   ;;  %v29_v11 = vpop.permute.xlu1 %28  }
  0x79   :  { %17 = vst.msk [vmem:[#allocation0] sm:$0x1] %vm16_vm2, %v15_v10  }
  0x7a   :  { %24 = vst.msk [vmem:[#allocation0] ss:$8 sm:$0x3] %vm23_vm3, %v22_v9  }
  0x7b   :  { %31 = vst.msk [vmem:[#allocation0] ss:$8 sm:$0x3] %vm30_vm4, %v29_v11  }
  0x7c   :  { %v36_v12 = vpop.permute.xlu0 %35   ;;  %v43_v13 = vpop.permute.xlu1 %42  }
  0x7d   :  { %38 = vst.msk [vmem:[#allocation0] ss:$8 sm:$0x3] %vm37_vm5, %v36_v12  }
  0x7e   :  { %45 = vst.msk [vmem:[#allocation0] ss:$8 sm:$0x3] %vm44_vm6, %v43_v13  }
  0x80   :  { %v50_v14 = vpop.permute.xlu0 %49  }
  0x81   :  { %52 = vst.msk [vmem:[#allocation0] ss:$8 sm:$0x3] %vm51_vm7, %v50_v14  }
  0x88   :  { %v57_v15 = vld [vmem:[#allocation0] sm:$0x1]  ;;  %v62_v16 = vld [vmem:[#allocation0 + $0x8] sm:$0x1] }
  0x89   :  { %60 = vst [vmem:[%s130_s1] sm:$0x1] %v57_v15  ;;  %74 = vst [vmem:[%s130_s1 + $0x1] sm:$0x1] %v62_v16 }

// kernel: tile.18
= control target key start
LH: loop header
LB: loop body
LE: loop exit
PB: predicated region body
PF: predicated region fallthrough
CT: control target
= control target key end

     0   :  { %s22_s0 = inlined_call_operand.vmem [shape: f32[32], index: 0, kind: input, shape index: {}]   ;;  %s23_s1 = inlined_call_operand.vmem [shape: f32[5,32], index: 1, kind: output, shape index: {}]  }
   0x1   :  { %v4_v0 = vld [vmem:[%s22_s0] ss:$0 sm:$0xff] }
   0x2   :  { %5 = vst [vmem:[%s23_s1] sm:$0xff] %v4_v0 }

// kernel: tile.19
= control target key start
LH: loop header
LB: loop body
LE: loop exit
PB: predicated region body
PF: predicated region fallthrough
CT: control target
= control target key end

     0   :  { %s45_s8 = smov 96   ;;  %s2_s11 = smov 3  ;;  %vm4_vm0 = vcmask 261120   ;;  %vm10_vm1 = vcmask 1048320   ;;  %vm16_vm2 = vcmask 785920   ;;  %vm22_vm3 = vcmask 523520   ;;  %s76_s0 = inlined_call_operand.vmem [shape: f32[5,32], index: 0, kind: input, shape index: {}]   ;;  %s77_s1 = inlined_call_operand.vmem [shape: f32[1,160], index: 1, kind: output, shape index: {}]  }
   0x1   :  { %v38_v0 = vld [vmem:[%s76_s0 + $0x3] sm:$0x1]   ;;  %v40_v1 = vld [vmem:[%s76_s0 + $0x1] sm:$0x1]   ;;  %v39_v2 = vld [vmem:[%s76_s0 + $0x2] sm:$0x1]  }
   0x2   :  { %8 = vrot.lane.b32.xlu0 %v38_v0, %s45_s8  ;;  %s46_s14 = smov 32   ;;  %v3_v3 = vld [vmem:[%s76_s0] ss:$4 sm:%s2_s11]   ;;  %s47_s0 = smov 64  }
   0x3   :  { %20 = vrot.lane.b32.xlu1 %v40_v1, %s46_s14  ;;  %5 = vst.msk [vmem:[#allocation0] ss:$8 sm:$0x3] %vm4_vm0, %v3_v3  }
   0x6   :  { %14 = vrot.lane.b32.xlu0 %v39_v2, %s47_s0 }
   0xa   :  { %v33_v4 = vld [vmem:[#allocation0 + $0x8] sm:$0x1] }
   0xb   :  { %41 = vst [vmem:[%s77_s1 + $0x1] sm:$0x1] %v33_v4 }
  0x74   :  { %v9_v5 = vpop.permute.xlu0 %8  }
  0x75   :  { %11 = vst.msk [vmem:[#allocation0] sm:$0x1] %vm10_vm1, %v9_v5   ;;  %v21_v6 = vpop.permute.xlu1 %20  }
  0x78   :  { %v15_v7 = vpop.permute.xlu0 %14  }
  0x79   :  { %17 = vst.msk [vmem:[#allocation0] sm:$0x1] %vm16_vm2, %v15_v7  }
  0x7a   :  { %23 = vst.msk [vmem:[#allocation0] sm:$0x1] %vm22_vm3, %v21_v6  }
  0x81   :  { %v28_v8 = vld [vmem:[#allocation0] sm:$0x1] }
  0x82   :  { %31 = vst [vmem:[%s77_s1] sm:$0x1] %v28_v8 }

// kernel: convnn_forward.1
= control target key start
LH: loop header
LB: loop body
LE: loop exit
PB: predicated region body
PF: predicated region fallthrough
CT: control target
= control target key end

     0   :  { %vm467_vm0 = vcmask 261120   ;;  %vm1846_vm1 = vcmask 785408   ;;  %vm8095_vm2 = vmmov 0   ;;  %s12441_s1 = inlined_call_operand.vmem [shape: bf16[2,160,224], index: 1, kind: input, shape index: {}]   ;;  %s12442_s0 = inlined_call_operand.vmem [shape: bf16[4,7,16,160], index: 0, kind: input, shape index: {}]   ;;  %s12443_s3 = inlined_call_operand.vmem [shape: bf16[2,5,224,160], index: 3, kind: input, shape index: {}]   ;;  %s12444_s2 = inlined_call_operand.vmem [shape: f32[1,224], index: 2, kind: input, shape index: {}]   ;;  %s12445_s5 = inlined_call_operand.vmem [shape: bf16[800,128], index: 5, kind: input, shape index: {}]   ;;  %s12446_s4 = inlined_call_operand.vmem [shape: f32[1,160], index: 4, kind: input, shape index: {}]   ;;  %s12447_s7 = inlined_call_operand.vmem [shape: bf16[128,128], index: 7, kind: input, shape index: {}]   ;;  %s12448_s9 = inlined_call_operand.vmem [shape: bf16[128,128], index: 9, kind: input, shape index: {}]   ;;  %s12449_s6 = inlined_call_operand.vmem [shape: f32[1,128], index: 6, kind: input, shape index: {}]   ;;  %s12450_s8 = inlined_call_operand.vmem [shape: f32[1,128], index: 8, kind: input, shape index: {}]   ;;  %s12451_s10 = inlined_call_operand.vmem [shape: f32[1,128], index: 10, kind: input, shape index: {}]   ;;  %s12452_s11 = inlined_call_operand.vmem [shape: f32[16,128], index: 11, kind: output, shape index: {}]  }
   0x1   :  { %v7183_v0 = vld [vmem:[%s12441_s1 + $0x74] ss:$8 sps:$4 sm:$0xff]   ;;  %v7187_v2 = vld [vmem:[%s12441_s1 + $0x70] ss:$8 sps:$4 sm:$0xff]   ;;  %v7189_v4 = vld [vmem:[%s12441_s1 + $0x64] ss:$8 sps:$4 sm:$0xff]  }
   0x2   :  { %v7185_v1 = vld [vmem:[%s12441_s1 + $0x114] ss:$8 sps:$4 sm:$0xff]   ;;  %552 = vmatprep.subr.bf16.mxu0 %v7183_v0  ;;  %v7188_v3 = vld [vmem:[%s12441_s1 + $0x110] ss:$8 sps:$4 sm:$0xff]   ;;  %v7191_v5 = vld [vmem:[%s12441_s1 + $0x104] ss:$8 sps:$4 sm:$0xff]  }
   0x3   :  { %986 = vmatprep.subr.bf16.mxu1 %v7185_v1  ;;  %553 = vmatpush1.bf16.msra.mxu0 %v7187_v2  ;;  %v7193_v6 = vld [vmem:[%s12441_s1 + $0x60] ss:$8 sps:$4 sm:$0xff]   ;;  %v7195_v8 = vld [vmem:[%s12441_s1 + $0x54] ss:$8 sps:$4 sm:$0xff]   ;;  %v7199_v10 = vld [vmem:[%s12441_s1 + $0x50] ss:$8 sps:$4 sm:$0xff]  }
   0x4   :  { %987 = vmatpush1.bf16.msra.mxu1 %v7188_v3  ;;  %554 = vmatprep.subr.bf16.mxu0 %v7189_v4  ;;  %v7194_v7 = vld [vmem:[%s12441_s1 + $0x100] ss:$8 sps:$4 sm:$0xff]   ;;  %v7197_v9 = vld [vmem:[%s12441_s1 + $0xf4] ss:$8 sps:$4 sm:$0xff]   ;;  %v7200_v11 = vld [vmem:[%s12441_s1 + $0xf0] ss:$8 sps:$4 sm:$0xff]  }
   0x5   :  { %988 = vmatprep.subr.bf16.mxu1 %v7191_v5  ;;  %v7201_v12 = vld [vmem:[%s12441_s1 + $0x44] ss:$8 sps:$4 sm:$0xff]   ;;  %v7205_v14 = vld [vmem:[%s12441_s1 + $0x40] ss:$8 sps:$4 sm:$0xff]   ;;  %v7207_v16 = vld [vmem:[%s12441_s1 + $0x34] ss:$8 sps:$4 sm:$0xff]  }
   0x6   :  { %v7203_v13 = vld [vmem:[%s12441_s1 + $0xe4] ss:$8 sps:$4 sm:$0xff]   ;;  %v7206_v15 = vld [vmem:[%s12441_s1 + $0xe0] ss:$8 sps:$4 sm:$0xff]   ;;  %v7209_v17 = vld [vmem:[%s12441_s1 + $0xd4] ss:$8 sps:$4 sm:$0xff]  }
   0x7   :  { %555 = vmatpush1.bf16.msra.mxu0 %v7193_v6  ;;  %v7211_v18 = vld [vmem:[%s12441_s1 + $0x30] ss:$8 sps:$4 sm:$0xff]   ;;  %v7213_v20 = vld [vmem:[%s12441_s1 + $0x24] ss:$8 sps:$4 sm:$0xff]   ;;  %v7217_v22 = vld [vmem:[%s12441_s1 + $0x20] ss:$8 sps:$4 sm:$0xff]  }
   0x8   :  { %989 = vmatpush1.bf16.msra.mxu1 %v7194_v7  ;;  %556 = vmatprep.subr.bf16.mxu0 %v7195_v8  ;;  %v7212_v19 = vld [vmem:[%s12441_s1 + $0xd0] ss:$8 sps:$4 sm:$0xff]   ;;  %v7215_v21 = vld [vmem:[%s12441_s1 + $0xc4] ss:$8 sps:$4 sm:$0xff]   ;;  %v7218_v23 = vld [vmem:[%s12441_s1 + $0xc0] ss:$8 sps:$4 sm:$0xff]  }
   0x9   :  { %990 = vmatprep.subr.bf16.mxu1 %v7197_v9  ;;  %v7219_v24 = vld [vmem:[%s12441_s1 + $0x14] ss:$8 sps:$4 sm:$0xff]   ;;  %v7223_v26 = vld [vmem:[%s12441_s1 + $0x10] ss:$8 sps:$4 sm:$0xff]   ;;  %v7225_v28 = vld [vmem:[%s12441_s1 + $0x4] ss:$8 sps:$4 sm:$0xff]  }
   0xa   :  { %v7221_v25 = vld [vmem:[%s12441_s1 + $0xb4] ss:$8 sps:$4 sm:$0xff]   ;;  %v7224_v27 = vld [vmem:[%s12441_s1 + $0xb0] ss:$8 sps:$4 sm:$0xff]   ;;  %v7227_v29 = vld [vmem:[%s12441_s1 + $0xa4] ss:$8 sps:$4 sm:$0xff]  }
   0xb   :  { %557 = vmatpush1.bf16.msra.mxu0 %v7199_v10  ;;  %v7229_v30 = vld [vmem:[%s12441_s1] ss:$8 sps:$4 sm:$0xff]   ;;  %v7245_v32 = vld [vmem:[%s12442_s0 + $0x4] ss:$8 sps:$4 sm:$0xff]   ;;  %v7231_v33 = vld [vmem:[%s12441_s1 + $0x94] ss:$8 sps:$4 sm:$0xff]  }
   0xc   :  { %991 = vmatpush1.bf16.msra.mxu1 %v7200_v11  ;;  %558 = vmatprep.subr.bf16.mxu0 %v7201_v12  ;;  %v7230_v31 = vld [vmem:[%s12441_s1 + $0xa0] ss:$8 sps:$4 sm:$0xff]   ;;  %v7233_v34 = vld [vmem:[%s12441_s1 + $0x134] ss:$8 sps:$4 sm:$0xff]   ;;  %v7235_v35 = vld [vmem:[%s12441_s1 + $0x90] ss:$8 sps:$4 sm:$0xff]  }
   0xd   :  { %992 = vmatprep.subr.bf16.mxu1 %v7203_v13  ;;  %6320 = vmatprep.mubr.msk.bf16.mxu0 %vm467_vm0, %v7245_v32  ;;  %v7236_v36 = vld [vmem:[%s12441_s1 + $0x130] ss:$8 sps:$4 sm:$0xff]   ;;  %v7237_v37 = vld [vmem:[%s12441_s1 + $0x84] ss:$8 sps:$4 sm:$0xff]   ;;  %v7241_v39 = vld [vmem:[%s12441_s1 + $0x80] ss:$8 sps:$4 sm:$0xff]  }
   0xe   :  { %6388 = vmatprep.mubr.msk.bf16.mxu1 %vm467_vm0, %v7245_v32  ;;  %v7239_v38 = vld [vmem:[%s12441_s1 + $0x124] ss:$8 sps:$4 sm:$0xff]   ;;  %v7242_v40 = vld [vmem:[%s12441_s1 + $0x120] ss:$8 sps:$4 sm:$0xff]   ;;  %v7246_v42 = vld [vmem:[%s12442_s0 + $0x14] ss:$8 sps:$4 sm:$0xff]  }
   0xf   :  { %559 = vmatpush1.bf16.msra.mxu0 %v7205_v14  ;;  %v7243_v41 = vld [vmem:[%s12442_s0] ss:$8 sps:$4 sm:$0xff]   ;;  %v7248_v43 = vld [vmem:[%s12442_s0 + $0x10] ss:$8 sps:$4 sm:$0xff]   ;;  %v7249_v44 = vld [vmem:[%s12442_s0 + $0x24] ss:$8 sps:$4 sm:$0xff]  }
  0x10   :  { %993 = vmatpush1.bf16.msra.mxu1 %v7206_v15  ;;  %560 = vmatprep.subr.bf16.mxu0 %v7207_v16  ;;  %v7251_v45 = vld [vmem:[%s12442_s0 + $0x20] ss:$8 sps:$4 sm:$0xff]   ;;  %v7252_v46 = vld [vmem:[%s12442_s0 + $0x34] ss:$8 sps:$4 sm:$0xff]   ;;  %v7254_v47 = vld [vmem:[%s12442_s0 + $0x30] ss:$8 sps:$4 sm:$0xff]  }
  0x11   :  { %994 = vmatprep.subr.bf16.mxu1 %v7209_v17  ;;  %v7255_v48 = vld [vmem:[%s12442_s0 + $0x44] ss:$8 sps:$4 sm:$0xff]   ;;  %v7303_v49 = vld [vmem:[%s12443_s3 + $0x150] ss:$8 sps:$4 sm:$0xff]   ;;  %v7257_v50 = vld [vmem:[%s12442_s0 + $0x40] ss:$8 sps:$4 sm:$0xff]  }
  0x12   :  { %v7305_v51 = vld [vmem:[%s12443_s3 + $0x154] ss:$8 sps:$4 sm:$0xff]   ;;  %v7306_v53 = vld [vmem:[%s12443_s3 + $0x70] ss:$8 sps:$4 sm:$0xff]   ;;  %v7261_v56 = vld [vmem:[%s12442_s0 + $0x64] ss:$8 sps:$4 sm:$0xff]  }
  0x13   :  { %561 = vmatpush1.bf16.msra.mxu0 %v7211_v18  ;;  %v7258_v52 = vld [vmem:[%s12442_s0 + $0x54] ss:$8 sps:$4 sm:$0xff]   ;;  %v7260_v55 = vld [vmem:[%s12442_s0 + $0x50] ss:$8 sps:$4 sm:$0xff]   ;;  %v7315_v57 = vld [vmem:[%s12443_s3 + $0x140] ss:$8 sps:$4 sm:$0xff]  }
  0x14   :  { %995 = vmatpush1.bf16.msra.mxu1 %v7212_v19  ;;  %562 = vmatprep.subr.bf16.mxu0 %v7213_v20  ;;  %v7308_v54 = vld [vmem:[%s12443_s3 + $0x74] ss:$8 sps:$4 sm:$0xff]   ;;  %v7317_v58 = vld [vmem:[%s12443_s3 + $0x144] ss:$8 sps:$4 sm:$0xff]   ;;  %v7318_v59 = vld [vmem:[%s12443_s3 + $0x60] ss:$8 sps:$4 sm:$0xff]  }
  0x15   :  { %996 = vmatprep.subr.bf16.mxu1 %v7215_v21  ;;  %v7320_v60 = vld [vmem:[%s12443_s3 + $0x64] ss:$8 sps:$4 sm:$0xff]   ;;  %v7263_v61 = vld [vmem:[%s12442_s0 + $0x60] ss:$8 sps:$4 sm:$0xff]   ;;  %v7264_v62 = vld [vmem:[%s12442_s0 + $0x74] ss:$8 sps:$4 sm:$0xff]  }
  0x16   :  { %v7266_v63 = vld [vmem:[%s12442_s0 + $0x70] ss:$8 sps:$4 sm:$0xff]   ;;  %v7267_v0 = vld [vmem:[%s12442_s0 + $0x84] ss:$8 sps:$4 sm:$0xff]   ;;  %v7329_v2 = vld [vmem:[%s12443_s3 + $0x134] ss:$8 sps:$4 sm:$0xff]  }
  0x17   :  { %563 = vmatpush1.bf16.msra.mxu0 %v7217_v22  ;;  %v7327_v1 = vld [vmem:[%s12443_s3 + $0x130] ss:$8 sps:$4 sm:$0xff]   ;;  %v7332_v4 = vld [vmem:[%s12443_s3 + $0x54] ss:$8 sps:$4 sm:$0xff]   ;;  %v7269_v5 = vld [vmem:[%s12442_s0 + $0x80] ss:$8 sps:$4 sm:$0xff]  }
  0x18   :  { %997 = vmatpush1.bf16.msra.mxu1 %v7218_v23  ;;  %564 = vmatprep.subr.bf16.mxu0 %v7219_v24  ;;  %v7330_v3 = vld [vmem:[%s12443_s3 + $0x50] ss:$8 sps:$4 sm:$0xff]   ;;  %v7270_v6 = vld [vmem:[%s12442_s0 + $0x94] ss:$8 sps:$4 sm:$0xff]   ;;  %v7273_v8 = vld [vmem:[%s12442_s0 + $0xa4] ss:$8 sps:$4 sm:$0xff]  }
  0x19   :  { %998 = vmatprep.subr.bf16.mxu1 %v7221_v25  ;;  %v7272_v7 = vld [vmem:[%s12442_s0 + $0x90] ss:$8 sps:$4 sm:$0xff]   ;;  %v7339_v9 = vld [vmem:[%s12443_s3 + $0x120] ss:$8 sps:$4 sm:$0xff]   ;;  %v7341_v10 = vld [vmem:[%s12443_s3 + $0x124] ss:$8 sps:$4 sm:$0xff]  }
  0x1a   :  { %v7275_v11 = vld [vmem:[%s12442_s0 + $0xa0] ss:$8 sps:$4 sm:$0xff]   ;;  %v7344_v13 = vld [vmem:[%s12443_s3 + $0x44] ss:$8 sps:$4 sm:$0xff]   ;;  %v7276_v14 = vld [vmem:[%s12442_s0 + $0xb4] ss:$8 sps:$4 sm:$0xff]  }
  0x1b   :  { %565 = vmatpush1.bf16.msra.mxu0 %v7223_v26  ;;  %v7342_v12 = vld [vmem:[%s12443_s3 + $0x40] ss:$8 sps:$4 sm:$0xff]   ;;  %v7278_v15 = vld [vmem:[%s12442_s0 + $0xb0] ss:$8 sps:$4 sm:$0xff]   ;;  %v7279_v16 = vld [vmem:[%s12442_s0 + $0xc4] ss:$8 sps:$4 sm:$0xff]  }
  0x1c   :  { %999 = vmatpush1.bf16.msra.mxu1 %v7224_v27  ;;  %566 = vmatprep.subr.bf16.mxu0 %v7225_v28  ;;  %v7351_v17 = vld [vmem:[%s12443_s3 + $0x110] ss:$8 sps:$4 sm:$0xff]   ;;  %v7353_v18 = vld [vmem:[%s12443_s3 + $0x114] ss:$8 sps:$4 sm:$0xff]   ;;  %v7281_v19 = vld [vmem:[%s12442_s0 + $0xc0] ss:$8 sps:$4 sm:$0xff]  }
  0x1d   :  { %1000 = vmatprep.subr.bf16.mxu1 %v7227_v29  ;;  %v7354_v20 = vld [vmem:[%s12443_s3 + $0x30] ss:$8 sps:$4 sm:$0xff]   ;;  %v7356_v21 = vld [vmem:[%s12443_s3 + $0x34] ss:$8 sps:$4 sm:$0xff]   ;;  %v7285_v24 = vld [vmem:[%s12442_s0 + $0xe4] ss:$8 sps:$4 sm:$0xff]  }
  0x1e   :  { %v7282_v22 = vld [vmem:[%s12442_s0 + $0xd4] ss:$8 sps:$4 sm:$0xff]   ;;  %v7284_v23 = vld [vmem:[%s12442_s0 + $0xd0] ss:$8 sps:$4 sm:$0xff]   ;;  %v7359_v25 = vld [vmem:[%s12443_s3 + $0x24] ss:$8 sps:$4 sm:$0xff]  }
  0x1f   :  { %567 = vmatpush1.bf16.msra.mxu0 %v7229_v30  ;;  %v7357_v26 = vld [vmem:[%s12443_s3 + $0x20] ss:$8 sps:$4 sm:$0xff]   ;;  %v7365_v27 = vld [vmem:[%s12443_s3 + $0x14] ss:$8 sps:$4 sm:$0xff]   ;;  %v7362_v29 = vld [vmem:[%s12443_s3 + $0x104] ss:$8 sps:$4 sm:$0xff]  }
  0x20   :  { %1001 = vmatpush1.bf16.msra.mxu1 %v7230_v31  ;;  %580 = vmatprep.subr.bf16.mxu0 %v7231_v33  ;;  %v7360_v28 = vld [vmem:[%s12443_s3 + $0x100] ss:$8 sps:$4 sm:$0xff]   ;;  %v7363_v30 = vld [vmem:[%s12443_s3 + $0x10] ss:$8 sps:$4 sm:$0xff]   ;;  %v7288_v32 = vld [vmem:[%s12442_s0 + $0xf4] ss:$8 sps:$4 sm:$0xff]  }
  0x21   :  { %1014 = vmatprep.subr.bf16.mxu1 %v7233_v34  ;;  %v7287_v31 = vld [vmem:[%s12442_s0 + $0xe0] ss:$8 sps:$4 sm:$0xff]   ;;  %v7368_v33 = vld [vmem:[%s12443_s3 + $0x4] ss:$8 sps:$4 sm:$0xff]  }
  0x22   :  { %v7366_v34 = vld [vmem:[%s12443_s3] ss:$8 sps:$4 sm:$0xff]  }
  0x23   :  { %581 = vmatpush2.bf16.msra.mxu0 %v7235_v35  ;;  %v7371_v35 = vld [vmem:[%s12443_s3 + $0xd4] ss:$8 sps:$4 sm:$0xff]  }
  0x24   :  { %1015 = vmatpush2.bf16.msra.mxu1 %v7236_v36  ;;  %582 = vmatprep.subr.bf16.mxu0 %v7237_v37  ;;  %v7369_v36 = vld [vmem:[%s12443_s3 + $0xd0] ss:$8 sps:$4 sm:$0xff]  }
  0x25   :  { %1016 = vmatprep.subr.bf16.mxu1 %v7239_v38  ;;  %v7290_v37 = vld [vmem:[%s12442_s0 + $0xf0] ss:$8 sps:$4 sm:$0xff]   ;;  %v7291_v38 = vld [vmem:[%s12442_s0 + $0x104] ss:$8 sps:$4 sm:$0xff]  }
  0x27   :  { %583 = vmatpush2.bf16.msra.mxu0 %v7241_v39  ;;  %v7374_v39 = vld [vmem:[%s12443_s3 + $0xc4] ss:$8 sps:$4 sm:$0xff]  }
  0x28   :  { %1017 = vmatpush2.bf16.msra.mxu1 %v7242_v40  ;;  %1862 = vmatprep.subr.bf16.mxu0 %v7305_v51  ;;  %v7372_v40 = vld [vmem:[%s12443_s3 + $0xc0] ss:$8 sps:$4 sm:$0xff]   ;;  %v7296_v51 = vld [vmem:[%s12442_s0 + $0x110] ss:$8 sps:$4 sm:$0xff]  }
  0x29   :  { %2100 = vmatprep.subr.bf16.mxu1 %v7308_v54  ;;  %v7387_v54 = vld [vmem:[%s12443_s3 + $0x80] ss:$8 sps:$4 sm:$0xff]  }
  0x2a   :  { %585 = vmatmul.mubr.bf16.vlgmr.msra.gmra.mxu0 %v7243_v41 }
  0x2b   :  { %1019 = vmatmul.mubr.bf16.vlgmr.msra.gmra.mxu1 %v7243_v41  ;;  %6321 = vmatprep.mubr.msk.bf16.mxu0 %vm467_vm0, %v7246_v42  ;;  %v7380_v41 = vld [vmem:[%s12443_s3 + $0xb4] ss:$8 sps:$4 sm:$0xff]  }
  0x2c   :  { %6389 = vmatprep.mubr.msk.bf16.mxu1 %vm467_vm0, %v7246_v42  ;;  %1863 = vmatpush1.bf16.msra.mxu0 %v7303_v49  ;;  %v7378_v42 = vld [vmem:[%s12443_s3 + $0xb0] ss:$8 sps:$4 sm:$0xff]   ;;  %v7386_v49 = vld [vmem:[%s12443_s3 + $0x94] ss:$8 sps:$4 sm:$0xff]  }
  0x2d   :  { %2101 = vmatpush1.bf16.msra.mxu1 %v7306_v53  ;;  %1864 = vmatprep.subr.bf16.mxu0 %v7317_v58  ;;  %v7389_v53 = vld [vmem:[%s12443_s3 + $0x84] ss:$8 sps:$4 sm:$0xff]   ;;  %v7390_v58 = vld [vmem:[%s12443_s3 + $0xe0] ss:$8 sps:$4 sm:$0xff]  }
  0x2e   :  { %2102 = vmatprep.subr.bf16.mxu1 %v7320_v60  ;;  %v7302_v60 = vld [vmem:[%s12442_s0 + $0x130] ss:$8 sps:$4 sm:$0xff]  }
  0x30   :  { %1865 = vmatpush1.bf16.msra.mxu0 %v7315_v57  ;;  %v7300_v57 = vld [vmem:[%s12442_s0 + $0x134] ss:$8 sps:$4 sm:$0xff]  }
  0x31   :  { %2103 = vmatpush1.bf16.msra.mxu1 %v7318_v59  ;;  %1866 = vmatprep.subr.bf16.mxu0 %v7329_v2  ;;  %v7392_v59 = vld [vmem:[%s12443_s3 + $0xe4] ss:$8 sps:$4 sm:$0xff]   ;;  %v7314_v2 = vld [vmem:[%s12442_s0 + $0x150] ss:$8 sps:$4 sm:$0xff]  }
  0x32   :  { %595 = vmatmul.mubr.bf16.gmra.mxu0 %v7248_v43  ;;  %2104 = vmatprep.subr.bf16.mxu1 %v7332_v4  ;;  %v7323_v4 = vld [vmem:[%s12442_s0 + $0x160] ss:$8 sps:$4 sm:$0xff]  }
  0x33   :  { %1029 = vmatmul.mubr.bf16.gmra.mxu1 %v7248_v43  ;;  %6322 = vmatprep.mubr.msk.bf16.mxu0 %vm467_vm0, %v7249_v44  ;;  %v7293_v43 = vld [vmem:[%s12442_s0 + $0x100] ss:$8 sps:$4 sm:$0xff]  }
  0x34   :  { %6390 = vmatprep.mubr.msk.bf16.mxu1 %vm467_vm0, %v7249_v44  ;;  %1867 = vmatpush1.bf16.msra.mxu0 %v7327_v1  ;;  %v7294_v44 = vld [vmem:[%s12442_s0 + $0x114] ss:$8 sps:$4 sm:$0xff]  }
  0x35   :  { %2105 = vmatpush1.bf16.msra.mxu1 %v7330_v3  ;;  %1868 = vmatprep.subr.bf16.mxu0 %v7341_v10  ;;  %v7407_v1 = vld [vmem:[%s12443_s3 + $0x1b4] ss:$8 sps:$4 sm:$0xff]   ;;  %v7321_v3 = vld [vmem:[%s12442_s0 + $0x164] ss:$8 sps:$4 sm:$0xff]   ;;  %v7435_v10 = vld [vmem:[%s12443_s3 + $0x190] ss:$8 sps:$4 sm:$0xff]  }
  0x36   :  { %2106 = vmatprep.subr.bf16.mxu1 %v7344_v13  ;;  %v7336_v13 = vld [vmem:[%s12442_s0 + $0x194] ss:$8 sps:$4 sm:$0xff]  }
  0x38   :  { %1869 = vmatpush1.bf16.msra.mxu0 %v7339_v9  ;;  %v7333_v9 = vld [vmem:[%s12442_s0 + $0x184] ss:$8 sps:$4 sm:$0xff]  }
  0x39   :  { %2107 = vmatpush1.bf16.msra.mxu1 %v7342_v12  ;;  %1870 = vmatprep.subr.bf16.mxu0 %v7353_v18  ;;  %v7335_v12 = vld [vmem:[%s12442_s0 + $0x180] ss:$8 sps:$4 sm:$0xff]  }
  0x3a   :  { %605 = vmatmul.mubr.bf16.gmra.mxu0 %v7251_v45  ;;  %2108 = vmatprep.subr.bf16.mxu1 %v7356_v21  ;;  %v7345_v21 = vld [vmem:[%s12442_s0 + $0x1a4] ss:$8 sps:$4 sm:$0xff]  }
  0x3b   :  { %1039 = vmatmul.mubr.bf16.gmra.mxu1 %v7251_v45  ;;  %6323 = vmatprep.mubr.msk.bf16.mxu0 %vm467_vm0, %v7252_v46  ;;  %v7383_v45 = vld [vmem:[%s12443_s3 + $0xa4] ss:$8 sps:$4 sm:$0xff]  }
  0x3c   :  { %6391 = vmatprep.mubr.msk.bf16.mxu1 %vm467_vm0, %v7252_v46  ;;  %1871 = vmatpush1.bf16.msra.mxu0 %v7351_v17  ;;  %v7381_v46 = vld [vmem:[%s12443_s3 + $0xa0] ss:$8 sps:$4 sm:$0xff]  }
  0x3d   :  { %2109 = vmatpush1.bf16.msra.mxu1 %v7354_v20  ;;  %1872 = vmatprep.subr.bf16.mxu0 %v7362_v29  ;;  %v7338_v20 = vld [vmem:[%s12442_s0 + $0x190] ss:$8 sps:$4 sm:$0xff]  }
  0x3e   :  { %2110 = vmatprep.subr.bf16.mxu1 %v7359_v25 }
  0x40   :  { %1873 = vmatpush1.bf16.msra.mxu0 %v7360_v28 }
  0x41   :  { %2111 = vmatpush1.bf16.msra.mxu1 %v7357_v26  ;;  %v7450_v26 = vld [vmem:[%s12443_s3 + $0x180] ss:$8 sps:$4 sm:$0xff]  }
  0x42   :  { %615 = vmatmul.mubr.bf16.gmra.mxu0 %v7254_v47  ;;  %2112 = vmatprep.subr.bf16.mxu1 %v7365_v27  ;;  %v7452_v27 = vld [vmem:[%s12443_s3 + $0x184] ss:$8 sps:$4 sm:$0xff]  }
  0x43   :  { %1049 = vmatmul.mubr.bf16.gmra.mxu1 %v7254_v47  ;;  %6324 = vmatprep.mubr.msk.bf16.mxu0 %vm467_vm0, %v7255_v48  ;;  %v7375_v47 = vld [vmem:[%s12443_s3 + $0xf0] ss:$8 sps:$4 sm:$0xff]  }
  0x44   :  { %6392 = vmatprep.mubr.msk.bf16.mxu1 %vm467_vm0, %v7255_v48  ;;  %v7377_v48 = vld [vmem:[%s12443_s3 + $0xf4] ss:$8 sps:$4 sm:$0xff]  }
  0x45   :  { %2113 = vmatpush1.bf16.msra.mxu1 %v7363_v30  ;;  %1874 = vmatprep.subr.bf16.mxu0 %v7377_v48  ;;  %v7467_v48 = vld [vmem:[%s12443_s3 + $0x174] ss:$8 sps:$4 sm:$0xff]  }
  0x46   :  { %2114 = vmatprep.subr.bf16.mxu1 %v7368_v33  ;;  %1875 = vmatpush1.bf16.msra.mxu0 %v7375_v47  ;;  %v7348_v33 = vld [vmem:[%s12442_s0 + $0x1b4] ss:$8 sps:$4 sm:$0xff]   ;;  %v7465_v47 = vld [vmem:[%s12443_s3 + $0x170] ss:$8 sps:$4 sm:$0xff]  }
  0x47   :  { %1876 = vmatprep.subr.bf16.mxu0 %v7392_v59 }
  0x49   :  { %2115 = vmatpush1.bf16.msra.mxu1 %v7366_v34 }
  0x4a   :  { %625 = vmatmul.mubr.bf16.gmra.mxu0 %v7257_v50  ;;  %2120 = vmatprep.subr.bf16.mxu1 %v7371_v35 }
  0x4b   :  { %1059 = vmatmul.mubr.bf16.gmra.mxu1 %v7257_v50  ;;  %6325 = vmatprep.mubr.msk.bf16.mxu0 %vm467_vm0, %v7258_v52  ;;  %v7384_v50 = vld [vmem:[%s12443_s3 + $0x90] ss:$8 sps:$4 sm:$0xff]  }
  0x4c   :  { %6393 = vmatprep.mubr.msk.bf16.mxu1 %vm467_vm0, %v7258_v52  ;;  %v7297_v52 = vld [vmem:[%s12442_s0 + $0x124] ss:$8 sps:$4 sm:$0xff]   ;;  %1877 = vmatpush1.bf16.msra.mxu0 %v7390_v58 }
  0x4d   :  { %2121 = vmatpush2.bf16.msra.mxu1 %v7369_v36  ;;  %1882 = vmatprep.subr.bf16.mxu0 %v7407_v1 }
  0x4e   :  { %2122 = vmatprep.subr.bf16.mxu1 %v7374_v39 }
  0x51   :  { %2123 = vmatpush2.bf16.msra.mxu1 %v7372_v40 }
  0x52   :  { %635 = vmatmul.mubr.bf16.gmra.mxu0 %v7260_v55  ;;  %2124 = vmatprep.subr.bf16.mxu1 %v7380_v41 }
  0x53   :  { %1069 = vmatmul.mubr.bf16.gmra.mxu1 %v7260_v55  ;;  %6326 = vmatprep.mubr.msk.bf16.mxu0 %vm467_vm0, %v7261_v56  ;;  %v7395_v55 = vld [vmem:[%s12443_s3 + $0x4d4] ss:$8 sps:$4 sm:$0xff]  }
  0x54   :  { %6394 = vmatprep.mubr.msk.bf16.mxu1 %vm467_vm0, %v7261_v56  ;;  %v7299_v56 = vld [vmem:[%s12442_s0 + $0x120] ss:$8 sps:$4 sm:$0xff]  }
  0x55   :  { %2125 = vmatpush2.bf16.msra.mxu1 %v7378_v42  ;;  %v7350_v42 = vld [vmem:[%s12442_s0 + $0x1b0] ss:$8 sps:$4 sm:$0xff]  }
  0x56   :  { %2126 = vmatprep.subr.bf16.mxu1 %v7383_v45 }
  0x59   :  { %2127 = vmatpush2.bf16.msra.mxu1 %v7381_v46 }
  0x5a   :  { %645 = vmatmul.mubr.bf16.gmra.mxu0 %v7263_v61  ;;  %2128 = vmatprep.subr.bf16.mxu1 %v7386_v49 }
  0x5b   :  { %1079 = vmatmul.mubr.bf16.gmra.mxu1 %v7263_v61  ;;  %6327 = vmatprep.mubr.msk.bf16.mxu0 %vm467_vm0, %v7264_v62  ;;  %v7309_v61 = vld [vmem:[%s12442_s0 + $0x144] ss:$8 sps:$4 sm:$0xff]  }
  0x5c   :  { %6395 = vmatprep.mubr.msk.bf16.mxu1 %vm467_vm0, %v7264_v62  ;;  %v7311_v62 = vld [vmem:[%s12442_s0 + $0x140] ss:$8 sps:$4 sm:$0xff]  }
  0x5d   :  { %2129 = vmatpush2.bf16.msra.mxu1 %v7384_v50 }
  0x5e   :  { %2130 = vmatprep.subr.bf16.mxu1 %v7389_v53 }
  0x61   :  { %2131 = vmatpush2.bf16.msra.mxu1 %v7387_v54 }
  0x62   :  { %655 = vmatmul.mubr.bf16.gmra.mxu0 %v7266_v63  ;;  %2575 = vmatprep.subr.bf16.mxu1 %v7395_v55 }
  0x63   :  { %1089 = vmatmul.mubr.bf16.gmra.mxu1 %v7266_v63  ;;  %6328 = vmatprep.mubr.msk.bf16.mxu0 %vm467_vm0, %v7267_v0  ;;  %v7312_v63 = vld [vmem:[%s12442_s0 + $0x154] ss:$8 sps:$4 sm:$0xff]  }
  0x64   :  { %6396 = vmatprep.mubr.msk.bf16.mxu1 %vm467_vm0, %v7267_v0  ;;  %v7405_v0 = vld [vmem:[%s12443_s3 + $0x1b0] ss:$8 sps:$4 sm:$0xff]  }
  0x65   :  { %1883 = vmatpush2.bf16.msra.mxu0 %v7405_v0 }
  0x6a   :  { %665 = vmatmul.mubr.bf16.gmra.mxu0 %v7269_v5 }
  0x6b   :  { %1099 = vmatmul.mubr.bf16.gmra.mxu1 %v7269_v5  ;;  %6329 = vmatprep.mubr.msk.bf16.mxu0 %vm467_vm0, %v7270_v6  ;;  %v7324_v5 = vld [vmem:[%s12442_s0 + $0x174] ss:$8 sps:$4 sm:$0xff]  }
  0x6c   :  { %6397 = vmatprep.mubr.msk.bf16.mxu1 %vm467_vm0, %v7270_v6  ;;  %v7420_v6 = vld [vmem:[%s12443_s3 + $0x1a0] ss:$8 sps:$4 sm:$0xff]  }
  0x72   :  { %675 = vmatmul.mubr.bf16.gmra.mxu0 %v7272_v7 }
  0x73   :  { %1109 = vmatmul.mubr.bf16.gmra.mxu1 %v7272_v7  ;;  %6330 = vmatprep.mubr.msk.bf16.mxu0 %vm467_vm0, %v7273_v8  ;;  %v7422_v7 = vld [vmem:[%s12443_s3 + $0x1a4] ss:$8 sps:$4 sm:$0xff]  }
  0x74   :  { %6398 = vmatprep.mubr.msk.bf16.mxu1 %vm467_vm0, %v7273_v8  ;;  %1884 = vmatprep.subr.bf16.mxu0 %v7422_v7  ;;  %v7326_v8 = vld [vmem:[%s12442_s0 + $0x170] ss:$8 sps:$4 sm:$0xff]   ;;  %v7480_v7 = vld [vmem:[%s12443_s3 + $0x160] ss:$8 sps:$4 sm:$0xff]  }
  0x75   :  { %1885 = vmatpush2.bf16.msra.mxu0 %v7420_v6 }
  0x7a   :  { %685 = vmatmul.mubr.bf16.gmra.mxu0 %v7275_v11 }
  0x7b   :  { %1119 = vmatmul.mubr.bf16.gmra.mxu1 %v7275_v11  ;;  %6331 = vmatprep.mubr.msk.bf16.mxu0 %vm467_vm0, %v7276_v14  ;;  %v7437_v11 = vld [vmem:[%s12443_s3 + $0x194] ss:$8 sps:$4 sm:$0xff]  }
  0x7c   :  { %6399 = vmatprep.mubr.msk.bf16.mxu1 %vm467_vm0, %v7276_v14  ;;  %1886 = vmatprep.subr.bf16.mxu0 %v7437_v11 }
  0x7d   :  { %1887 = vmatpush2.bf16.msra.mxu0 %v7435_v10 }
  0x7e   :  { %1888 = vmatprep.subr.bf16.mxu0 %v7452_v27 }
  0x81   :  { %1889 = vmatpush2.bf16.msra.mxu0 %v7450_v26 }
  0x82   :  { %695 = vmatmul.mubr.bf16.gmra.mxu0 %v7278_v15  ;;  %1890 = vmatprep.subr.bf16.mxu0 %v7467_v48 }
  0x83   :  { %1129 = vmatmul.mubr.bf16.gmra.mxu1 %v7278_v15  ;;  %6332 = vmatprep.mubr.msk.bf16.mxu0 %vm467_vm0, %v7279_v16 }
  0x84   :  { %6400 = vmatprep.mubr.msk.bf16.mxu1 %vm467_vm0, %v7279_v16 }
  0x85   :  { %1891 = vmatpush2.bf16.msra.mxu0 %v7465_v47 }
  0x8a   :  { %705 = vmatmul.mubr.bf16.gmra.mxu0 %v7281_v19 }
  0x8b   :  { %1139 = vmatmul.mubr.bf16.gmra.mxu1 %v7281_v19  ;;  %6333 = vmatprep.mubr.msk.bf16.mxu0 %vm467_vm0, %v7282_v22 }
  0x8c   :  { %6401 = vmatprep.mubr.msk.bf16.mxu1 %vm467_vm0, %v7282_v22 }
  0x92   :  { %715 = vmatmul.mubr.bf16.gmra.mxu0 %v7284_v23 }
  0x93   :  { %1149 = vmatmul.mubr.bf16.gmra.mxu1 %v7284_v23  ;;  %6334 = vmatprep.mubr.msk.bf16.mxu0 %vm467_vm0, %v7285_v24 }
  0x94   :  { %6402 = vmatprep.mubr.msk.bf16.mxu1 %vm467_vm0, %v7285_v24 }
  0x9a   :  { %725 = vmatmul.mubr.bf16.gmra.mxu0 %v7287_v31 }
  0x9b   :  { %1159 = vmatmul.mubr.bf16.gmra.mxu1 %v7287_v31  ;;  %6335 = vmatprep.mubr.msk.bf16.mxu0 %vm467_vm0, %v7288_v32 }
  0x9c   :  { %6403 = vmatprep.mubr.msk.bf16.mxu1 %vm467_vm0, %v7288_v32  ;;  %v7347_v32 = vld [vmem:[%s12442_s0 + $0x1a0] ss:$8 sps:$4 sm:$0xff]  }
  0xa2   :  { %735 = vmatmul.mubr.bf16.gmra.mxu0 %v7290_v37 }
  0xa3   :  { %1169 = vmatmul.mubr.bf16.gmra.mxu1 %v7290_v37  ;;  %6336 = vmatprep.mubr.msk.bf16.mxu0 %vm467_vm0, %v7291_v38 }
  0xa4   :  { %6404 = vmatprep.mubr.msk.bf16.mxu1 %vm467_vm0, %v7291_v38 }
  0xaa   :  { %745 = vmatmul.mubr.bf16.gmra.mxu0 %v7293_v43 }
  0xab   :  { %1179 = vmatmul.mubr.bf16.gmra.mxu1 %v7293_v43  ;;  %6337 = vmatprep.mubr.msk.bf16.mxu0 %vm467_vm0, %v7294_v44 }
  0xac   :  { %6405 = vmatprep.mubr.msk.bf16.mxu1 %vm467_vm0, %v7294_v44 }
  0xb2   :  { %755 = vmatmul.mubr.bf16.gmra.mxu0 %v7296_v51 }
  0xb3   :  { %1189 = vmatmul.mubr.bf16.gmra.mxu1 %v7296_v51  ;;  %6338 = vmatprep.mubr.msk.bf16.mxu0 %vm467_vm0, %v7297_v52 }
  0xb4   :  { %6406 = vmatprep.mubr.msk.bf16.mxu1 %vm467_vm0, %v7297_v52 }
  0xba   :  { %765 = vmatmul.mubr.bf16.gmra.mxu0 %v7299_v56 }
  0xbb   :  { %1199 = vmatmul.mubr.bf16.gmra.mxu1 %v7299_v56  ;;  %6339 = vmatprep.mubr.msk.bf16.mxu0 %vm467_vm0, %v7300_v57 }
  0xbc   :  { %6407 = vmatprep.mubr.msk.bf16.mxu1 %vm467_vm0, %v7300_v57 }
  0xc2   :  { %775 = vmatmul.mubr.bf16.gmra.mxu0 %v7302_v60 }
  0xc3   :  { %1209 = vmatmul.mubr.bf16.gmra.mxu1 %v7302_v60  ;;  %6340 = vmatprep.mubr.msk.bf16.mxu0 %vm467_vm0, %v7309_v61 }
  0xc4   :  { %6408 = vmatprep.mubr.msk.bf16.mxu1 %vm467_vm0, %v7309_v61 }
  0xca   :  { %785 = vmatmul.mubr.bf16.gmra.mxu0 %v7311_v62 }
  0xcb   :  { %1219 = vmatmul.mubr.bf16.gmra.mxu1 %v7311_v62  ;;  %6341 = vmatprep.mubr.msk.bf16.mxu0 %vm467_vm0, %v7312_v63 }
  0xcc   :  { %6409 = vmatprep.mubr.msk.bf16.mxu1 %vm467_vm0, %v7312_v63 }
  0xd2   :  { %795 = vmatmul.mubr.bf16.gmra.mxu0 %v7314_v2 }
  0xd3   :  { %1229 = vmatmul.mubr.bf16.gmra.mxu1 %v7314_v2  ;;  %6342 = vmatprep.mubr.msk.bf16.mxu0 %vm467_vm0, %v7321_v3 }
  0xd4   :  { %6410 = vmatprep.mubr.msk.bf16.mxu1 %vm467_vm0, %v7321_v3 }
  0xda   :  { %805 = vmatmul.mubr.bf16.gmra.mxu0 %v7323_v4 }
  0xdb   :  { %1239 = vmatmul.mubr.bf16.gmra.mxu1 %v7323_v4  ;;  %6343 = vmatprep.mubr.msk.bf16.mxu0 %vm467_vm0, %v7324_v5 }
  0xdc   :  { %6411 = vmatprep.mubr.msk.bf16.mxu1 %vm467_vm0, %v7324_v5 }
  0xe2   :  { %815 = vmatmul.mubr.bf16.gmra.mxu0 %v7326_v8 }
  0xe3   :  { %1249 = vmatmul.mubr.bf16.gmra.mxu1 %v7326_v8  ;;  %6344 = vmatprep.mubr.msk.bf16.mxu0 %vm467_vm0, %v7333_v9  ;;  %v7482_v8 = vld [vmem:[%s12443_s3 + $0x164] ss:$8 sps:$4 sm:$0xff]  }
  0xe4   :  { %6412 = vmatprep.mubr.msk.bf16.mxu1 %vm467_vm0, %v7333_v9  ;;  %1892 = vmatprep.subr.bf16.mxu0 %v7482_v8 }
  0xe5   :  { %1893 = vmatpush2.bf16.msra.mxu0 %v7480_v7  ;;  %v7497_v7 = vld [vmem:[%s12443_s3 + $0x5b4] ss:$8 sps:$4 sm:$0xff]  }
  0xe6   :  { %2352 = vmatprep.subr.bf16.mxu0 %v7497_v7 }
  0xea   :  { %v8632_v14 = vpop.f32.mrf.mxu0  ;;  %825 = vmatmul.mubr.bf16.gmra.mxu0 %v7335_v12 }
  0xeb   :  { %v8634_v15 = vpop.f32.mrf.mxu1  ;;  %1259 = vmatmul.mubr.bf16.gmra.mxu1 %v7335_v12  ;;  %6345 = vmatprep.mubr.msk.bf16.mxu0 %vm467_vm0, %v7336_v13 }
  0xec   :  { %6413 = vmatprep.mubr.msk.bf16.mxu1 %vm467_vm0, %v7336_v13  ;;  %v8638_v16 = vpop.f32.mrf.mxu0  ;;  %v1385_v13 = vlaneseq }
  0xed   :  { %v8640_v17 = vpop.f32.mrf.mxu1 }
  0xee   :  { %v8642_v18 = vpop.f32.mrf.mxu0 }
  0xef   :  { %v8644_v19 = vpop.f32.mrf.mxu1 }
  0xf0   :  { %v8652_v22 = vpop.f32.mrf.mxu0 }
  0xf1   :  { %v8654_v23 = vpop.f32.mrf.mxu1 }
  0xf2   :  { %v8656_v24 = vpop.f32.mrf.mxu0  ;;  %835 = vmatmul.mubr.bf16.gmra.mxu0 %v7338_v20 }
  0xf3   :  { %v8658_v25 = vpop.f32.mrf.mxu1  ;;  %1269 = vmatmul.mubr.bf16.gmra.mxu1 %v7338_v20  ;;  %6346 = vmatprep.mubr.msk.bf16.mxu0 %vm467_vm0, %v7345_v21 }
  0xf4   :  { %6414 = vmatprep.mubr.msk.bf16.mxu1 %vm467_vm0, %v7345_v21  ;;  %v8668_v28 = vpop.f32.mrf.mxu0 }
  0xf5   :  { %v8670_v29 = vpop.f32.mrf.mxu1 }
  0xf6   :  { %v8672_v30 = vpop.f32.mrf.mxu0 }
  0xf7   :  { %v8674_v31 = vpop.f32.mrf.mxu1 }
  0xf8   :  { %v8682_v34 = vpop.f32.mrf.mxu0 }
  0xf9   :  { %v8684_v35 = vpop.f32.mrf.mxu1 }
  0xfa   :  { %v8686_v36 = vpop.f32.mrf.mxu0  ;;  %845 = vmatmul.mubr.bf16.gmra.mxu0 %v7347_v32 }
  0xfb   :  { %v8688_v37 = vpop.f32.mrf.mxu1  ;;  %1279 = vmatmul.mubr.bf16.gmra.mxu1 %v7347_v32  ;;  %6347 = vmatprep.mubr.msk.bf16.mxu0 %vm467_vm0, %v7348_v33  ;;  %v8783_v32 = vshrl.u32 %v1385_v13, 7  ;;  %v1299_v13 = vld [vmem:[%s12444_s2] sm:$0x3] }
  0xfc   :  { %6415 = vmatprep.mubr.msk.bf16.mxu1 %vm467_vm0, %v7348_v33  ;;  %v8692_v38 = vpop.f32.mrf.mxu0 }
  0xfd   :  { %v8694_v39 = vpop.f32.mrf.mxu1  ;;  %12513 = vst [vmem:[#allocation11_spill] sm:$0xff] %v8783_v32 }
  0xfe   :  { %v8696_v40 = vpop.f32.mrf.mxu0 }
  0xff   :  { %v8698_v41 = vpop.f32.mrf.mxu1 }
 0x100   :  { %v8703_v43 = vpop.f32.mrf.mxu0 }
 0x101   :  { %v8705_v44 = vpop.f32.mrf.mxu1 }
 0x102   :  { %v8707_v45 = vpop.f32.mrf.mxu0  ;;  %855 = vmatmul.mubr.bf16.gmra.mxu0 %v7350_v42 }
 0x103   :  { %v8709_v46 = vpop.f32.mrf.mxu1  ;;  %1289 = vmatmul.mubr.bf16.gmra.mxu1 %v7350_v42 }
 0x104   :  { %v8717_v49 = vpop.f32.mrf.mxu0 }
 0x105   :  { %v8719_v50 = vpop.f32.mrf.mxu1 }
 0x106   :  { %v8721_v51 = vpop.f32.mrf.mxu0 }
 0x107   :  { %v8723_v52 = vpop.f32.mrf.mxu1 }
 0x108   :  { %v8725_v53 = vpop.f32.mrf.mxu0 }
 0x109   :  { %v8727_v54 = vpop.f32.mrf.mxu1 }
 0x10a   :  { %v8729_v55 = vpop.f32.mrf.mxu0 }
 0x10b   :  { %v8731_v56 = vpop.f32.mrf.mxu1 }
 0x10c   :  { %v8733_v57 = vpop.f32.mrf.mxu0 }
 0x10d   :  { %v8735_v58 = vpop.f32.mrf.mxu1 }
 0x10e   :  { %v8737_v59 = vpop.f32.mrf.mxu0 }
 0x10f   :  { %v8739_v60 = vpop.f32.mrf.mxu1 }
 0x110   :  { %v8741_v61 = vpop.f32.mrf.mxu0 }
 0x111   :  { %v8743_v62 = vpop.f32.mrf.mxu1 }
 0x112   :  { %v8745_v63 = vpop.f32.mrf.mxu0 }
 0x113   :  { %v8747_v0 = vpop.f32.mrf.mxu1 }
 0x114   :  { %v8749_v1 = vpop.f32.mrf.mxu0 }
 0x115   :  { %v8751_v2 = vpop.f32.mrf.mxu1 }
 0x116   :  { %v8753_v3 = vpop.f32.mrf.mxu0 }
 0x117   :  { %v8755_v4 = vpop.f32.mrf.mxu1 }
 0x118   :  { %v8757_v5 = vpop.f32.mrf.mxu0 }
 0x119   :  { %12504 = vst [vmem:[#allocation2_spill] sm:$0xff] %v8757_v5  ;;  %v8759_v6 = vpop.f32.mrf.mxu1 }
 0x11a   :  { %12505 = vst [vmem:[#allocation3_spill] sm:$0xff] %v8759_v6  ;;  %v8767_v9 = vpop.f32.mrf.mxu0 }
 0x11b   :  { %v8769_v10 = vpop.f32.mrf.mxu1 }
 0x11c   :  { %12506 = vst [vmem:[#allocation4_spill] sm:$0xff] %v8769_v10  ;;  %v8771_v11 = vpop.f32.mrf.mxu0 }
 0x11d   :  { %12507 = vst [vmem:[#allocation5_spill] sm:$0xff] %v8771_v11  ;;  %v8773_v12 = vpop.f32.mrf.mxu1  ;;  %v12515_v11 = vsub.s32 1, %v8783_v32 }
 0x11e   :  { %12508 = vst [vmem:[#allocation6_spill] sm:$0xff] %v8773_v12  ;;  %v8775_v20 = vpop.f32.mrf.mxu0 }
 0x11f   :  { %12509 = vst [vmem:[#allocation7_spill] sm:$0xff] %v8775_v20  ;;  %v8777_v21 = vpop.f32.mrf.mxu1  ;;  %v12514_v20 = vsub.s32 0, %v8783_v32  ;;  %v8805_v10 = vrot.slane %v1299_v13, %v12515_v11  ;;  %v7468_v32 = vld [vmem:[%s12443_s3 + $0x630] ss:$8 sps:$4 sm:$0xff]  }
 0x120   :  { %12510 = vst [vmem:[#allocation8_spill] sm:$0xff] %v8777_v21  ;;  %v8779_v26 = vpop.f32.mrf.mxu0 }
 0x121   :  { %12511 = vst [vmem:[#allocation9_spill] sm:$0xff] %v8779_v26  ;;  %v8781_v27 = vpop.f32.mrf.mxu1  ;;  %v8801_v12 = vrot.slane %v1299_v13, %v12514_v20  ;;  %12516 = vst [vmem:[#allocation12_spill] sm:$0xff] %v8805_v10 }
 0x122   :  { %12512 = vst [vmem:[#allocation10_spill] sm:$0xff] %v8781_v27  ;;  %v656_v33 = vpop.f32.mrf.mxu0 }
 0x123   :  { %v1090_v42 = vpop.f32.mrf.mxu1  ;;  %v1300_v47 = vmax.f32 %v8632_v14, %v656_v33 }
 0x124   :  { %v1328_v48 = vmax.f32 %v8634_v15, %v1090_v42  ;;  %v658_v6 = vpop.f32.mrf.mxu0 }
 0x125   :  { %v1092_v5 = vpop.f32.mrf.mxu1  ;;  %v1301_v21 = vmax.f32 %v8638_v16, %v658_v6 }
 0x126   :  { %v1356_v27 = vmax.f32 %v1300_v47, %v1328_v48  ;;  %v1329_v14 = vmax.f32 %v8640_v17, %v1092_v5  ;;  %v660_v15 = vpop.f32.mrf.mxu0 }
 0x127   :  { %v1094_v33 = vpop.f32.mrf.mxu1  ;;  %v1302_v42 = vmax.f32 %v8642_v18, %v660_v15 }
 0x128   :  { %v1330_v8 = vmax.f32 %v8644_v19, %v1094_v33  ;;  %v1357_v26 = vmax.f32 %v1301_v21, %v1329_v14  ;;  %v662_v47 = vpop.f32.mrf.mxu0  ;;  %v1395_v21 = vadd.f32 %v8801_v12, %v1356_v27 }
 0x129   :  { %v1096_v16 = vpop.f32.mrf.mxu1  ;;  %v1303_v17 = vmax.f32 %v8652_v22, %v662_v47 }
 0x12a   :  { %v1358_v6 = vmax.f32 %v1302_v42, %v1330_v8  ;;  %v1331_v5 = vmax.f32 %v8654_v23, %v1096_v16  ;;  %v666_v48 = vpop.f32.mrf.mxu0  ;;  %v1396_v11 = vadd.f32 %v8805_v10, %v1357_v26 }
 0x12b   :  { %v1100_v18 = vpop.f32.mrf.mxu1  ;;  %v1304_v7 = vmax.f32 %v8656_v24, %v666_v48 }
 0x12c   :  { %v1397_v19 = vadd.f32 %v8801_v12, %v1358_v6  ;;  %v1332_v20 = vmax.f32 %v8658_v25, %v1100_v18  ;;  %v1359_v13 = vmax.f32 %v1303_v17, %v1331_v5  ;;  %v668_v14 = vpop.f32.mrf.mxu0  ;;  %v1423_v6 = vmax.f32 %v1395_v21, 0.0 }
 0x12d   :  { %v1102_v15 = vpop.f32.mrf.mxu1  ;;  %v1305_v22 = vmax.f32 %v8668_v28, %v668_v14  ;;  %v1424_v27 = vmax.f32 %v1396_v11, 0.0 }
 0x12e   :  { %v1360_v8 = vmax.f32 %v1304_v7, %v1332_v20  ;;  %v1333_v23 = vmax.f32 %v8670_v29, %v1102_v15  ;;  %v1425_v33 = vmax.f32 %v1397_v19, 0.0  ;;  %v1398_v42 = vadd.f32 %v8805_v10, %v1359_v13  ;;  %v670_v47 = vpop.f32.mrf.mxu0 }
 0x12f   :  { %v1104_v16 = vpop.f32.mrf.mxu1  ;;  %v1306_v25 = vmax.f32 %v8672_v30, %v670_v47  ;;  %v7393_v30 = vld [vmem:[%s12443_s3 + $0x4d0] ss:$8 sps:$4 sm:$0xff]  }
 0x130   :  { %v1361_v24 = vmax.f32 %v1305_v22, %v1333_v23  ;;  %v1426_v48 = vmax.f32 %v1398_v42, 0.0  ;;  %v1334_v26 = vmax.f32 %v8674_v31, %v1104_v16  ;;  %v672_v17 = vpop.f32.mrf.mxu0  ;;  %v8821_v29 = vpack.c.bf16 %v1425_v33, %v1423_v6 }
 0x131   :  { %v1106_v5 = vpop.f32.mrf.mxu1  ;;  %v1307_v18 = vmax.f32 %v8682_v34, %v672_v17  ;;  %v1399_v14 = vadd.f32 %v8801_v12, %v1360_v8  ;;  %v7396_v8 = vld [vmem:[%s12443_s3 + $0x4c0] ss:$8 sps:$4 sm:$0xff]  }
 0x132   :  { %v1335_v28 = vmax.f32 %v8684_v35, %v1106_v5  ;;  %v1362_v19 = vmax.f32 %v1306_v25, %v1334_v26  ;;  %v676_v7 = vpop.f32.mrf.mxu0  ;;  %v8823_v13 = vpack.c.bf16 %v1426_v48, %v1424_v27  ;;  %v1400_v31 = vadd.f32 %v8805_v10, %v1361_v24  ;;  %v7398_v35 = vld [vmem:[%s12443_s3 + $0x4c4] ss:$8 sps:$4 sm:$0xff]  }
 0x133   :  { %v1110_v20 = vpop.f32.mrf.mxu1  ;;  %v1308_v11 = vmax.f32 %v8686_v36, %v676_v7  ;;  %v1427_v5 = vmax.f32 %v1399_v14, 0.0 }
 0x134   :  { %v1363_v21 = vmax.f32 %v1307_v18, %v1335_v28  ;;  %v1336_v34 = vmax.f32 %v8688_v37, %v1110_v20  ;;  %v1401_v15 = vadd.f32 %v8801_v12, %v1362_v19  ;;  %6533 = vmatprep.mubr.msk.bf16.mxu1 %vm1846_vm1, %v8823_v13  ;;  %v678_v22 = vpop.f32.mrf.mxu0  ;;  %v1428_v24 = vmax.f32 %v1400_v31, 0.0 }
 0x135   :  { %v1112_v23 = vpop.f32.mrf.mxu1  ;;  %v1309_v36 = vmax.f32 %v8692_v38, %v678_v22  ;;  %2133 = vmatmul.mubr.bf16.vlgmr.msra.gmra.mxu1 %v8821_v29  ;;  %v7401_v38 = vld [vmem:[%s12443_s3 + $0x4b4] ss:$8 sps:$4 sm:$0xff]  }
 0x136   :  { %v1402_v33 = vadd.f32 %v8805_v10, %v1363_v21  ;;  %v1364_v42 = vmax.f32 %v1308_v11, %v1336_v34  ;;  %v1337_v37 = vmax.f32 %v8694_v39, %v1112_v23  ;;  %2576 = vmatpush1.bf16.msra.mxu1 %v7393_v30  ;;  %v680_v47 = vpop.f32.mrf.mxu0  ;;  %v1429_v25 = vmax.f32 %v1401_v15, 0.0  ;;  %v7399_v30 = vld [vmem:[%s12443_s3 + $0x4b0] ss:$8 sps:$4 sm:$0xff]  }
 0x137   :  { %v1114_v16 = vpop.f32.mrf.mxu1  ;;  %v1310_v27 = vmax.f32 %v8696_v40, %v680_v47  ;;  %2577 = vmatprep.subr.bf16.mxu1 %v7398_v35 }
 0x138   :  { %v1430_v6 = vmax.f32 %v1402_v33, 0.0  ;;  %v1365_v39 = vmax.f32 %v1309_v36, %v1337_v37  ;;  %v1338_v48 = vmax.f32 %v8698_v41, %v1114_v16  ;;  %v682_v26 = vpop.f32.mrf.mxu0  ;;  %v8857_v31 = vpack.c.bf16 %v1429_v25, %v1427_v5  ;;  %v7402_v37 = vld [vmem:[%s12443_s3 + $0x4a0] ss:$8 sps:$4 sm:$0xff]  }
 0x139   :  { %v1116_v17 = vpop.f32.mrf.mxu1  ;;  %v1311_v28 = vmax.f32 %v8703_v43, %v682_v26  ;;  %v7404_v43 = vld [vmem:[%s12443_s3 + $0x4a4] ss:$8 sps:$4 sm:$0xff]   ;;  %v1403_v15 = vadd.f32 %v8801_v12, %v1364_v42 }
 0x13a   :  { %v8850_v18 = vpack.c.bf16 %v1430_v6, %v1428_v24  ;;  %v1366_v19 = vmax.f32 %v1310_v27, %v1338_v48  ;;  %v1339_v7 = vmax.f32 %v8705_v44, %v1116_v17  ;;  %2578 = vmatpush1.bf16.msra.mxu1 %v7396_v8  ;;  %v686_v40 = vpop.f32.mrf.mxu0  ;;  %v1404_v44 = vadd.f32 %v8805_v10, %v1365_v39  ;;  %v7408_v17 = vld [vmem:[%s12443_s3 + $0x490] ss:$8 sps:$4 sm:$0xff]  }
 0x13b   :  { %v1120_v20 = vpop.f32.mrf.mxu1  ;;  %v1312_v41 = vmax.f32 %v8707_v45, %v686_v40  ;;  %2579 = vmatprep.subr.bf16.mxu1 %v7401_v38  ;;  %v1431_v27 = vmax.f32 %v1403_v15, 0.0 }
 0x13c   :  { %12517 = vst [vmem:[#allocation13_spill] sm:$0xff] %v8850_v18  ;;  %v1340_v21 = vmax.f32 %v8709_v46, %v1120_v20  ;;  %6534 = vmatprep.mubr.msk.bf16.mxu1 %vm1846_vm1, %v8850_v18  ;;  %v1405_v11 = vadd.f32 %v8801_v12, %v1366_v19  ;;  %v1367_v34 = vmax.f32 %v1311_v28, %v1339_v7  ;;  %v688_v35 = vpop.f32.mrf.mxu0 }
 0x13d   :  { %v1122_v14 = vpop.f32.mrf.mxu1  ;;  %v1313_v46 = vmax.f32 %v8717_v49, %v688_v35  ;;  %2143 = vmatmul.mubr.bf16.gmra.mxu1 %v8857_v31  ;;  %v7410_v49 = vld [vmem:[%s12443_s3 + $0x494] ss:$8 sps:$4 sm:$0xff]  }
 0x13e   :  { %v1368_v45 = vmax.f32 %v1312_v41, %v1340_v21  ;;  %v1341_v22 = vmax.f32 %v8719_v50, %v1122_v14  ;;  %v1406_v23 = vadd.f32 %v8805_v10, %v1367_v34  ;;  %2580 = vmatpush1.bf16.msra.mxu1 %v7399_v30  ;;  %v690_v33 = vpop.f32.mrf.mxu0  ;;  %v1433_v47 = vmax.f32 %v1405_v11, 0.0  ;;  %v7411_v34 = vld [vmem:[%s12443_s3 + $0x480] ss:$8 sps:$4 sm:$0xff]  }
 0x13f   :  { %v1124_v36 = vpop.f32.mrf.mxu1  ;;  %v1314_v16 = vmax.f32 %v8721_v51, %v690_v33  ;;  %2581 = vmatprep.subr.bf16.mxu1 %v7404_v43  ;;  %v1432_v50 = vmax.f32 %v1404_v44, 0.0 }
 0x140   :  { %v1342_v42 = vmax.f32 %v8723_v52, %v1124_v36  ;;  %v1434_v8 = vmax.f32 %v1406_v23, 0.0  ;;  %v1369_v24 = vmax.f32 %v1313_v46, %v1341_v22  ;;  %v692_v25 = vpop.f32.mrf.mxu0  ;;  %v8888_v5 = vpack.c.bf16 %v1433_v47, %v1431_v27 }
 0x141   :  { %v1126_v6 = vpop.f32.mrf.mxu1  ;;  %v1315_v39 = vmax.f32 %v8725_v53, %v692_v25  ;;  %v7413_v53 = vld [vmem:[%s12443_s3 + $0x484] ss:$8 sps:$4 sm:$0xff]   ;;  %v1407_v41 = vadd.f32 %v8801_v12, %v1368_v45 }
 0x142   :  { %v1370_v38 = vmax.f32 %v1314_v16, %v1342_v42  ;;  %v8882_v48 = vpack.c.bf16 %v1434_v8, %v1432_v50  ;;  %v1343_v51 = vmax.f32 %v8727_v54, %v1126_v6  ;;  %2582 = vmatpush1.bf16.msra.mxu1 %v7402_v37  ;;  %v696_v52 = vpop.f32.mrf.mxu0  ;;  %v1408_v54 = vadd.f32 %v8805_v10, %v1369_v24  ;;  %v7414_v50 = vld [vmem:[%s12443_s3 + $0x470] ss:$8 sps:$4 sm:$0xff]  }
 0x143   :  { %v1130_v26 = vpop.f32.mrf.mxu1  ;;  %v1316_v19 = vmax.f32 %v8729_v55, %v696_v52  ;;  %2583 = vmatprep.subr.bf16.mxu1 %v7410_v49  ;;  %v1435_v33 = vmax.f32 %v1407_v41, 0.0 }
 0x144   :  { %v1409_v28 = vadd.f32 %v8801_v12, %v1370_v38  ;;  %v1344_v7 = vmax.f32 %v8731_v56, %v1130_v26  ;;  %v1371_v40 = vmax.f32 %v1315_v39, %v1343_v51  ;;  %6535 = vmatprep.mubr.msk.bf16.mxu1 %vm1846_vm1, %v8882_v48  ;;  %v698_v20 = vpop.f32.mrf.mxu0 }
 0x145   :  { %v1132_v30 = vpop.f32.mrf.mxu1  ;;  %v1317_v55 = vmax.f32 %v8733_v57, %v698_v20  ;;  %2153 = vmatmul.mubr.bf16.gmra.mxu1 %v8888_v5  ;;  %v7416_v57 = vld [vmem:[%s12443_s3 + $0x474] ss:$8 sps:$4 sm:$0xff]  }
 0x146   :  { %v1372_v21 = vmax.f32 %v1316_v19, %v1344_v7  ;;  %v1345_v56 = vmax.f32 %v8735_v58, %v1132_v30  ;;  %v1410_v43 = vadd.f32 %v8805_v10, %v1371_v40  ;;  %2584 = vmatpush1.bf16.msra.mxu1 %v7408_v17  ;;  %v700_v44 = vpop.f32.mrf.mxu0  ;;  %v1437_v35 = vmax.f32 %v1409_v28, 0.0  ;;  %v7417_v28 = vld [vmem:[%s12443_s3 + $0x460] ss:$8 sps:$4 sm:$0xff]  }
 0x147   :  { %v1134_v11 = vpop.f32.mrf.mxu1  ;;  %v1318_v15 = vmax.f32 %v8737_v59, %v700_v44  ;;  %2585 = vmatprep.subr.bf16.mxu1 %v7413_v53  ;;  %v1436_v58 = vmax.f32 %v1408_v54, 0.0 }
 0x148   :  { %v1373_v14 = vmax.f32 %v1317_v55, %v1345_v56  ;;  %v1438_v45 = vmax.f32 %v1410_v43, 0.0  ;;  %v1346_v46 = vmax.f32 %v8739_v60, %v1134_v11  ;;  %v702_v22 = vpop.f32.mrf.mxu0  ;;  %v8920_v60 = vpack.c.bf16 %v1437_v35, %v1435_v33  ;;  %v7423_v43 = vld [vmem:[%s12443_s3 + $0x530] ss:$8 sps:$4 sm:$0xff]   ;;  %v7428_v35 = vld [vmem:[%s12443_s3 + $0x524] ss:$8 sps:$4 sm:$0xff]  }
 0x149   :  { %v1136_v23 = vpop.f32.mrf.mxu1  ;;  %v1319_v36 = vmax.f32 %v8741_v61, %v702_v22  ;;  %v1411_v25 = vadd.f32 %v8801_v12, %v1372_v21  ;;  %v12519_v11 = vld [vmem:[#allocation4_spill] sm:$0xff]  ;;  %v12521_v22 = vld [vmem:[#allocation6_spill] sm:$0xff] }
 0x14a   :  { %v1347_v37 = vmax.f32 %v8743_v62, %v1136_v23  ;;  %v8914_v47 = vpack.c.bf16 %v1438_v45, %v1436_v58  ;;  %v1412_v59 = vadd.f32 %v8805_v10, %v1373_v14  ;;  %v1374_v16 = vmax.f32 %v1318_v15, %v1346_v46  ;;  %2586 = vmatpush1.bf16.msra.mxu1 %v7411_v34  ;;  %v706_v42 = vpop.f32.mrf.mxu0  ;;  %v7419_v62 = vld [vmem:[%s12443_s3 + $0x464] ss:$8 sps:$4 sm:$0xff]   ;;  %v12520_v45 = vld [vmem:[#allocation5_spill] sm:$0xff] }
 0x14b   :  { %v1140_v49 = vpop.f32.mrf.mxu1  ;;  %v1320_v24 = vmax.f32 %v8745_v63, %v706_v42  ;;  %2587 = vmatprep.subr.bf16.mxu1 %v7416_v57  ;;  %v1439_v30 = vmax.f32 %v1411_v25, 0.0  ;;  %v12523_v42 = vld [vmem:[#allocation7_spill] sm:$0xff] }
 0x14c   :  { %v1375_v8 = vmax.f32 %v1319_v36, %v1347_v37  ;;  %v1348_v61 = vmax.f32 %v8747_v0, %v1140_v49  ;;  %v1413_v6 = vadd.f32 %v8801_v12, %v1374_v16  ;;  %6536 = vmatprep.mubr.msk.bf16.mxu1 %vm1846_vm1, %v8914_v47  ;;  %v708_v27 = vpop.f32.mrf.mxu0  ;;  %v1440_v52 = vmax.f32 %v1412_v59, 0.0  ;;  %v7426_v59 = vld [vmem:[%s12443_s3 + $0x520] ss:$8 sps:$4 sm:$0xff]  }
 0x14d   :  { %v1142_v38 = vpop.f32.mrf.mxu1  ;;  %v1321_v63 = vmax.f32 %v8749_v1, %v708_v27  ;;  %2163 = vmatmul.mubr.bf16.gmra.mxu1 %v8920_v60  ;;  %v7425_v1 = vld [vmem:[%s12443_s3 + $0x534] ss:$8 sps:$4 sm:$0xff]  }
 0x14e   :  { %v1414_v39 = vadd.f32 %v8805_v10, %v1375_v8  ;;  %v1376_v51 = vmax.f32 %v1320_v24, %v1348_v61  ;;  %v1349_v0 = vmax.f32 %v8751_v2, %v1142_v38  ;;  %2588 = vmatpush1.bf16.msra.mxu1 %v7414_v50  ;;  %v710_v26 = vpop.f32.mrf.mxu0  ;;  %v1441_v19 = vmax.f32 %v1413_v6, 0.0  ;;  %v12524_v50 = vld [vmem:[#allocation8_spill] sm:$0xff] }
 0x14f   :  { %v1144_v17 = vpop.f32.mrf.mxu1  ;;  %v1322_v54 = vmax.f32 %v8753_v3, %v710_v26  ;;  %2589 = vmatprep.subr.bf16.mxu1 %v7419_v62  ;;  %v7431_v24 = vld [vmem:[%s12443_s3 + $0x514] ss:$8 sps:$4 sm:$0xff]  }
 0x150   :  { %v1442_v7 = vmax.f32 %v1414_v39, 0.0  ;;  %v8938_v53 = vmax.f32 %v1321_v63, %v1349_v0  ;;  %v1350_v2 = vmax.f32 %v8755_v4, %v1144_v17  ;;  %v8945_v40 = vpop.f32.mrf.mxu0  ;;  %v1415_v21 = vadd.f32 %v8801_v12, %v1376_v51  ;;  %v7429_v39 = vld [vmem:[%s12443_s3 + $0x510] ss:$8 sps:$4 sm:$0xff]   ;;  %v7434_v63 = vld [vmem:[%s12443_s3 + $0x504] ss:$8 sps:$4 sm:$0xff]  }
 0x151   :  { %v8947_v20 = vpop.f32.mrf.mxu1  ;;  %v8955_v44 = vpack.c.bf16 %v1441_v19, %v1439_v30 }
 0x152   :  { %v8949_v41 = vpack.c.bf16 %v1442_v7, %v1440_v52  ;;  %v1378_v55 = vmax.f32 %v1322_v54, %v1350_v2  ;;  %2590 = vmatpush1.bf16.msra.mxu1 %v7417_v28  ;;  %v716_v56 = vpop.f32.mrf.mxu0  ;;  %v7432_v7 = vld [vmem:[%s12443_s3 + $0x500] ss:$8 sps:$4 sm:$0xff]  }
 0x153   :  { %v1150_v3 = vpop.f32.mrf.mxu1  ;;  %12518 = vst [vmem:[#allocation14_spill] sm:$0xff] %v8955_v44  ;;  %v1324_v4 = vmax.f32 %v8767_v9, %v716_v56  ;;  %2595 = vmatprep.subr.bf16.mxu1 %v7425_v1  ;;  %v1443_v9 = vmax.f32 %v1415_v21, 0.0  ;;  %v7440_v1 = vld [vmem:[%s12443_s3 + $0x4f4] ss:$8 sps:$4 sm:$0xff]   ;;  %v7438_v56 = vld [vmem:[%s12443_s3 + $0x4f0] ss:$8 sps:$4 sm:$0xff]  }
 0x154   :  { %v1352_v34 = vmax.f32 %v12519_v11, %v1150_v3  ;;  %6537 = vmatprep.mubr.msk.bf16.mxu1 %vm1846_vm1, %v8949_v41  ;;  %v1417_v14 = vadd.f32 %v8801_v12, %v1378_v55  ;;  %v718_v15 = vpop.f32.mrf.mxu0  ;;  %v7443_v3 = vld [vmem:[%s12443_s3 + $0x4e4] ss:$8 sps:$4 sm:$0xff]  }
 0x155   :  { %v1152_v57 = vpop.f32.mrf.mxu1  ;;  %v1325_v46 = vmax.f32 %v12520_v45, %v718_v15  ;;  %2173 = vmatmul.mubr.bf16.gmra.mxu1 %v8955_v44 }
 0x156   :  { %v1380_v58 = vmax.f32 %v1324_v4, %v1352_v34  ;;  %v1353_v23 = vmax.f32 %v12521_v22, %v1152_v57  ;;  %v1445_v33 = vmax.f32 %v1417_v14, 0.0  ;;  %2596 = vmatpush2.bf16.msra.mxu1 %v7423_v43  ;;  %6627 = vmatprep.mubr.msk.bf16.mxu1 %vm1846_vm1, %v8823_v13  ;;  %v720_v36 = vpop.f32.mrf.mxu0  ;;  %v7446_v14 = vld [vmem:[%s12443_s3 + $0x694] ss:$8 sps:$4 sm:$0xff]   ;;  %v7449_v22 = vld [vmem:[%s12443_s3 + $0x684] ss:$8 sps:$4 sm:$0xff]  }
 0x157   :  { %v1154_v37 = vpop.f32.mrf.mxu1  ;;  %v1326_v49 = vmax.f32 %v12523_v42, %v720_v36  ;;  %2597 = vmatprep.subr.bf16.mxu1 %v7428_v35  ;;  %v7441_v35 = vld [vmem:[%s12443_s3 + $0x4e0] ss:$8 sps:$4 sm:$0xff]  }
 0x158   :  { %v8973_v16 = vmax.f32 %v1325_v46, %v1353_v23  ;;  %v1354_v8 = vmax.f32 %v12524_v50, %v1154_v37  ;;  %v8980_v61 = vpack.c.bf16 %v1445_v33, %v1443_v9  ;;  %v8982_v13 = vpop.f32.mrf.mxu0  ;;  %v1419_v25 = vadd.f32 %v8801_v12, %v1380_v58  ;;  %v7444_v46 = vld [vmem:[%s12443_s3 + $0x690] ss:$8 sps:$4 sm:$0xff]   ;;  %v7447_v37 = vld [vmem:[%s12443_s3 + $0x680] ss:$8 sps:$4 sm:$0xff]  }
 0x159   :  { %12526 = vst [vmem:[#allocation6_spill] sm:$0xff] %v8982_v13  ;;  %v8984_v62 = vpop.f32.mrf.mxu1  ;;  %v7476_v13 = vld [vmem:[%s12443_s3 + $0x6f4] ss:$8 sps:$4 sm:$0xff]  }
 0x15a   :  { %12522 = vst [vmem:[#allocation4_spill] sm:$0xff] %v8973_v16  ;;  %12525 = vst [vmem:[#allocation5_spill] sm:$0xff] %v8980_v61  ;;  %v1382_v6 = vmax.f32 %v1326_v49, %v1354_v8  ;;  %2598 = vmatpush2.bf16.msra.mxu1 %v7426_v59  ;;  %v8987_v27 = vpop.f32.mrf.mxu0  ;;  %v1447_v26 = vmax.f32 %v1419_v25, 0.0  ;;  %v7455_v59 = vld [vmem:[%s12443_s3 + $0x674] ss:$8 sps:$4 sm:$0xff]  }
 0x15b   :  { %12527 = vst [vmem:[#allocation7_spill] sm:$0xff] %v8984_v62  ;;  %v8989_v38 = vpop.f32.mrf.mxu1  ;;  %2599 = vmatprep.subr.bf16.mxu1 %v7431_v24  ;;  %v7453_v8 = vld [vmem:[%s12443_s3 + $0x670] ss:$8 sps:$4 sm:$0xff]   ;;  %v7458_v24 = vld [vmem:[%s12443_s3 + $0x664] ss:$8 sps:$4 sm:$0xff]  }
 0x15c   :  { %v1421_v51 = vadd.f32 %v8801_v12, %v1382_v6  ;;  %v8998_v0 = vpop.f32.mrf.mxu0 }
 0x15d   :  { %v9000_v52 = vpop.f32.mrf.mxu1 }
 0x15e   :  { %v1449_v17 = vmax.f32 %v1421_v51, 0.0  ;;  %2600 = vmatpush2.bf16.msra.mxu1 %v7429_v39  ;;  %v9002_v28 = vpop.f32.mrf.mxu0 }
 0x15f   :  { %v9004_v19 = vpop.f32.mrf.mxu1  ;;  %2601 = vmatprep.subr.bf16.mxu1 %v7434_v63  ;;  %v7456_v63 = vld [vmem:[%s12443_s3 + $0x660] ss:$8 sps:$4 sm:$0xff]  }
 0x160   :  { %v9009_v54 = vpack.c.bf16 %v1449_v17, %v1447_v26  ;;  %v9014_v2 = vpop.f32.mrf.mxu0  ;;  %v7461_v26 = vld [vmem:[%s12443_s3 + $0x654] ss:$8 sps:$4 sm:$0xff]  }
 0x161   :  { %v9016_v30 = vpop.f32.mrf.mxu1 }
 0x162   :  { %12528 = vst [vmem:[#allocation8_spill] sm:$0xff] %v9009_v54  ;;  %2602 = vmatpush2.bf16.msra.mxu1 %v7432_v7  ;;  %v9018_v21 = vpop.f32.mrf.mxu0 }
 0x163   :  { %v9020_v55 = vpop.f32.mrf.mxu1  ;;  %2603 = vmatprep.subr.bf16.mxu1 %v7440_v1 }
 0x164   :  { %v9028_v43 = vpop.f32.mrf.mxu0 }
 0x165   :  { %v9030_v4 = vpop.f32.mrf.mxu1 }
 0x166   :  { %2604 = vmatpush2.bf16.msra.mxu1 %v7438_v56  ;;  %v9032_v11 = vpop.f32.mrf.mxu0 }
 0x167   :  { %v9034_v34 = vpop.f32.mrf.mxu1  ;;  %2605 = vmatprep.subr.bf16.mxu1 %v7443_v3  ;;  %v7459_v3 = vld [vmem:[%s12443_s3 + $0x650] ss:$8 sps:$4 sm:$0xff]  }
 0x168   :  { %v9042_v15 = vpop.f32.mrf.mxu0 }
 0x169   :  { %v9044_v57 = vpop.f32.mrf.mxu1 }
 0x16a   :  { %2606 = vmatpush2.bf16.msra.mxu1 %v7441_v35  ;;  %v9046_v58 = vpop.f32.mrf.mxu0  ;;  %v7464_v35 = vld [vmem:[%s12443_s3 + $0x644] ss:$8 sps:$4 sm:$0xff]  }
 0x16b   :  { %v9048_v45 = vpop.f32.mrf.mxu1  ;;  %3102 = vmatprep.subr.bf16.mxu1 %v7446_v14 }
 0x16c   :  { %v9056_v23 = vpop.f32.mrf.mxu0 }
 0x16d   :  { %v9058_v9 = vpop.f32.mrf.mxu1  ;;  %2608 = vmatmul.mubr.bf16.vlgmr.msra.gmra.mxu1 %v8821_v29 }
 0x16e   :  { %6628 = vmatprep.mubr.msk.bf16.mxu1 %vm1846_vm1, %v8850_v18  ;;  %3103 = vmatpush1.bf16.msra.mxu1 %v7444_v46  ;;  %v9063_v33 = vpop.f32.mrf.mxu0 }
 0x16f   :  { %v9065_v36 = vpop.f32.mrf.mxu1  ;;  %3104 = vmatprep.subr.bf16.mxu1 %v7449_v22 }
 0x170   :  { %v9073_v42 = vpop.f32.mrf.mxu0 }
 0x171   :  { %v9075_v29 = vpop.f32.mrf.mxu1 }
 0x172   :  { %3105 = vmatpush1.bf16.msra.mxu1 %v7447_v37  ;;  %v9077_v49 = vpop.f32.mrf.mxu0 }
 0x173   :  { %v9079_v50 = vpop.f32.mrf.mxu1  ;;  %3106 = vmatprep.subr.bf16.mxu1 %v7455_v59  ;;  %v7462_v59 = vld [vmem:[%s12443_s3 + $0x640] ss:$8 sps:$4 sm:$0xff]  }
 0x174   :  { %v9087_v25 = vpop.f32.mrf.mxu0 }
 0x175   :  { %v9089_v6 = vpop.f32.mrf.mxu1  ;;  %2618 = vmatmul.mubr.bf16.gmra.mxu1 %v8857_v31 }
 0x176   :  { %6629 = vmatprep.mubr.msk.bf16.mxu1 %vm1846_vm1, %v8882_v48  ;;  %3107 = vmatpush1.bf16.msra.mxu1 %v7453_v8  ;;  %v9094_v39 = vpop.f32.mrf.mxu0  ;;  %v7470_v8 = vld [vmem:[%s12443_s3 + $0x634] ss:$8 sps:$4 sm:$0xff]  }
 0x177   :  { %v9096_v51 = vpop.f32.mrf.mxu1  ;;  %3108 = vmatprep.subr.bf16.mxu1 %v7458_v24 }
 0x178   :  { %v9104_v17 = vpop.f32.mrf.mxu0 }
 0x179   :  { %v9106_v7 = vpop.f32.mrf.mxu1 }
 0x17a   :  { %3109 = vmatpush1.bf16.msra.mxu1 %v7456_v63  ;;  %v9108_v1 = vpop.f32.mrf.mxu0 }
 0x17b   :  { %v9110_v56 = vpop.f32.mrf.mxu1  ;;  %3110 = vmatprep.subr.bf16.mxu1 %v7461_v26 }
 0x17c   :  { %v9118_v14 = vpop.f32.mrf.mxu0 }
 0x17d   :  { %v9120_v46 = vpop.f32.mrf.mxu1  ;;  %2628 = vmatmul.mubr.bf16.gmra.mxu1 %v8888_v5 }
 0x17e   :  { %6630 = vmatprep.mubr.msk.bf16.mxu1 %vm1846_vm1, %v8914_v47  ;;  %3111 = vmatpush1.bf16.msra.mxu1 %v7459_v3  ;;  %v9125_v22 = vpop.f32.mrf.mxu0 }
 0x17f   :  { %v9127_v37 = vpop.f32.mrf.mxu1  ;;  %3112 = vmatprep.subr.bf16.mxu1 %v7464_v35  ;;  %v7473_v35 = vld [vmem:[%s12443_s3 + $0x624] ss:$8 sps:$4 sm:$0xff]  }
 0x180   :  { %v9135_v24 = vpop.f32.mrf.mxu0 }
 0x181   :  { %v9137_v63 = vpop.f32.mrf.mxu1 }
 0x182   :  { %12529 = vst [vmem:[#allocation15_spill] sm:$0xff] %v9137_v63  ;;  %3113 = vmatpush1.bf16.msra.mxu1 %v7462_v59  ;;  %v9139_v26 = vpop.f32.mrf.mxu0 }
 0x183   :  { %12530 = vst [vmem:[#allocation16_spill] sm:$0xff] %v9139_v26  ;;  %v9141_v3 = vpop.f32.mrf.mxu1  ;;  %3114 = vmatprep.subr.bf16.mxu1 %v7470_v8  ;;  %v7471_v8 = vld [vmem:[%s12443_s3 + $0x620] ss:$8 sps:$4 sm:$0xff]  }
 0x184   :  { %12531 = vst [vmem:[#allocation17_spill] sm:$0xff] %v9141_v3  ;;  %v9149_v54 = vpop.f32.mrf.mxu0 }
 0x185   :  { %12532 = vst [vmem:[#allocation18_spill] sm:$0xff] %v9149_v54  ;;  %v9151_v16 = vpop.f32.mrf.mxu1  ;;  %2638 = vmatmul.mubr.bf16.gmra.mxu1 %v8920_v60 }
 0x186   :  { %12533 = vst [vmem:[#allocation19_spill] sm:$0xff] %v9151_v16  ;;  %6631 = vmatprep.mubr.msk.bf16.mxu1 %vm1846_vm1, %v8949_v41  ;;  %3115 = vmatpush1.bf16.msra.mxu1 %v7468_v32  ;;  %v9156_v59 = vpop.f32.mrf.mxu0 }
 0x187   :  { %12534 = vst [vmem:[#allocation20_spill] sm:$0xff] %v9156_v59  ;;  %v9158_v62 = vpop.f32.mrf.mxu1  ;;  %3116 = vmatprep.subr.bf16.mxu1 %v7473_v35  ;;  %v7479_v35 = vld [vmem:[%s12443_s3 + $0x6e4] ss:$8 sps:$4 sm:$0xff]  }
 0x188   :  { %12535 = vst [vmem:[#allocation21_spill] sm:$0xff] %v9158_v62  ;;  %v9166_v61 = vpop.f32.mrf.mxu0  ;;  %v7474_v62 = vld [vmem:[%s12443_s3 + $0x6f0] ss:$8 sps:$4 sm:$0xff]  }
 0x189   :  { %12536 = vst [vmem:[#allocation22_spill] sm:$0xff] %v9166_v61  ;;  %v9168_v16 = vpop.f32.mrf.mxu1  ;;  %v7485_v61 = vld [vmem:[%s12443_s3 + $0x6d4] ss:$8 sps:$4 sm:$0xff]  }
 0x18a   :  { %12537 = vst [vmem:[#allocation23_spill] sm:$0xff] %v9168_v16  ;;  %3117 = vmatpush1.bf16.msra.mxu1 %v7471_v8  ;;  %v9170_v54 = vpop.f32.mrf.mxu0 }
 0x18b   :  { %12538 = vst [vmem:[#allocation24_spill] sm:$0xff] %v9170_v54  ;;  %v9172_v32 = vpop.f32.mrf.mxu1  ;;  %3122 = vmatprep.subr.bf16.mxu1 %v7476_v13  ;;  %v7477_v13 = vld [vmem:[%s12443_s3 + $0x6e0] ss:$8 sps:$4 sm:$0xff]  }
 0x18c   :  { %12539 = vst [vmem:[#allocation25_spill] sm:$0xff] %v9172_v32  ;;  %v9180_v59 = vpop.f32.mrf.mxu0 }
 0x18d   :  { %12540 = vst [vmem:[#allocation26_spill] sm:$0xff] %v9180_v59  ;;  %v9182_v3 = vpop.f32.mrf.mxu1  ;;  %2648 = vmatmul.mubr.bf16.gmra.mxu1 %v8955_v44 }
 0x18e   :  { %12541 = vst [vmem:[#allocation27_spill] sm:$0xff] %v9182_v3  ;;  %3123 = vmatpush2.bf16.msra.mxu1 %v7474_v62  ;;  %6749 = vmatprep.mubr.msk.bf16.mxu1 %vm1846_vm1, %v8850_v18  ;;  %v9187_v8 = vpop.f32.mrf.mxu0 }
 0x18f   :  { %12542 = vst [vmem:[#allocation28_spill] sm:$0xff] %v9187_v8  ;;  %v9189_v16 = vpop.f32.mrf.mxu1  ;;  %3124 = vmatprep.subr.bf16.mxu1 %v7479_v35  ;;  %v7488_v35 = vld [vmem:[%s12443_s3 + $0x6c4] ss:$8 sps:$4 sm:$0xff]  }
 0x190   :  { %12543 = vst [vmem:[#allocation29_spill] sm:$0xff] %v9189_v16  ;;  %v9197_v3 = vpop.f32.mrf.mxu0  ;;  %v7483_v16 = vld [vmem:[%s12443_s3 + $0x6d0] ss:$8 sps:$4 sm:$0xff]  }
 0x191   :  { %12544 = vst [vmem:[#allocation30_spill] sm:$0xff] %v9197_v3  ;;  %v9199_v59 = vpop.f32.mrf.mxu1 }
 0x192   :  { %12545 = vst [vmem:[#allocation31_spill] sm:$0xff] %v9199_v59  ;;  %3125 = vmatpush2.bf16.msra.mxu1 %v7477_v13  ;;  %v796_v62 = vpop.f32.mrf.mxu0 }
 0x193   :  { %v1230_v18 = vpop.f32.mrf.mxu1  ;;  %v1465_v8 = vmax.f32 %v8987_v27, %v796_v62  ;;  %3126 = vmatprep.subr.bf16.mxu1 %v7485_v61  ;;  %v7486_v27 = vld [vmem:[%s12443_s3 + $0x6c0] ss:$8 sps:$4 sm:$0xff]  }
 0x194   :  { %v1493_v32 = vmax.f32 %v8989_v38, %v1230_v18  ;;  %v798_v54 = vpop.f32.mrf.mxu0  ;;  %v7491_v38 = vld [vmem:[%s12443_s3 + $0x6b4] ss:$8 sps:$4 sm:$0xff]  }
 0x195   :  { %v1232_v3 = vpop.f32.mrf.mxu1  ;;  %v1466_v13 = vmax.f32 %v8998_v0, %v798_v54 }
 0x196   :  { %v1521_v44 = vmax.f32 %v1465_v8, %v1493_v32  ;;  %v1494_v59 = vmax.f32 %v9000_v52, %v1232_v3  ;;  %3127 = vmatpush2.bf16.msra.mxu1 %v7483_v16  ;;  %v800_v26 = vpop.f32.mrf.mxu0 }
 0x197   :  { %v1234_v63 = vpop.f32.mrf.mxu1  ;;  %v1467_v18 = vmax.f32 %v9002_v28, %v800_v26  ;;  %3128 = vmatprep.subr.bf16.mxu1 %v7488_v35  ;;  %v7489_v28 = vld [vmem:[%s12443_s3 + $0x6b0] ss:$8 sps:$4 sm:$0xff]   ;;  %v7494_v26 = vld [vmem:[%s12443_s3 + $0x6a4] ss:$8 sps:$4 sm:$0xff]  }
 0x198   :  { %v1495_v61 = vmax.f32 %v9004_v19, %v1234_v63  ;;  %v1522_v32 = vmax.f32 %v1466_v13, %v1494_v59  ;;  %v802_v0 = vpop.f32.mrf.mxu0 }
 0x199   :  { %v1236_v54 = vpop.f32.mrf.mxu1  ;;  %v1468_v16 = vmax.f32 %v9014_v2, %v802_v0 }
 0x19a   :  { %v1523_v52 = vmax.f32 %v1467_v18, %v1495_v61  ;;  %v1496_v3 = vmax.f32 %v9016_v30, %v1236_v54  ;;  %3129 = vmatpush2.bf16.msra.mxu1 %v7486_v27  ;;  %v806_v8 = vpop.f32.mrf.mxu0  ;;  %v1550_v2 = vadd.f32 %v1522_v32, %v8805_v10  ;;  %v7492_v32 = vld [vmem:[%s12443_s3 + $0x6a0] ss:$8 sps:$4 sm:$0xff]  }
 0x19b   :  { %v1240_v62 = vpop.f32.mrf.mxu1  ;;  %v1469_v19 = vmax.f32 %v9018_v21, %v806_v8  ;;  %3130 = vmatprep.subr.bf16.mxu1 %v7491_v38  ;;  %v1549_v21 = vadd.f32 %v1521_v44, %v8801_v12 }
 0x19c   :  { %v1497_v63 = vmax.f32 %v9020_v55, %v1240_v62  ;;  %v1551_v30 = vadd.f32 %v1523_v52, %v8801_v12  ;;  %v1524_v59 = vmax.f32 %v1468_v16, %v1496_v3  ;;  %v808_v35 = vpop.f32.mrf.mxu0 }
 0x19d   :  { %v1242_v13 = vpop.f32.mrf.mxu1  ;;  %v1470_v18 = vmax.f32 %v9028_v43, %v808_v35  ;;  %v7500_v43 = vld [vmem:[%s12443_s3 + $0x774] ss:$8 sps:$4 sm:$0xff]  }
 0x19e   :  { %v1525_v27 = vmax.f32 %v1469_v19, %v1497_v63  ;;  %v1498_v61 = vmax.f32 %v9030_v4, %v1242_v13  ;;  %v1552_v55 = vadd.f32 %v1524_v59, %v8805_v10  ;;  %3131 = vmatpush2.bf16.msra.mxu1 %v7489_v28  ;;  %v810_v38 = vpop.f32.mrf.mxu0  ;;  %v1578_v4 = vmax.f32 %v1550_v2, 0.0 }
 0x19f   :  { %v1244_v0 = vpop.f32.mrf.mxu1  ;;  %v1471_v52 = vmax.f32 %v9032_v11, %v810_v38  ;;  %3132 = vmatprep.subr.bf16.mxu1 %v7494_v26  ;;  %v1579_v16 = vmax.f32 %v1551_v30, 0.0  ;;  %v1577_v63 = vmax.f32 %v1549_v21, 0.0  ;;  %v7506_v38 = vld [vmem:[%s12443_s3 + $0x764] ss:$8 sps:$4 sm:$0xff]  }
 0x1a0   :  { %v1526_v54 = vmax.f32 %v1470_v18, %v1498_v61  ;;  %v1580_v44 = vmax.f32 %v1552_v55, 0.0  ;;  %v1499_v3 = vmax.f32 %v9034_v34, %v1244_v0  ;;  %v812_v8 = vpop.f32.mrf.mxu0  ;;  %v1553_v61 = vadd.f32 %v1525_v27, %v8801_v12  ;;  %v7503_v55 = vld [vmem:[%s12443_s3 + $0x5a4] ss:$8 sps:$4 sm:$0xff]  }
 0x1a1   :  { %v1246_v62 = vpop.f32.mrf.mxu1  ;;  %v1472_v28 = vmax.f32 %v9042_v15, %v812_v8  ;;  %v7495_v15 = vld [vmem:[%s12443_s3 + $0x5b0] ss:$8 sps:$4 sm:$0xff]   ;;  %v9256_v18 = vpack.c.bf16 %v1579_v16, %v1577_v63  ;;  %v7501_v8 = vld [vmem:[%s12443_s3 + $0x5a0] ss:$8 sps:$4 sm:$0xff]  }
 0x1a2   :  { %v1500_v19 = vmax.f32 %v9044_v57, %v1246_v62  ;;  %v1527_v59 = vmax.f32 %v1471_v52, %v1499_v3  ;;  %3133 = vmatpush2.bf16.msra.mxu1 %v7492_v32  ;;  %v816_v11 = vpop.f32.mrf.mxu0  ;;  %v9245_v35 = vpack.c.bf16 %v1580_v44, %v1578_v4  ;;  %v1554_v13 = vadd.f32 %v1526_v54, %v8805_v10  ;;  %v7498_v57 = vld [vmem:[%s12443_s3 + $0x770] ss:$8 sps:$4 sm:$0xff]   ;;  %v12546_v52 = vld [vmem:[#allocation2_spill] sm:$0xff]  ;;  %v12547_v4 = vld [vmem:[#allocation3_spill] sm:$0xff] }
 0x1a3   :  { %v1250_v26 = vpop.f32.mrf.mxu1  ;;  %v1473_v30 = vmax.f32 %v9046_v58, %v816_v11  ;;  %3649 = vmatprep.subr.bf16.mxu1 %v7500_v43  ;;  %v1323_v43 = vmax.f32 %v12546_v52, %v8945_v40  ;;  %v1351_v16 = vmax.f32 %v12547_v4, %v8947_v20  ;;  %v7504_v20 = vld [vmem:[%s12443_s3 + $0x760] ss:$8 sps:$4 sm:$0xff]   ;;  %v7509_v11 = vld [vmem:[%s12443_s3 + $0x594] ss:$8 sps:$4 sm:$0xff]  }
 0x1a4   :  { %v1528_v2 = vmax.f32 %v1472_v28, %v1500_v19  ;;  %v1501_v34 = vmax.f32 %v9048_v45, %v1250_v26  ;;  %v1555_v21 = vadd.f32 %v1527_v59, %v8801_v12  ;;  %6500 = vmatprep.mubr.msk.bf16.mxu0 %vm1846_vm1, %v9245_v35  ;;  %v818_v58 = vpop.f32.mrf.mxu0  ;;  %v1581_v26 = vmax.f32 %v1553_v61, 0.0 }
 0x1a5   :  { %v1252_v45 = vpop.f32.mrf.mxu1  ;;  %3135 = vmatmul.mubr.bf16.vlgmr.msra.gmra.mxu1 %v8857_v31  ;;  %v1474_v27 = vmax.f32 %v9056_v23, %v818_v58  ;;  %1895 = vmatmul.mubr.bf16.vlgmr.msra.gmra.mxu0 %v9256_v18  ;;  %v1582_v23 = vmax.f32 %v1554_v13, 0.0 }
 0x1a6   :  { %v1556_v0 = vadd.f32 %v1528_v2, %v8805_v10  ;;  %v1529_v32 = vmax.f32 %v1473_v30, %v1501_v34  ;;  %v1502_v54 = vmax.f32 %v9058_v9, %v1252_v45  ;;  %6750 = vmatprep.mubr.msk.bf16.mxu1 %vm1846_vm1, %v8882_v48  ;;  %v820_v44 = vpop.f32.mrf.mxu0  ;;  %v1583_v62 = vmax.f32 %v1555_v21, 0.0  ;;  %2353 = vmatpush1.bf16.msra.mxu0 %v7495_v15  ;;  %v7512_v2 = vld [vmem:[%s12443_s3 + $0x754] ss:$8 sps:$4 sm:$0xff]   ;;  %v7510_v45 = vld [vmem:[%s12443_s3 + $0x750] ss:$8 sps:$4 sm:$0xff]  }
 0x1a7   :  { %v1254_v3 = vpop.f32.mrf.mxu1  ;;  %3650 = vmatpush1.bf16.msra.mxu1 %v7498_v57  ;;  %v1475_v40 = vmax.f32 %v9063_v33, %v820_v44  ;;  %2354 = vmatprep.subr.bf16.mxu0 %v7503_v55  ;;  %v1379_v30 = vmax.f32 %v1323_v43, %v1351_v16 }
 0x1a8   :  { %v1584_v9 = vmax.f32 %v1556_v0, 0.0  ;;  %v1530_v28 = vmax.f32 %v1474_v27, %v1502_v54  ;;  %v1503_v19 = vmax.f32 %v9065_v36, %v1254_v3  ;;  %3651 = vmatprep.subr.bf16.mxu1 %v7506_v38  ;;  %v822_v63 = vpop.f32.mrf.mxu0  ;;  %v9297_v21 = vpack.c.bf16 %v1583_v62, %v1581_v26  ;;  %v7518_v27 = vld [vmem:[%s12443_s3 + $0x744] ss:$8 sps:$4 sm:$0xff]  }
 0x1a9   :  { %v1256_v59 = vpop.f32.mrf.mxu1  ;;  %v1476_v33 = vmax.f32 %v9073_v42, %v822_v63  ;;  %v7507_v42 = vld [vmem:[%s12443_s3 + $0x590] ss:$8 sps:$4 sm:$0xff]   ;;  %v1557_v4 = vadd.f32 %v1529_v32, %v8801_v12 }
 0x1aa   :  { %v9290_v13 = vpack.c.bf16 %v1584_v9, %v1582_v23  ;;  %v1531_v34 = vmax.f32 %v1475_v40, %v1503_v19  ;;  %v1504_v36 = vmax.f32 %v9075_v29, %v1256_v59  ;;  %v826_v15 = vpop.f32.mrf.mxu0  ;;  %2355 = vmatpush1.bf16.msra.mxu0 %v7501_v8  ;;  %v1558_v29 = vadd.f32 %v1530_v28, %v8805_v10 }
 0x1ab   :  { %v1260_v57 = vpop.f32.mrf.mxu1  ;;  %3652 = vmatpush1.bf16.msra.mxu1 %v7504_v20  ;;  %v1477_v61 = vmax.f32 %v9077_v49, %v826_v15  ;;  %2356 = vmatprep.subr.bf16.mxu0 %v7509_v11  ;;  %v1418_v19 = vadd.f32 %v8805_v10, %v1379_v30  ;;  %v7524_v11 = vld [vmem:[%s12443_s3 + $0x734] ss:$8 sps:$4 sm:$0xff]   ;;  %v1585_v26 = vmax.f32 %v1557_v4, 0.0 }
 0x1ac   :  { %v1505_v58 = vmax.f32 %v9079_v50, %v1260_v57  ;;  %v1559_v55 = vadd.f32 %v1531_v34, %v8801_v12  ;;  %v1532_v38 = vmax.f32 %v1476_v33, %v1504_v36  ;;  %6501 = vmatprep.mubr.msk.bf16.mxu0 %vm1846_vm1, %v9290_v13  ;;  %v828_v49 = vpop.f32.mrf.mxu0  ;;  %v7515_v50 = vld [vmem:[%s12443_s3 + $0x584] ss:$8 sps:$4 sm:$0xff]   ;;  %3653 = vmatprep.subr.bf16.mxu1 %v7512_v2  ;;  %v1586_v32 = vmax.f32 %v1558_v29, 0.0  ;;  %v7522_v57 = vld [vmem:[%s12443_s3 + $0x730] ss:$8 sps:$4 sm:$0xff]  }
 0x1ad   :  { %v1262_v0 = vpop.f32.mrf.mxu1  ;;  %3145 = vmatmul.mubr.bf16.gmra.mxu1 %v8888_v5  ;;  %v1478_v52 = vmax.f32 %v9087_v25, %v828_v49  ;;  %1905 = vmatmul.mubr.bf16.gmra.mxu0 %v9297_v21  ;;  %v7513_v25 = vld [vmem:[%s12443_s3 + $0x580] ss:$8 sps:$4 sm:$0xff]   ;;  %v7530_v29 = vld [vmem:[%s12443_s3 + $0x724] ss:$8 sps:$4 sm:$0xff]   ;;  %v1446_v49 = vmax.f32 %v1418_v19, 0.0 }
 0x1ae   :  { %v1533_v54 = vmax.f32 %v1477_v61, %v1505_v58  ;;  %v1506_v43 = vmax.f32 %v9089_v6, %v1262_v0  ;;  %v1560_v16 = vadd.f32 %v1532_v38, %v8805_v10  ;;  %6751 = vmatprep.mubr.msk.bf16.mxu1 %vm1846_vm1, %v8914_v47  ;;  %v830_v44 = vpop.f32.mrf.mxu0  ;;  %2357 = vmatpush1.bf16.msra.mxu0 %v7507_v42  ;;  %v7516_v6 = vld [vmem:[%s12443_s3 + $0x740] ss:$8 sps:$4 sm:$0xff]   ;;  %v1587_v62 = vmax.f32 %v1559_v55, 0.0 }
 0x1af   :  { %v1264_v3 = vpop.f32.mrf.mxu1  ;;  %3654 = vmatpush1.bf16.msra.mxu1 %v7510_v45  ;;  %v1479_v23 = vmax.f32 %v9094_v39, %v830_v44  ;;  %2358 = vmatprep.subr.bf16.mxu0 %v7515_v50  ;;  %v7521_v39 = vld [vmem:[%s12443_s3 + $0x574] ss:$8 sps:$4 sm:$0xff]   ;;  %v1416_v61 = vadd.f32 %v8805_v10, %v8938_v53  ;;  %v7527_v45 = vld [vmem:[%s12443_s3 + $0x564] ss:$8 sps:$4 sm:$0xff]  }
 0x1b0   :  { %v1534_v8 = vmax.f32 %v1478_v52, %v1506_v43  ;;  %v1588_v9 = vmax.f32 %v1560_v16, 0.0  ;;  %v1507_v40 = vmax.f32 %v9096_v51, %v1264_v3  ;;  %3655 = vmatprep.subr.bf16.mxu1 %v7518_v27  ;;  %v832_v20 = vpop.f32.mrf.mxu0  ;;  %v9355_v58 = vpack.c.bf16 %v1587_v62, %v1585_v26  ;;  %v7536_v62 = vld [vmem:[%s12443_s3 + $0x714] ss:$8 sps:$4 sm:$0xff]  }
 0x1b1   :  { %v1266_v28 = vpop.f32.mrf.mxu1  ;;  %v1480_v63 = vmax.f32 %v9104_v17, %v832_v20  ;;  %v1561_v0 = vadd.f32 %v1533_v54, %v8801_v12  ;;  %v7525_v54 = vld [vmem:[%s12443_s3 + $0x560] ss:$8 sps:$4 sm:$0xff]   ;;  %v1444_v44 = vmax.f32 %v1416_v61, 0.0  ;;  %v12551_v26 = vld [vmem:[#allocation17_spill] sm:$0xff] }
 0x1b2   :  { %v1508_v59 = vmax.f32 %v9106_v7, %v1266_v28  ;;  %v9342_v51 = vpack.c.bf16 %v1588_v9, %v1586_v32  ;;  %v1562_v33 = vadd.f32 %v1534_v8, %v8805_v10  ;;  %v1535_v2 = vmax.f32 %v1479_v23, %v1507_v40  ;;  %v836_v34 = vpop.f32.mrf.mxu0  ;;  %2359 = vmatpush1.bf16.msra.mxu0 %v7513_v25  ;;  %v7519_v7 = vld [vmem:[%s12443_s3 + $0x570] ss:$8 sps:$4 sm:$0xff]   ;;  %v12549_v20 = vld [vmem:[#allocation15_spill] sm:$0xff] }
 0x1b3   :  { %v1270_v36 = vpop.f32.mrf.mxu1  ;;  %3656 = vmatpush1.bf16.msra.mxu1 %v7516_v6  ;;  %v1481_v30 = vmax.f32 %v9108_v1, %v836_v34  ;;  %2360 = vmatprep.subr.bf16.mxu0 %v7521_v39  ;;  %v9391_v9 = vpack.c.bf16 %v1446_v49, %v1444_v44  ;;  %v1589_v40 = vmax.f32 %v1561_v0, 0.0 }
 0x1b4   :  { %v1536_v15 = vmax.f32 %v1480_v63, %v1508_v59  ;;  %v1509_v17 = vmax.f32 %v9110_v56, %v1270_v36  ;;  %v1563_v42 = vadd.f32 %v1535_v2, %v8801_v12  ;;  %6502 = vmatprep.mubr.msk.bf16.mxu0 %vm1846_vm1, %v9342_v51  ;;  %v838_v1 = vpop.f32.mrf.mxu0  ;;  %3657 = vmatprep.subr.bf16.mxu1 %v7524_v11  ;;  %v1590_v43 = vmax.f32 %v1562_v33, 0.0  ;;  %v12550_v59 = vld [vmem:[#allocation16_spill] sm:$0xff] }
 0x1b5   :  { %v1272_v56 = vpop.f32.mrf.mxu1  ;;  %3155 = vmatmul.mubr.bf16.gmra.mxu1 %v8920_v60  ;;  %v1482_v38 = vmax.f32 %v9118_v14, %v838_v1  ;;  %1915 = vmatmul.mubr.bf16.gmra.mxu0 %v9355_v58  ;;  %12548 = vst [vmem:[#allocation2_spill] sm:$0xff] %v9391_v9  ;;  %v7534_v2 = vld [vmem:[%s12443_s3 + $0x710] ss:$8 sps:$4 sm:$0xff]   ;;  %v12553_v1 = vld [vmem:[#allocation18_spill] sm:$0xff] }
 0x1b6   :  { %v1564_v53 = vadd.f32 %v1536_v15, %v8805_v10  ;;  %v1537_v55 = vmax.f32 %v1481_v30, %v1509_v17  ;;  %v1510_v50 = vmax.f32 %v9120_v46, %v1272_v56  ;;  %6752 = vmatprep.mubr.msk.bf16.mxu1 %vm1846_vm1, %v8949_v41  ;;  %v840_v27 = vpop.f32.mrf.mxu0  ;;  %2361 = vmatpush1.bf16.msra.mxu0 %v7519_v7  ;;  %v7528_v46 = vld [vmem:[%s12443_s3 + $0x720] ss:$8 sps:$4 sm:$0xff]   ;;  %v1591_v3 = vmax.f32 %v1563_v42, 0.0  ;;  %v7539_v7 = vld [vmem:[%s12443_s3 + $0x544] ss:$8 sps:$4 sm:$0xff]  }
 0x1b7   :  { %v1274_v52 = vpop.f32.mrf.mxu1  ;;  %3658 = vmatpush1.bf16.msra.mxu1 %v7522_v57  ;;  %v1483_v16 = vmax.f32 %v9125_v22, %v840_v27  ;;  %2362 = vmatprep.subr.bf16.mxu0 %v7527_v45  ;;  %v7533_v22 = vld [vmem:[%s12443_s3 + $0x554] ss:$8 sps:$4 sm:$0xff]   ;;  %v7542_v57 = vld [vmem:[%s12443_s3 + $0x704] ss:$8 sps:$4 sm:$0xff]  }
 0x1b8   :  { %v1592_v4 = vmax.f32 %v1564_v53, 0.0  ;;  %v1511_v14 = vmax.f32 %v9127_v37, %v1274_v52  ;;  %v1538_v8 = vmax.f32 %v1482_v38, %v1510_v50  ;;  %3659 = vmatprep.subr.bf16.mxu1 %v7530_v29  ;;  %v842_v23 = vpop.f32.mrf.mxu0  ;;  %v9403_v34 = vpack.c.bf16 %v1591_v3, %v1589_v40  ;;  %v12552_v42 = vld [vmem:[#allocation14_spill] sm:$0xff]  ;;  %v12554_v45 = vld [vmem:[#allocation19_spill] sm:$0xff] }
 0x1b9   :  { %v1276_v25 = vpop.f32.mrf.mxu1  ;;  %v1484_v32 = vmax.f32 %v9135_v24, %v842_v23  ;;  %v7531_v24 = vld [vmem:[%s12443_s3 + $0x550] ss:$8 sps:$4 sm:$0xff]   ;;  %v1565_v53 = vadd.f32 %v1537_v55, %v8801_v12  ;;  %v7537_v52 = vld [vmem:[%s12443_s3 + $0x540] ss:$8 sps:$4 sm:$0xff]   ;;  %v7548_v23 = vld [vmem:[%s12443_s3 + $0x7d4] ss:$8 sps:$4 sm:$0xff]  }
 0x1ba   :  { %v9385_v37 = vpack.c.bf16 %v1592_v4, %v1590_v43  ;;  %v1539_v6 = vmax.f32 %v1483_v16, %v1511_v14  ;;  %v1512_v28 = vmax.f32 %v12549_v20, %v1276_v25  ;;  %v846_v39 = vpop.f32.mrf.mxu0  ;;  %v1566_v63 = vadd.f32 %v1538_v8, %v8805_v10  ;;  %2363 = vmatpush1.bf16.msra.mxu0 %v7525_v54  ;;  %v7540_v55 = vld [vmem:[%s12443_s3 + $0x700] ss:$8 sps:$4 sm:$0xff]   ;;  %v12555_v16 = vld [vmem:[#allocation20_spill] sm:$0xff]  ;;  %v12556_v54 = vld [vmem:[#allocation21_spill] sm:$0xff] }
 0x1bb   :  { %v1280_v19 = vpop.f32.mrf.mxu1  ;;  %3660 = vmatpush1.bf16.msra.mxu1 %v7528_v46  ;;  %v1485_v11 = vmax.f32 %v12550_v59, %v846_v39  ;;  %2364 = vmatprep.subr.bf16.mxu0 %v7533_v22  ;;  %v7545_v8 = vld [vmem:[%s12443_s3 + $0x614] ss:$8 sps:$4 sm:$0xff]   ;;  %v1593_v25 = vmax.f32 %v1565_v53, 0.0  ;;  %v7546_v59 = vld [vmem:[%s12443_s3 + $0x7d0] ss:$8 sps:$4 sm:$0xff]  }
 0x1bc   :  { %v1513_v33 = vmax.f32 %v12551_v26, %v1280_v19  ;;  %v1567_v36 = vadd.f32 %v1539_v6, %v8801_v12  ;;  %v1540_v15 = vmax.f32 %v1484_v32, %v1512_v28  ;;  %6503 = vmatprep.mubr.msk.bf16.mxu0 %vm1846_vm1, %v9385_v37  ;;  %v848_v30 = vpop.f32.mrf.mxu0  ;;  %3661 = vmatprep.subr.bf16.mxu1 %v7536_v62  ;;  %v1594_v50 = vmax.f32 %v1566_v63, 0.0  ;;  %v12557_v20 = vld [vmem:[#allocation24_spill] sm:$0xff]  ;;  %v12558_v39 = vld [vmem:[#allocation25_spill] sm:$0xff] }
 0x1bd   :  { %v1282_v17 = vpop.f32.mrf.mxu1  ;;  %3165 = vmatmul.mubr.bf16.gmra.mxu1 %v12552_v42  ;;  %v1486_v56 = vmax.f32 %v12553_v1, %v848_v30  ;;  %1925 = vmatmul.mubr.bf16.gmra.mxu0 %v9403_v34  ;;  %v7543_v63 = vld [vmem:[%s12443_s3 + $0x610] ss:$8 sps:$4 sm:$0xff]   ;;  %v12560_v30 = vld [vmem:[#allocation26_spill] sm:$0xff]  ;;  %v12561_v1 = vld [vmem:[#allocation27_spill] sm:$0xff] }
 0x1be   :  { %v1541_v61 = vmax.f32 %v1485_v11, %v1513_v33  ;;  %v1514_v29 = vmax.f32 %v12554_v45, %v1282_v17  ;;  %v1568_v38 = vadd.f32 %v1540_v15, %v8805_v10  ;;  %6753 = vmatprep.mubr.msk.bf16.mxu1 %vm1846_vm1, %v9391_v9  ;;  %v850_v49 = vpop.f32.mrf.mxu0  ;;  %2365 = vmatpush1.bf16.msra.mxu0 %v7531_v24  ;;  %v1595_v43 = vmax.f32 %v1567_v36, 0.0  ;;  %v12559_v15 = vld [vmem:[#allocation5_spill] sm:$0xff]  ;;  %v12562_v53 = vld [vmem:[#allocation28_spill] sm:$0xff] }
 0x1bf   :  { %v1284_v0 = vpop.f32.mrf.mxu1  ;;  %3662 = vmatpush1.bf16.msra.mxu1 %v7534_v2  ;;  %v1487_v14 = vmax.f32 %v12555_v16, %v850_v49  ;;  %2366 = vmatprep.subr.bf16.mxu0 %v7539_v7  ;;  %v7551_v2 = vld [vmem:[%s12443_s3 + $0x604] ss:$8 sps:$4 sm:$0xff]   ;;  %v12563_v49 = vld [vmem:[#allocation29_spill] sm:$0xff] }
 0x1c0   :  { %v9422_v27 = vmax.f32 %v1486_v56, %v1514_v29  ;;  %v1596_v4 = vmax.f32 %v1568_v38, 0.0  ;;  %v1515_v46 = vmax.f32 %v12556_v54, %v1284_v0  ;;  %3663 = vmatprep.subr.bf16.mxu1 %v7542_v57  ;;  %v9432_v44 = vpop.f32.mrf.mxu0  ;;  %v1569_v6 = vadd.f32 %v1541_v61, %v8801_v12  ;;  %v7554_v7 = vld [vmem:[%s12443_s3 + $0x7c4] ss:$8 sps:$4 sm:$0xff]   ;;  %v7560_v16 = vld [vmem:[%s12443_s3 + $0x7b4] ss:$8 sps:$4 sm:$0xff]  }
 0x1c1   :  { %v9434_v3 = vpop.f32.mrf.mxu1  ;;  %v9453_v11 = vpack.c.bf16 %v1595_v43, %v1593_v25  ;;  %v7563_v25 = vld [vmem:[%s12443_s3 + $0x5e4] ss:$8 sps:$4 sm:$0xff]  }
 0x1c2   :  { %v9442_v22 = vpack.c.bf16 %v1596_v4, %v1594_v50  ;;  %v1543_v32 = vmax.f32 %v1487_v14, %v1515_v46  ;;  %v856_v62 = vpop.f32.mrf.mxu0  ;;  %2367 = vmatpush1.bf16.msra.mxu0 %v7537_v52  ;;  %v1597_v57 = vmax.f32 %v1569_v6, 0.0  ;;  %v7549_v50 = vld [vmem:[%s12443_s3 + $0x600] ss:$8 sps:$4 sm:$0xff]   ;;  %v7557_v4 = vld [vmem:[%s12443_s3 + $0x5f4] ss:$8 sps:$4 sm:$0xff]  }
 0x1c3   :  { %v1290_v40 = vpop.f32.mrf.mxu1  ;;  %3664 = vmatpush1.bf16.msra.mxu1 %v7540_v55  ;;  %v1489_v28 = vmax.f32 %v12557_v20, %v856_v62  ;;  %2372 = vmatprep.subr.bf16.mxu0 %v7545_v8  ;;  %v7552_v52 = vld [vmem:[%s12443_s3 + $0x7c0] ss:$8 sps:$4 sm:$0xff]   ;;  %v7555_v8 = vld [vmem:[%s12443_s3 + $0x5f0] ss:$8 sps:$4 sm:$0xff]  }
 0x1c4   :  { %v1517_v19 = vmax.f32 %v12558_v39, %v1290_v40  ;;  %v1571_v26 = vadd.f32 %v1543_v32, %v8801_v12  ;;  %6504 = vmatprep.mubr.msk.bf16.mxu0 %vm1846_vm1, %v9442_v22  ;;  %v858_v33 = vpop.f32.mrf.mxu0  ;;  %3669 = vmatprep.subr.bf16.mxu1 %v7548_v23  ;;  %v7558_v23 = vld [vmem:[%s12443_s3 + $0x7b0] ss:$8 sps:$4 sm:$0xff]   ;;  %v7561_v40 = vld [vmem:[%s12443_s3 + $0x5e0] ss:$8 sps:$4 sm:$0xff]   ;;  %v7572_v39 = vld [vmem:[%s12443_s3 + $0x794] ss:$8 sps:$4 sm:$0xff]  }
 0x1c5   :  { %v1292_v24 = vpop.f32.mrf.mxu1  ;;  %3175 = vmatmul.mubr.bf16.gmra.mxu1 %v12559_v15  ;;  %v1490_v17 = vmax.f32 %v12560_v30, %v858_v33  ;;  %1935 = vmatmul.mubr.bf16.gmra.mxu0 %v9453_v11  ;;  %v7564_v20 = vld [vmem:[%s12443_s3 + $0x7a0] ss:$8 sps:$4 sm:$0xff]   ;;  %v7579_v30 = vld [vmem:[%s12443_s3 + $0x230] ss:$8 sps:$4 sm:$0xff]  }
 0x1c6   :  { %v1545_v36 = vmax.f32 %v1489_v28, %v1517_v19  ;;  %v1599_v61 = vmax.f32 %v1571_v26, 0.0  ;;  %v1518_v56 = vmax.f32 %v12561_v1, %v1292_v24  ;;  %6871 = vmatprep.mubr.msk.bf16.mxu1 %vm1846_vm1, %v9290_v13  ;;  %v860_v45 = vpop.f32.mrf.mxu0  ;;  %2373 = vmatpush2.bf16.msra.mxu0 %v7543_v63  ;;  %v7569_v28 = vld [vmem:[%s12443_s3 + $0x5d4] ss:$8 sps:$4 sm:$0xff]   ;;  %v7567_v19 = vld [vmem:[%s12443_s3 + $0x5d0] ss:$8 sps:$4 sm:$0xff]  }
 0x1c7   :  { %v1294_v29 = vpop.f32.mrf.mxu1  ;;  %3670 = vmatpush2.bf16.msra.mxu1 %v7546_v59  ;;  %v1491_v38 = vmax.f32 %v12562_v53, %v860_v45  ;;  %6594 = vmatprep.mubr.msk.bf16.mxu0 %vm1846_vm1, %v9245_v35  ;;  %v7570_v63 = vld [vmem:[%s12443_s3 + $0x790] ss:$8 sps:$4 sm:$0xff]   ;;  %v7575_v59 = vld [vmem:[%s12443_s3 + $0x5c4] ss:$8 sps:$4 sm:$0xff]   ;;  %v7573_v33 = vld [vmem:[%s12443_s3 + $0x5c0] ss:$8 sps:$4 sm:$0xff]  }
 0x1c8   :  { %v1519_v0 = vmax.f32 %v12563_v49, %v1294_v29  ;;  %v9478_v55 = vpack.c.bf16 %v1599_v61, %v1597_v57  ;;  %v9480_v43 = vmax.f32 %v1490_v17, %v1518_v56  ;;  %2374 = vmatprep.subr.bf16.mxu0 %v7551_v2  ;;  %v1573_v14 = vadd.f32 %v1545_v36, %v8801_v12  ;;  %v7578_v26 = vld [vmem:[%s12443_s3 + $0x784] ss:$8 sps:$4 sm:$0xff]   ;;  %v7576_v24 = vld [vmem:[%s12443_s3 + $0x780] ss:$8 sps:$4 sm:$0xff]   ;;  %v7581_v2 = vld [vmem:[%s12443_s3 + $0x234] ss:$8 sps:$4 sm:$0xff]  }
 0x1c9   :  { %3671 = vmatprep.subr.bf16.mxu1 %v7554_v7  ;;  %v7584_v36 = vld [vmem:[%s12443_s3 + $0x854] ss:$8 sps:$4 sm:$0xff]   ;;  %v7582_v17 = vld [vmem:[%s12443_s3 + $0x850] ss:$8 sps:$4 sm:$0xff]   ;;  %v7587_v7 = vld [vmem:[%s12443_s3 + $0x224] ss:$8 sps:$4 sm:$0xff]  }
 0x1ca   :  { %12564 = vst [vmem:[#allocation3_spill] sm:$0xff] %v9478_v55  ;;  %12565 = vst [vmem:[#allocation15_spill] sm:$0xff] %v9480_v43  ;;  %v1547_v54 = vmax.f32 %v1491_v38, %v1519_v0  ;;  %2375 = vmatpush2.bf16.msra.mxu0 %v7549_v50  ;;  %v1601_v6 = vmax.f32 %v1573_v14, 0.0  ;;  %v7590_v57 = vld [vmem:[%s12443_s3 + $0x844] ss:$8 sps:$4 sm:$0xff]  }
 0x1cb   :  { %3672 = vmatpush2.bf16.msra.mxu1 %v7552_v52  ;;  %2376 = vmatprep.subr.bf16.mxu0 %v7557_v4  ;;  %v7585_v61 = vld [vmem:[%s12443_s3 + $0x220] ss:$8 sps:$4 sm:$0xff]   ;;  %v7593_v56 = vld [vmem:[%s12443_s3 + $0x214] ss:$8 sps:$4 sm:$0xff]   ;;  %v7591_v29 = vld [vmem:[%s12443_s3 + $0x210] ss:$8 sps:$4 sm:$0xff]  }
 0x1cc   :  { %v1575_v46 = vadd.f32 %v1547_v54, %v8801_v12  ;;  %3673 = vmatprep.subr.bf16.mxu1 %v7560_v16  ;;  %v7566_v12 = vld [vmem:[%s12443_s3 + $0x7a4] ss:$8 sps:$4 sm:$0xff]   ;;  %v7588_v1 = vld [vmem:[%s12443_s3 + $0x840] ss:$8 sps:$4 sm:$0xff]   ;;  %v7596_v45 = vld [vmem:[%s12443_s3 + $0x834] ss:$8 sps:$4 sm:$0xff]  }
 0x1cd   :  { %v7594_v53 = vld [vmem:[%s12443_s3 + $0x830] ss:$8 sps:$4 sm:$0xff]   ;;  %v7599_v38 = vld [vmem:[%s12443_s3 + $0x204] ss:$8 sps:$4 sm:$0xff]   ;;  %v7597_v16 = vld [vmem:[%s12443_s3 + $0x200] ss:$8 sps:$4 sm:$0xff]  }
 0x1ce   :  { %v1603_v32 = vmax.f32 %v1575_v46, 0.0  ;;  %2377 = vmatpush2.bf16.msra.mxu0 %v7555_v8  ;;  %v7602_v49 = vld [vmem:[%s12443_s3 + $0x824] ss:$8 sps:$4 sm:$0xff]   ;;  %v7608_v14 = vld [vmem:[%s12443_s3 + $0x814] ss:$8 sps:$4 sm:$0xff]  }
 0x1cf   :  { %3674 = vmatpush2.bf16.msra.mxu1 %v7558_v23  ;;  %2378 = vmatprep.subr.bf16.mxu0 %v7563_v25  ;;  %v12567_v0 = vld [vmem:[#allocation22_spill] sm:$0xff]  ;;  %v12568_v52 = vld [vmem:[#allocation23_spill] sm:$0xff]  ;;  %v7603_v46 = vld [vmem:[%s12443_s3 + $0x1f0] ss:$8 sps:$4 sm:$0xff]  }
 0x1d0   :  { %v9504_v62 = vpack.c.bf16 %v1603_v32, %v1601_v6  ;;  %3675 = vmatprep.subr.bf16.mxu1 %v7566_v12  ;;  %v1488_v50 = vmax.f32 %v12567_v0, %v9432_v44  ;;  %v1516_v4 = vmax.f32 %v12568_v52, %v9434_v3  ;;  %v7600_v44 = vld [vmem:[%s12443_s3 + $0x820] ss:$8 sps:$4 sm:$0xff]   ;;  %v7605_v3 = vld [vmem:[%s12443_s3 + $0x1f4] ss:$8 sps:$4 sm:$0xff]   ;;  %v7606_v8 = vld [vmem:[%s12443_s3 + $0x810] ss:$8 sps:$4 sm:$0xff]   ;;  %v1570_v32 = vadd.f32 %v9422_v27, %v8805_v10  ;;  %v9639_v27 = vpop.f32.mrf.mxu1 }
 0x1d1   :  { %v7611_v23 = vld [vmem:[%s12443_s3 + $0x1e4] ss:$8 sps:$4 sm:$0xff]   ;;  %v7609_v6 = vld [vmem:[%s12443_s3 + $0x1e0] ss:$8 sps:$4 sm:$0xff]   ;;  %12569 = vst [vmem:[#allocation17_spill] sm:$0xff] %v9639_v27 }
 0x1d2   :  { %12566 = vst [vmem:[#allocation16_spill] sm:$0xff] %v9504_v62  ;;  %2379 = vmatpush2.bf16.msra.mxu0 %v7561_v40  ;;  %v1544_v54 = vmax.f32 %v1488_v50, %v1516_v4  ;;  %v7614_v25 = vld [vmem:[%s12443_s3 + $0x804] ss:$8 sps:$4 sm:$0xff]   ;;  %v7612_v40 = vld [vmem:[%s12443_s3 + $0x800] ss:$8 sps:$4 sm:$0xff]   ;;  %v10122_v62 = vpop.f32.mrf.mxu0 }
 0x1d3   :  { %3676 = vmatpush2.bf16.msra.mxu1 %v7564_v20  ;;  %2380 = vmatprep.subr.bf16.mxu0 %v7569_v28  ;;  %v7617_v20 = vld [vmem:[%s12443_s3 + $0x1d4] ss:$8 sps:$4 sm:$0xff]   ;;  %v7633_v50 = vld [vmem:[%s12443_s3 + $0x280] ss:$8 sps:$4 sm:$0xff]   ;;  %12601 = vst [vmem:[#allocation35_spill] sm:$0xff] %v10122_v62 }
 0x1d4   :  { %3677 = vmatprep.subr.bf16.mxu1 %v7572_v39  ;;  %v1572_v12 = vadd.f32 %v1544_v54, %v8805_v10  ;;  %v7620_v28 = vld [vmem:[%s12443_s3 + $0x7f4] ss:$8 sps:$4 sm:$0xff]   ;;  %v7636_v52 = vld [vmem:[%s12443_s3 + $0x8a0] ss:$8 sps:$4 sm:$0xff]   ;;  %v7642_v54 = vld [vmem:[%s12443_s3 + $0x890] ss:$8 sps:$4 sm:$0xff]  }
 0x1d5   :  { %v7641_v4 = vld [vmem:[%s12443_s3 + $0x274] ss:$8 sps:$4 sm:$0xff]   ;;  %v7726_v27 = vld [vmem:[%s12443_s3 + $0x380] ss:$8 sps:$4 sm:$0xff]  }
 0x1d6   :  { %2381 = vmatpush2.bf16.msra.mxu0 %v7567_v19  ;;  %v1600_v39 = vmax.f32 %v1572_v12, 0.0  ;;  %v7615_v19 = vld [vmem:[%s12443_s3 + $0x1d0] ss:$8 sps:$4 sm:$0xff]   ;;  %v7645_v12 = vld [vmem:[%s12443_s3 + $0x260] ss:$8 sps:$4 sm:$0xff]  }
 0x1d7   :  { %3678 = vmatpush2.bf16.msra.mxu1 %v7570_v63  ;;  %2382 = vmatprep.subr.bf16.mxu0 %v7575_v59  ;;  %v1598_v63 = vmax.f32 %v1570_v32, 0.0  ;;  %v7618_v59 = vld [vmem:[%s12443_s3 + $0x7f0] ss:$8 sps:$4 sm:$0xff]   ;;  %v7653_v32 = vld [vmem:[%s12443_s3 + $0x254] ss:$8 sps:$4 sm:$0xff]  }
 0x1d8   :  { %3679 = vmatprep.subr.bf16.mxu1 %v7578_v26 }
 0x1da   :  { %2383 = vmatpush2.bf16.msra.mxu0 %v7573_v33  ;;  %v7623_v33 = vld [vmem:[%s12443_s3 + $0x1c4] ss:$8 sps:$4 sm:$0xff]  }
 0x1db   :  { %3680 = vmatpush2.bf16.msra.mxu1 %v7576_v24  ;;  %2830 = vmatprep.subr.bf16.mxu0 %v7581_v2  ;;  %v7626_v24 = vld [vmem:[%s12443_s3 + $0x7e4] ss:$8 sps:$4 sm:$0xff]   ;;  %v9655_v2 = vpack.c.bf16 %v1600_v39, %v1598_v63  ;;  %v7651_v39 = vld [vmem:[%s12443_s3 + $0x250] ss:$8 sps:$4 sm:$0xff]  }
 0x1dc   :  { %4196 = vmatprep.subr.bf16.mxu1 %v7584_v36  ;;  %v7659_v63 = vld [vmem:[%s12443_s3 + $0x244] ss:$8 sps:$4 sm:$0xff]  }
 0x1dd   :  { %2385 = vmatmul.mubr.bf16.vlgmr.msra.gmra.mxu0 %v9256_v18  ;;  %12570 = vst [vmem:[#allocation14_spill] sm:$0xff] %v9655_v2 }
 0x1de   :  { %3682 = vmatmul.mubr.bf16.vlgmr.msra.gmra.mxu1 %v9297_v21  ;;  %6595 = vmatprep.mubr.msk.bf16.mxu0 %vm1846_vm1, %v9290_v13 }
 0x1df   :  { %2831 = vmatpush1.bf16.msra.mxu0 %v7579_v30  ;;  %6872 = vmatprep.mubr.msk.bf16.mxu1 %vm1846_vm1, %v9342_v51  ;;  %v7621_v30 = vld [vmem:[%s12443_s3 + $0x1c0] ss:$8 sps:$4 sm:$0xff]  }
 0x1e0   :  { %4197 = vmatpush1.bf16.msra.mxu1 %v7582_v17  ;;  %2832 = vmatprep.subr.bf16.mxu0 %v7587_v7  ;;  %v7624_v17 = vld [vmem:[%s12443_s3 + $0x7e0] ss:$8 sps:$4 sm:$0xff]   ;;  %v7629_v7 = vld [vmem:[%s12443_s3 + $0x294] ss:$8 sps:$4 sm:$0xff]  }
 0x1e1   :  { %4198 = vmatprep.subr.bf16.mxu1 %v7590_v57 }
 0x1e3   :  { %2833 = vmatpush1.bf16.msra.mxu0 %v7585_v61  ;;  %v7632_v61 = vld [vmem:[%s12443_s3 + $0x8b4] ss:$8 sps:$4 sm:$0xff]  }
 0x1e4   :  { %4199 = vmatpush1.bf16.msra.mxu1 %v7588_v1  ;;  %2834 = vmatprep.subr.bf16.mxu0 %v7593_v56  ;;  %v7627_v56 = vld [vmem:[%s12443_s3 + $0x290] ss:$8 sps:$4 sm:$0xff]  }
 0x1e5   :  { %4200 = vmatprep.subr.bf16.mxu1 %v7596_v45  ;;  %2395 = vmatmul.mubr.bf16.gmra.mxu0 %v9297_v21  ;;  %v7630_v45 = vld [vmem:[%s12443_s3 + $0x8b0] ss:$8 sps:$4 sm:$0xff]  }
 0x1e6   :  { %3692 = vmatmul.mubr.bf16.gmra.mxu1 %v9355_v58  ;;  %6596 = vmatprep.mubr.msk.bf16.mxu0 %vm1846_vm1, %v9342_v51 }
 0x1e7   :  { %2835 = vmatpush1.bf16.msra.mxu0 %v7591_v29  ;;  %6873 = vmatprep.mubr.msk.bf16.mxu1 %vm1846_vm1, %v9385_v37 }
 0x1e8   :  { %4201 = vmatpush1.bf16.msra.mxu1 %v7594_v53  ;;  %2836 = vmatprep.subr.bf16.mxu0 %v7599_v38  ;;  %v7635_v53 = vld [vmem:[%s12443_s3 + $0x284] ss:$8 sps:$4 sm:$0xff]  }
 0x1e9   :  { %4202 = vmatprep.subr.bf16.mxu1 %v7602_v49  ;;  %v7638_v38 = vld [vmem:[%s12443_s3 + $0x8a4] ss:$8 sps:$4 sm:$0xff]   ;;  %v12573_v49 = vld [vmem:[#allocation13_spill] sm:$0xff] }
 0x1eb   :  { %2837 = vmatpush1.bf16.msra.mxu0 %v7597_v16 }
 0x1ec   :  { %4203 = vmatpush1.bf16.msra.mxu1 %v7600_v44  ;;  %2838 = vmatprep.subr.bf16.mxu0 %v7605_v3  ;;  %v7644_v44 = vld [vmem:[%s12443_s3 + $0x894] ss:$8 sps:$4 sm:$0xff]  }
 0x1ed   :  { %4204 = vmatprep.subr.bf16.mxu1 %v7608_v14  ;;  %2405 = vmatmul.mubr.bf16.gmra.mxu0 %v9355_v58  ;;  %v7639_v14 = vld [vmem:[%s12443_s3 + $0x270] ss:$8 sps:$4 sm:$0xff]  }
 0x1ee   :  { %3702 = vmatmul.mubr.bf16.gmra.mxu1 %v9403_v34  ;;  %6597 = vmatprep.mubr.msk.bf16.mxu0 %vm1846_vm1, %v9385_v37 }
 0x1ef   :  { %2839 = vmatpush1.bf16.msra.mxu0 %v7603_v46  ;;  %6874 = vmatprep.mubr.msk.bf16.mxu1 %vm1846_vm1, %v9442_v22  ;;  %v7647_v46 = vld [vmem:[%s12443_s3 + $0x264] ss:$8 sps:$4 sm:$0xff]  }
 0x1f0   :  { %4205 = vmatpush1.bf16.msra.mxu1 %v7606_v8  ;;  %2840 = vmatprep.subr.bf16.mxu0 %v7611_v23  ;;  %v7650_v23 = vld [vmem:[%s12443_s3 + $0x884] ss:$8 sps:$4 sm:$0xff]  }
 0x1f1   :  { %4206 = vmatprep.subr.bf16.mxu1 %v7614_v25 }
 0x1f3   :  { %2841 = vmatpush1.bf16.msra.mxu0 %v7609_v6  ;;  %v7648_v6 = vld [vmem:[%s12443_s3 + $0x880] ss:$8 sps:$4 sm:$0xff]  }
 0x1f4   :  { %4207 = vmatpush1.bf16.msra.mxu1 %v7612_v40  ;;  %2842 = vmatprep.subr.bf16.mxu0 %v7617_v20  ;;  %v7656_v20 = vld [vmem:[%s12443_s3 + $0x874] ss:$8 sps:$4 sm:$0xff]  }
 0x1f5   :  { %4208 = vmatprep.subr.bf16.mxu1 %v7620_v28  ;;  %v9647_v26 = vpop.f32.mrf.mxu1  ;;  %2415 = vmatmul.mubr.bf16.gmra.mxu0 %v9403_v34 }
 0x1f6   :  { %3712 = vmatmul.mubr.bf16.gmra.mxu1 %v9453_v11  ;;  %6598 = vmatprep.mubr.msk.bf16.mxu0 %vm1846_vm1, %v9442_v22 }
 0x1f7   :  { %2843 = vmatpush1.bf16.msra.mxu0 %v7615_v19  ;;  %v9661_v36 = vpop.f32.mrf.mxu1  ;;  %6875 = vmatprep.mubr.msk.bf16.mxu1 %vm1846_vm1, %v9655_v2  ;;  %v7654_v19 = vld [vmem:[%s12443_s3 + $0x870] ss:$8 sps:$4 sm:$0xff]  }
 0x1f8   :  { %4209 = vmatpush1.bf16.msra.mxu1 %v7618_v59  ;;  %2844 = vmatprep.subr.bf16.mxu0 %v7623_v33  ;;  %v7662_v59 = vld [vmem:[%s12443_s3 + $0x864] ss:$8 sps:$4 sm:$0xff]  }
 0x1f9   :  { %4210 = vmatprep.subr.bf16.mxu1 %v7626_v24  ;;  %v9674_v57 = vpop.f32.mrf.mxu1  ;;  %v7657_v24 = vld [vmem:[%s12443_s3 + $0x240] ss:$8 sps:$4 sm:$0xff]  }
 0x1fb   :  { %2845 = vmatpush1.bf16.msra.mxu0 %v7621_v30  ;;  %v9679_v1 = vpop.f32.mrf.mxu1  ;;  %v7660_v30 = vld [vmem:[%s12443_s3 + $0x860] ss:$8 sps:$4 sm:$0xff]  }
 0x1fc   :  { %12571 = vst [vmem:[#allocation18_spill] sm:$0xff] %v9679_v1  ;;  %4211 = vmatpush1.bf16.msra.mxu1 %v7624_v17  ;;  %2850 = vmatprep.subr.bf16.mxu0 %v7629_v7  ;;  %v7665_v17 = vld [vmem:[%s12443_s3 + $0x314] ss:$8 sps:$4 sm:$0xff]  }
 0x1fd   :  { %4216 = vmatprep.subr.bf16.mxu1 %v7632_v61  ;;  %v9687_v29 = vpop.f32.mrf.mxu1  ;;  %2425 = vmatmul.mubr.bf16.gmra.mxu0 %v9453_v11  ;;  %v7663_v61 = vld [vmem:[%s12443_s3 + $0x310] ss:$8 sps:$4 sm:$0xff]  }
 0x1fe   :  { %12572 = vst [vmem:[#allocation19_spill] sm:$0xff] %v9687_v29  ;;  %3722 = vmatmul.mubr.bf16.gmra.mxu1 %v9478_v55  ;;  %6688 = vmatprep.mubr.msk.bf16.mxu0 %vm1846_vm1, %v12573_v49  ;;  %v7891_v29 = vld [vmem:[%s12443_s3 + $0x100] ss:$8 sps:$4 sm:$0xff]  }
 0x1ff   :  { %2851 = vmatpush2.bf16.msra.mxu0 %v7627_v56  ;;  %v9699_v0 = vpop.f32.mrf.mxu1  ;;  %6993 = vmatprep.mubr.msk.bf16.mxu1 %vm1846_vm1, %v8882_v48  ;;  %v7813_v56 = vld [vmem:[%s12443_s3 + $0x74] ss:$8 sps:$4 sm:$0xff]  }
 0x200   :  { %12574 = vst [vmem:[#allocation20_spill] sm:$0xff] %v9699_v0  ;;  %4217 = vmatpush2.bf16.msra.mxu1 %v7630_v45  ;;  %2852 = vmatprep.subr.bf16.mxu0 %v7635_v53  ;;  %v7668_v45 = vld [vmem:[%s12443_s3 + $0x304] ss:$8 sps:$4 sm:$0xff]  }
 0x201   :  { %4218 = vmatprep.subr.bf16.mxu1 %v7638_v38  ;;  %v9712_v16 = vpop.f32.mrf.mxu1  ;;  %v7666_v38 = vld [vmem:[%s12443_s3 + $0x300] ss:$8 sps:$4 sm:$0xff]  }
 0x202   :  { %12575 = vst [vmem:[#allocation21_spill] sm:$0xff] %v9712_v16 }
 0x203   :  { %2853 = vmatpush2.bf16.msra.mxu0 %v7633_v50  ;;  %v9717_v3 = vpop.f32.mrf.mxu1  ;;  %v7814_v50 = vld [vmem:[%s12443_s3 + $0x70] ss:$8 sps:$4 sm:$0xff]  }
 0x204   :  { %12576 = vst [vmem:[#allocation24_spill] sm:$0xff] %v9717_v3  ;;  %4219 = vmatpush2.bf16.msra.mxu1 %v7636_v52  ;;  %2854 = vmatprep.subr.bf16.mxu0 %v7641_v4  ;;  %v7671_v52 = vld [vmem:[%s12443_s3 + $0x2f4] ss:$8 sps:$4 sm:$0xff]   ;;  %v7815_v4 = vld [vmem:[%s12443_s3 + $0x64] ss:$8 sps:$4 sm:$0xff]  }
 0x205   :  { %4220 = vmatprep.subr.bf16.mxu1 %v7644_v44  ;;  %v9728_v8 = vpop.f32.mrf.mxu1  ;;  %v7840_v3 = vld [vmem:[%s12443_s3 + $0x80] ss:$8 sps:$4 sm:$0xff]  }
 0x206   :  { %12577 = vst [vmem:[#allocation25_spill] sm:$0xff] %v9728_v8 }
 0x207   :  { %2855 = vmatpush2.bf16.msra.mxu0 %v7639_v14  ;;  %v9733_v25 = vpop.f32.mrf.mxu1  ;;  %v7669_v14 = vld [vmem:[%s12443_s3 + $0x2f0] ss:$8 sps:$4 sm:$0xff]  }
 0x208   :  { %12578 = vst [vmem:[#allocation5_spill] sm:$0xff] %v9733_v25  ;;  %4221 = vmatpush2.bf16.msra.mxu1 %v7642_v54  ;;  %2856 = vmatprep.subr.bf16.mxu0 %v7647_v46  ;;  %v7816_v54 = vld [vmem:[%s12443_s3 + $0x60] ss:$8 sps:$4 sm:$0xff]   ;;  %v7674_v46 = vld [vmem:[%s12443_s3 + $0x2e4] ss:$8 sps:$4 sm:$0xff]  }
 0x209   :  { %4222 = vmatprep.subr.bf16.mxu1 %v7650_v23  ;;  %v9744_v40 = vpop.f32.mrf.mxu1  ;;  %v12585_v23 = vld [vmem:[#allocation6_spill] sm:$0xff] }
 0x20a   :  { %12579 = vst [vmem:[#allocation26_spill] sm:$0xff] %v9744_v40 }
 0x20b   :  { %2857 = vmatpush2.bf16.msra.mxu0 %v7645_v12  ;;  %v9749_v28 = vpop.f32.mrf.mxu1  ;;  %v12586_v12 = vld [vmem:[#allocation9_spill] sm:$0xff] }
 0x20c   :  { %12580 = vst [vmem:[#allocation27_spill] sm:$0xff] %v9749_v28  ;;  %4223 = vmatpush2.bf16.msra.mxu1 %v7648_v6  ;;  %2858 = vmatprep.subr.bf16.mxu0 %v7653_v32  ;;  %v1327_v6 = vmax.f32 %v12586_v12, %v12585_v23  ;;  %v12587_v32 = vld [vmem:[#allocation7_spill] sm:$0xff]  ;;  %v7822_v12 = vld [vmem:[%s12443_s3 + $0x30] ss:$8 sps:$4 sm:$0xff]  }
 0x20d   :  { %4224 = vmatprep.subr.bf16.mxu1 %v7656_v20  ;;  %v9763_v33 = vpop.f32.mrf.mxu1  ;;  %v12588_v20 = vld [vmem:[#allocation10_spill] sm:$0xff] }
 0x20e   :  { %12581 = vst [vmem:[#allocation28_spill] sm:$0xff] %v9763_v33  ;;  %v7678_v23 = vld [vmem:[%s12443_s3 + $0x2c0] ss:$8 sps:$4 sm:$0xff]  }
 0x20f   :  { %2859 = vmatpush2.bf16.msra.mxu0 %v7651_v39  ;;  %v9774_v7 = vpop.f32.mrf.mxu1  ;;  %v1355_v39 = vmax.f32 %v12588_v20, %v12587_v32  ;;  %v7823_v20 = vld [vmem:[%s12443_s3 + $0x24] ss:$8 sps:$4 sm:$0xff]   ;;  %v7702_v28 = vld [vmem:[%s12443_s3 + $0x320] ss:$8 sps:$4 sm:$0xff]  }
 0x210   :  { %4225 = vmatpush2.bf16.msra.mxu1 %v7654_v19  ;;  %2860 = vmatprep.subr.bf16.mxu0 %v7659_v63  ;;  %12582 = vst [vmem:[#allocation29_spill] sm:$0xff] %v9774_v7  ;;  %v7817_v19 = vld [vmem:[%s12443_s3 + $0x54] ss:$8 sps:$4 sm:$0xff]  }
 0x211   :  { %4226 = vmatprep.subr.bf16.mxu1 %v7662_v59  ;;  %v9786_v53 = vpop.f32.mrf.mxu1  ;;  %v7672_v59 = vld [vmem:[%s12443_s3 + $0x2e0] ss:$8 sps:$4 sm:$0xff]  }
 0x212   :  { %12583 = vst [vmem:[#allocation22_spill] sm:$0xff] %v9786_v53 }
 0x213   :  { %2861 = vmatpush2.bf16.msra.mxu0 %v7657_v24  ;;  %v9805_v44 = vpop.f32.mrf.mxu1  ;;  %v7818_v24 = vld [vmem:[%s12443_s3 + $0x50] ss:$8 sps:$4 sm:$0xff]  }
 0x214   :  { %4227 = vmatpush2.bf16.msra.mxu1 %v7660_v30  ;;  %3377 = vmatprep.subr.bf16.mxu0 %v7665_v17  ;;  %12584 = vst [vmem:[#allocation23_spill] sm:$0xff] %v9805_v44  ;;  %v7677_v30 = vld [vmem:[%s12443_s3 + $0x2d4] ss:$8 sps:$4 sm:$0xff]   ;;  %v1383_v17 = vmax.f32 %v1327_v6, %v1355_v39  ;;  %v7699_v44 = vld [vmem:[%s12443_s3 + $0x330] ss:$8 sps:$4 sm:$0xff]  }
 0x215   :  { %4402 = vmatprep.subr.bf16.mxu1 %v7813_v56  ;;  %v9824_v63 = vpop.f32.mrf.mxu1  ;;  %v7683_v6 = vld [vmem:[%s12443_s3 + $0x2b4] ss:$8 sps:$4 sm:$0xff]  }
 0x216   :  { %2863 = vmatmul.mubr.bf16.vlgmr.msra.gmra.mxu0 %v8857_v31  ;;  %12589 = vst [vmem:[#allocation13_spill] sm:$0xff] %v9824_v63 }
 0x217   :  { %4229 = vmatmul.mubr.bf16.vlgmr.msra.gmra.mxu1 %v8888_v5  ;;  %6689 = vmatprep.mubr.msk.bf16.mxu0 %vm1846_vm1, %v8882_v48  ;;  %v9843_v56 = vpop.f32.mrf.mxu1 }
 0x218   :  { %3378 = vmatpush1.bf16.msra.mxu0 %v7663_v61  ;;  %6994 = vmatprep.mubr.msk.bf16.mxu1 %vm1846_vm1, %v8914_v47  ;;  %v7819_v61 = vld [vmem:[%s12443_s3 + $0x44] ss:$8 sps:$4 sm:$0xff]   ;;  %12590 = vst [vmem:[#allocation6_spill] sm:$0xff] %v9843_v56 }
 0x219   :  { %4403 = vmatpush1.bf16.msra.mxu1 %v7814_v50  ;;  %3379 = vmatprep.subr.bf16.mxu0 %v7668_v45  ;;  %v7675_v45 = vld [vmem:[%s12443_s3 + $0x2d0] ss:$8 sps:$4 sm:$0xff]   ;;  %v7680_v50 = vld [vmem:[%s12443_s3 + $0x2c4] ss:$8 sps:$4 sm:$0xff]  }
 0x21a   :  { %4404 = vmatprep.subr.bf16.mxu1 %v7815_v4  ;;  %v7821_v4 = vld [vmem:[%s12443_s3 + $0x34] ss:$8 sps:$4 sm:$0xff]  }
 0x21c   :  { %3380 = vmatpush1.bf16.msra.mxu0 %v7666_v38  ;;  %v7820_v38 = vld [vmem:[%s12443_s3 + $0x40] ss:$8 sps:$4 sm:$0xff]  }
 0x21d   :  { %4405 = vmatpush1.bf16.msra.mxu1 %v7816_v54  ;;  %3381 = vmatprep.subr.bf16.mxu0 %v7671_v52  ;;  %v1422_v52 = vadd.f32 %v8805_v10, %v1383_v17  ;;  %v12592_v54 = vld [vmem:[#allocation4_spill] sm:$0xff]  ;;  %v7686_v17 = vld [vmem:[%s12443_s3 + $0x2a4] ss:$8 sps:$4 sm:$0xff]  }
 0x21e   :  { %2873 = vmatmul.mubr.bf16.gmra.mxu0 %v8888_v5  ;;  %4406 = vmatprep.subr.bf16.mxu1 %v7817_v19 }
 0x21f   :  { %4239 = vmatmul.mubr.bf16.gmra.mxu1 %v8920_v60  ;;  %6690 = vmatprep.mubr.msk.bf16.mxu0 %vm1846_vm1, %v8914_v47  ;;  %v1450_v32 = vmax.f32 %v1422_v52, 0.0  ;;  %v7826_v52 = vld [vmem:[%s12443_s3 + $0x10] ss:$8 sps:$4 sm:$0xff]  }
 0x220   :  { %3382 = vmatpush1.bf16.msra.mxu0 %v7669_v14  ;;  %6995 = vmatprep.mubr.msk.bf16.mxu1 %vm1846_vm1, %v8949_v41  ;;  %v9859_v14 = vpop.f32.mrf.mxu1 }
 0x221   :  { %4407 = vmatpush1.bf16.msra.mxu1 %v7818_v24  ;;  %3383 = vmatprep.subr.bf16.mxu0 %v7674_v46  ;;  %12591 = vst [vmem:[#allocation9_spill] sm:$0xff] %v9859_v14  ;;  %v1420_v46 = vadd.f32 %v8805_v10, %v12592_v54  ;;  %v7824_v24 = vld [vmem:[%s12443_s3 + $0x20] ss:$8 sps:$4 sm:$0xff]   ;;  %v7689_v54 = vld [vmem:[%s12443_s3 + $0x374] ss:$8 sps:$4 sm:$0xff]  }
 0x222   :  { %4408 = vmatprep.subr.bf16.mxu1 %v7819_v61  ;;  %v9880_v39 = vpop.f32.mrf.mxu1  ;;  %v7825_v61 = vld [vmem:[%s12443_s3 + $0x14] ss:$8 sps:$4 sm:$0xff]   ;;  %v7855_v14 = vld [vmem:[%s12443_s3 + $0x464] ss:$8 sps:$4 sm:$0xff]  }
 0x223   :  { %12593 = vst [vmem:[#allocation7_spill] sm:$0xff] %v9880_v39  ;;  %v1448_v19 = vmax.f32 %v1420_v46, 0.0  ;;  %v7827_v46 = vld [vmem:[%s12443_s3 + $0x4] ss:$8 sps:$4 sm:$0xff]   ;;  %v7701_v39 = vld [vmem:[%s12443_s3 + $0x334] ss:$8 sps:$4 sm:$0xff]  }
 0x224   :  { %3384 = vmatpush1.bf16.msra.mxu0 %v7672_v59  ;;  %v7681_v59 = vld [vmem:[%s12443_s3 + $0x2b0] ss:$8 sps:$4 sm:$0xff]  }
 0x225   :  { %4409 = vmatpush1.bf16.msra.mxu1 %v7820_v38  ;;  %3385 = vmatprep.subr.bf16.mxu0 %v7677_v30 }
 0x226   :  { %2883 = vmatmul.mubr.bf16.gmra.mxu0 %v8920_v60  ;;  %4410 = vmatprep.subr.bf16.mxu1 %v7821_v4 }
 0x227   :  { %4249 = vmatmul.mubr.bf16.gmra.mxu1 %v12552_v42  ;;  %6691 = vmatprep.mubr.msk.bf16.mxu0 %vm1846_vm1, %v8949_v41 }
 0x228   :  { %3386 = vmatpush1.bf16.msra.mxu0 %v7675_v45  ;;  %6996 = vmatprep.mubr.msk.bf16.mxu1 %vm1846_vm1, %v9391_v9  ;;  %v9897_v45 = vpack.c.bf16 %v1450_v32, %v1448_v19  ;;  %v7829_v19 = vld [vmem:[%s12443_s3 + $0xd4] ss:$8 sps:$4 sm:$0xff]  }
 0x229   :  { %4411 = vmatpush1.bf16.msra.mxu1 %v7822_v12  ;;  %3387 = vmatprep.subr.bf16.mxu0 %v7680_v50  ;;  %v7684_v50 = vld [vmem:[%s12443_s3 + $0x2a0] ss:$8 sps:$4 sm:$0xff]   ;;  %v7687_v12 = vld [vmem:[%s12443_s3 + $0x370] ss:$8 sps:$4 sm:$0xff]  }
 0x22a   :  { %4412 = vmatprep.subr.bf16.mxu1 %v7823_v20  ;;  %12594 = vst [vmem:[#allocation10_spill] sm:$0xff] %v9897_v45  ;;  %v7692_v20 = vld [vmem:[%s12443_s3 + $0x364] ss:$8 sps:$4 sm:$0xff]  }
 0x22c   :  { %3388 = vmatpush1.bf16.msra.mxu0 %v7678_v23 }
 0x22d   :  { %4413 = vmatpush1.bf16.msra.mxu1 %v7824_v24  ;;  %v9888_v30 = vpop.f32.mrf.mxu1  ;;  %3389 = vmatprep.subr.bf16.mxu0 %v7683_v6  ;;  %v7828_v6 = vld [vmem:[%s12443_s3] ss:$8 sps:$4 sm:$0xff]  }
 0x22e   :  { %2893 = vmatmul.mubr.bf16.gmra.mxu0 %v12552_v42  ;;  %4414 = vmatprep.subr.bf16.mxu1 %v7825_v61  ;;  %v7830_v61 = vld [vmem:[%s12443_s3 + $0xd0] ss:$8 sps:$4 sm:$0xff]  }
 0x22f   :  { %4259 = vmatmul.mubr.bf16.gmra.mxu1 %v12559_v15  ;;  %6692 = vmatprep.mubr.msk.bf16.mxu0 %vm1846_vm1, %v9391_v9  ;;  %v9902_v38 = vpop.f32.mrf.mxu1 }
 0x230   :  { %3390 = vmatpush1.bf16.msra.mxu0 %v7681_v59  ;;  %6997 = vmatprep.mubr.msk.bf16.mxu1 %vm1846_vm1, %v9897_v45  ;;  %v12596_v59 = vld [vmem:[#allocation8_spill] sm:$0xff] }
 0x231   :  { %4415 = vmatpush1.bf16.msra.mxu1 %v7826_v52  ;;  %v9912_v4 = vpop.f32.mrf.mxu1  ;;  %3391 = vmatprep.subr.bf16.mxu0 %v7686_v17  ;;  %v7690_v17 = vld [vmem:[%s12443_s3 + $0x360] ss:$8 sps:$4 sm:$0xff]   ;;  %v7695_v52 = vld [vmem:[%s12443_s3 + $0x354] ss:$8 sps:$4 sm:$0xff]  }
 0x232   :  { %4416 = vmatprep.subr.bf16.mxu1 %v7827_v46 }
 0x233   :  { %v9920_v23 = vpop.f32.mrf.mxu1 }
 0x234   :  { %12595 = vst [vmem:[#allocation4_spill] sm:$0xff] %v9920_v23  ;;  %3392 = vmatpush1.bf16.msra.mxu0 %v7684_v50 }
 0x235   :  { %4417 = vmatpush1.bf16.msra.mxu1 %v7828_v6  ;;  %v9928_v32 = vpop.f32.mrf.mxu1  ;;  %3397 = vmatprep.subr.bf16.mxu0 %v7689_v54  ;;  %v7831_v54 = vld [vmem:[%s12443_s3 + $0xc4] ss:$8 sps:$4 sm:$0xff]   ;;  %v7832_v6 = vld [vmem:[%s12443_s3 + $0xc0] ss:$8 sps:$4 sm:$0xff]  }
 0x236   :  { %2903 = vmatmul.mubr.bf16.gmra.mxu0 %v12559_v15  ;;  %4422 = vmatprep.subr.bf16.mxu1 %v7829_v19  ;;  %v7698_v19 = vld [vmem:[%s12443_s3 + $0x344] ss:$8 sps:$4 sm:$0xff]  }
 0x237   :  { %4269 = vmatmul.mubr.bf16.gmra.mxu1 %v12596_v59  ;;  %6810 = vmatprep.mubr.msk.bf16.mxu0 %vm1846_vm1, %v9290_v13  ;;  %v9940_v24 = vpop.f32.mrf.mxu1 }
 0x238   :  { %3398 = vmatpush2.bf16.msra.mxu0 %v7687_v12  ;;  %7003 = vmatprep.mubr.msk.bf16.mxu1 %vm1846_vm1, %v9245_v35  ;;  %v7693_v12 = vld [vmem:[%s12443_s3 + $0x350] ss:$8 sps:$4 sm:$0xff]  }
 0x239   :  { %4423 = vmatpush2.bf16.msra.mxu1 %v7830_v61  ;;  %v9950_v50 = vpop.f32.mrf.mxu1  ;;  %3399 = vmatprep.subr.bf16.mxu0 %v7692_v20 }
 0x23a   :  { %4424 = vmatprep.subr.bf16.mxu1 %v7831_v54  ;;  %v7696_v54 = vld [vmem:[%s12443_s3 + $0x340] ss:$8 sps:$4 sm:$0xff]  }
 0x23b   :  { %v9958_v46 = vpop.f32.mrf.mxu1 }
 0x23c   :  { %12597 = vst [vmem:[#allocation8_spill] sm:$0xff] %v9958_v46  ;;  %3400 = vmatpush2.bf16.msra.mxu0 %v7690_v17  ;;  %v7833_v17 = vld [vmem:[%s12443_s3 + $0xb4] ss:$8 sps:$4 sm:$0xff]   ;;  %v7717_v46 = vld [vmem:[%s12443_s3 + $0x3b0] ss:$8 sps:$4 sm:$0xff]  }
 0x23d   :  { %4425 = vmatpush2.bf16.msra.mxu1 %v7832_v6  ;;  %v9966_v20 = vpop.f32.mrf.mxu1  ;;  %3401 = vmatprep.subr.bf16.mxu0 %v7695_v52  ;;  %v7834_v52 = vld [vmem:[%s12443_s3 + $0xb0] ss:$8 sps:$4 sm:$0xff]  }
 0x23e   :  { %4426 = vmatprep.subr.bf16.mxu1 %v7833_v17 }
 0x23f   :  { %v9974_v61 = vpop.f32.mrf.mxu1 }
 0x240   :  { %3402 = vmatpush2.bf16.msra.mxu0 %v7693_v12  ;;  %v7835_v12 = vld [vmem:[%s12443_s3 + $0xa4] ss:$8 sps:$4 sm:$0xff]  }
 0x241   :  { %4427 = vmatpush2.bf16.msra.mxu1 %v7834_v52  ;;  %v9982_v6 = vpop.f32.mrf.mxu1  ;;  %3403 = vmatprep.subr.bf16.mxu0 %v7698_v19  ;;  %v7836_v19 = vld [vmem:[%s12443_s3 + $0xa0] ss:$8 sps:$4 sm:$0xff]   ;;  %v7704_v52 = vld [vmem:[%s12443_s3 + $0x324] ss:$8 sps:$4 sm:$0xff]  }
 0x242   :  { %4428 = vmatprep.subr.bf16.mxu1 %v7835_v12  ;;  %v7837_v12 = vld [vmem:[%s12443_s3 + $0x94] ss:$8 sps:$4 sm:$0xff]  }
 0x243   :  { %v9990_v17 = vpop.f32.mrf.mxu1 }
 0x244   :  { %12598 = vst [vmem:[#allocation32_spill] sm:$0xff] %v9990_v17  ;;  %3404 = vmatpush2.bf16.msra.mxu0 %v7696_v54  ;;  %v7711_v17 = vld [vmem:[%s12443_s3 + $0x3d0] ss:$8 sps:$4 sm:$0xff]  }
 0x245   :  { %4429 = vmatpush2.bf16.msra.mxu1 %v7836_v19  ;;  %3405 = vmatprep.subr.bf16.mxu0 %v7701_v39  ;;  %v10004_v54 = vpop.f32.mrf.mxu1  ;;  %v7838_v39 = vld [vmem:[%s12443_s3 + $0x90] ss:$8 sps:$4 sm:$0xff]   ;;  %v7707_v19 = vld [vmem:[%s12443_s3 + $0x3f4] ss:$8 sps:$4 sm:$0xff]  }
 0x246   :  { %4430 = vmatprep.subr.bf16.mxu1 %v7837_v12  ;;  %v7839_v12 = vld [vmem:[%s12443_s3 + $0x84] ss:$8 sps:$4 sm:$0xff]  }
 0x248   :  { %3406 = vmatpush2.bf16.msra.mxu0 %v7699_v44  ;;  %v10018_v44 = vpop.f32.mrf.mxu1 }
 0x249   :  { %4431 = vmatpush2.bf16.msra.mxu1 %v7838_v39  ;;  %3407 = vmatprep.subr.bf16.mxu0 %v7704_v52  ;;  %v7705_v52 = vld [vmem:[%s12443_s3 + $0x3f0] ss:$8 sps:$4 sm:$0xff]   ;;  %v7841_v39 = vld [vmem:[%s12443_s3 + $0x4d4] ss:$8 sps:$4 sm:$0xff]  }
 0x24a   :  { %4432 = vmatprep.subr.bf16.mxu1 %v7839_v12  ;;  %v7710_v12 = vld [vmem:[%s12443_s3 + $0x3e4] ss:$8 sps:$4 sm:$0xff]  }
 0x24c   :  { %3408 = vmatpush2.bf16.msra.mxu0 %v7702_v28  ;;  %v10032_v28 = vpop.f32.mrf.mxu1 }
 0x24d   :  { %4433 = vmatpush2.bf16.msra.mxu1 %v7840_v3  ;;  %3924 = vmatprep.subr.bf16.mxu0 %v7707_v19  ;;  %v7708_v3 = vld [vmem:[%s12443_s3 + $0x3e0] ss:$8 sps:$4 sm:$0xff]   ;;  %v7842_v19 = vld [vmem:[%s12443_s3 + $0x4d0] ss:$8 sps:$4 sm:$0xff]  }
 0x24e   :  { %4568 = vmatprep.subr.bf16.mxu1 %v7841_v39  ;;  %v7713_v39 = vld [vmem:[%s12443_s3 + $0x3d4] ss:$8 sps:$4 sm:$0xff]   ;;  %v10049_v1 = vpop.f32.mrf.mxu1 }
 0x24f   :  { %3410 = vmatmul.mubr.bf16.vlgmr.msra.gmra.mxu0 %v9297_v21  ;;  %12599 = vst [vmem:[#allocation33_spill] sm:$0xff] %v10049_v1 }
 0x250   :  { %4435 = vmatmul.mubr.bf16.vlgmr.msra.gmra.mxu1 %v9256_v18  ;;  %6811 = vmatprep.mubr.msk.bf16.mxu0 %vm1846_vm1, %v9342_v51  ;;  %v10063_v1 = vpop.f32.mrf.mxu1 }
 0x251   :  { %3925 = vmatpush1.bf16.msra.mxu0 %v7705_v52  ;;  %7004 = vmatprep.mubr.msk.bf16.mxu1 %vm1846_vm1, %v9290_v13  ;;  %v7843_v52 = vld [vmem:[%s12443_s3 + $0x4c4] ss:$8 sps:$4 sm:$0xff]  }
 0x252   :  { %4569 = vmatpush1.bf16.msra.mxu1 %v7842_v19  ;;  %3926 = vmatprep.subr.bf16.mxu0 %v7710_v12  ;;  %v7844_v12 = vld [vmem:[%s12443_s3 + $0x4c0] ss:$8 sps:$4 sm:$0xff]   ;;  %v7716_v19 = vld [vmem:[%s12443_s3 + $0x3c4] ss:$8 sps:$4 sm:$0xff]  }
 0x253   :  { %4570 = vmatprep.subr.bf16.mxu1 %v7843_v52  ;;  %v7846_v52 = vld [vmem:[%s12443_s3 + $0x4b0] ss:$8 sps:$4 sm:$0xff]  }
 0x255   :  { %3927 = vmatpush1.bf16.msra.mxu0 %v7708_v3  ;;  %v7845_v3 = vld [vmem:[%s12443_s3 + $0x4b4] ss:$8 sps:$4 sm:$0xff]  }
 0x256   :  { %4571 = vmatpush1.bf16.msra.mxu1 %v7844_v12  ;;  %3928 = vmatprep.subr.bf16.mxu0 %v7713_v39  ;;  %v7714_v39 = vld [vmem:[%s12443_s3 + $0x3c0] ss:$8 sps:$4 sm:$0xff]   ;;  %v7719_v12 = vld [vmem:[%s12443_s3 + $0x3b4] ss:$8 sps:$4 sm:$0xff]  }
 0x257   :  { %3420 = vmatmul.mubr.bf16.gmra.mxu0 %v9355_v58  ;;  %4572 = vmatprep.subr.bf16.mxu1 %v7845_v3  ;;  %v10083_v3 = vpop.f32.mrf.mxu1 }
 0x258   :  { %4445 = vmatmul.mubr.bf16.gmra.mxu1 %v9297_v21  ;;  %6812 = vmatprep.mubr.msk.bf16.mxu0 %vm1846_vm1, %v9385_v37 }
 0x259   :  { %3929 = vmatpush1.bf16.msra.mxu0 %v7711_v17  ;;  %7005 = vmatprep.mubr.msk.bf16.mxu1 %vm1846_vm1, %v9342_v51  ;;  %v7847_v17 = vld [vmem:[%s12443_s3 + $0x4a4] ss:$8 sps:$4 sm:$0xff]   ;;  %v10097_v23 = vpop.f32.mrf.mxu1 }
 0x25a   :  { %4573 = vmatpush1.bf16.msra.mxu1 %v7846_v52  ;;  %3930 = vmatprep.subr.bf16.mxu0 %v7716_v19  ;;  %v7848_v19 = vld [vmem:[%s12443_s3 + $0x4a0] ss:$8 sps:$4 sm:$0xff]   ;;  %v7722_v52 = vld [vmem:[%s12443_s3 + $0x3a4] ss:$8 sps:$4 sm:$0xff]  }
 0x25b   :  { %4574 = vmatprep.subr.bf16.mxu1 %v7847_v17  ;;  %v7850_v17 = vld [vmem:[%s12443_s3 + $0x490] ss:$8 sps:$4 sm:$0xff]  }
 0x25d   :  { %3931 = vmatpush1.bf16.msra.mxu0 %v7714_v39  ;;  %v7849_v39 = vld [vmem:[%s12443_s3 + $0x494] ss:$8 sps:$4 sm:$0xff]  }
 0x25e   :  { %4575 = vmatpush1.bf16.msra.mxu1 %v7848_v19  ;;  %3932 = vmatprep.subr.bf16.mxu0 %v7719_v12  ;;  %v7720_v12 = vld [vmem:[%s12443_s3 + $0x3a0] ss:$8 sps:$4 sm:$0xff]   ;;  %v7725_v19 = vld [vmem:[%s12443_s3 + $0x394] ss:$8 sps:$4 sm:$0xff]  }
 0x25f   :  { %3430 = vmatmul.mubr.bf16.gmra.mxu0 %v9403_v34  ;;  %4576 = vmatprep.subr.bf16.mxu1 %v7849_v39  ;;  %v10117_v39 = vpop.f32.mrf.mxu1 }
 0x260   :  { %4455 = vmatmul.mubr.bf16.gmra.mxu1 %v9355_v58  ;;  %6813 = vmatprep.mubr.msk.bf16.mxu0 %vm1846_vm1, %v9442_v22  ;;  %12600 = vst [vmem:[#allocation34_spill] sm:$0xff] %v10117_v39 }
 0x261   :  { %3933 = vmatpush1.bf16.msra.mxu0 %v7717_v46  ;;  %7006 = vmatprep.mubr.msk.bf16.mxu1 %vm1846_vm1, %v9385_v37  ;;  %v7851_v46 = vld [vmem:[%s12443_s3 + $0x484] ss:$8 sps:$4 sm:$0xff]  }
 0x262   :  { %4577 = vmatpush1.bf16.msra.mxu1 %v7850_v17  ;;  %3934 = vmatprep.subr.bf16.mxu0 %v7722_v52  ;;  %v7723_v52 = vld [vmem:[%s12443_s3 + $0x390] ss:$8 sps:$4 sm:$0xff]   ;;  %v7852_v17 = vld [vmem:[%s12443_s3 + $0x480] ss:$8 sps:$4 sm:$0xff]  }
 0x263   :  { %4578 = vmatprep.subr.bf16.mxu1 %v7851_v46  ;;  %v7728_v46 = vld [vmem:[%s12443_s3 + $0x384] ss:$8 sps:$4 sm:$0xff]  }
 0x265   :  { %3935 = vmatpush1.bf16.msra.mxu0 %v7720_v12  ;;  %v10124_v43 = vpop.f32.mrf.mxu1  ;;  %v10132_v39 = vpop.f32.mrf.mxu0  ;;  %v7853_v12 = vld [vmem:[%s12443_s3 + $0x474] ss:$8 sps:$4 sm:$0xff]  }
 0x266   :  { %4579 = vmatpush1.bf16.msra.mxu1 %v7852_v17  ;;  %3936 = vmatprep.subr.bf16.mxu0 %v7725_v19 }
 0x267   :  { %3440 = vmatmul.mubr.bf16.gmra.mxu0 %v9453_v11  ;;  %4580 = vmatprep.subr.bf16.mxu1 %v7853_v12  ;;  %v10141_v10 = vpop.f32.mrf.mxu1  ;;  %v10146_v19 = vpop.f32.mrf.mxu0  ;;  %v7854_v12 = vld [vmem:[%s12443_s3 + $0x470] ss:$8 sps:$4 sm:$0xff]  }
 0x268   :  { %4465 = vmatmul.mubr.bf16.gmra.mxu1 %v9403_v34  ;;  %6814 = vmatprep.mubr.msk.bf16.mxu0 %vm1846_vm1, %v9655_v2 }
 0x269   :  { %3937 = vmatpush1.bf16.msra.mxu0 %v7723_v52  ;;  %7007 = vmatprep.mubr.msk.bf16.mxu1 %vm1846_vm1, %v9442_v22  ;;  %v10150_v17 = vpop.f32.mrf.mxu1  ;;  %v10158_v62 = vpop.f32.mrf.mxu0  ;;  %v7731_v52 = vld [vmem:[%s12443_s3 + $0x454] ss:$8 sps:$4 sm:$0xff]  }
 0x26a   :  { %4581 = vmatpush1.bf16.msra.mxu1 %v7854_v12  ;;  %3938 = vmatprep.subr.bf16.mxu0 %v7728_v46  ;;  %v7729_v46 = vld [vmem:[%s12443_s3 + $0x450] ss:$8 sps:$4 sm:$0xff]   ;;  %v7856_v12 = vld [vmem:[%s12443_s3 + $0x460] ss:$8 sps:$4 sm:$0xff]  }
 0x26b   :  { %4582 = vmatprep.subr.bf16.mxu1 %v7855_v14  ;;  %v10166_v56 = vpop.f32.mrf.mxu1  ;;  %v10168_v63 = vpop.f32.mrf.mxu0  ;;  %v7734_v14 = vld [vmem:[%s12443_s3 + $0x444] ss:$8 sps:$4 sm:$0xff]  }
 0x26c   :  { %12602 = vst [vmem:[#allocation36_spill] sm:$0xff] %v10166_v56  ;;  %12603 = vst [vmem:[#allocation37_spill] sm:$0xff] %v10168_v63  ;;  %v7732_v63 = vld [vmem:[%s12443_s3 + $0x440] ss:$8 sps:$4 sm:$0xff]  }
 0x26d   :  { %3939 = vmatpush1.bf16.msra.mxu0 %v7726_v27  ;;  %v10170_v53 = vpop.f32.mrf.mxu1  ;;  %v10178_v7 = vpop.f32.mrf.mxu0  ;;  %v7857_v27 = vld [vmem:[%s12443_s3 + $0x534] ss:$8 sps:$4 sm:$0xff]  }
 0x26e   :  { %4583 = vmatpush1.bf16.msra.mxu1 %v7856_v12  ;;  %3944 = vmatprep.subr.bf16.mxu0 %v7731_v52  ;;  %12604 = vst [vmem:[#allocation38_spill] sm:$0xff] %v10178_v7 }
 0x26f   :  { %3450 = vmatmul.mubr.bf16.gmra.mxu0 %v9478_v55  ;;  %4588 = vmatprep.subr.bf16.mxu1 %v7857_v27  ;;  %v10187_v56 = vpop.f32.mrf.mxu1  ;;  %v10192_v52 = vpop.f32.mrf.mxu0  ;;  %v7858_v27 = vld [vmem:[%s12443_s3 + $0x530] ss:$8 sps:$4 sm:$0xff]  }
 0x270   :  { %4475 = vmatmul.mubr.bf16.gmra.mxu1 %v9453_v11  ;;  %6932 = vmatprep.mubr.msk.bf16.mxu0 %vm1846_vm1, %v8882_v48  ;;  %12605 = vst [vmem:[#allocation39_spill] sm:$0xff] %v10192_v52 }
 0x271   :  { %3945 = vmatpush2.bf16.msra.mxu0 %v7729_v46  ;;  %7013 = vmatprep.mubr.msk.bf16.mxu1 %vm1846_vm1, %v9245_v35  ;;  %v10196_v12 = vpop.f32.mrf.mxu1  ;;  %v10204_v33 = vpop.f32.mrf.mxu0  ;;  %v7737_v46 = vld [vmem:[%s12443_s3 + $0x434] ss:$8 sps:$4 sm:$0xff]   ;;  %v7859_v35 = vld [vmem:[%s12443_s3 + $0x524] ss:$8 sps:$4 sm:$0xff]  }
 0x272   :  { %4589 = vmatpush2.bf16.msra.mxu1 %v7858_v27  ;;  %3946 = vmatprep.subr.bf16.mxu0 %v7734_v14  ;;  %12606 = vst [vmem:[#allocation40_spill] sm:$0xff] %v10204_v33  ;;  %v7735_v14 = vld [vmem:[%s12443_s3 + $0x430] ss:$8 sps:$4 sm:$0xff]   ;;  %v7860_v27 = vld [vmem:[%s12443_s3 + $0x520] ss:$8 sps:$4 sm:$0xff]  }
 0x273   :  { %4590 = vmatprep.subr.bf16.mxu1 %v7859_v35  ;;  %v10212_v40 = vpop.f32.mrf.mxu1  ;;  %v10214_v25 = vpop.f32.mrf.mxu0  ;;  %v7740_v35 = vld [vmem:[%s12443_s3 + $0x424] ss:$8 sps:$4 sm:$0xff]  }
 0x274   :  { %12607 = vst [vmem:[#allocation41_spill] sm:$0xff] %v10212_v40  ;;  %12608 = vst [vmem:[#allocation42_spill] sm:$0xff] %v10214_v25 }
 0x275   :  { %3947 = vmatpush2.bf16.msra.mxu0 %v7732_v63  ;;  %v10216_v8 = vpop.f32.mrf.mxu1  ;;  %v10224_v55 = vpop.f32.mrf.mxu0  ;;  %v7861_v63 = vld [vmem:[%s12443_s3 + $0x514] ss:$8 sps:$4 sm:$0xff]  }
 0x276   :  { %4591 = vmatpush2.bf16.msra.mxu1 %v7860_v27  ;;  %3948 = vmatprep.subr.bf16.mxu0 %v7737_v46  ;;  %12609 = vst [vmem:[#allocation43_spill] sm:$0xff] %v10224_v55  ;;  %v7738_v46 = vld [vmem:[%s12443_s3 + $0x420] ss:$8 sps:$4 sm:$0xff]   ;;  %v7862_v27 = vld [vmem:[%s12443_s3 + $0x510] ss:$8 sps:$4 sm:$0xff]  }
 0x277   :  { %4592 = vmatprep.subr.bf16.mxu1 %v7861_v63  ;;  %v10232_v40 = vpop.f32.mrf.mxu1  ;;  %v10234_v25 = vpop.f32.mrf.mxu0  ;;  %v7743_v63 = vld [vmem:[%s12443_s3 + $0x414] ss:$8 sps:$4 sm:$0xff]  }
 0x278   :  { %12610 = vst [vmem:[#allocation44_spill] sm:$0xff] %v10234_v25 }
 0x279   :  { %3949 = vmatpush2.bf16.msra.mxu0 %v7735_v14  ;;  %v10236_v16 = vpop.f32.mrf.mxu1  ;;  %v10244_v55 = vpop.f32.mrf.mxu0  ;;  %v7863_v14 = vld [vmem:[%s12443_s3 + $0x504] ss:$8 sps:$4 sm:$0xff]  }
 0x27a   :  { %4593 = vmatpush2.bf16.msra.mxu1 %v7862_v27  ;;  %3950 = vmatprep.subr.bf16.mxu0 %v7740_v35  ;;  %12611 = vst [vmem:[#allocation45_spill] sm:$0xff] %v10244_v55  ;;  %v7741_v35 = vld [vmem:[%s12443_s3 + $0x410] ss:$8 sps:$4 sm:$0xff]   ;;  %v7864_v27 = vld [vmem:[%s12443_s3 + $0x500] ss:$8 sps:$4 sm:$0xff]  }
 0x27b   :  { %4594 = vmatprep.subr.bf16.mxu1 %v7863_v14  ;;  %v10252_v25 = vpop.f32.mrf.mxu1  ;;  %v10254_v33 = vpop.f32.mrf.mxu0  ;;  %v7746_v55 = vld [vmem:[%s12443_s3 + $0x404] ss:$8 sps:$4 sm:$0xff]   ;;  %v7865_v14 = vld [vmem:[%s12443_s3 + $0x4f4] ss:$8 sps:$4 sm:$0xff]  }
 0x27c   :  { %12612 = vst [vmem:[#allocation46_spill] sm:$0xff] %v10252_v25  ;;  %12613 = vst [vmem:[#allocation47_spill] sm:$0xff] %v10254_v33  ;;  %v7744_v25 = vld [vmem:[%s12443_s3 + $0x400] ss:$8 sps:$4 sm:$0xff]  }
 0x27d   :  { %3951 = vmatpush2.bf16.msra.mxu0 %v7738_v46  ;;  %v10268_v46 = vpop.f32.mrf.mxu1  ;;  %v10270_v33 = vpop.f32.mrf.mxu0 }
 0x27e   :  { %4595 = vmatpush2.bf16.msra.mxu1 %v7864_v27  ;;  %3952 = vmatprep.subr.bf16.mxu0 %v7743_v63  ;;  %12614 = vst [vmem:[#allocation48_spill] sm:$0xff] %v10270_v33  ;;  %v7866_v63 = vld [vmem:[%s12443_s3 + $0x4f0] ss:$8 sps:$4 sm:$0xff]   ;;  %v7867_v27 = vld [vmem:[%s12443_s3 + $0x4e4] ss:$8 sps:$4 sm:$0xff]  }
 0x27f   :  { %4596 = vmatprep.subr.bf16.mxu1 %v7865_v14  ;;  %v10281_v14 = vpop.f32.mrf.mxu1  ;;  %v10283_v0 = vpop.f32.mrf.mxu0 }
 0x280   :  { %12615 = vst [vmem:[#allocation49_spill] sm:$0xff] %v10283_v0  ;;  %v7883_v0 = vld [vmem:[%s12443_s3 + $0x120] ss:$8 sps:$4 sm:$0xff]  }
 0x281   :  { %3953 = vmatpush2.bf16.msra.mxu0 %v7741_v35  ;;  %v7868_v35 = vld [vmem:[%s12443_s3 + $0x4e0] ss:$8 sps:$4 sm:$0xff]   ;;  %v10296_v33 = vpop.f32.mrf.mxu0 }
 0x282   :  { %4597 = vmatpush2.bf16.msra.mxu1 %v7866_v63  ;;  %3954 = vmatprep.subr.bf16.mxu0 %v7746_v55  ;;  %v7869_v63 = vld [vmem:[%s12443_s3 + $0x154] ss:$8 sps:$4 sm:$0xff]   ;;  %12616 = vst [vmem:[#allocation50_spill] sm:$0xff] %v10296_v33  ;;  %v7875_v33 = vld [vmem:[%s12443_s3 + $0x140] ss:$8 sps:$4 sm:$0xff]  }
 0x283   :  { %4598 = vmatprep.subr.bf16.mxu1 %v7867_v27  ;;  %v7870_v55 = vld [vmem:[%s12443_s3 + $0x694] ss:$8 sps:$4 sm:$0xff]   ;;  %v10294_v27 = vpop.f32.mrf.mxu1 }
 0x285   :  { %3955 = vmatpush2.bf16.msra.mxu0 %v7744_v25  ;;  %v7871_v25 = vld [vmem:[%s12443_s3 + $0x150] ss:$8 sps:$4 sm:$0xff]  }
 0x286   :  { %4599 = vmatpush2.bf16.msra.mxu1 %v7868_v35  ;;  %4319 = vmatprep.subr.bf16.mxu0 %v7869_v63  ;;  %v7872_v35 = vld [vmem:[%s12443_s3 + $0x690] ss:$8 sps:$4 sm:$0xff]   ;;  %v10313_v63 = vpop.f32.mrf.mxu1 }
 0x287   :  { %4754 = vmatprep.subr.bf16.mxu1 %v7870_v55  ;;  %12617 = vst [vmem:[#allocation51_spill] sm:$0xff] %v10313_v63  ;;  %v10315_v55 = vpop.f32.mrf.mxu0 }
 0x288   :  { %3957 = vmatmul.mubr.bf16.vlgmr.msra.gmra.mxu0 %v8888_v5  ;;  %12618 = vst [vmem:[#allocation52_spill] sm:$0xff] %v10315_v55  ;;  %v10329_v55 = vpop.f32.mrf.mxu1 }
 0x289   :  { %4601 = vmatmul.mubr.bf16.vlgmr.msra.gmra.mxu1 %v9256_v18  ;;  %6933 = vmatprep.mubr.msk.bf16.mxu0 %vm1846_vm1, %v8914_v47  ;;  %v7873_v18 = vld [vmem:[%s12443_s3 + $0x144] ss:$8 sps:$4 sm:$0xff]   ;;  %v10331_v63 = vpop.f32.mrf.mxu0 }
 0x28a   :  { %4320 = vmatpush1.bf16.msra.mxu0 %v7871_v25  ;;  %7014 = vmatprep.mubr.msk.bf16.mxu1 %vm1846_vm1, %v9290_v13  ;;  %v7874_v25 = vld [vmem:[%s12443_s3 + $0x684] ss:$8 sps:$4 sm:$0xff]   ;;  %12619 = vst [vmem:[#allocation53_spill] sm:$0xff] %v10331_v63 }
 0x28b   :  { %4755 = vmatpush1.bf16.msra.mxu1 %v7872_v35  ;;  %4321 = vmatprep.subr.bf16.mxu0 %v7873_v18  ;;  %v7876_v35 = vld [vmem:[%s12443_s3 + $0x680] ss:$8 sps:$4 sm:$0xff]   ;;  %v7877_v18 = vld [vmem:[%s12443_s3 + $0x134] ss:$8 sps:$4 sm:$0xff]   ;;  %v10353_v63 = vpop.f32.mrf.mxu0 }
 0x28c   :  { %4756 = vmatprep.subr.bf16.mxu1 %v7874_v25  ;;  %v7879_v25 = vld [vmem:[%s12443_s3 + $0x130] ss:$8 sps:$4 sm:$0xff]   ;;  %12620 = vst [vmem:[#allocation54_spill] sm:$0xff] %v10353_v63 }
 0x28d   :  { %v10369_v52 = vpop.f32.mrf.mxu0 }
 0x28e   :  { %4322 = vmatpush1.bf16.msra.mxu0 %v7875_v33  ;;  %v7878_v33 = vld [vmem:[%s12443_s3 + $0x674] ss:$8 sps:$4 sm:$0xff]   ;;  %12621 = vst [vmem:[#allocation55_spill] sm:$0xff] %v10369_v52 }
 0x28f   :  { %4757 = vmatpush1.bf16.msra.mxu1 %v7876_v35  ;;  %4323 = vmatprep.subr.bf16.mxu0 %v7877_v18  ;;  %v7880_v35 = vld [vmem:[%s12443_s3 + $0x670] ss:$8 sps:$4 sm:$0xff]   ;;  %v7881_v18 = vld [vmem:[%s12443_s3 + $0x124] ss:$8 sps:$4 sm:$0xff]   ;;  %v10391_v52 = vpop.f32.mrf.mxu0 }
 0x290   :  { %3967 = vmatmul.mubr.bf16.gmra.mxu0 %v8920_v60  ;;  %4758 = vmatprep.subr.bf16.mxu1 %v7878_v33  ;;  %v10351_v33 = vpop.f32.mrf.mxu1  ;;  %12623 = vst [vmem:[#allocation57_spill] sm:$0xff] %v10391_v52  ;;  %v7893_v52 = vld [vmem:[%s12443_s3 + $0xf4] ss:$8 sps:$4 sm:$0xff]  }
 0x291   :  { %4611 = vmatmul.mubr.bf16.gmra.mxu1 %v9297_v21  ;;  %6934 = vmatprep.mubr.msk.bf16.mxu0 %vm1846_vm1, %v8949_v41 }
 0x292   :  { %4324 = vmatpush1.bf16.msra.mxu0 %v7879_v25  ;;  %7015 = vmatprep.mubr.msk.bf16.mxu1 %vm1846_vm1, %v9342_v51  ;;  %v7882_v25 = vld [vmem:[%s12443_s3 + $0x664] ss:$8 sps:$4 sm:$0xff]   ;;  %v10367_v63 = vpop.f32.mrf.mxu1 }
 0x293   :  { %4759 = vmatpush1.bf16.msra.mxu1 %v7880_v35  ;;  %4325 = vmatprep.subr.bf16.mxu0 %v7881_v18  ;;  %v7884_v35 = vld [vmem:[%s12443_s3 + $0x660] ss:$8 sps:$4 sm:$0xff]   ;;  %v7885_v18 = vld [vmem:[%s12443_s3 + $0x114] ss:$8 sps:$4 sm:$0xff]  }
 0x294   :  { %4760 = vmatprep.subr.bf16.mxu1 %v7882_v25  ;;  %v7887_v25 = vld [vmem:[%s12443_s3 + $0x110] ss:$8 sps:$4 sm:$0xff]  }
 0x296   :  { %4326 = vmatpush1.bf16.msra.mxu0 %v7883_v0  ;;  %v7886_v0 = vld [vmem:[%s12443_s3 + $0x654] ss:$8 sps:$4 sm:$0xff]  }
 0x297   :  { %4761 = vmatpush1.bf16.msra.mxu1 %v7884_v35  ;;  %4327 = vmatprep.subr.bf16.mxu0 %v7885_v18  ;;  %v7888_v35 = vld [vmem:[%s12443_s3 + $0x650] ss:$8 sps:$4 sm:$0xff]   ;;  %v7889_v18 = vld [vmem:[%s12443_s3 + $0x104] ss:$8 sps:$4 sm:$0xff]  }
 0x298   :  { %3977 = vmatmul.mubr.bf16.gmra.mxu0 %v12552_v42  ;;  %4762 = vmatprep.subr.bf16.mxu1 %v7886_v0  ;;  %v10389_v0 = vpop.f32.mrf.mxu1 }
 0x299   :  { %4621 = vmatmul.mubr.bf16.gmra.mxu1 %v9355_v58  ;;  %6935 = vmatprep.mubr.msk.bf16.mxu0 %vm1846_vm1, %v9391_v9  ;;  %12622 = vst [vmem:[#allocation56_spill] sm:$0xff] %v10389_v0 }
 0x29a   :  { %4328 = vmatpush1.bf16.msra.mxu0 %v7887_v25  ;;  %7016 = vmatprep.mubr.msk.bf16.mxu1 %vm1846_vm1, %v9385_v37  ;;  %v7890_v25 = vld [vmem:[%s12443_s3 + $0x644] ss:$8 sps:$4 sm:$0xff]  }
 0x29b   :  { %4763 = vmatpush1.bf16.msra.mxu1 %v7888_v35  ;;  %4329 = vmatprep.subr.bf16.mxu0 %v7889_v18  ;;  %v7892_v18 = vld [vmem:[%s12443_s3 + $0x640] ss:$8 sps:$4 sm:$0xff]  }
 0x29c   :  { %4764 = vmatprep.subr.bf16.mxu1 %v7890_v25 }
 0x29d   :  { %v2386_v35 = vpop.f32.mrf.mxu0 }
 0x29e   :  { %4330 = vmatpush1.bf16.msra.mxu0 %v7891_v29  ;;  %v3683_v7 = vpop.f32.mrf.mxu1  ;;  %v2610_v0 = vadd.f32 %v9888_v30, %v2386_v35  ;;  %v7894_v29 = vld [vmem:[%s12443_s3 + $0x634] ss:$8 sps:$4 sm:$0xff]  }
 0x29f   :  { %4765 = vmatpush1.bf16.msra.mxu1 %v7892_v18  ;;  %4331 = vmatprep.subr.bf16.mxu0 %v7893_v52  ;;  %v2388_v25 = vpop.f32.mrf.mxu0  ;;  %v7895_v52 = vld [vmem:[%s12443_s3 + $0xf0] ss:$8 sps:$4 sm:$0xff]  }
 0x2a0   :  { %3987 = vmatmul.mubr.bf16.gmra.mxu0 %v12559_v15  ;;  %4766 = vmatprep.subr.bf16.mxu1 %v7894_v29  ;;  %v3685_v2 = vpop.f32.mrf.mxu1  ;;  %v3185_v9 = vadd.f32 %v10124_v43, %v2610_v0  ;;  %v2612_v30 = vadd.f32 %v9902_v38, %v2388_v25  ;;  %v7896_v43 = vld [vmem:[%s12443_s3 + $0x630] ss:$8 sps:$4 sm:$0xff]   ;;  %v7897_v25 = vld [vmem:[%s12443_s3 + $0xe4] ss:$8 sps:$4 sm:$0xff]  }
 0x2a1   :  { %4631 = vmatmul.mubr.bf16.gmra.mxu1 %v9403_v34  ;;  %6936 = vmatprep.mubr.msk.bf16.mxu0 %vm1846_vm1, %v9897_v45  ;;  %v2390_v35 = vpop.f32.mrf.mxu0 }
 0x2a2   :  { %4332 = vmatpush1.bf16.msra.mxu0 %v7895_v52  ;;  %7017 = vmatprep.mubr.msk.bf16.mxu1 %vm1846_vm1, %v9442_v22  ;;  %v3687_v18 = vpop.f32.mrf.mxu1  ;;  %v10420_v29 = vadd.f32 %v3683_v7, %v3185_v9  ;;  %v3186_v0 = vadd.f32 %v10141_v10, %v2612_v30  ;;  %v2614_v38 = vadd.f32 %v9912_v4, %v2390_v35  ;;  %v7898_v52 = vld [vmem:[%s12443_s3 + $0x624] ss:$8 sps:$4 sm:$0xff]   ;;  %v7899_v4 = vld [vmem:[%s12443_s3 + $0xe0] ss:$8 sps:$4 sm:$0xff]  }
 0x2a3   :  { %4767 = vmatpush1.bf16.msra.mxu1 %v7896_v43  ;;  %4333 = vmatprep.subr.bf16.mxu0 %v7897_v25  ;;  %v10433_v9 = vpop.f32.mrf.mxu0  ;;  %v7900_v25 = vld [vmem:[%s12443_s3 + $0x620] ss:$8 sps:$4 sm:$0xff]  }
 0x2a4   :  { %4768 = vmatprep.subr.bf16.mxu1 %v7898_v52  ;;  %12624 = vst [vmem:[#allocation58_spill] sm:$0xff] %v10433_v9  ;;  %v10435_v7 = vpop.f32.mrf.mxu1  ;;  %v10437_v45 = vadd.f32 %v3685_v2, %v3186_v0  ;;  %v3187_v10 = vadd.f32 %v10150_v17, %v2614_v38  ;;  %v7901_v2 = vld [vmem:[%s12443_s3 + $0x1b4] ss:$8 sps:$4 sm:$0xff]  }
 0x2a5   :  { %12625 = vst [vmem:[#allocation59_spill] sm:$0xff] %v10435_v7  ;;  %v2396_v30 = vpop.f32.mrf.mxu0  ;;  %v7902_v17 = vld [vmem:[%s12443_s3 + $0x6f4] ss:$8 sps:$4 sm:$0xff]  }
 0x2a6   :  { %4334 = vmatpush1.bf16.msra.mxu0 %v7899_v4  ;;  %v3693_v35 = vpop.f32.mrf.mxu1  ;;  %v10443_v43 = vadd.f32 %v3687_v18, %v3187_v10  ;;  %v2620_v52 = vadd.f32 %v9928_v32, %v2396_v30  ;;  %v7903_v10 = vld [vmem:[%s12443_s3 + $0x1b0] ss:$8 sps:$4 sm:$0xff]  }
 0x2a7   :  { %4769 = vmatpush1.bf16.msra.mxu1 %v7900_v25  ;;  %4339 = vmatprep.subr.bf16.mxu0 %v7901_v2  ;;  %v2398_v18 = vpop.f32.mrf.mxu0  ;;  %v7905_v2 = vld [vmem:[%s12443_s3 + $0x1a4] ss:$8 sps:$4 sm:$0xff]  }
 0x2a8   :  { %3997 = vmatmul.mubr.bf16.gmra.mxu0 %v12596_v59  ;;  %4774 = vmatprep.subr.bf16.mxu1 %v7902_v17  ;;  %v3695_v0 = vpop.f32.mrf.mxu1  ;;  %v3189_v38 = vadd.f32 %v10170_v53, %v2620_v52  ;;  %v2622_v32 = vadd.f32 %v9940_v24, %v2398_v18  ;;  %v7904_v53 = vld [vmem:[%s12443_s3 + $0x6f0] ss:$8 sps:$4 sm:$0xff]   ;;  %v7906_v17 = vld [vmem:[%s12443_s3 + $0x6e4] ss:$8 sps:$4 sm:$0xff]  }
 0x2a9   :  { %4641 = vmatmul.mubr.bf16.gmra.mxu1 %v9453_v11  ;;  %6998 = vmatprep.mubr.msk.bf16.mxu0 %vm1846_vm1, %v12573_v49  ;;  %v2400_v4 = vpop.f32.mrf.mxu0 }
 0x2aa   :  { %4340 = vmatpush2.bf16.msra.mxu0 %v7903_v10  ;;  %7023 = vmatprep.mubr.msk.bf16.mxu1 %vm1846_vm1, %v9290_v13  ;;  %v3697_v30 = vpop.f32.mrf.mxu1  ;;  %v10466_v25 = vadd.f32 %v3693_v35, %v3189_v38  ;;  %v3190_v52 = vadd.f32 %v10187_v56, %v2622_v32  ;;  %v2624_v24 = vadd.f32 %v9950_v50, %v2400_v4  ;;  %v7907_v50 = vld [vmem:[%s12443_s3 + $0x1a0] ss:$8 sps:$4 sm:$0xff]  }
 0x2ab   :  { %4775 = vmatpush2.bf16.msra.mxu1 %v7904_v53  ;;  %4341 = vmatprep.subr.bf16.mxu0 %v7905_v2  ;;  %v10479_v35 = vpop.f32.mrf.mxu0  ;;  %v7908_v53 = vld [vmem:[%s12443_s3 + $0x6e0] ss:$8 sps:$4 sm:$0xff]  }
 0x2ac   :  { %4776 = vmatprep.subr.bf16.mxu1 %v7906_v17  ;;  %12626 = vst [vmem:[#allocation60_spill] sm:$0xff] %v10479_v35  ;;  %v10481_v18 = vpop.f32.mrf.mxu1  ;;  %v10483_v38 = vadd.f32 %v3695_v0, %v3190_v52  ;;  %v3191_v56 = vadd.f32 %v10196_v12, %v2624_v24  ;;  %v7909_v12 = vld [vmem:[%s12443_s3 + $0x194] ss:$8 sps:$4 sm:$0xff]   ;;  %v8019_v35 = vld [vmem:[%s12443_s3 + $0x280] ss:$8 sps:$4 sm:$0xff]  }
 0x2ad   :  { %12627 = vst [vmem:[#allocation61_spill] sm:$0xff] %v10481_v18  ;;  %v2406_v32 = vpop.f32.mrf.mxu0  ;;  %v7910_v0 = vld [vmem:[%s12443_s3 + $0x6d4] ss:$8 sps:$4 sm:$0xff]  }
 0x2ae   :  { %4342 = vmatpush2.bf16.msra.mxu0 %v7907_v50  ;;  %v3703_v10 = vpop.f32.mrf.mxu1  ;;  %v10489_v4 = vadd.f32 %v3697_v30, %v3191_v56  ;;  %v2630_v2 = vadd.f32 %v9966_v20, %v2406_v32  ;;  %v7911_v20 = vld [vmem:[%s12443_s3 + $0x190] ss:$8 sps:$4 sm:$0xff]  }
 0x2af   :  { %4777 = vmatpush2.bf16.msra.mxu1 %v7908_v53  ;;  %4343 = vmatprep.subr.bf16.mxu0 %v7909_v12  ;;  %v2408_v52 = vpop.f32.mrf.mxu0  ;;  %v7912_v53 = vld [vmem:[%s12443_s3 + $0x6d0] ss:$8 sps:$4 sm:$0xff]  }
 0x2b0   :  { %4778 = vmatprep.subr.bf16.mxu1 %v7910_v0  ;;  %v3705_v30 = vpop.f32.mrf.mxu1  ;;  %v3193_v24 = vadd.f32 %v10216_v8, %v2630_v2  ;;  %v2632_v17 = vadd.f32 %v9974_v61, %v2408_v52  ;;  %v7913_v61 = vld [vmem:[%s12443_s3 + $0x184] ss:$8 sps:$4 sm:$0xff]  }
 0x2b1   :  { %v2410_v56 = vpop.f32.mrf.mxu0  ;;  %v7914_v2 = vld [vmem:[%s12443_s3 + $0x6c4] ss:$8 sps:$4 sm:$0xff]  }
 0x2b2   :  { %4344 = vmatpush2.bf16.msra.mxu0 %v7911_v20  ;;  %v3707_v50 = vpop.f32.mrf.mxu1  ;;  %v10506_v32 = vadd.f32 %v3703_v10, %v3193_v24  ;;  %v3194_v12 = vadd.f32 %v10232_v40, %v2632_v17  ;;  %v2634_v8 = vadd.f32 %v9982_v6, %v2410_v56  ;;  %v7915_v6 = vld [vmem:[%s12443_s3 + $0x180] ss:$8 sps:$4 sm:$0xff]  }
 0x2b3   :  { %4779 = vmatpush2.bf16.msra.mxu1 %v7912_v53  ;;  %4345 = vmatprep.subr.bf16.mxu0 %v7913_v61  ;;  %v10519_v10 = vpop.f32.mrf.mxu0  ;;  %v7916_v56 = vld [vmem:[%s12443_s3 + $0x6c0] ss:$8 sps:$4 sm:$0xff]  }
 0x2b4   :  { %4780 = vmatprep.subr.bf16.mxu1 %v7914_v2  ;;  %12628 = vst [vmem:[#allocation62_spill] sm:$0xff] %v10519_v10  ;;  %v10521_v0 = vpop.f32.mrf.mxu1  ;;  %v10523_v52 = vadd.f32 %v3705_v30, %v3194_v12  ;;  %v3195_v40 = vadd.f32 %v10236_v16, %v2634_v8  ;;  %v7917_v16 = vld [vmem:[%s12443_s3 + $0x174] ss:$8 sps:$4 sm:$0xff]  }
 0x2b5   :  { %12629 = vst [vmem:[#allocation63_spill] sm:$0xff] %v10521_v0  ;;  %v2416_v24 = vpop.f32.mrf.mxu0  ;;  %v7918_v30 = vld [vmem:[%s12443_s3 + $0x6b4] ss:$8 sps:$4 sm:$0xff]  }
 0x2b6   :  { %4346 = vmatpush2.bf16.msra.mxu0 %v7915_v6  ;;  %v3713_v17 = vpop.f32.mrf.mxu1  ;;  %v10529_v20 = vadd.f32 %v3707_v50, %v3195_v40  ;;  %v2640_v53 = vadd.f32 %v10004_v54, %v2416_v24  ;;  %v7919_v54 = vld [vmem:[%s12443_s3 + $0x170] ss:$8 sps:$4 sm:$0xff]  }
 0x2b7   :  { %4781 = vmatpush2.bf16.msra.mxu1 %v7916_v56  ;;  %4347 = vmatprep.subr.bf16.mxu0 %v7917_v16  ;;  %v2418_v12 = vpop.f32.mrf.mxu0  ;;  %v7920_v24 = vld [vmem:[%s12443_s3 + $0x6b0] ss:$8 sps:$4 sm:$0xff]  }
 0x2b8   :  { %4782 = vmatprep.subr.bf16.mxu1 %v7918_v30  ;;  %v3715_v50 = vpop.f32.mrf.mxu1  ;;  %v3197_v8 = vadd.f32 %v10268_v46, %v2640_v53  ;;  %v2642_v61 = vadd.f32 %v10018_v44, %v2418_v12  ;;  %v7921_v44 = vld [vmem:[%s12443_s3 + $0x164] ss:$8 sps:$4 sm:$0xff]  }
 0x2b9   :  { %v2420_v2 = vpop.f32.mrf.mxu0  ;;  %v7922_v53 = vld [vmem:[%s12443_s3 + $0x6a4] ss:$8 sps:$4 sm:$0xff]  }
 0x2ba   :  { %4348 = vmatpush2.bf16.msra.mxu0 %v7919_v54  ;;  %v3717_v40 = vpop.f32.mrf.mxu1  ;;  %v10546_v6 = vadd.f32 %v3713_v17, %v3197_v8  ;;  %v3198_v56 = vadd.f32 %v10281_v14, %v2642_v61  ;;  %v2644_v46 = vadd.f32 %v10032_v28, %v2420_v2  ;;  %v7923_v28 = vld [vmem:[%s12443_s3 + $0x160] ss:$8 sps:$4 sm:$0xff]  }
 0x2bb   :  { %4783 = vmatpush2.bf16.msra.mxu1 %v7920_v24  ;;  %4349 = vmatprep.subr.bf16.mxu0 %v7921_v44  ;;  %v10559_v17 = vpop.f32.mrf.mxu0  ;;  %v7924_v54 = vld [vmem:[%s12443_s3 + $0x6a0] ss:$8 sps:$4 sm:$0xff]  }
 0x2bc   :  { %4784 = vmatprep.subr.bf16.mxu1 %v7922_v53  ;;  %12630 = vst [vmem:[#allocation64_spill] sm:$0xff] %v10559_v17  ;;  %v10561_v16 = vpop.f32.mrf.mxu1  ;;  %v10563_v30 = vadd.f32 %v3715_v50, %v3198_v56  ;;  %v3199_v14 = vadd.f32 %v10294_v27, %v2644_v46  ;;  %v7925_v27 = vld [vmem:[%s12443_s3 + $0x5b4] ss:$8 sps:$4 sm:$0xff]   ;;  %v7927_v53 = vld [vmem:[%s12443_s3 + $0x5b0] ss:$8 sps:$4 sm:$0xff]  }
 0x2bd   :  { %12631 = vst [vmem:[#allocation65_spill] sm:$0xff] %v10561_v16  ;;  %v2426_v12 = vpop.f32.mrf.mxu0  ;;  %v7926_v50 = vld [vmem:[%s12443_s3 + $0x774] ss:$8 sps:$4 sm:$0xff]  }
 0x2be   :  { %4350 = vmatpush2.bf16.msra.mxu0 %v7923_v28  ;;  %v3723_v8 = vpop.f32.mrf.mxu1  ;;  %v10569_v61 = vadd.f32 %v3717_v40, %v3199_v14  ;;  %v2650_v2 = vadd.f32 %v10063_v1, %v2426_v12  ;;  %v7928_v14 = vld [vmem:[%s12443_s3 + $0x770] ss:$8 sps:$4 sm:$0xff]   ;;  %v7929_v28 = vld [vmem:[%s12443_s3 + $0x5a4] ss:$8 sps:$4 sm:$0xff]  }
 0x2bf   :  { %4785 = vmatpush2.bf16.msra.mxu1 %v7924_v54  ;;  %4485 = vmatprep.subr.bf16.mxu0 %v7925_v27  ;;  %v2428_v24 = vpop.f32.mrf.mxu0  ;;  %v7932_v27 = vld [vmem:[%s12443_s3 + $0x760] ss:$8 sps:$4 sm:$0xff]  }
 0x2c0   :  { %4960 = vmatprep.subr.bf16.mxu1 %v7926_v50  ;;  %v3201_v40 = vadd.f32 %v10329_v55, %v2650_v2  ;;  %v2652_v56 = vadd.f32 %v10083_v3, %v2428_v24  ;;  %v3725_v1 = vpop.f32.mrf.mxu1  ;;  %v7931_v2 = vld [vmem:[%s12443_s3 + $0x5a0] ss:$8 sps:$4 sm:$0xff]   ;;  %v7934_v50 = vld [vmem:[%s12443_s3 + $0x754] ss:$8 sps:$4 sm:$0xff]   ;;  %v7935_v24 = vld [vmem:[%s12443_s3 + $0x590] ss:$8 sps:$4 sm:$0xff]  }
 0x2c1   :  { %4352 = vmatmul.mubr.bf16.vlgmr.msra.gmra.mxu0 %v8857_v31  ;;  %v2430_v46 = vpop.f32.mrf.mxu0 }
 0x2c2   :  { %4787 = vmatmul.mubr.bf16.vlgmr.msra.gmra.mxu1 %v9297_v21  ;;  %6999 = vmatprep.mubr.msk.bf16.mxu0 %vm1846_vm1, %v8882_v48  ;;  %v10587_v44 = vadd.f32 %v3723_v8, %v3201_v40  ;;  %v3202_v55 = vadd.f32 %v10351_v33, %v2652_v56  ;;  %v2654_v3 = vadd.f32 %v10097_v23, %v2430_v46  ;;  %v7930_v33 = vld [vmem:[%s12443_s3 + $0x764] ss:$8 sps:$4 sm:$0xff]   ;;  %v3727_v23 = vpop.f32.mrf.mxu1  ;;  %v7936_v40 = vld [vmem:[%s12443_s3 + $0x750] ss:$8 sps:$4 sm:$0xff]   ;;  %v7939_v46 = vld [vmem:[%s12443_s3 + $0x580] ss:$8 sps:$4 sm:$0xff]  }
 0x2c3   :  { %4486 = vmatpush1.bf16.msra.mxu0 %v7927_v53  ;;  %7024 = vmatprep.mubr.msk.bf16.mxu1 %vm1846_vm1, %v9342_v51  ;;  %v7937_v56 = vld [vmem:[%s12443_s3 + $0x584] ss:$8 sps:$4 sm:$0xff]   ;;  %v7940_v53 = vld [vmem:[%s12443_s3 + $0x740] ss:$8 sps:$4 sm:$0xff]  }
 0x2c4   :  { %4961 = vmatpush1.bf16.msra.mxu1 %v7928_v14  ;;  %4487 = vmatprep.subr.bf16.mxu0 %v7929_v28  ;;  %v10602_v12 = vadd.f32 %v3725_v1, %v3202_v55  ;;  %v3203_v8 = vadd.f32 %v10367_v63, %v2654_v3  ;;  %v7933_v63 = vld [vmem:[%s12443_s3 + $0x594] ss:$8 sps:$4 sm:$0xff]   ;;  %v7938_v1 = vld [vmem:[%s12443_s3 + $0x744] ss:$8 sps:$4 sm:$0xff]   ;;  %v7943_v14 = vld [vmem:[%s12443_s3 + $0x570] ss:$8 sps:$4 sm:$0xff]   ;;  %v10661_v28 = vpop.f32.mrf.mxu0 }
 0x2c5   :  { %4962 = vmatprep.subr.bf16.mxu1 %v7930_v33  ;;  %v7941_v55 = vld [vmem:[%s12443_s3 + $0x574] ss:$8 sps:$4 sm:$0xff]   ;;  %12632 = vst [vmem:[#allocation66_spill] sm:$0xff] %v10661_v28  ;;  %v7945_v33 = vld [vmem:[%s12443_s3 + $0x564] ss:$8 sps:$4 sm:$0xff]  }
 0x2c6   :  { %v10608_v54 = vadd.f32 %v3727_v23, %v3203_v8  ;;  %v7942_v3 = vld [vmem:[%s12443_s3 + $0x734] ss:$8 sps:$4 sm:$0xff]   ;;  %v7944_v8 = vld [vmem:[%s12443_s3 + $0x730] ss:$8 sps:$4 sm:$0xff]   ;;  %v2135_v23 = vadd.f32 %v9647_v26, %v10132_v39  ;;  %v7948_v26 = vld [vmem:[%s12443_s3 + $0x720] ss:$8 sps:$4 sm:$0xff]  }
 0x2c7   :  { %4488 = vmatpush1.bf16.msra.mxu0 %v7931_v2  ;;  %v10671_v2 = vpop.f32.mrf.mxu1  ;;  %v8011_v28 = vld [vmem:[%s12443_s3 + $0x1c0] ss:$8 sps:$4 sm:$0xff]  }
 0x2c8   :  { %4963 = vmatpush1.bf16.msra.mxu1 %v7932_v27  ;;  %4489 = vmatprep.subr.bf16.mxu0 %v7933_v63  ;;  %12633 = vst [vmem:[#allocation67_spill] sm:$0xff] %v10671_v2  ;;  %v7946_v27 = vld [vmem:[%s12443_s3 + $0x724] ss:$8 sps:$4 sm:$0xff]  }
 0x2c9   :  { %4362 = vmatmul.mubr.bf16.gmra.mxu0 %v8888_v5  ;;  %4964 = vmatprep.subr.bf16.mxu1 %v7934_v50  ;;  %v2137_v50 = vadd.f32 %v9661_v36, %v10146_v19  ;;  %v7949_v36 = vld [vmem:[%s12443_s3 + $0x554] ss:$8 sps:$4 sm:$0xff]  }
 0x2ca   :  { %4797 = vmatmul.mubr.bf16.gmra.mxu1 %v9355_v58  ;;  %7000 = vmatprep.mubr.msk.bf16.mxu0 %vm1846_vm1, %v8914_v47 }
 0x2cb   :  { %4490 = vmatpush1.bf16.msra.mxu0 %v7935_v24  ;;  %7025 = vmatprep.mubr.msk.bf16.mxu1 %vm1846_vm1, %v9385_v37  ;;  %v7947_v24 = vld [vmem:[%s12443_s3 + $0x560] ss:$8 sps:$4 sm:$0xff]  }
 0x2cc   :  { %4965 = vmatpush1.bf16.msra.mxu1 %v7936_v40  ;;  %4491 = vmatprep.subr.bf16.mxu0 %v7937_v56 }
 0x2cd   :  { %4966 = vmatprep.subr.bf16.mxu1 %v7938_v1  ;;  %v2139_v1 = vadd.f32 %v9674_v57, %v10158_v62  ;;  %v7951_v62 = vld [vmem:[%s12443_s3 + $0x550] ss:$8 sps:$4 sm:$0xff]   ;;  %v12637_v57 = vld [vmem:[#allocation14_spill] sm:$0xff] }
 0x2cf   :  { %4492 = vmatpush1.bf16.msra.mxu0 %v7939_v46  ;;  %v7950_v46 = vld [vmem:[%s12443_s3 + $0x714] ss:$8 sps:$4 sm:$0xff]  }
 0x2d0   :  { %4967 = vmatpush1.bf16.msra.mxu1 %v7940_v53  ;;  %4493 = vmatprep.subr.bf16.mxu0 %v7941_v55  ;;  %v12635_v55 = vld [vmem:[#allocation2_spill] sm:$0xff] }
 0x2d1   :  { %4372 = vmatmul.mubr.bf16.gmra.mxu0 %v8920_v60  ;;  %4968 = vmatprep.subr.bf16.mxu1 %v7942_v3 }
 0x2d2   :  { %4807 = vmatmul.mubr.bf16.gmra.mxu1 %v9403_v34  ;;  %7001 = vmatprep.mubr.msk.bf16.mxu0 %vm1846_vm1, %v8949_v41 }
 0x2d3   :  { %4494 = vmatpush1.bf16.msra.mxu0 %v7943_v14  ;;  %7026 = vmatprep.mubr.msk.bf16.mxu1 %vm1846_vm1, %v9442_v22 }
 0x2d4   :  { %4969 = vmatpush1.bf16.msra.mxu1 %v7944_v8  ;;  %4495 = vmatprep.subr.bf16.mxu0 %v7945_v33 }
 0x2d5   :  { %4970 = vmatprep.subr.bf16.mxu1 %v7946_v27  ;;  %v7953_v27 = vld [vmem:[%s12443_s3 + $0x544] ss:$8 sps:$4 sm:$0xff]  }
 0x2d6   :  { %v2864_v63 = vpop.f32.mrf.mxu0 }
 0x2d7   :  { %4496 = vmatpush1.bf16.msra.mxu0 %v7947_v24  ;;  %v10681_v40 = vadd.f32 %v2864_v63, %v2135_v23  ;;  %v4230_v56 = vpop.f32.mrf.mxu1  ;;  %v7952_v23 = vld [vmem:[%s12443_s3 + $0x710] ss:$8 sps:$4 sm:$0xff]   ;;  %v12641_v24 = vld [vmem:[#allocation19_spill] sm:$0xff] }
 0x2d8   :  { %4971 = vmatpush1.bf16.msra.mxu1 %v7948_v26  ;;  %v10687_v39 = vadd.f32 %v4230_v56, %v10420_v29  ;;  %4497 = vmatprep.subr.bf16.mxu0 %v7949_v36  ;;  %v2866_v19 = vpop.f32.mrf.mxu0  ;;  %v7954_v26 = vld [vmem:[%s12443_s3 + $0x704] ss:$8 sps:$4 sm:$0xff]  }
 0x2d9   :  { %4382 = vmatmul.mubr.bf16.gmra.mxu0 %v12552_v42  ;;  %4972 = vmatprep.subr.bf16.mxu1 %v7950_v46  ;;  %v10698_v53 = vadd.f32 %v2866_v19, %v2137_v50  ;;  %v4232_v29 = vpop.f32.mrf.mxu1  ;;  %v12640_v50 = vld [vmem:[#allocation38_spill] sm:$0xff] }
 0x2da   :  { %12634 = vst [vmem:[#allocation68_spill] sm:$0xff] %v10687_v39  ;;  %4817 = vmatmul.mubr.bf16.gmra.mxu1 %v9453_v11  ;;  %7002 = vmatprep.mubr.msk.bf16.mxu0 %vm1846_vm1, %v12635_v55  ;;  %v10704_v3 = vadd.f32 %v4232_v29, %v10437_v45  ;;  %v2868_v14 = vpop.f32.mrf.mxu0  ;;  %v2145_v56 = vadd.f32 %v12641_v24, %v12640_v50  ;;  %v7955_v29 = vld [vmem:[%s12443_s3 + $0x540] ss:$8 sps:$4 sm:$0xff]   ;;  %v12646_v24 = vld [vmem:[#allocation40_spill] sm:$0xff] }
 0x2db   :  { %4498 = vmatpush1.bf16.msra.mxu0 %v7951_v62  ;;  %7027 = vmatprep.mubr.msk.bf16.mxu1 %vm1846_vm1, %v12637_v57  ;;  %v10711_v8 = vadd.f32 %v2868_v14, %v2139_v1  ;;  %v4234_v33 = vpop.f32.mrf.mxu1  ;;  %v12644_v1 = vld [vmem:[#allocation20_spill] sm:$0xff] }
 0x2dc   :  { %12636 = vst [vmem:[#allocation2_spill] sm:$0xff] %v10704_v3  ;;  %4973 = vmatpush1.bf16.msra.mxu1 %v7952_v23  ;;  %v10717_v45 = vadd.f32 %v4234_v33, %v10443_v43  ;;  %4499 = vmatprep.subr.bf16.mxu0 %v7953_v27  ;;  %v10722_v63 = vpop.f32.mrf.mxu0  ;;  %v12643_v43 = vld [vmem:[#allocation39_spill] sm:$0xff]  ;;  %v7957_v27 = vld [vmem:[%s12443_s3 + $0x614] ss:$8 sps:$4 sm:$0xff]  }
 0x2dd   :  { %12639 = vst [vmem:[#allocation69_spill] sm:$0xff] %v10722_v63  ;;  %4974 = vmatprep.subr.bf16.mxu1 %v7954_v26  ;;  %v10729_v36 = vpop.f32.mrf.mxu1  ;;  %v2147_v46 = vadd.f32 %v12644_v1, %v12643_v43  ;;  %v7956_v33 = vld [vmem:[%s12443_s3 + $0x700] ss:$8 sps:$4 sm:$0xff]   ;;  %v12647_v26 = vld [vmem:[#allocation21_spill] sm:$0xff] }
 0x2de   :  { %12638 = vst [vmem:[#allocation14_spill] sm:$0xff] %v10717_v45  ;;  %12642 = vst [vmem:[#allocation38_spill] sm:$0xff] %v10729_v36  ;;  %v2874_v19 = vpop.f32.mrf.mxu0  ;;  %v2149_v43 = vadd.f32 %v12647_v26, %v12646_v24  ;;  %v12648_v1 = vld [vmem:[#allocation3_spill] sm:$0xff] }
 0x2df   :  { %4500 = vmatpush1.bf16.msra.mxu0 %v7955_v29  ;;  %v10736_v14 = vadd.f32 %v2874_v19, %v2145_v56  ;;  %v4240_v62 = vpop.f32.mrf.mxu1  ;;  %v7958_v56 = vld [vmem:[%s12443_s3 + $0x7d4] ss:$8 sps:$4 sm:$0xff]   ;;  %v12652_v26 = vld [vmem:[#allocation43_spill] sm:$0xff] }
 0x2e0   :  { %4975 = vmatpush1.bf16.msra.mxu1 %v7956_v33  ;;  %v10742_v23 = vadd.f32 %v4240_v62, %v10466_v25  ;;  %4505 = vmatprep.subr.bf16.mxu0 %v7957_v27  ;;  %v2876_v50 = vpop.f32.mrf.mxu0  ;;  %v7959_v33 = vld [vmem:[%s12443_s3 + $0x610] ss:$8 sps:$4 sm:$0xff]  }
 0x2e1   :  { %4392 = vmatmul.mubr.bf16.gmra.mxu0 %v12559_v15  ;;  %4980 = vmatprep.subr.bf16.mxu1 %v7958_v56  ;;  %v10753_v19 = vadd.f32 %v2876_v50, %v2147_v46  ;;  %v4242_v25 = vpop.f32.mrf.mxu1  ;;  %v7960_v50 = vld [vmem:[%s12443_s3 + $0x7d0] ss:$8 sps:$4 sm:$0xff]  }
 0x2e2   :  { %12645 = vst [vmem:[#allocation19_spill] sm:$0xff] %v10742_v23  ;;  %4827 = vmatmul.mubr.bf16.gmra.mxu1 %v12648_v1  ;;  %7008 = vmatprep.mubr.msk.bf16.mxu0 %vm1846_vm1, %v12573_v49  ;;  %v10759_v29 = vadd.f32 %v4242_v25, %v10483_v38  ;;  %v2878_v62 = vpop.f32.mrf.mxu0  ;;  %v7961_v38 = vld [vmem:[%s12443_s3 + $0x604] ss:$8 sps:$4 sm:$0xff]   ;;  %v12653_v56 = vld [vmem:[#allocation25_spill] sm:$0xff] }
 0x2e3   :  { %4506 = vmatpush2.bf16.msra.mxu0 %v7959_v33  ;;  %7033 = vmatprep.mubr.msk.bf16.mxu1 %vm1846_vm1, %v8882_v48  ;;  %v10766_v46 = vadd.f32 %v2878_v62, %v2149_v43  ;;  %v4244_v27 = vpop.f32.mrf.mxu1  ;;  %v2155_v43 = vadd.f32 %v12653_v56, %v12652_v26  ;;  %v7962_v25 = vld [vmem:[%s12443_s3 + $0x7c4] ss:$8 sps:$4 sm:$0xff]   ;;  %v7964_v26 = vld [vmem:[%s12443_s3 + $0x7c0] ss:$8 sps:$4 sm:$0xff]  }
 0x2e4   :  { %12649 = vst [vmem:[#allocation39_spill] sm:$0xff] %v10759_v29  ;;  %4981 = vmatpush2.bf16.msra.mxu1 %v7960_v50  ;;  %v10772_v49 = vadd.f32 %v4244_v27, %v10489_v4  ;;  %4507 = vmatprep.subr.bf16.mxu0 %v7961_v38  ;;  %v10777_v24 = vpop.f32.mrf.mxu0  ;;  %v12655_v4 = vld [vmem:[#allocation44_spill] sm:$0xff]  ;;  %v12656_v27 = vld [vmem:[#allocation5_spill] sm:$0xff]  ;;  %v7963_v38 = vld [vmem:[%s12443_s3 + $0x600] ss:$8 sps:$4 sm:$0xff]  }
 0x2e5   :  { %12651 = vst [vmem:[#allocation40_spill] sm:$0xff] %v10777_v24  ;;  %4982 = vmatprep.subr.bf16.mxu1 %v7962_v25  ;;  %v10784_v62 = vpop.f32.mrf.mxu1  ;;  %v2157_v50 = vadd.f32 %v12656_v27, %v12655_v4  ;;  %v7965_v25 = vld [vmem:[%s12443_s3 + $0x5f4] ss:$8 sps:$4 sm:$0xff]  }
 0x2e6   :  { %12650 = vst [vmem:[#allocation20_spill] sm:$0xff] %v10772_v49  ;;  %12654 = vst [vmem:[#allocation21_spill] sm:$0xff] %v10784_v62  ;;  %v2884_v33 = vpop.f32.mrf.mxu0  ;;  %v12658_v27 = vld [vmem:[#allocation45_spill] sm:$0xff]  ;;  %v12659_v62 = vld [vmem:[#allocation26_spill] sm:$0xff] }
 0x2e7   :  { %4508 = vmatpush2.bf16.msra.mxu0 %v7963_v38  ;;  %v10791_v36 = vadd.f32 %v2884_v33, %v2155_v43  ;;  %v4250_v2 = vpop.f32.mrf.mxu1  ;;  %v2159_v38 = vadd.f32 %v12659_v62, %v12658_v27  ;;  %v7966_v43 = vld [vmem:[%s12443_s3 + $0x7b4] ss:$8 sps:$4 sm:$0xff]   ;;  %v7968_v27 = vld [vmem:[%s12443_s3 + $0x7b0] ss:$8 sps:$4 sm:$0xff]  }
 0x2e8   :  { %4983 = vmatpush2.bf16.msra.mxu1 %v7964_v26  ;;  %v10797_v56 = vadd.f32 %v4250_v2, %v10506_v32  ;;  %4509 = vmatprep.subr.bf16.mxu0 %v7965_v25  ;;  %v2886_v4 = vpop.f32.mrf.mxu0  ;;  %v7967_v25 = vld [vmem:[%s12443_s3 + $0x5f0] ss:$8 sps:$4 sm:$0xff]  }
 0x2e9   :  { %4984 = vmatprep.subr.bf16.mxu1 %v7966_v43  ;;  %v10807_v33 = vadd.f32 %v2886_v4, %v2157_v50  ;;  %v4252_v26 = vpop.f32.mrf.mxu1  ;;  %v12663_v43 = vld [vmem:[#allocation48_spill] sm:$0xff] }
 0x2ea   :  { %12657 = vst [vmem:[#allocation3_spill] sm:$0xff] %v10797_v56  ;;  %v10810_v32 = vadd.f32 %v4252_v26, %v10523_v52  ;;  %v2888_v2 = vpop.f32.mrf.mxu0  ;;  %v7969_v52 = vld [vmem:[%s12443_s3 + $0x5e4] ss:$8 sps:$4 sm:$0xff]   ;;  %v12664_v26 = vld [vmem:[#allocation28_spill] sm:$0xff] }
 0x2eb   :  { %4510 = vmatpush2.bf16.msra.mxu0 %v7967_v25  ;;  %v10815_v16 = vadd.f32 %v2888_v2, %v2159_v38  ;;  %v4254_v62 = vpop.f32.mrf.mxu1  ;;  %v2165_v38 = vadd.f32 %v12664_v26, %v12663_v43  ;;  %v7970_v2 = vld [vmem:[%s12443_s3 + $0x7a4] ss:$8 sps:$4 sm:$0xff]   ;;  %v7972_v43 = vld [vmem:[%s12443_s3 + $0x7a0] ss:$8 sps:$4 sm:$0xff]  }
 0x2ec   :  { %12660 = vst [vmem:[#allocation43_spill] sm:$0xff] %v10810_v32  ;;  %4985 = vmatpush2.bf16.msra.mxu1 %v7968_v27  ;;  %v10821_v50 = vadd.f32 %v4254_v62, %v10529_v20  ;;  %4511 = vmatprep.subr.bf16.mxu0 %v7969_v52  ;;  %v10826_v4 = vpop.f32.mrf.mxu0  ;;  %v12666_v20 = vld [vmem:[#allocation49_spill] sm:$0xff]  ;;  %v7971_v52 = vld [vmem:[%s12443_s3 + $0x5e0] ss:$8 sps:$4 sm:$0xff]  }
 0x2ed   :  { %12662 = vst [vmem:[#allocation44_spill] sm:$0xff] %v10826_v4  ;;  %4986 = vmatprep.subr.bf16.mxu1 %v7970_v2  ;;  %v10833_v25 = vpop.f32.mrf.mxu1  ;;  %v12667_v62 = vld [vmem:[#allocation29_spill] sm:$0xff] }
 0x2ee   :  { %12661 = vst [vmem:[#allocation25_spill] sm:$0xff] %v10821_v50  ;;  %12665 = vst [vmem:[#allocation5_spill] sm:$0xff] %v10833_v25  ;;  %v2894_v27 = vpop.f32.mrf.mxu0  ;;  %v2167_v0 = vadd.f32 %v12667_v62, %v12666_v20  ;;  %v7973_v2 = vld [vmem:[%s12443_s3 + $0x5d4] ss:$8 sps:$4 sm:$0xff]   ;;  %v12669_v62 = vld [vmem:[#allocation50_spill] sm:$0xff] }
 0x2ef   :  { %4512 = vmatpush2.bf16.msra.mxu0 %v7971_v52  ;;  %v10840_v4 = vadd.f32 %v2894_v27, %v2165_v38  ;;  %v4260_v18 = vpop.f32.mrf.mxu1  ;;  %v12670_v25 = vld [vmem:[#allocation22_spill] sm:$0xff]  ;;  %v7974_v38 = vld [vmem:[%s12443_s3 + $0x794] ss:$8 sps:$4 sm:$0xff]  }
 0x2f0   :  { %4987 = vmatpush2.bf16.msra.mxu1 %v7972_v43  ;;  %v10846_v26 = vadd.f32 %v4260_v18, %v10546_v6  ;;  %4513 = vmatprep.subr.bf16.mxu0 %v7973_v2  ;;  %v2896_v20 = vpop.f32.mrf.mxu0  ;;  %v2169_v52 = vadd.f32 %v12670_v25, %v12669_v62  ;;  %v7975_v2 = vld [vmem:[%s12443_s3 + $0x5d0] ss:$8 sps:$4 sm:$0xff]  }
 0x2f1   :  { %4988 = vmatprep.subr.bf16.mxu1 %v7974_v38  ;;  %v10856_v27 = vadd.f32 %v2896_v20, %v2167_v0  ;;  %v4262_v43 = vpop.f32.mrf.mxu1  ;;  %v7976_v62 = vld [vmem:[%s12443_s3 + $0x790] ss:$8 sps:$4 sm:$0xff]  }
 0x2f2   :  { %12668 = vst [vmem:[#allocation45_spill] sm:$0xff] %v10846_v26  ;;  %v10859_v18 = vadd.f32 %v4262_v43, %v10563_v30  ;;  %v2898_v6 = vpop.f32.mrf.mxu0  ;;  %v7977_v30 = vld [vmem:[%s12443_s3 + $0x5c4] ss:$8 sps:$4 sm:$0xff]   ;;  %v12674_v38 = vld [vmem:[#allocation53_spill] sm:$0xff] }
 0x2f3   :  { %4514 = vmatpush2.bf16.msra.mxu0 %v7975_v2  ;;  %v10864_v7 = vadd.f32 %v2898_v6, %v2169_v52  ;;  %v4264_v25 = vpop.f32.mrf.mxu1  ;;  %v12675_v43 = vld [vmem:[#allocation13_spill] sm:$0xff]  ;;  %v7978_v6 = vld [vmem:[%s12443_s3 + $0x784] ss:$8 sps:$4 sm:$0xff]  }
 0x2f4   :  { %12671 = vst [vmem:[#allocation26_spill] sm:$0xff] %v10859_v18  ;;  %4989 = vmatpush2.bf16.msra.mxu1 %v7976_v62  ;;  %v10870_v0 = vadd.f32 %v4264_v25, %v10569_v61  ;;  %4515 = vmatprep.subr.bf16.mxu0 %v7977_v30  ;;  %v10875_v20 = vpop.f32.mrf.mxu0  ;;  %v2175_v52 = vadd.f32 %v12675_v43, %v12674_v38  ;;  %v12677_v61 = vld [vmem:[#allocation54_spill] sm:$0xff] }
 0x2f5   :  { %12673 = vst [vmem:[#allocation28_spill] sm:$0xff] %v10875_v20  ;;  %4990 = vmatprep.subr.bf16.mxu1 %v7978_v6  ;;  %v10882_v2 = vpop.f32.mrf.mxu1  ;;  %v12678_v25 = vld [vmem:[#allocation6_spill] sm:$0xff]  ;;  %v7981_v6 = vld [vmem:[%s12443_s3 + $0x234] ss:$8 sps:$4 sm:$0xff]  }
 0x2f6   :  { %12672 = vst [vmem:[#allocation48_spill] sm:$0xff] %v10870_v0  ;;  %12676 = vst [vmem:[#allocation49_spill] sm:$0xff] %v10882_v2  ;;  %v2904_v62 = vpop.f32.mrf.mxu0  ;;  %v2177_v24 = vadd.f32 %v12678_v25, %v12677_v61  ;;  %v7979_v30 = vld [vmem:[%s12443_s3 + $0x5c0] ss:$8 sps:$4 sm:$0xff]   ;;  %v12681_v2 = vld [vmem:[#allocation9_spill] sm:$0xff] }
 0x2f7   :  { %4516 = vmatpush2.bf16.msra.mxu0 %v7979_v30  ;;  %v10889_v20 = vadd.f32 %v2904_v62, %v2175_v52  ;;  %v4270_v63 = vpop.f32.mrf.mxu1  ;;  %v7980_v38 = vld [vmem:[%s12443_s3 + $0x780] ss:$8 sps:$4 sm:$0xff]   ;;  %v7982_v52 = vld [vmem:[%s12443_s3 + $0x854] ss:$8 sps:$4 sm:$0xff]  }
 0x2f8   :  { %4991 = vmatpush2.bf16.msra.mxu1 %v7980_v38  ;;  %v10895_v43 = vadd.f32 %v4270_v63, %v10587_v44  ;;  %4651 = vmatprep.subr.bf16.mxu0 %v7981_v6  ;;  %v2906_v61 = vpop.f32.mrf.mxu0  ;;  %v12680_v25 = vld [vmem:[#allocation55_spill] sm:$0xff] }
 0x2f9   :  { %v2179_v30 = vadd.f32 %v12681_v2, %v12680_v25  ;;  %5169 = vmatprep.subr.bf16.mxu1 %v7982_v52  ;;  %v10905_v62 = vadd.f32 %v2906_v61, %v2177_v24  ;;  %v4272_v38 = vpop.f32.mrf.mxu1  ;;  %v7983_v24 = vld [vmem:[%s12443_s3 + $0x230] ss:$8 sps:$4 sm:$0xff]   ;;  %v7985_v61 = vld [vmem:[%s12443_s3 + $0x224] ss:$8 sps:$4 sm:$0xff]   ;;  %v7989_v52 = vld [vmem:[%s12443_s3 + $0x214] ss:$8 sps:$4 sm:$0xff]  }
 0x2fa   :  { %12679 = vst [vmem:[#allocation29_spill] sm:$0xff] %v10895_v43  ;;  %4518 = vmatmul.mubr.bf16.vlgmr.msra.gmra.mxu0 %v8857_v31  ;;  %v10909_v44 = vadd.f32 %v4272_v38, %v10602_v12  ;;  %v2908_v63 = vpop.f32.mrf.mxu0  ;;  %v7984_v12 = vld [vmem:[%s12443_s3 + $0x850] ss:$8 sps:$4 sm:$0xff]   ;;  %v7986_v25 = vld [vmem:[%s12443_s3 + $0x844] ss:$8 sps:$4 sm:$0xff]  }
 0x2fb   :  { %4993 = vmatmul.mubr.bf16.vlgmr.msra.gmra.mxu1 %v8888_v5  ;;  %7009 = vmatprep.mubr.msk.bf16.mxu0 %vm1846_vm1, %v8882_v48  ;;  %v10914_v2 = vadd.f32 %v2908_v63, %v2179_v30  ;;  %v4274_v6 = vpop.f32.mrf.mxu1  ;;  %v7988_v30 = vld [vmem:[%s12443_s3 + $0x840] ss:$8 sps:$4 sm:$0xff]   ;;  %v7990_v38 = vld [vmem:[%s12443_s3 + $0x834] ss:$8 sps:$4 sm:$0xff]   ;;  %v7991_v63 = vld [vmem:[%s12443_s3 + $0x210] ss:$8 sps:$4 sm:$0xff]  }
 0x2fc   :  { %12682 = vst [vmem:[#allocation50_spill] sm:$0xff] %v10909_v44  ;;  %4652 = vmatpush1.bf16.msra.mxu0 %v7983_v24  ;;  %7034 = vmatprep.mubr.msk.bf16.mxu1 %vm1846_vm1, %v8914_v47  ;;  %v10922_v31 = vadd.f32 %v4274_v6, %v10608_v54  ;;  %v7987_v54 = vld [vmem:[%s12443_s3 + $0x220] ss:$8 sps:$4 sm:$0xff]   ;;  %v7992_v6 = vld [vmem:[%s12443_s3 + $0x830] ss:$8 sps:$4 sm:$0xff]  }
 0x2fd   :  { %5170 = vmatpush1.bf16.msra.mxu1 %v7984_v12  ;;  %4653 = vmatprep.subr.bf16.mxu0 %v7985_v61  ;;  %v7993_v24 = vld [vmem:[%s12443_s3 + $0x204] ss:$8 sps:$4 sm:$0xff]   ;;  %v7995_v61 = vld [vmem:[%s12443_s3 + $0x200] ss:$8 sps:$4 sm:$0xff]  }
 0x2fe   :  { %12683 = vst [vmem:[#allocation22_spill] sm:$0xff] %v10922_v31  ;;  %5171 = vmatprep.subr.bf16.mxu1 %v7986_v25  ;;  %v7994_v12 = vld [vmem:[%s12443_s3 + $0x824] ss:$8 sps:$4 sm:$0xff]   ;;  %v7996_v25 = vld [vmem:[%s12443_s3 + $0x820] ss:$8 sps:$4 sm:$0xff]  }
 0x300   :  { %4654 = vmatpush1.bf16.msra.mxu0 %v7987_v54  ;;  %v7997_v54 = vld [vmem:[%s12443_s3 + $0x1f4] ss:$8 sps:$4 sm:$0xff]  }
 0x301   :  { %5172 = vmatpush1.bf16.msra.mxu1 %v7988_v30  ;;  %4655 = vmatprep.subr.bf16.mxu0 %v7989_v52  ;;  %v7998_v30 = vld [vmem:[%s12443_s3 + $0x814] ss:$8 sps:$4 sm:$0xff]   ;;  %v7999_v52 = vld [vmem:[%s12443_s3 + $0x1f0] ss:$8 sps:$4 sm:$0xff]  }
 0x302   :  { %4528 = vmatmul.mubr.bf16.gmra.mxu0 %v8888_v5  ;;  %5173 = vmatprep.subr.bf16.mxu1 %v7990_v38  ;;  %v10984_v38 = vpop.f32.mrf.mxu0 }
 0x303   :  { %5003 = vmatmul.mubr.bf16.gmra.mxu1 %v8920_v60  ;;  %7010 = vmatprep.mubr.msk.bf16.mxu0 %vm1846_vm1, %v8914_v47  ;;  %12684 = vst [vmem:[#allocation53_spill] sm:$0xff] %v10984_v38 }
 0x304   :  { %4656 = vmatpush1.bf16.msra.mxu0 %v7991_v63  ;;  %7035 = vmatprep.mubr.msk.bf16.mxu1 %vm1846_vm1, %v8949_v41  ;;  %v8000_v63 = vld [vmem:[%s12443_s3 + $0x810] ss:$8 sps:$4 sm:$0xff]  }
 0x305   :  { %5174 = vmatpush1.bf16.msra.mxu1 %v7992_v6  ;;  %4657 = vmatprep.subr.bf16.mxu0 %v7993_v24  ;;  %v8001_v6 = vld [vmem:[%s12443_s3 + $0x1e4] ss:$8 sps:$4 sm:$0xff]   ;;  %v10992_v24 = vpop.f32.mrf.mxu1 }
 0x306   :  { %5175 = vmatprep.subr.bf16.mxu1 %v7994_v12  ;;  %12685 = vst [vmem:[#allocation13_spill] sm:$0xff] %v10992_v24  ;;  %v8002_v12 = vld [vmem:[%s12443_s3 + $0x804] ss:$8 sps:$4 sm:$0xff]  }
 0x307   :  { %v8009_v24 = vld [vmem:[%s12443_s3 + $0x1c4] ss:$8 sps:$4 sm:$0xff]  }
 0x308   :  { %4658 = vmatpush1.bf16.msra.mxu0 %v7995_v61 }
 0x309   :  { %5176 = vmatpush1.bf16.msra.mxu1 %v7996_v25  ;;  %4659 = vmatprep.subr.bf16.mxu0 %v7997_v54  ;;  %v8003_v25 = vld [vmem:[%s12443_s3 + $0x1e0] ss:$8 sps:$4 sm:$0xff]  }
 0x30a   :  { %4538 = vmatmul.mubr.bf16.gmra.mxu0 %v8920_v60  ;;  %5177 = vmatprep.subr.bf16.mxu1 %v7998_v30 }
 0x30b   :  { %5013 = vmatmul.mubr.bf16.gmra.mxu1 %v12552_v42  ;;  %7011 = vmatprep.mubr.msk.bf16.mxu0 %vm1846_vm1, %v8949_v41 }
 0x30c   :  { %4660 = vmatpush1.bf16.msra.mxu0 %v7999_v52  ;;  %7036 = vmatprep.mubr.msk.bf16.mxu1 %vm1846_vm1, %v12635_v55  ;;  %v8004_v52 = vld [vmem:[%s12443_s3 + $0x800] ss:$8 sps:$4 sm:$0xff]  }
 0x30d   :  { %5178 = vmatpush1.bf16.msra.mxu1 %v8000_v63  ;;  %4661 = vmatprep.subr.bf16.mxu0 %v8001_v6  ;;  %v8005_v63 = vld [vmem:[%s12443_s3 + $0x1d4] ss:$8 sps:$4 sm:$0xff]  }
 0x30e   :  { %5179 = vmatprep.subr.bf16.mxu1 %v8002_v12 }
 0x30f   :  { %v3411_v61 = vpop.f32.mrf.mxu0 }
 0x310   :  { %4662 = vmatpush1.bf16.msra.mxu0 %v8003_v25  ;;  %v11001_v54 = vadd.f32 %v3411_v61, %v10681_v40  ;;  %v11003_v30 = vpop.f32.mrf.mxu1  ;;  %v8006_v40 = vld [vmem:[%s12443_s3 + $0x7f4] ss:$8 sps:$4 sm:$0xff]  }
 0x311   :  { %5180 = vmatpush1.bf16.msra.mxu1 %v8004_v52  ;;  %4663 = vmatprep.subr.bf16.mxu0 %v8005_v63  ;;  %v3413_v6 = vpop.f32.mrf.mxu0  ;;  %v8007_v52 = vld [vmem:[%s12443_s3 + $0x1d0] ss:$8 sps:$4 sm:$0xff]   ;;  %v12686_v63 = vld [vmem:[#allocation10_spill] sm:$0xff] }
 0x312   :  { %4548 = vmatmul.mubr.bf16.gmra.mxu0 %v12552_v42  ;;  %5181 = vmatprep.subr.bf16.mxu1 %v8006_v40  ;;  %v11016_v12 = vadd.f32 %v3413_v6, %v10698_v53  ;;  %v11018_v61 = vpop.f32.mrf.mxu1  ;;  %v8008_v6 = vld [vmem:[%s12443_s3 + $0x7f0] ss:$8 sps:$4 sm:$0xff]  }
 0x313   :  { %5023 = vmatmul.mubr.bf16.gmra.mxu1 %v12559_v15  ;;  %7012 = vmatprep.mubr.msk.bf16.mxu0 %vm1846_vm1, %v12635_v55  ;;  %v3415_v25 = vpop.f32.mrf.mxu0 }
 0x314   :  { %4664 = vmatpush1.bf16.msra.mxu0 %v8007_v52  ;;  %7037 = vmatprep.mubr.msk.bf16.mxu1 %vm1846_vm1, %v12686_v63  ;;  %v11029_v40 = vadd.f32 %v3415_v25, %v10711_v8  ;;  %v11031_v53 = vpop.f32.mrf.mxu1  ;;  %v8010_v52 = vld [vmem:[%s12443_s3 + $0x7e4] ss:$8 sps:$4 sm:$0xff]  }
 0x315   :  { %5182 = vmatpush1.bf16.msra.mxu1 %v8008_v6  ;;  %4665 = vmatprep.subr.bf16.mxu0 %v8009_v24  ;;  %v11039_v38 = vpop.f32.mrf.mxu0  ;;  %v8012_v24 = vld [vmem:[%s12443_s3 + $0x7e0] ss:$8 sps:$4 sm:$0xff]  }
 0x316   :  { %12687 = vst [vmem:[#allocation54_spill] sm:$0xff] %v11039_v38  ;;  %5183 = vmatprep.subr.bf16.mxu1 %v8010_v52  ;;  %v11044_v8 = vpop.f32.mrf.mxu1  ;;  %v8013_v52 = vld [vmem:[%s12443_s3 + $0x294] ss:$8 sps:$4 sm:$0xff]  }
 0x317   :  { %v3421_v25 = vpop.f32.mrf.mxu0 }
 0x318   :  { %4666 = vmatpush1.bf16.msra.mxu0 %v8011_v28  ;;  %v11050_v6 = vadd.f32 %v3421_v25, %v10736_v14  ;;  %v11052_v17 = vpop.f32.mrf.mxu1  ;;  %v8014_v28 = vld [vmem:[%s12443_s3 + $0x8b4] ss:$8 sps:$4 sm:$0xff]  }
 0x319   :  { %5184 = vmatpush1.bf16.msra.mxu1 %v8012_v24  ;;  %4671 = vmatprep.subr.bf16.mxu0 %v8013_v52  ;;  %v3423_v38 = vpop.f32.mrf.mxu0  ;;  %v8015_v52 = vld [vmem:[%s12443_s3 + $0x290] ss:$8 sps:$4 sm:$0xff]  }
 0x31a   :  { %4558 = vmatmul.mubr.bf16.gmra.mxu0 %v12559_v15  ;;  %5189 = vmatprep.subr.bf16.mxu1 %v8014_v28  ;;  %v11065_v14 = vadd.f32 %v3423_v38, %v10753_v19  ;;  %v11067_v25 = vpop.f32.mrf.mxu1  ;;  %v8016_v38 = vld [vmem:[%s12443_s3 + $0x8b0] ss:$8 sps:$4 sm:$0xff]  }
 0x31b   :  { %12688 = vst [vmem:[#allocation6_spill] sm:$0xff] %v11067_v25  ;;  %5033 = vmatmul.mubr.bf16.gmra.mxu1 %v12596_v59  ;;  %7018 = vmatprep.mubr.msk.bf16.mxu0 %vm1846_vm1, %v9290_v13  ;;  %v3425_v24 = vpop.f32.mrf.mxu0  ;;  %v8017_v13 = vld [vmem:[%s12443_s3 + $0x284] ss:$8 sps:$4 sm:$0xff]  }
 0x31c   :  { %4672 = vmatpush2.bf16.msra.mxu0 %v8015_v52  ;;  %7043 = vmatprep.mubr.msk.bf16.mxu1 %vm1846_vm1, %v9342_v51  ;;  %v11078_v28 = vadd.f32 %v3425_v24, %v10766_v46  ;;  %v11080_v19 = vpop.f32.mrf.mxu1  ;;  %v8018_v52 = vld [vmem:[%s12443_s3 + $0x8a4] ss:$8 sps:$4 sm:$0xff]  }
 0x31d   :  { %12689 = vst [vmem:[#allocation55_spill] sm:$0xff] %v11080_v19  ;;  %5190 = vmatpush2.bf16.msra.mxu1 %v8016_v38  ;;  %4673 = vmatprep.subr.bf16.mxu0 %v8017_v13  ;;  %v11088_v10 = vpop.f32.mrf.mxu0  ;;  %v8020_v13 = vld [vmem:[%s12443_s3 + $0x8a0] ss:$8 sps:$4 sm:$0xff]  }
 0x31e   :  { %12690 = vst [vmem:[#allocation9_spill] sm:$0xff] %v11088_v10  ;;  %5191 = vmatprep.subr.bf16.mxu1 %v8018_v52  ;;  %v11093_v46 = vpop.f32.mrf.mxu1  ;;  %v8021_v52 = vld [vmem:[%s12443_s3 + $0x274] ss:$8 sps:$4 sm:$0xff]  }
 0x31f   :  { %12691 = vst [vmem:[#allocation10_spill] sm:$0xff] %v11093_v46  ;;  %v3431_v24 = vpop.f32.mrf.mxu0 }
 0x320   :  { %4674 = vmatpush2.bf16.msra.mxu0 %v8019_v35  ;;  %v11099_v38 = vadd.f32 %v3431_v24, %v10791_v36  ;;  %v11101_v9 = vpop.f32.mrf.mxu1  ;;  %v8022_v35 = vld [vmem:[%s12443_s3 + $0x894] ss:$8 sps:$4 sm:$0xff]  }
 0x321   :  { %12692 = vst [vmem:[#allocation70_spill] sm:$0xff] %v11101_v9  ;;  %5192 = vmatpush2.bf16.msra.mxu1 %v8020_v13  ;;  %4675 = vmatprep.subr.bf16.mxu0 %v8021_v52  ;;  %v3433_v10 = vpop.f32.mrf.mxu0  ;;  %v8023_v13 = vld [vmem:[%s12443_s3 + $0x270] ss:$8 sps:$4 sm:$0xff]  }
 0x322   :  { %5193 = vmatprep.subr.bf16.mxu1 %v8022_v35  ;;  %v11113_v36 = vadd.f32 %v3433_v10, %v10807_v33  ;;  %v11115_v24 = vpop.f32.mrf.mxu1  ;;  %v8024_v35 = vld [vmem:[%s12443_s3 + $0x890] ss:$8 sps:$4 sm:$0xff]   ;;  %v8025_v10 = vld [vmem:[%s12443_s3 + $0x264] ss:$8 sps:$4 sm:$0xff]  }
 0x323   :  { %12693 = vst [vmem:[#allocation71_spill] sm:$0xff] %v11115_v24  ;;  %v3435_v9 = vpop.f32.mrf.mxu0 }
 0x324   :  { %4676 = vmatpush2.bf16.msra.mxu0 %v8023_v13  ;;  %v11121_v46 = vadd.f32 %v3435_v9, %v10815_v16  ;;  %v11123_v52 = vpop.f32.mrf.mxu1  ;;  %v8026_v13 = vld [vmem:[%s12443_s3 + $0x884] ss:$8 sps:$4 sm:$0xff]  }
 0x325   :  { %12694 = vst [vmem:[#allocation72_spill] sm:$0xff] %v11123_v52  ;;  %5194 = vmatpush2.bf16.msra.mxu1 %v8024_v35  ;;  %4677 = vmatprep.subr.bf16.mxu0 %v8025_v10  ;;  %v11131_v33 = vpop.f32.mrf.mxu0  ;;  %v8027_v52 = vld [vmem:[%s12443_s3 + $0x260] ss:$8 sps:$4 sm:$0xff]  }
 0x326   :  { %12695 = vst [vmem:[#allocation73_spill] sm:$0xff] %v11131_v33  ;;  %5195 = vmatprep.subr.bf16.mxu1 %v8026_v13  ;;  %v11136_v9 = vpop.f32.mrf.mxu1  ;;  %v8028_v10 = vld [vmem:[%s12443_s3 + $0x880] ss:$8 sps:$4 sm:$0xff]   ;;  %v8029_v13 = vld [vmem:[%s12443_s3 + $0x254] ss:$8 sps:$4 sm:$0xff]  }
 0x327   :  { %12696 = vst [vmem:[#allocation74_spill] sm:$0xff] %v11136_v9  ;;  %v3441_v16 = vpop.f32.mrf.mxu0  ;;  %v8030_v9 = vld [vmem:[%s12443_s3 + $0x874] ss:$8 sps:$4 sm:$0xff]  }
 0x328   :  { %4678 = vmatpush2.bf16.msra.mxu0 %v8027_v52  ;;  %v11142_v35 = vadd.f32 %v3441_v16, %v10840_v4  ;;  %v11156_v4 = vpop.f32.mrf.mxu1 }
 0x329   :  { %5196 = vmatpush2.bf16.msra.mxu1 %v8028_v10  ;;  %4679 = vmatprep.subr.bf16.mxu0 %v8029_v13  ;;  %v3443_v33 = vpop.f32.mrf.mxu0  ;;  %12697 = vst [vmem:[#allocation75_spill] sm:$0xff] %v11156_v4  ;;  %v8031_v10 = vld [vmem:[%s12443_s3 + $0x250] ss:$8 sps:$4 sm:$0xff]  }
 0x32a   :  { %5197 = vmatprep.subr.bf16.mxu1 %v8030_v9  ;;  %v11154_v52 = vadd.f32 %v3443_v33, %v10856_v27  ;;  %v8032_v13 = vld [vmem:[%s12443_s3 + $0x870] ss:$8 sps:$4 sm:$0xff]   ;;  %v8033_v27 = vld [vmem:[%s12443_s3 + $0x244] ss:$8 sps:$4 sm:$0xff]  }
 0x32b   :  { %v3445_v16 = vpop.f32.mrf.mxu0  ;;  %v8034_v9 = vld [vmem:[%s12443_s3 + $0x864] ss:$8 sps:$4 sm:$0xff]  }
 0x32c   :  { %4680 = vmatpush2.bf16.msra.mxu0 %v8031_v10  ;;  %v11162_v24 = vadd.f32 %v3445_v16, %v10864_v7  ;;  %v11175_v10 = vpop.f32.mrf.mxu1  ;;  %v8035_v16 = vld [vmem:[%s12443_s3 + $0x240] ss:$8 sps:$4 sm:$0xff]  }
 0x32d   :  { %5198 = vmatpush2.bf16.msra.mxu1 %v8032_v13  ;;  %4681 = vmatprep.subr.bf16.mxu0 %v8033_v27  ;;  %v11170_v33 = vpop.f32.mrf.mxu0  ;;  %12699 = vst [vmem:[#allocation77_spill] sm:$0xff] %v11175_v10  ;;  %v8036_v27 = vld [vmem:[%s12443_s3 + $0x860] ss:$8 sps:$4 sm:$0xff]  }
 0x32e   :  { %12698 = vst [vmem:[#allocation76_spill] sm:$0xff] %v11170_v33  ;;  %5199 = vmatprep.subr.bf16.mxu1 %v8034_v9  ;;  %v8037_v9 = vld [vmem:[%s12443_s3 + $0x314] ss:$8 sps:$4 sm:$0xff]   ;;  %v11192_v4 = vpop.f32.mrf.mxu1 }
 0x32f   :  { %v3451_v7 = vpop.f32.mrf.mxu0  ;;  %12700 = vst [vmem:[#allocation78_spill] sm:$0xff] %v11192_v4  ;;  %v12705_v4 = vld [vmem:[#allocation31_spill] sm:$0xff] }
 0x330   :  { %4682 = vmatpush2.bf16.msra.mxu0 %v8035_v16  ;;  %v11181_v13 = vadd.f32 %v3451_v7, %v10889_v20  ;;  %v8038_v16 = vld [vmem:[%s12443_s3 + $0x310] ss:$8 sps:$4 sm:$0xff]  }
 0x331   :  { %5200 = vmatpush2.bf16.msra.mxu1 %v8036_v27  ;;  %4857 = vmatprep.subr.bf16.mxu0 %v8037_v9  ;;  %v3453_v33 = vpop.f32.mrf.mxu0  ;;  %v12702_v27 = vld [vmem:[#allocation35_spill] sm:$0xff]  ;;  %v12703_v9 = vld [vmem:[#allocation30_spill] sm:$0xff] }
 0x332   :  { %v11190_v10 = vadd.f32 %v3453_v33, %v10905_v62  ;;  %v11209_v62 = vpop.f32.mrf.mxu1  ;;  %v8041_v33 = vld [vmem:[%s12443_s3 + $0x2f4] ss:$8 sps:$4 sm:$0xff]  }
 0x333   :  { %4684 = vmatmul.mubr.bf16.vlgmr.msra.gmra.mxu0 %v9297_v21  ;;  %v3455_v20 = vpop.f32.mrf.mxu0  ;;  %v8039_v21 = vld [vmem:[%s12443_s3 + $0x304] ss:$8 sps:$4 sm:$0xff]   ;;  %12701 = vst [vmem:[#allocation79_spill] sm:$0xff] %v11209_v62 }
 0x334   :  { %5202 = vmatmul.mubr.bf16.vlgmr.msra.gmra.mxu1 %v9355_v58  ;;  %7019 = vmatprep.mubr.msk.bf16.mxu0 %vm1846_vm1, %v9342_v51  ;;  %v11199_v7 = vadd.f32 %v3455_v20, %v10914_v2  ;;  %v8040_v2 = vld [vmem:[%s12443_s3 + $0x300] ss:$8 sps:$4 sm:$0xff]   ;;  %v1492_v20 = vmax.f32 %v12703_v9, %v12702_v27  ;;  %v11221_v25 = vpop.f32.mrf.mxu1  ;;  %v8045_v9 = vld [vmem:[%s12443_s3 + $0x2d4] ss:$8 sps:$4 sm:$0xff]  }
 0x335   :  { %4858 = vmatpush1.bf16.msra.mxu0 %v8038_v16  ;;  %7044 = vmatprep.mubr.msk.bf16.mxu1 %vm1846_vm1, %v9385_v37  ;;  %v12704_v16 = vld [vmem:[#allocation17_spill] sm:$0xff]  ;;  %12706 = vst [vmem:[#allocation35_spill] sm:$0xff] %v11221_v25  ;;  %v8044_v27 = vld [vmem:[%s12443_s3 + $0x2e0] ss:$8 sps:$4 sm:$0xff]  }
 0x336   :  { %4859 = vmatprep.subr.bf16.mxu0 %v8039_v21  ;;  %v1520_v19 = vmax.f32 %v12705_v4, %v12704_v16  ;;  %v8042_v21 = vld [vmem:[%s12443_s3 + $0x2f0] ss:$8 sps:$4 sm:$0xff]   ;;  %v8043_v4 = vld [vmem:[%s12443_s3 + $0x2e4] ss:$8 sps:$4 sm:$0xff]  }
 0x337   :  { %v12708_v16 = vld [vmem:[#allocation12_spill] sm:$0xff] }
 0x339   :  { %4860 = vmatpush1.bf16.msra.mxu0 %v8040_v2  ;;  %v1548_v2 = vmax.f32 %v1492_v20, %v1520_v19  ;;  %v12710_v19 = vld [vmem:[#allocation15_spill] sm:$0xff] }
 0x33a   :  { %4861 = vmatprep.subr.bf16.mxu0 %v8041_v33  ;;  %v11235_v33 = vpop.f32.mrf.mxu1  ;;  %v1574_v20 = vadd.f32 %v12710_v19, %v12708_v16  ;;  %v8048_v19 = vld [vmem:[%s12443_s3 + $0x2c0] ss:$8 sps:$4 sm:$0xff]  }
 0x33b   :  { %4694 = vmatmul.mubr.bf16.gmra.mxu0 %v9355_v58  ;;  %12707 = vst [vmem:[#allocation30_spill] sm:$0xff] %v11235_v33 }
 0x33c   :  { %5212 = vmatmul.mubr.bf16.gmra.mxu1 %v9403_v34  ;;  %7020 = vmatprep.mubr.msk.bf16.mxu0 %vm1846_vm1, %v9385_v37  ;;  %v11244_v25 = vpop.f32.mrf.mxu1 }
 0x33d   :  { %4862 = vmatpush1.bf16.msra.mxu0 %v8042_v21  ;;  %7045 = vmatprep.mubr.msk.bf16.mxu1 %vm1846_vm1, %v9442_v22  ;;  %v1576_v21 = vadd.f32 %v1548_v2, %v12708_v16  ;;  %12709 = vst [vmem:[#allocation17_spill] sm:$0xff] %v11244_v25  ;;  %v11257_v2 = vpop.f32.mrf.mxu0  ;;  %v1602_v16 = vmax.f32 %v1574_v20, 0.0 }
 0x33e   :  { %4863 = vmatprep.subr.bf16.mxu0 %v8043_v4  ;;  %v8046_v4 = vld [vmem:[%s12443_s3 + $0x2d0] ss:$8 sps:$4 sm:$0xff]   ;;  %12711 = vst [vmem:[#allocation31_spill] sm:$0xff] %v11257_v2  ;;  %v11262_v25 = vpop.f32.mrf.mxu1  ;;  %v8049_v2 = vld [vmem:[%s12443_s3 + $0x2b4] ss:$8 sps:$4 sm:$0xff]  }
 0x33f   :  { %12712 = vst [vmem:[#allocation12_spill] sm:$0xff] %v11262_v25 }
 0x341   :  { %4864 = vmatpush1.bf16.msra.mxu0 %v8044_v27  ;;  %v8047_v27 = vld [vmem:[%s12443_s3 + $0x2c4] ss:$8 sps:$4 sm:$0xff]  }
 0x342   :  { %4865 = vmatprep.subr.bf16.mxu0 %v8045_v9  ;;  %v1604_v9 = vmax.f32 %v1576_v21, 0.0 }
 0x343   :  { %4704 = vmatmul.mubr.bf16.gmra.mxu0 %v9403_v34 }
 0x344   :  { %5222 = vmatmul.mubr.bf16.gmra.mxu1 %v9453_v11  ;;  %7021 = vmatprep.mubr.msk.bf16.mxu0 %vm1846_vm1, %v9442_v22  ;;  %v11278_v20 = vpack.c.bf16 %v1604_v9, %v1602_v16 }
 0x345   :  { %4866 = vmatpush1.bf16.msra.mxu0 %v8046_v4  ;;  %7046 = vmatprep.mubr.msk.bf16.mxu1 %vm1846_vm1, %v12637_v57 }
 0x346   :  { %4867 = vmatprep.subr.bf16.mxu0 %v8047_v27 }
 0x348   :  { %v3958_v33 = vpop.f32.mrf.mxu0 }
 0x349   :  { %4868 = vmatpush1.bf16.msra.mxu0 %v8048_v19  ;;  %v11268_v4 = vadd.f32 %v3958_v33, %v11001_v54  ;;  %v11270_v62 = vpop.f32.mrf.mxu1 }
 0x34a   :  { %4869 = vmatprep.subr.bf16.mxu0 %v8049_v2  ;;  %v3960_v21 = vpop.f32.mrf.mxu0  ;;  %v8050_v2 = vld [vmem:[%s12443_s3 + $0x2b0] ss:$8 sps:$4 sm:$0xff]  }
 0x34b   :  { %12713 = vst [vmem:[#allocation15_spill] sm:$0xff] %v11268_v4  ;;  %4714 = vmatmul.mubr.bf16.gmra.mxu0 %v9453_v11  ;;  %v11281_v19 = vadd.f32 %v3960_v21, %v11016_v12  ;;  %v11283_v54 = vpop.f32.mrf.mxu1  ;;  %v8051_v21 = vld [vmem:[%s12443_s3 + $0x2a4] ss:$8 sps:$4 sm:$0xff]  }
 0x34c   :  { %5232 = vmatmul.mubr.bf16.gmra.mxu1 %v12648_v1  ;;  %7022 = vmatprep.mubr.msk.bf16.mxu0 %vm1846_vm1, %v12637_v57  ;;  %v3962_v33 = vpop.f32.mrf.mxu0 }
 0x34d   :  { %12714 = vst [vmem:[#allocation80_spill] sm:$0xff] %v11281_v19  ;;  %4870 = vmatpush1.bf16.msra.mxu0 %v8050_v2  ;;  %7047 = vmatprep.mubr.msk.bf16.mxu1 %vm1846_vm1, %v11278_v20  ;;  %v11296_v9 = vadd.f32 %v3962_v33, %v11029_v40  ;;  %v11298_v16 = vpop.f32.mrf.mxu1  ;;  %v8052_v40 = vld [vmem:[%s12443_s3 + $0x2a0] ss:$8 sps:$4 sm:$0xff]  }
 0x34e   :  { %4871 = vmatprep.subr.bf16.mxu0 %v8051_v21  ;;  %v11303_v27 = vpop.f32.mrf.mxu0  ;;  %v8053_v21 = vld [vmem:[%s12443_s3 + $0x374] ss:$8 sps:$4 sm:$0xff]  }
 0x34f   :  { %12715 = vst [vmem:[#allocation81_spill] sm:$0xff] %v11296_v9  ;;  %12716 = vst [vmem:[#allocation82_spill] sm:$0xff] %v11303_v27  ;;  %v11307_v39 = vpop.f32.mrf.mxu1 }
 0x350   :  { %v3968_v4 = vpop.f32.mrf.mxu0 }
 0x351   :  { %4872 = vmatpush1.bf16.msra.mxu0 %v8052_v40  ;;  %v11313_v33 = vadd.f32 %v3968_v4, %v11050_v6  ;;  %v11315_v12 = vpop.f32.mrf.mxu1  ;;  %v12719_v6 = vld [vmem:[#allocation16_spill] sm:$0xff] }
 0x352   :  { %4877 = vmatprep.subr.bf16.mxu0 %v8053_v21  ;;  %v3970_v3 = vpop.f32.mrf.mxu0  ;;  %v8054_v21 = vld [vmem:[%s12443_s3 + $0x370] ss:$8 sps:$4 sm:$0xff]  }
 0x353   :  { %12717 = vst [vmem:[#allocation83_spill] sm:$0xff] %v11313_v33  ;;  %4724 = vmatmul.mubr.bf16.gmra.mxu0 %v12648_v1  ;;  %v11324_v45 = vadd.f32 %v3970_v3, %v11065_v14  ;;  %v11326_v40 = vpop.f32.mrf.mxu1  ;;  %v8055_v14 = vld [vmem:[%s12443_s3 + $0x364] ss:$8 sps:$4 sm:$0xff]  }
 0x354   :  { %5242 = vmatmul.mubr.bf16.gmra.mxu1 %v12719_v6  ;;  %7028 = vmatprep.mubr.msk.bf16.mxu0 %vm1846_vm1, %v8882_v48  ;;  %v3972_v4 = vpop.f32.mrf.mxu0 }
 0x355   :  { %12718 = vst [vmem:[#allocation84_spill] sm:$0xff] %v11324_v45  ;;  %4878 = vmatpush2.bf16.msra.mxu0 %v8054_v21  ;;  %v11337_v23 = vadd.f32 %v3972_v4, %v11078_v28  ;;  %v11339_v3 = vpop.f32.mrf.mxu1  ;;  %v8056_v28 = vld [vmem:[%s12443_s3 + $0x360] ss:$8 sps:$4 sm:$0xff]  }
 0x356   :  { %4879 = vmatprep.subr.bf16.mxu0 %v8055_v14  ;;  %v11344_v48 = vpop.f32.mrf.mxu0  ;;  %v8057_v14 = vld [vmem:[%s12443_s3 + $0x354] ss:$8 sps:$4 sm:$0xff]  }
 0x357   :  { %12720 = vst [vmem:[#allocation16_spill] sm:$0xff] %v11337_v23  ;;  %12721 = vst [vmem:[#allocation85_spill] sm:$0xff] %v11344_v48  ;;  %v11348_v9 = vpop.f32.mrf.mxu1 }
 0x358   :  { %v3978_v21 = vpop.f32.mrf.mxu0 }
 0x359   :  { %4880 = vmatpush2.bf16.msra.mxu0 %v8056_v28  ;;  %v11354_v4 = vadd.f32 %v3978_v21, %v11099_v38  ;;  %v11356_v2 = vpop.f32.mrf.mxu1  ;;  %v8058_v38 = vld [vmem:[%s12443_s3 + $0x350] ss:$8 sps:$4 sm:$0xff]  }
 0x35a   :  { %4881 = vmatprep.subr.bf16.mxu0 %v8057_v14  ;;  %v3980_v29 = vpop.f32.mrf.mxu0 }
 0x35b   :  { %12722 = vst [vmem:[#allocation86_spill] sm:$0xff] %v11354_v4  ;;  %v11364_v49 = vadd.f32 %v3980_v29, %v11113_v36  ;;  %v11366_v23 = vpop.f32.mrf.mxu1  ;;  %v8059_v29 = vld [vmem:[%s12443_s3 + $0x344] ss:$8 sps:$4 sm:$0xff]   ;;  %v8086_v4 = vld [vmem:[%s12443_s3 + $0x430] ss:$8 sps:$4 sm:$0xff]  }
 0x35c   :  { %v3982_v28 = vpop.f32.mrf.mxu0 }
 0x35d   :  { %12723 = vst [vmem:[#allocation87_spill] sm:$0xff] %v11364_v49  ;;  %4882 = vmatpush2.bf16.msra.mxu0 %v8058_v38  ;;  %v11374_v14 = vadd.f32 %v3982_v28, %v11121_v46  ;;  %v11376_v45 = vpop.f32.mrf.mxu1  ;;  %v8060_v46 = vld [vmem:[%s12443_s3 + $0x340] ss:$8 sps:$4 sm:$0xff]  }
 0x35e   :  { %4883 = vmatprep.subr.bf16.mxu0 %v8059_v29  ;;  %v11381_v36 = vpop.f32.mrf.mxu0  ;;  %v8061_v29 = vld [vmem:[%s12443_s3 + $0x334] ss:$8 sps:$4 sm:$0xff]  }
 0x35f   :  { %12724 = vst [vmem:[#allocation88_spill] sm:$0xff] %v11374_v14  ;;  %12725 = vst [vmem:[#allocation89_spill] sm:$0xff] %v11381_v36  ;;  %v11385_v56 = vpop.f32.mrf.mxu1 }
 0x360   :  { %v3988_v38 = vpop.f32.mrf.mxu0 }
 0x361   :  { %4884 = vmatpush2.bf16.msra.mxu0 %v8060_v46  ;;  %v11391_v28 = vadd.f32 %v3988_v38, %v11142_v35  ;;  %v11401_v14 = vpop.f32.mrf.mxu1  ;;  %v8062_v35 = vld [vmem:[%s12443_s3 + $0x330] ss:$8 sps:$4 sm:$0xff]  }
 0x362   :  { %4885 = vmatprep.subr.bf16.mxu0 %v8061_v29  ;;  %v3990_v21 = vpop.f32.mrf.mxu0  ;;  %v8063_v29 = vld [vmem:[%s12443_s3 + $0x324] ss:$8 sps:$4 sm:$0xff]  }
 0x363   :  { %12726 = vst [vmem:[#allocation90_spill] sm:$0xff] %v11391_v28  ;;  %v11399_v50 = vadd.f32 %v3990_v21, %v11154_v52  ;;  %v11418_v33 = vpop.f32.mrf.mxu1  ;;  %v8085_v28 = vld [vmem:[%s12443_s3 + $0x434] ss:$8 sps:$4 sm:$0xff]  }
 0x364   :  { %v3992_v32 = vpop.f32.mrf.mxu0 }
 0x365   :  { %12727 = vst [vmem:[#allocation91_spill] sm:$0xff] %v11399_v50  ;;  %4886 = vmatpush2.bf16.msra.mxu0 %v8062_v35  ;;  %v11409_v46 = vadd.f32 %v3992_v32, %v11162_v24  ;;  %v8064_v35 = vld [vmem:[%s12443_s3 + $0x320] ss:$8 sps:$4 sm:$0xff]   ;;  %v8065_v24 = vld [vmem:[%s12443_s3 + $0x3f4] ss:$8 sps:$4 sm:$0xff]   ;;  %v11434_v0 = vpop.f32.mrf.mxu1 }
 0x366   :  { %4887 = vmatprep.subr.bf16.mxu0 %v8063_v29  ;;  %v11414_v52 = vpop.f32.mrf.mxu0 }
 0x367   :  { %12728 = vst [vmem:[#allocation92_spill] sm:$0xff] %v11409_v46  ;;  %12729 = vst [vmem:[#allocation93_spill] sm:$0xff] %v11414_v52 }
 0x368   :  { %v3998_v26 = vpop.f32.mrf.mxu0 }
 0x369   :  { %4888 = vmatpush2.bf16.msra.mxu0 %v8064_v35  ;;  %v11424_v32 = vadd.f32 %v3998_v26, %v11181_v13  ;;  %v8066_v26 = vld [vmem:[%s12443_s3 + $0x3f0] ss:$8 sps:$4 sm:$0xff]  }
 0x36a   :  { %5066 = vmatprep.subr.bf16.mxu0 %v8065_v24  ;;  %v4000_v29 = vpop.f32.mrf.mxu0 }
 0x36b   :  { %12730 = vst [vmem:[#allocation94_spill] sm:$0xff] %v11424_v32  ;;  %v11432_v38 = vadd.f32 %v4000_v29, %v11190_v10  ;;  %v8067_v10 = vld [vmem:[%s12443_s3 + $0x3e4] ss:$8 sps:$4 sm:$0xff]   ;;  %v8068_v29 = vld [vmem:[%s12443_s3 + $0x3e0] ss:$8 sps:$4 sm:$0xff]  }
 0x36c   :  { %4890 = vmatmul.mubr.bf16.vlgmr.msra.gmra.mxu0 %v8888_v5  ;;  %v4002_v35 = vpop.f32.mrf.mxu0  ;;  %v8082_v32 = vld [vmem:[%s12443_s3 + $0x450] ss:$8 sps:$4 sm:$0xff]  }
 0x36d   :  { %12731 = vst [vmem:[#allocation95_spill] sm:$0xff] %v11432_v38  ;;  %7029 = vmatprep.mubr.msk.bf16.mxu0 %vm1846_vm1, %v8914_v47  ;;  %5067 = vmatpush1.bf16.msra.mxu0 %v8066_v26  ;;  %v11445_v24 = vadd.f32 %v4002_v35, %v11199_v7  ;;  %v11452_v47 = vpop.f32.mrf.mxu1  ;;  %v8069_v7 = vld [vmem:[%s12443_s3 + $0x3d4] ss:$8 sps:$4 sm:$0xff]   ;;  %v8070_v26 = vld [vmem:[%s12443_s3 + $0x3d0] ss:$8 sps:$4 sm:$0xff]  }
 0x36e   :  { %5068 = vmatprep.subr.bf16.mxu0 %v8067_v10  ;;  %v8071_v10 = vld [vmem:[%s12443_s3 + $0x3c4] ss:$8 sps:$4 sm:$0xff]   ;;  %v8081_v38 = vld [vmem:[%s12443_s3 + $0x454] ss:$8 sps:$4 sm:$0xff]  }
 0x36f   :  { %12732 = vst [vmem:[#allocation96_spill] sm:$0xff] %v11445_v24  ;;  %v11460_v35 = vpop.f32.mrf.mxu1 }
 0x371   :  { %5069 = vmatpush1.bf16.msra.mxu0 %v8068_v29  ;;  %v11471_v29 = vpop.f32.mrf.mxu1 }
 0x372   :  { %5070 = vmatprep.subr.bf16.mxu0 %v8069_v7  ;;  %v8072_v7 = vld [vmem:[%s12443_s3 + $0x3c0] ss:$8 sps:$4 sm:$0xff]  }
 0x374   :  { %4900 = vmatmul.mubr.bf16.gmra.mxu0 %v8920_v60  ;;  %v8073_v60 = vld [vmem:[%s12443_s3 + $0x3b4] ss:$8 sps:$4 sm:$0xff]  }
 0x375   :  { %7030 = vmatprep.mubr.msk.bf16.mxu0 %vm1846_vm1, %v8949_v41  ;;  %5071 = vmatpush1.bf16.msra.mxu0 %v8070_v26  ;;  %v11479_v41 = vpop.f32.mrf.mxu1  ;;  %v8074_v26 = vld [vmem:[%s12443_s3 + $0x3b0] ss:$8 sps:$4 sm:$0xff]  }
 0x376   :  { %5072 = vmatprep.subr.bf16.mxu0 %v8071_v10  ;;  %v8075_v10 = vld [vmem:[%s12443_s3 + $0x3a4] ss:$8 sps:$4 sm:$0xff]  }
 0x379   :  { %5073 = vmatpush1.bf16.msra.mxu0 %v8072_v7  ;;  %v11490_v7 = vpop.f32.mrf.mxu0 }
 0x37a   :  { %5074 = vmatprep.subr.bf16.mxu0 %v8073_v60  ;;  %12733 = vst [vmem:[#allocation97_spill] sm:$0xff] %v11490_v7  ;;  %v11492_v60 = vpop.f32.mrf.mxu1  ;;  %v8087_v7 = vld [vmem:[%s12443_s3 + $0x424] ss:$8 sps:$4 sm:$0xff]  }
 0x37c   :  { %4910 = vmatmul.mubr.bf16.gmra.mxu0 %v12552_v42  ;;  %v8076_v42 = vld [vmem:[%s12443_s3 + $0x3a0] ss:$8 sps:$4 sm:$0xff]  }
 0x37d   :  { %7031 = vmatprep.mubr.msk.bf16.mxu0 %vm1846_vm1, %v12635_v55  ;;  %5075 = vmatpush1.bf16.msra.mxu0 %v8074_v26  ;;  %v8077_v26 = vld [vmem:[%s12443_s3 + $0x394] ss:$8 sps:$4 sm:$0xff]  }
 0x37e   :  { %5076 = vmatprep.subr.bf16.mxu0 %v8075_v10 }
 0x381   :  { %5077 = vmatpush1.bf16.msra.mxu0 %v8076_v42  ;;  %v11497_v55 = vpop.f32.mrf.mxu0  ;;  %v8078_v42 = vld [vmem:[%s12443_s3 + $0x390] ss:$8 sps:$4 sm:$0xff]  }
 0x382   :  { %v11499_v5 = vpop.f32.mrf.mxu1  ;;  %5078 = vmatprep.subr.bf16.mxu0 %v8077_v26  ;;  %v8079_v26 = vld [vmem:[%s12443_s3 + $0x384] ss:$8 sps:$4 sm:$0xff]  }
 0x383   :  { %v11504_v13 = vpop.f32.mrf.mxu0 }
 0x384   :  { %4920 = vmatmul.mubr.bf16.gmra.mxu0 %v12559_v15  ;;  %v11507_v10 = vpop.f32.mrf.mxu1 }
 0x385   :  { %7032 = vmatprep.mubr.msk.bf16.mxu0 %vm1846_vm1, %v12686_v63  ;;  %5079 = vmatpush1.bf16.msra.mxu0 %v8078_v42  ;;  %v11514_v21 = vpop.f32.mrf.mxu0  ;;  %v8080_v63 = vld [vmem:[%s12443_s3 + $0x380] ss:$8 sps:$4 sm:$0xff]  }
 0x386   :  { %v11516_v31 = vpop.f32.mrf.mxu1  ;;  %5080 = vmatprep.subr.bf16.mxu0 %v8079_v26 }
 0x387   :  { %v11521_v15 = vpop.f32.mrf.mxu0 }
 0x388   :  { %v11523_v24 = vpop.f32.mrf.mxu1 }
 0x389   :  { %5081 = vmatpush1.bf16.msra.mxu0 %v8080_v63  ;;  %v11528_v44 = vpop.f32.mrf.mxu0 }
 0x38a   :  { %v11530_v42 = vpop.f32.mrf.mxu1  ;;  %5086 = vmatprep.subr.bf16.mxu0 %v8081_v38  ;;  %v8083_v38 = vld [vmem:[%s12443_s3 + $0x444] ss:$8 sps:$4 sm:$0xff]  }
 0x38b   :  { %v11535_v43 = vpop.f32.mrf.mxu0 }
 0x38c   :  { %4930 = vmatmul.mubr.bf16.gmra.mxu0 %v12596_v59  ;;  %v11538_v26 = vpop.f32.mrf.mxu1 }
 0x38d   :  { %5087 = vmatpush2.bf16.msra.mxu0 %v8082_v32  ;;  %7038 = vmatprep.mubr.msk.bf16.mxu0 %vm1846_vm1, %v9342_v51  ;;  %v11545_v63 = vpop.f32.mrf.mxu0  ;;  %v8084_v32 = vld [vmem:[%s12443_s3 + $0x440] ss:$8 sps:$4 sm:$0xff]  }
 0x38e   :  { %v11547_v46 = vpop.f32.mrf.mxu1  ;;  %5088 = vmatprep.subr.bf16.mxu0 %v8083_v38 }
 0x38f   :  { %v11552_v59 = vpop.f32.mrf.mxu0 }
 0x390   :  { %12734 = vst [vmem:[#allocation98_spill] sm:$0xff] %v11552_v59  ;;  %v11554_v18 = vpop.f32.mrf.mxu1 }
 0x391   :  { %5089 = vmatpush2.bf16.msra.mxu0 %v8084_v32  ;;  %v11559_v50 = vpop.f32.mrf.mxu0 }
 0x392   :  { %12735 = vst [vmem:[#allocation99_spill] sm:$0xff] %v11559_v50  ;;  %v11561_v51 = vpop.f32.mrf.mxu1  ;;  %5090 = vmatprep.subr.bf16.mxu0 %v8085_v28  ;;  %v8088_v28 = vld [vmem:[%s12443_s3 + $0x420] ss:$8 sps:$4 sm:$0xff]  }
 0x393   :  { %v11566_v49 = vpop.f32.mrf.mxu0 }
 0x394   :  { %12736 = vst [vmem:[#allocation100_spill] sm:$0xff] %v11566_v49  ;;  %v11568_v38 = vpop.f32.mrf.mxu1 }
 0x395   :  { %5091 = vmatpush2.bf16.msra.mxu0 %v8086_v4  ;;  %v11573_v19 = vpop.f32.mrf.mxu0  ;;  %v8089_v4 = vld [vmem:[%s12443_s3 + $0x414] ss:$8 sps:$4 sm:$0xff]  }
 0x396   :  { %12737 = vst [vmem:[#allocation101_spill] sm:$0xff] %v11573_v19  ;;  %v11575_v32 = vpop.f32.mrf.mxu1  ;;  %5092 = vmatprep.subr.bf16.mxu0 %v8087_v7  ;;  %v8090_v7 = vld [vmem:[%s12443_s3 + $0x410] ss:$8 sps:$4 sm:$0xff]  }
 0x397   :  { %v11580_v52 = vpop.f32.mrf.mxu0 }
 0x398   :  { %12738 = vst [vmem:[#allocation102_spill] sm:$0xff] %v11580_v52  ;;  %v11585_v36 = vpop.f32.mrf.mxu1 }
 0x399   :  { %5093 = vmatpush2.bf16.msra.mxu0 %v8088_v28  ;;  %v11590_v48 = vpop.f32.mrf.mxu0  ;;  %v8091_v28 = vld [vmem:[%s12443_s3 + $0x404] ss:$8 sps:$4 sm:$0xff]  }
 0x39a   :  { %5094 = vmatprep.subr.bf16.mxu0 %v8089_v4  ;;  %12739 = vst [vmem:[#allocation103_spill] sm:$0xff] %v11590_v48  ;;  %v11592_v27 = vpop.f32.mrf.mxu1  ;;  %v8092_v4 = vld [vmem:[%s12443_s3 + $0x400] ss:$8 sps:$4 sm:$0xff]  }
 0x39b   :  { %v11600_v25 = vpop.f32.mrf.mxu0 }
 0x39c   :  { %12740 = vst [vmem:[#allocation104_spill] sm:$0xff] %v11600_v25  ;;  %v11602_v52 = vpop.f32.mrf.mxu1 }
 0x39d   :  { %5095 = vmatpush2.bf16.msra.mxu0 %v8090_v7  ;;  %v11607_v48 = vpop.f32.mrf.mxu0 }
 0x39e   :  { %5096 = vmatprep.subr.bf16.mxu0 %v8091_v28  ;;  %12741 = vst [vmem:[#allocation105_spill] sm:$0xff] %v11607_v48  ;;  %v11610_v19 = vpop.f32.mrf.mxu1 }
 0x39f   :  { %v11614_v7 = vpop.f32.mrf.mxu0 }
 0x3a0   :  { %12742 = vst [vmem:[#allocation106_spill] sm:$0xff] %v11614_v7  ;;  %v11616_v28 = vpop.f32.mrf.mxu1 }
 0x3a1   :  { %5097 = vmatpush2.bf16.msra.mxu0 %v8092_v4  ;;  %v11618_v25 = vpop.f32.mrf.mxu0 }
 0x3a2   :  { %12743 = vst [vmem:[#allocation107_spill] sm:$0xff] %v11618_v25  ;;  %v11621_v49 = vpop.f32.mrf.mxu1 }
 0x3a3   :  { %v11625_v4 = vpop.f32.mrf.mxu0 }
 0x3a4   :  { %5099 = vmatmul.mubr.bf16.vlgmr.msra.gmra.mxu0 %v9355_v58  ;;  %12744 = vst [vmem:[#allocation108_spill] sm:$0xff] %v11625_v4  ;;  %v11627_v58 = vpop.f32.mrf.mxu1 }
 0x3a5   :  { %7039 = vmatprep.mubr.msk.bf16.mxu0 %vm1846_vm1, %v9385_v37  ;;  %v11629_v48 = vpop.f32.mrf.mxu0 }
 0x3a6   :  { %12745 = vst [vmem:[#allocation109_spill] sm:$0xff] %v11629_v48  ;;  %v11632_v37 = vpop.f32.mrf.mxu1 }
 0x3a7   :  { %v11636_v25 = vpop.f32.mrf.mxu0 }
 0x3a8   :  { %12746 = vst [vmem:[#allocation110_spill] sm:$0xff] %v11636_v25 }
 0x3ac   :  { %5109 = vmatmul.mubr.bf16.gmra.mxu0 %v9403_v34  ;;  %v11638_v34 = vpop.f32.mrf.mxu1 }
 0x3ad   :  { %7040 = vmatprep.mubr.msk.bf16.mxu0 %vm1846_vm1, %v9442_v22 }
 0x3b4   :  { %5119 = vmatmul.mubr.bf16.gmra.mxu0 %v9453_v11 }
 0x3b5   :  { %7041 = vmatprep.mubr.msk.bf16.mxu0 %vm1846_vm1, %v12637_v57 }
 0x3ba   :  { %v4519_v7 = vpop.f32.mrf.mxu0 }
 0x3bb   :  { %v4603_v22 = vadd.f32 %v11270_v62, %v4519_v7  ;;  %v11641_v50 = vpop.f32.mrf.mxu1 }
 0x3bc   :  { %12747 = vst [vmem:[#allocation111_spill] sm:$0xff] %v11641_v50  ;;  %5129 = vmatmul.mubr.bf16.gmra.mxu0 %v12648_v1  ;;  %v4521_v4 = vpop.f32.mrf.mxu0 }
 0x3bd   :  { %v11645_v48 = vadd.f32 %v11499_v5, %v4603_v22  ;;  %7042 = vmatprep.mubr.msk.bf16.mxu0 %vm1846_vm1, %v11278_v20  ;;  %v4605_v11 = vadd.f32 %v11283_v54, %v4521_v4  ;;  %v11650_v57 = vpop.f32.mrf.mxu1 }
 0x3be   :  { %v4523_v25 = vpop.f32.mrf.mxu0 }
 0x3bf   :  { %v11653_v59 = vadd.f32 %v11507_v10, %v4605_v11  ;;  %v4607_v62 = vadd.f32 %v11298_v16, %v4523_v25  ;;  %v11656_v7 = vpop.f32.mrf.mxu1 }
 0x3c0   :  { %v4525_v1 = vpop.f32.mrf.mxu0 }
 0x3c1   :  { %v11659_v50 = vadd.f32 %v11516_v31, %v4607_v62  ;;  %v4609_v5 = vadd.f32 %v11307_v39, %v4525_v1  ;;  %v11662_v22 = vpop.f32.mrf.mxu1 }
 0x3c2   :  { %v4529_v20 = vpop.f32.mrf.mxu0 }
 0x3c3   :  { %v11665_v54 = vadd.f32 %v11523_v24, %v4609_v5  ;;  %v4613_v4 = vadd.f32 %v11315_v12, %v4529_v20  ;;  %v11668_v10 = vpop.f32.mrf.mxu1 }
 0x3c4   :  { %5139 = vmatmul.mubr.bf16.gmra.mxu0 %v12719_v6  ;;  %v4531_v25 = vpop.f32.mrf.mxu0 }
 0x3c5   :  { %v11672_v16 = vadd.f32 %v11530_v42, %v4613_v4  ;;  %v4615_v31 = vadd.f32 %v11326_v40, %v4531_v25  ;;  %v11675_v11 = vpop.f32.mrf.mxu1 }
 0x3c6   :  { %v4533_v39 = vpop.f32.mrf.mxu0 }
 0x3c7   :  { %v11678_v62 = vadd.f32 %v11538_v26, %v4615_v31  ;;  %v4617_v24 = vadd.f32 %v11339_v3, %v4533_v39  ;;  %v11681_v1 = vpop.f32.mrf.mxu1 }
 0x3c8   :  { %v4535_v12 = vpop.f32.mrf.mxu0 }
 0x3c9   :  { %v11684_v5 = vadd.f32 %v11547_v46, %v4617_v24  ;;  %v4619_v6 = vadd.f32 %v11348_v9, %v4535_v12  ;;  %v11687_v42 = vpop.f32.mrf.mxu1  ;;  %v7747_v9 = vld [vmem:[%s12445_s5 + $0x38] sm:$0xff]  }
 0x3ca   :  { %12748 = vst [vmem:[#allocation112_spill] sm:$0xff] %v11687_v42  ;;  %v4539_v20 = vpop.f32.mrf.mxu0 }
 0x3cb   :  { %v11690_v40 = vadd.f32 %v11554_v18, %v4619_v6  ;;  %v4623_v4 = vadd.f32 %v11356_v2, %v4539_v20  ;;  %v5014_v26 = vpop.f32.mrf.mxu1  ;;  %v12502_v6 = vmov 0  }
 0x3cc   :  { %v4541_v25 = vpop.f32.mrf.mxu0  ;;  %5580 = vmatprep.subr.bf16.mxu1 %v12502_v6  ;;  %5476 = vmatprep.subr.bf16.mxu0 %v12502_v6 }
 0x3cd   :  { %12749 = vst [vmem:[#allocation113_spill] sm:$0xff] %v11690_v40  ;;  %v4845_v3 = vadd.f32 %v11561_v51, %v4623_v4  ;;  %v4625_v31 = vadd.f32 %v11366_v23, %v4541_v25  ;;  %v11695_v39 = vpop.f32.mrf.mxu1  ;;  %5581 = vmatpush1.bf16.msra.mxu1 %v7747_v9  ;;  %v12846_v40 = vld [vmem:[#allocation59_spill] sm:$0xff] }
 0x3ce   :  { %12750 = vst [vmem:[#allocation114_spill] sm:$0xff] %v11695_v39  ;;  %v4543_v46 = vpop.f32.mrf.mxu0  ;;  %5582 = vmatprep.subr.bf16.mxu1 %v12502_v6  ;;  %v12840_v39 = vld [vmem:[#allocation69_spill] sm:$0xff] }
 0x3cf   :  { %v11700_v24 = vadd.f32 %v5014_v26, %v4845_v3  ;;  %v11703_v18 = vadd.f32 %v11568_v38, %v4625_v31  ;;  %v4627_v2 = vadd.f32 %v11376_v45, %v4543_v46  ;;  %v5018_v12 = vpop.f32.mrf.mxu1  ;;  %v7748_v45 = vld [vmem:[%s12445_s5 + $0x30] sm:$0xff]   ;;  %v7750_v46 = vld [vmem:[%s12445_s5 + $0x28] sm:$0xff]  }
 0x3d0   :  { %v4545_v23 = vpop.f32.mrf.mxu0 }
 0x3d1   :  { %12751 = vst [vmem:[#allocation115_spill] sm:$0xff] %v11700_v24  ;;  %12752 = vst [vmem:[#allocation116_spill] sm:$0xff] %v11703_v18  ;;  %v4847_v51 = vadd.f32 %v11575_v32, %v4627_v2  ;;  %v4629_v20 = vadd.f32 %v11385_v56, %v4545_v23  ;;  %v11710_v4 = vpop.f32.mrf.mxu1  ;;  %v7749_v56 = vld [vmem:[%s12445_s5 + $0x88] sm:$0xff]   ;;  %5583 = vmatpush1.bf16.msra.mxu1 %v7748_v45  ;;  %v7752_v23 = vld [vmem:[%s12445_s5 + $0x20] sm:$0xff]  }
 0x3d2   :  { %12753 = vst [vmem:[#allocation117_spill] sm:$0xff] %v11710_v4  ;;  %v4549_v38 = vpop.f32.mrf.mxu0  ;;  %5584 = vmatprep.subr.bf16.mxu1 %v12502_v6  ;;  %5477 = vmatpush1.bf16.msra.mxu0 %v7749_v56  ;;  %v12829_v24 = vld [vmem:[#allocation34_spill] sm:$0xff] }
 0x3d3   :  { %v11716_v26 = vadd.f32 %v5018_v12, %v4847_v51  ;;  %v11719_v25 = vadd.f32 %v11585_v36, %v4629_v20  ;;  %v4633_v3 = vadd.f32 %v11401_v14, %v4549_v38  ;;  %v11722_v31 = vpop.f32.mrf.mxu1  ;;  %v7751_v14 = vld [vmem:[%s12445_s5 + $0x80] sm:$0xff]   ;;  %5478 = vmatprep.subr.bf16.mxu0 %v12502_v6  ;;  %v7753_v20 = vld [vmem:[%s12445_s5 + $0x78] sm:$0xff]  }
 0x3d4   :  { %12756 = vst [vmem:[#allocation120_spill] sm:$0xff] %v11722_v31  ;;  %v4551_v32 = vpop.f32.mrf.mxu0 }
 0x3d5   :  { %12754 = vst [vmem:[#allocation118_spill] sm:$0xff] %v11716_v26  ;;  %12755 = vst [vmem:[#allocation119_spill] sm:$0xff] %v11719_v25  ;;  %v11731_v9 = vadd.f32 %v11592_v27, %v4633_v3  ;;  %v4635_v36 = vadd.f32 %v11418_v33, %v4551_v32  ;;  %v11734_v2 = vpop.f32.mrf.mxu1  ;;  %5585 = vmatpush1.bf16.msra.mxu1 %v7750_v46  ;;  %v12835_v25 = vld [vmem:[#allocation24_spill] sm:$0xff] }
 0x3d6   :  { %12758 = vst [vmem:[#allocation122_spill] sm:$0xff] %v11734_v2  ;;  %v4553_v12 = vpop.f32.mrf.mxu0  ;;  %5586 = vmatprep.subr.bf16.mxu1 %v12502_v6  ;;  %5479 = vmatpush1.bf16.msra.mxu0 %v7751_v14  ;;  %v12824_v2 = vld [vmem:[#allocation62_spill] sm:$0xff] }
 0x3d7   :  { %12757 = vst [vmem:[#allocation121_spill] sm:$0xff] %v11731_v9  ;;  %v11745_v27 = vadd.f32 %v11602_v52, %v4635_v36  ;;  %v4637_v33 = vadd.f32 %v11434_v0, %v4553_v12  ;;  %v11748_v51 = vpop.f32.mrf.mxu1  ;;  %5480 = vmatprep.subr.bf16.mxu0 %v12502_v6  ;;  %v7754_v0 = vld [vmem:[%s12445_s5 + $0x18] sm:$0xff]   ;;  %v12832_v9 = vld [vmem:[#allocation36_spill] sm:$0xff] }
 0x3d8   :  { %12760 = vst [vmem:[#allocation124_spill] sm:$0xff] %v11748_v51  ;;  %v4555_v38 = vpop.f32.mrf.mxu0 }
 0x3d9   :  { %12759 = vst [vmem:[#allocation123_spill] sm:$0xff] %v11745_v27  ;;  %v11754_v45 = vadd.f32 %v11610_v19, %v4637_v33  ;;  %v4639_v3 = vadd.f32 %v11452_v47, %v4555_v38  ;;  %v11757_v56 = vpop.f32.mrf.mxu1  ;;  %5587 = vmatpush1.bf16.msra.mxu1 %v7752_v23 }
 0x3da   :  { %12762 = vst [vmem:[#allocation126_spill] sm:$0xff] %v11757_v56  ;;  %v4559_v52 = vpop.f32.mrf.mxu0  ;;  %5588 = vmatprep.subr.bf16.mxu1 %v12502_v6  ;;  %5481 = vmatpush1.bf16.msra.mxu0 %v7753_v20 }
 0x3db   :  { %12761 = vst [vmem:[#allocation125_spill] sm:$0xff] %v11754_v45  ;;  %v11765_v32 = vadd.f32 %v11616_v28, %v4639_v3  ;;  %v4643_v19 = vadd.f32 %v11460_v35, %v4559_v52  ;;  %v5034_v46 = vpop.f32.mrf.mxu1  ;;  %5482 = vmatprep.subr.bf16.mxu0 %v12502_v6  ;;  %v7755_v3 = vld [vmem:[%s12445_s5 + $0x70] sm:$0xff]  }
 0x3dc   :  { %v4561_v36 = vpop.f32.mrf.mxu0 }
 0x3dd   :  { %12763 = vst [vmem:[#allocation127_spill] sm:$0xff] %v11765_v32  ;;  %v4853_v47 = vadd.f32 %v11621_v49, %v4643_v19  ;;  %v4645_v12 = vadd.f32 %v11471_v29, %v4561_v36  ;;  %v11771_v14 = vpop.f32.mrf.mxu1  ;;  %5589 = vmatpush1.bf16.msra.mxu1 %v7754_v0  ;;  %v7760_v0 = vld [vmem:[%s12445_s5] sm:$0xff]   ;;  %v7761_v19 = vld [vmem:[%s12445_s5 + $0x58] sm:$0xff]   ;;  %v4437_v36 = vadd.f32 %v11003_v30, %v11497_v55 }
 0x3de   :  { %12764 = vst [vmem:[#allocation128_spill] sm:$0xff] %v11771_v14  ;;  %v4563_v33 = vpop.f32.mrf.mxu0  ;;  %5590 = vmatprep.subr.bf16.mxu1 %v12502_v6  ;;  %5483 = vmatpush1.bf16.msra.mxu0 %v7755_v3  ;;  %v4441_v30 = vadd.f32 %v11031_v53, %v11514_v21  ;;  %v4447_v53 = vadd.f32 %v11052_v17, %v11528_v44 }
 0x3df   :  { %v11774_v38 = vadd.f32 %v5034_v46, %v4853_v47  ;;  %v11777_v28 = vadd.f32 %v11627_v58, %v4645_v12  ;;  %v4647_v35 = vadd.f32 %v11479_v41, %v4563_v33  ;;  %v5038_v20 = vpop.f32.mrf.mxu1  ;;  %v7756_v58 = vld [vmem:[%s12445_s5 + $0x10] sm:$0xff]   ;;  %5484 = vmatprep.subr.bf16.mxu0 %v12502_v6  ;;  %v7762_v46 = vld [vmem:[%s12445_s5 + $0x48] sm:$0xff]   ;;  %v7764_v33 = vld [vmem:[%s12445_s5 + $0x40] sm:$0xff]  }
 0x3e0   :  { %v4565_v23 = vpop.f32.mrf.mxu0  ;;  %v7763_v12 = vld [vmem:[%s12445_s5 + $0x50] sm:$0xff]  }
 0x3e1   :  { %12765 = vst [vmem:[#allocation129_spill] sm:$0xff] %v11774_v38  ;;  %12766 = vst [vmem:[#allocation130_spill] sm:$0xff] %v11777_v28  ;;  %v4855_v49 = vadd.f32 %v11632_v37, %v4647_v35  ;;  %v4649_v29 = vadd.f32 %v11492_v60, %v4565_v23  ;;  %5591 = vmatpush1.bf16.msra.mxu1 %v7756_v58  ;;  %v7757_v60 = vld [vmem:[%s12445_s5 + $0x68] sm:$0xff]   ;;  %v4439_v35 = vadd.f32 %v11018_v61, %v11504_v13 }
 0x3e2   :  { %5592 = vmatprep.subr.bf16.mxu1 %v12502_v6  ;;  %v7758_v37 = vld [vmem:[%s12445_s5 + $0x8] sm:$0xff]   ;;  %5485 = vmatpush1.bf16.msra.mxu0 %v7757_v60  ;;  %v4443_v61 = vadd.f32 %v11044_v8, %v11521_v15  ;;  %v7767_v60 = vld [vmem:[%s12445_s5 + $0x90] sm:$0xff]  }
 0x3e3   :  { %v11789_v52 = vadd.f32 %v5038_v20, %v4855_v49  ;;  %v11792_v41 = vadd.f32 %v11638_v34, %v4649_v29  ;;  %5486 = vmatprep.subr.bf16.mxu0 %v12502_v6  ;;  %v7759_v34 = vld [vmem:[%s12445_s5 + $0x60] sm:$0xff]   ;;  %v7765_v20 = vld [vmem:[%s12445_s5 + $0x98] sm:$0xff]  }
 0x3e5   :  { %12767 = vst [vmem:[#allocation131_spill] sm:$0xff] %v11789_v52  ;;  %12768 = vst [vmem:[#allocation132_spill] sm:$0xff] %v11792_v41  ;;  %5593 = vmatpush1.bf16.msra.mxu1 %v7758_v37  ;;  %v12769_v37 = vld [vmem:[#allocation6_spill] sm:$0xff] }
 0x3e6   :  { %5594 = vmatprep.subr.bf16.mxu1 %v12502_v6  ;;  %5487 = vmatpush1.bf16.msra.mxu0 %v7759_v34  ;;  %v4449_v34 = vadd.f32 %v12769_v37, %v11535_v43  ;;  %v12774_v43 = vld [vmem:[#allocation70_spill] sm:$0xff] }
 0x3e7   :  { %5488 = vmatprep.subr.bf16.mxu0 %v12502_v6 }
 0x3e9   :  { %5595 = vmatpush1.bf16.msra.mxu1 %v7760_v0  ;;  %v12770_v0 = vld [vmem:[#allocation55_spill] sm:$0xff] }
 0x3ea   :  { %5608 = vmatprep.subr.bf16.mxu1 %v12502_v6  ;;  %5489 = vmatpush1.bf16.msra.mxu0 %v7761_v19  ;;  %v4451_v19 = vadd.f32 %v12770_v0, %v11545_v63  ;;  %v12781_v0 = vld [vmem:[#allocation102_spill] sm:$0xff] }
 0x3eb   :  { %5490 = vmatprep.subr.bf16.mxu0 %v12502_v6 }
 0x3ed   :  { %5609 = vmatpush2.bf16.msra.mxu1 %v7762_v46  ;;  %v12771_v46 = vld [vmem:[#allocation98_spill] sm:$0xff] }
 0x3ee   :  { %5610 = vmatprep.subr.bf16.mxu1 %v12502_v6  ;;  %5491 = vmatpush1.bf16.msra.mxu0 %v7763_v12 }
 0x3ef   :  { %5504 = vmatprep.subr.bf16.mxu0 %v12502_v6 }
 0x3f1   :  { %5611 = vmatpush2.bf16.msra.mxu1 %v7764_v33 }
 0x3f2   :  { %5830 = vmatprep.subr.bf16.mxu1 %v12502_v6  ;;  %5505 = vmatpush2.bf16.msra.mxu0 %v7765_v20  ;;  %v12776_v20 = vld [vmem:[#allocation100_spill] sm:$0xff] }
 0x3f3   :  { %v4685_v47 = vpop.f32.mrf.mxu0  ;;  %5506 = vmatprep.subr.bf16.mxu0 %v12502_v6 }
 0x3f4   :  { %v11830_v23 = vadd.f32 %v4685_v47, %v4437_v36  ;;  %v12772_v36 = vld [vmem:[#allocation10_spill] sm:$0xff] }
 0x3f5   :  { %v4687_v49 = vpop.f32.mrf.mxu0  ;;  %v4453_v47 = vadd.f32 %v12772_v36, %v12771_v46 }
 0x3f6   :  { %v11834_v55 = vadd.f32 %v4687_v49, %v4439_v35  ;;  %5507 = vmatpush2.bf16.msra.mxu0 %v7767_v60  ;;  %v12773_v35 = vld [vmem:[#allocation99_spill] sm:$0xff]  ;;  %v12779_v60 = vld [vmem:[#allocation72_spill] sm:$0xff] }
 0x3f7   :  { %v4689_v29 = vpop.f32.mrf.mxu0  ;;  %5704 = vmatprep.subr.bf16.mxu0 %v12502_v6  ;;  %v4457_v49 = vadd.f32 %v12774_v43, %v12773_v35  ;;  %v12783_v35 = vld [vmem:[#allocation103_spill] sm:$0xff] }
 0x3f8   :  { %v11843_v13 = vadd.f32 %v4689_v29, %v4441_v30 }
 0x3f9   :  { %v4691_v3 = vpop.f32.mrf.mxu0 }
 0x3fa   :  { %v11847_v21 = vadd.f32 %v4691_v3, %v4443_v61  ;;  %v12777_v61 = vld [vmem:[#allocation71_spill] sm:$0xff] }
 0x3fb   :  { %v4695_v58 = vpop.f32.mrf.mxu0  ;;  %v4459_v63 = vadd.f32 %v12777_v61, %v12776_v20  ;;  %v12786_v20 = vld [vmem:[#allocation104_spill] sm:$0xff] }
 0x3fc   :  { %v11855_v8 = vadd.f32 %v4695_v58, %v4447_v53  ;;  %v12778_v58 = vld [vmem:[#allocation101_spill] sm:$0xff] }
 0x3fd   :  { %v4697_v15 = vpop.f32.mrf.mxu0  ;;  %v4461_v37 = vadd.f32 %v12779_v60, %v12778_v58 }
 0x3fe   :  { %v11859_v17 = vadd.f32 %v4697_v15, %v4449_v34 }
 0x3ff   :  { %v4699_v44 = vpop.f32.mrf.mxu0 }
 0x400   :  { %v11864_v12 = vadd.f32 %v4699_v44, %v4451_v19  ;;  %v12782_v19 = vld [vmem:[#allocation74_spill] sm:$0xff] }
 0x401   :  { %v4701_v33 = vpop.f32.mrf.mxu0  ;;  %v4463_v44 = vadd.f32 %v12782_v19, %v12781_v0 }
 0x402   :  { %v11868_v30 = vadd.f32 %v4701_v33, %v4453_v47  ;;  %v12784_v47 = vld [vmem:[#allocation75_spill] sm:$0xff] }
 0x403   :  { %v4705_v29 = vpop.f32.mrf.mxu0  ;;  %v4467_v33 = vadd.f32 %v12784_v47, %v12783_v35  ;;  %v12796_v35 = vld [vmem:[#allocation35_spill] sm:$0xff] }
 0x404   :  { %12775 = vst [vmem:[#allocation6_spill] sm:$0xff] %v11868_v30  ;;  %v4742_v3 = vadd.f32 %v4705_v29, %v4457_v49  ;;  %v12787_v49 = vld [vmem:[#allocation77_spill] sm:$0xff] }
 0x405   :  { %v4707_v53 = vpop.f32.mrf.mxu0  ;;  %v4469_v29 = vadd.f32 %v12787_v49, %v12786_v20  ;;  %v12799_v20 = vld [vmem:[#allocation30_spill] sm:$0xff] }
 0x406   :  { %v11874_v34 = vadd.f32 %v4707_v53, %v4459_v63  ;;  %v12789_v63 = vld [vmem:[#allocation105_spill] sm:$0xff]  ;;  %v12790_v53 = vld [vmem:[#allocation78_spill] sm:$0xff] }
 0x407   :  { %v4709_v15 = vpop.f32.mrf.mxu0  ;;  %v4471_v60 = vadd.f32 %v12790_v53, %v12789_v63 }
 0x408   :  { %12780 = vst [vmem:[#allocation55_spill] sm:$0xff] %v11874_v34  ;;  %v4744_v46 = vadd.f32 %v4709_v15, %v4461_v37  ;;  %v12792_v37 = vld [vmem:[#allocation106_spill] sm:$0xff]  ;;  %v12793_v15 = vld [vmem:[#allocation79_spill] sm:$0xff] }
 0x409   :  { %v4711_v36 = vpop.f32.mrf.mxu0  ;;  %v4473_v19 = vadd.f32 %v12793_v15, %v12792_v37 }
 0x40a   :  { %v11880_v43 = vadd.f32 %v4711_v36, %v4463_v44  ;;  %v12795_v36 = vld [vmem:[#allocation107_spill] sm:$0xff] }
 0x40b   :  { %v4715_v6 = vpop.f32.mrf.mxu0  ;;  %v4477_v47 = vadd.f32 %v12796_v35, %v12795_v36 }
 0x40c   :  { %12785 = vst [vmem:[#allocation98_spill] sm:$0xff] %v11880_v43  ;;  %v11884_v61 = vadd.f32 %v4715_v6, %v4467_v33  ;;  %v12798_v33 = vld [vmem:[#allocation108_spill] sm:$0xff] }
 0x40d   :  { %v4717_v58 = vpop.f32.mrf.mxu0  ;;  %v4479_v49 = vadd.f32 %v12799_v20, %v12798_v33  ;;  %v12823_v43 = vld [vmem:[#allocation8_spill] sm:$0xff] }
 0x40e   :  { %12788 = vst [vmem:[#allocation10_spill] sm:$0xff] %v11884_v61  ;;  %v11888_v41 = vadd.f32 %v4717_v58, %v4469_v29  ;;  %v12800_v29 = vld [vmem:[#allocation109_spill] sm:$0xff]  ;;  %v12820_v61 = vld [vmem:[#allocation4_spill] sm:$0xff] }
 0x40f   :  { %v4719_v0 = vpop.f32.mrf.mxu0  ;;  %v12801_v58 = vld [vmem:[#allocation17_spill] sm:$0xff] }
 0x410   :  { %12791 = vst [vmem:[#allocation99_spill] sm:$0xff] %v11888_v41  ;;  %v11892_v52 = vadd.f32 %v4719_v0, %v4471_v60  ;;  %v4481_v53 = vadd.f32 %v12801_v58, %v12800_v29  ;;  %v12803_v60 = vld [vmem:[#allocation110_spill] sm:$0xff]  ;;  %v12804_v0 = vld [vmem:[#allocation12_spill] sm:$0xff]  ;;  %v11924_v29 = vpop.f32.mrf.mxu1 }
 0x411   :  { %v4721_v44 = vpop.f32.mrf.mxu0  ;;  %v4483_v15 = vadd.f32 %v12804_v0, %v12803_v60  ;;  %12807 = vst [vmem:[#allocation102_spill] sm:$0xff] %v11924_v29 }
 0x412   :  { %12794 = vst [vmem:[#allocation70_spill] sm:$0xff] %v11892_v52  ;;  %v11896_v38 = vadd.f32 %v4721_v44, %v4473_v19 }
 0x413   :  { %v4725_v6 = vpop.f32.mrf.mxu0 }
 0x414   :  { %12797 = vst [vmem:[#allocation100_spill] sm:$0xff] %v11896_v38  ;;  %v4750_v14 = vadd.f32 %v4725_v6, %v4477_v47 }
 0x415   :  { %v4727_v63 = vpop.f32.mrf.mxu0 }
 0x416   :  { %v11902_v28 = vadd.f32 %v4727_v63, %v4479_v49 }
 0x417   :  { %v4729_v37 = vpop.f32.mrf.mxu0 }
 0x418   :  { %12802 = vst [vmem:[#allocation71_spill] sm:$0xff] %v11902_v28  ;;  %v4752_v56 = vadd.f32 %v4729_v37, %v4481_v53  ;;  %v11930_v53 = vpop.f32.mrf.mxu1 }
 0x419   :  { %v4731_v32 = vpop.f32.mrf.mxu0 }
 0x41a   :  { %v11906_v36 = vadd.f32 %v4731_v32, %v4483_v15  ;;  %v11936_v15 = vpop.f32.mrf.mxu1 }
 0x41c   :  { %12805 = vst [vmem:[#allocation101_spill] sm:$0xff] %v11906_v36  ;;  %v11942_v38 = vpop.f32.mrf.mxu1 }
 0x42c   :  { %v11908_v19 = vpop.f32.mrf.mxu0 }
 0x42e   :  { %v11910_v44 = vpop.f32.mrf.mxu0 }
 0x430   :  { %v11912_v35 = vpop.f32.mrf.mxu0 }
 0x432   :  { %v11914_v47 = vpop.f32.mrf.mxu0 }
 0x434   :  { %v11916_v6 = vpop.f32.mrf.mxu0 }
 0x436   :  { %v11918_v33 = vpop.f32.mrf.mxu0 }
 0x438   :  { %v11920_v20 = vpop.f32.mrf.mxu0 }
 0x43a   :  { %v11922_v49 = vpop.f32.mrf.mxu0 }
 0x43b   :  { %12806 = vst [vmem:[#allocation72_spill] sm:$0xff] %v11922_v49 }
 0x43c   :  { %v4911_v63 = vpop.f32.mrf.mxu0 }
 0x43d   :  { %v11926_v32 = vadd.f32 %v4911_v63, %v4742_v3  ;;  %v11948_v63 = vpop.f32.mrf.mxu1 }
 0x43e   :  { %v11928_v58 = vpop.f32.mrf.mxu0 }
 0x43f   :  { %12808 = vst [vmem:[#allocation74_spill] sm:$0xff] %v11926_v32  ;;  %12809 = vst [vmem:[#allocation103_spill] sm:$0xff] %v11928_v58  ;;  %v12837_v58 = vld [vmem:[#allocation46_spill] sm:$0xff] }
 0x440   :  { %v4915_v37 = vpop.f32.mrf.mxu0 }
 0x441   :  { %v11932_v60 = vadd.f32 %v4915_v37, %v4744_v46  ;;  %v11954_v37 = vpop.f32.mrf.mxu1 }
 0x442   :  { %v11934_v0 = vpop.f32.mrf.mxu0 }
 0x443   :  { %12810 = vst [vmem:[#allocation75_spill] sm:$0xff] %v11932_v60  ;;  %12811 = vst [vmem:[#allocation104_spill] sm:$0xff] %v11934_v0  ;;  %v12828_v60 = vld [vmem:[#allocation66_spill] sm:$0xff] }
 0x444   :  { %v11938_v36 = vpop.f32.mrf.mxu0 }
 0x445   :  { %12812 = vst [vmem:[#allocation77_spill] sm:$0xff] %v11938_v36  ;;  %v11958_v36 = vpop.f32.mrf.mxu1 }
 0x446   :  { %v11940_v28 = vpop.f32.mrf.mxu0 }
 0x447   :  { %12813 = vst [vmem:[#allocation105_spill] sm:$0xff] %v11940_v28  ;;  %v12819_v28 = vld [vmem:[#allocation58_spill] sm:$0xff] }
 0x448   :  { %v11944_v29 = vpop.f32.mrf.mxu0  ;;  %v2616_v0 = vadd.f32 %v12820_v61, %v12819_v28  ;;  %v12834_v61 = vld [vmem:[#allocation42_spill] sm:$0xff] }
 0x449   :  { %12814 = vst [vmem:[#allocation78_spill] sm:$0xff] %v11944_v29  ;;  %v11962_v29 = vpop.f32.mrf.mxu1  ;;  %v2151_v32 = vadd.f32 %v12835_v25, %v12834_v61  ;;  %v12847_v61 = vld [vmem:[#allocation54_spill] sm:$0xff] }
 0x44a   :  { %v11946_v3 = vpop.f32.mrf.mxu0  ;;  %12821 = vst [vmem:[#allocation108_spill] sm:$0xff] %v11962_v29  ;;  %v3188_v4 = vadd.f32 %v12832_v9, %v2616_v0  ;;  %v12844_v0 = vld [vmem:[#allocation52_spill] sm:$0xff]  ;;  %v12860_v29 = vld [vmem:[#allocation53_spill] sm:$0xff] }
 0x44b   :  { %12815 = vst [vmem:[#allocation106_spill] sm:$0xff] %v11946_v3  ;;  %v12822_v3 = vld [vmem:[#allocation60_spill] sm:$0xff]  ;;  %v11975_v28 = vpop.f32.mrf.mxu1 }
 0x44c   :  { %v4931_v52 = vpop.f32.mrf.mxu0  ;;  %v2626_v26 = vadd.f32 %v12823_v43, %v12822_v3  ;;  %12833 = vst [vmem:[#allocation30_spill] sm:$0xff] %v11975_v28  ;;  %v12836_v43 = vld [vmem:[#allocation41_spill] sm:$0xff]  ;;  %v12845_v28 = vld [vmem:[#allocation23_spill] sm:$0xff]  ;;  %v3735_v25 = vadd.f32 %v12846_v40, %v3188_v4  ;;  %v12857_v40 = vld [vmem:[#allocation82_spill] sm:$0xff] }
 0x44d   :  { %v11950_v41 = vadd.f32 %v4931_v52, %v4750_v14  ;;  %v12825_v14 = vld [vmem:[#allocation32_spill] sm:$0xff]  ;;  %v2171_v42 = vadd.f32 %v12845_v28, %v12844_v0  ;;  %v12856_v28 = vld [vmem:[#allocation38_spill] sm:$0xff] }
 0x44e   :  { %v11952_v46 = vpop.f32.mrf.mxu0  ;;  %v2636_v52 = vadd.f32 %v12825_v14, %v12824_v2  ;;  %v3192_v3 = vadd.f32 %v12836_v43, %v2626_v26  ;;  %v12838_v14 = vld [vmem:[#allocation51_spill] sm:$0xff]  ;;  %v11991_v43 = vpop.f32.mrf.mxu1  ;;  %v4282_v0 = vadd.f32 %v12856_v28, %v3735_v25  ;;  %v12864_v25 = vld [vmem:[#allocation49_spill] sm:$0xff] }
 0x44f   :  { %12816 = vst [vmem:[#allocation79_spill] sm:$0xff] %v11950_v41  ;;  %12817 = vst [vmem:[#allocation107_spill] sm:$0xff] %v11952_v46  ;;  %v12826_v41 = vld [vmem:[#allocation64_spill] sm:$0xff]  ;;  %v12827_v46 = vld [vmem:[#allocation33_spill] sm:$0xff] }
 0x450   :  { %v4935_v51 = vpop.f32.mrf.mxu0  ;;  %v2646_v27 = vadd.f32 %v12827_v46, %v12826_v41  ;;  %v3196_v2 = vadd.f32 %v12837_v58, %v2636_v52  ;;  %v12839_v41 = vld [vmem:[#allocation56_spill] sm:$0xff]  ;;  %12848 = vst [vmem:[#allocation109_spill] sm:$0xff] %v11991_v43  ;;  %v12849_v58 = vld [vmem:[#allocation57_spill] sm:$0xff]  ;;  %v12869_v28 = vld [vmem:[#allocation111_spill] sm:$0xff] }
 0x451   :  { %v11956_v45 = vadd.f32 %v4935_v51, %v4752_v56  ;;  %v2656_v51 = vadd.f32 %v12829_v24, %v12828_v60  ;;  %v12830_v56 = vld [vmem:[#allocation37_spill] sm:$0xff]  ;;  %v12841_v60 = vld [vmem:[#allocation40_spill] sm:$0xff] }
 0x452   :  { %v3200_v34 = vadd.f32 %v12838_v14, %v2646_v27  ;;  %v2920_v18 = vadd.f32 %v12841_v60, %v2151_v32  ;;  %v12850_v27 = vld [vmem:[#allocation7_spill] sm:$0xff]  ;;  %v12853_v32 = vld [vmem:[#allocation9_spill] sm:$0xff]  ;;  %v12859_v43 = vld [vmem:[#allocation28_spill] sm:$0xff] }
 0x453   :  { %12818 = vst [vmem:[#allocation35_spill] sm:$0xff] %v11956_v45  ;;  %v12831_v45 = vld [vmem:[#allocation18_spill] sm:$0xff]  ;;  %v3204_v46 = vadd.f32 %v12839_v41, %v2656_v51  ;;  %v2181_v52 = vadd.f32 %v12850_v27, %v12849_v58  ;;  %v12851_v51 = vld [vmem:[#allocation61_spill] sm:$0xff]  ;;  %v2928_v30 = vadd.f32 %v12859_v43, %v2171_v42  ;;  %v4940_v42 = vadd.f32 %v11908_v19, %v11830_v23 }
 0x454   :  { %v2141_v31 = vadd.f32 %v12831_v45, %v12830_v56  ;;  %v12842_v45 = vld [vmem:[#allocation47_spill] sm:$0xff]  ;;  %v3739_v14 = vadd.f32 %v12851_v51, %v3192_v3  ;;  %v3467_v41 = vadd.f32 %v12853_v32, %v2920_v18  ;;  %v12854_v60 = vld [vmem:[#allocation65_spill] sm:$0xff]  ;;  %v12867_v32 = vld [vmem:[#allocation76_spill] sm:$0xff] }
 0x455   :  { %v12843_v56 = vld [vmem:[#allocation27_spill] sm:$0xff]  ;;  %v2932_v58 = vadd.f32 %v12860_v29, %v2181_v52  ;;  %v12861_v27 = vld [vmem:[#allocation85_spill] sm:$0xff]  ;;  %v1619_v23 = vld [vmem:[%s12446_s4] sm:$0x3] }
 0x456   :  { %v2916_v24 = vadd.f32 %v12840_v39, %v2141_v31  ;;  %v2161_v9 = vadd.f32 %v12843_v56, %v12842_v45  ;;  %v12852_v39 = vld [vmem:[#allocation63_spill] sm:$0xff]  ;;  %v3747_v45 = vadd.f32 %v12854_v60, %v3200_v34  ;;  %v12006_v3 = vadd.f32 %v12861_v27, %v3467_v41  ;;  %v12862_v18 = vld [vmem:[#allocation21_spill] sm:$0xff] }
 0x457   :  { %v3743_v31 = vadd.f32 %v12852_v39, %v3196_v2  ;;  %v12855_v56 = vld [vmem:[#allocation67_spill] sm:$0xff]  ;;  %v12008_v2 = vpop.f32.mrf.mxu0  ;;  %v12011_v51 = vadd.f32 %v12862_v18, %v3739_v14  ;;  %v12863_v34 = vld [vmem:[#allocation5_spill] sm:$0xff]  ;;  %v3475_v41 = vadd.f32 %v12867_v32, %v2928_v30  ;;  %v12873_v18 = vld [vmem:[#allocation68_spill] sm:$0xff] }
 0x458   :  { %v3463_v26 = vadd.f32 %v12847_v61, %v2916_v24  ;;  %v3751_v49 = vadd.f32 %v12855_v56, %v3204_v46  ;;  %v12858_v24 = vld [vmem:[#allocation44_spill] sm:$0xff]  ;;  %v12017_v39 = vadd.f32 %v12864_v25, %v3747_v45  ;;  %v12865_v29 = vld [vmem:[#allocation13_spill] sm:$0xff]  ;;  %v12868_v14 = vld [vmem:[#allocation31_spill] sm:$0xff]  ;;  %v5043_v45 = vadd.f32 %v12869_v28, %v11645_v48 }
 0x459   :  { %v2924_v61 = vadd.f32 %v12858_v24, %v2161_v9  ;;  %v12014_v46 = vadd.f32 %v12863_v34, %v3743_v31  ;;  %v12866_v43 = vld [vmem:[#allocation73_spill] sm:$0xff]  ;;  %v3479_v60 = vadd.f32 %v12868_v14, %v2932_v58  ;;  %v5044_v48 = vadd.f32 %v11650_v57, %v11653_v59  ;;  %v12872_v27 = vld [vmem:[#allocation15_spill] sm:$0xff]  ;;  %v12878_v14 = vld [vmem:[#allocation80_spill] sm:$0xff] }
 0x45a   :  { %v4010_v4 = vadd.f32 %v12857_v40, %v3463_v26  ;;  %v12019_v26 = vpop.f32.mrf.mxu1  ;;  %v12024_v9 = vadd.f32 %v12865_v29, %v3751_v49  ;;  %v4941_v40 = vadd.f32 %v11910_v44, %v11834_v55  ;;  %v4306_v49 = vmax.f32 %v12006_v3, %v12011_v51  ;;  %v12870_v24 = vld [vmem:[#allocation89_spill] sm:$0xff]  ;;  %v12876_v57 = vld [vmem:[#allocation11_spill] sm:$0xff] }
 0x45b   :  { %v3471_v52 = vadd.f32 %v12866_v43, %v2924_v61  ;;  %v12871_v61 = vld [vmem:[#allocation93_spill] sm:$0xff]  ;;  %v5252_v55 = vadd.f32 %v11930_v53, %v5043_v45  ;;  %v12874_v34 = vmax.f32 %v12872_v27, %v12873_v18  ;;  %v5253_v59 = vadd.f32 %v11936_v15, %v5044_v48 }
 0x45c   :  { %v4302_v31 = vmax.f32 %v4010_v4, %v4282_v0  ;;  %v12042_v58 = vadd.f32 %v12871_v61, %v3475_v41  ;;  %v12047_v44 = vpop.f32.mrf.mxu1  ;;  %v4942_v4 = vadd.f32 %v11912_v35, %v11843_v13  ;;  %v12875_v29 = vld [vmem:[#allocation97_spill] sm:$0xff]  ;;  %v12877_v53 = vsub.s32 0, %v12876_v57 }
 0x45d   :  { %v12039_v30 = vadd.f32 %v12870_v24, %v3471_v52  ;;  %v12055_v43 = vadd.f32 %v12875_v29, %v3479_v60  ;;  %v5045_v52 = vadd.f32 %v11656_v7, %v11659_v50  ;;  %v4943_v13 = vadd.f32 %v11914_v47, %v11847_v21  ;;  %v12882_v48 = vld [vmem:[#allocation81_spill] sm:$0xff] }
 0x45e   :  { %v12062_v32 = vrot.slane %v1619_v23, %v12877_v53  ;;  %v4314_v50 = vmax.f32 %v12042_v58, %v12017_v39  ;;  %v5046_v7 = vadd.f32 %v11662_v22, %v11665_v54  ;;  %v12881_v15 = vsub.s32 1, %v12876_v57  ;;  %v12080_v24 = vpop.f32.mrf.mxu1  ;;  %v12885_v53 = vld [vmem:[#allocation83_spill] sm:$0xff] }
 0x45f   :  { %v5254_v47 = vadd.f32 %v11942_v38, %v5045_v52  ;;  %v4318_v18 = vmax.f32 %v12055_v43, %v12024_v9  ;;  %v5047_v22 = vadd.f32 %v11668_v10, %v11672_v16  ;;  %v4944_v54 = vadd.f32 %v11916_v6, %v11855_v8  ;;  %v7780_v43 = vld [vmem:[%s12445_s5 + $0xf0] sm:$0xff]  }
 0x460   :  { %v5048_v52 = vadd.f32 %v11675_v11, %v11678_v62  ;;  %v12100_v6 = vpop.f32.mrf.mxu1 }
 0x462   :  { %v5257_v11 = vadd.f32 %v11958_v36, %v5048_v52 }
 0x464   :  { %v5100_v56 = vpop.f32.mrf.mxu0 }
 0x465   :  { %v5149_v19 = vadd.f32 %v5100_v56, %v4940_v42  ;;  %v12879_v56 = vld [vmem:[#allocation2_spill] sm:$0xff] }
 0x466   :  { %v5102_v0 = vpop.f32.mrf.mxu0  ;;  %v12880_v28 = vmax.f32 %v12878_v14, %v12879_v56  ;;  %v12888_v56 = vld [vmem:[#allocation84_spill] sm:$0xff] }
 0x467   :  { %v5272_v25 = vmax.f32 %v12874_v34, %v5149_v19  ;;  %v5150_v42 = vadd.f32 %v5102_v0, %v4941_v40  ;;  %v4310_v40 = vmax.f32 %v12039_v30, %v12014_v46  ;;  %v12077_v19 = vrot.slane %v1619_v23, %v12881_v15  ;;  %v12883_v0 = vld [vmem:[#allocation14_spill] sm:$0xff] }
 0x468   :  { %v5104_v41 = vpop.f32.mrf.mxu0  ;;  %v5255_v34 = vadd.f32 %v11948_v63, %v5046_v7  ;;  %v4946_v63 = vadd.f32 %v11920_v20, %v11864_v12  ;;  %v12892_v15 = vld [vmem:[#allocation6_spill] sm:$0xff] }
 0x469   :  { %v5292_v35 = vmax.f32 %v5272_v25, %v5252_v55  ;;  %v5273_v45 = vmax.f32 %v12880_v28, %v5150_v42  ;;  %v5151_v60 = vadd.f32 %v5104_v41, %v4942_v4  ;;  %v12884_v55 = vmax.f32 %v12882_v48, %v12883_v0  ;;  %v12889_v28 = vld [vmem:[#allocation39_spill] sm:$0xff]  ;;  %v12117_v48 = vpop.f32.mrf.mxu1 }
 0x46a   :  { %v5106_v21 = vpop.f32.mrf.mxu0  ;;  %v4945_v25 = vadd.f32 %v11918_v33, %v11859_v17  ;;  %v12890_v12 = vmax.f32 %v12888_v56, %v12889_v28 }
 0x46b   :  { %v5293_v61 = vmax.f32 %v5273_v45, %v5253_v59  ;;  %v5274_v4 = vmax.f32 %v12884_v55, %v5151_v60  ;;  %v5152_v27 = vadd.f32 %v5106_v21, %v4943_v13  ;;  %v5323_v23 = vadd.f32 %v12062_v32, %v5292_v35  ;;  %v12891_v60 = vld [vmem:[#allocation108_spill] sm:$0xff] }
 0x46c   :  { %v5110_v38 = vpop.f32.mrf.mxu0  ;;  %v5049_v59 = vadd.f32 %v11681_v1, %v11684_v5  ;;  %v12886_v1 = vld [vmem:[#allocation19_spill] sm:$0xff] }
 0x46d   :  { %v5294_v42 = vmax.f32 %v5274_v4, %v5254_v47  ;;  %v5275_v29 = vmax.f32 %v4302_v31, %v5152_v27  ;;  %v5324_v10 = vadd.f32 %v12077_v19, %v5293_v61  ;;  %v5153_v16 = vadd.f32 %v5110_v38, %v4944_v54  ;;  %v12894_v27 = vld [vmem:[#allocation16_spill] sm:$0xff]  ;;  %v12897_v38 = vld [vmem:[#allocation113_spill] sm:$0xff] }
 0x46e   :  { %v5112_v8 = vpop.f32.mrf.mxu0  ;;  %v5256_v31 = vadd.f32 %v11954_v37, %v5047_v22  ;;  %v5343_v62 = vmax.f32 %v5323_v23, 0.0  ;;  %v12887_v5 = vmax.f32 %v12885_v53, %v12886_v1  ;;  %v5258_v7 = vadd.f32 %v12891_v60, %v5049_v59  ;;  %v12893_v37 = vld [vmem:[#allocation72_spill] sm:$0xff]  ;;  %v12904_v53 = vld [vmem:[#allocation119_spill] sm:$0xff]  ;;  %v12905_v1 = vld [vmem:[#allocation117_spill] sm:$0xff] }
 0x46f   :  { %v5325_v57 = vadd.f32 %v12062_v32, %v5294_v42  ;;  %v5295_v17 = vmax.f32 %v5275_v29, %v5255_v34  ;;  %v5154_v33 = vadd.f32 %v5112_v8, %v4945_v25  ;;  %v4947_v21 = vadd.f32 %v12893_v37, %v12892_v15  ;;  %v12895_v22 = vld [vmem:[#allocation20_spill] sm:$0xff]  ;;  %v12900_v29 = vld [vmem:[#allocation114_spill] sm:$0xff]  ;;  %v12901_v8 = vld [vmem:[#allocation55_spill] sm:$0xff] }
 0x470   :  { %v5276_v41 = vmax.f32 %v12887_v5, %v5153_v16  ;;  %v5114_v13 = vpop.f32.mrf.mxu0  ;;  %v5344_v36 = vmax.f32 %v5324_v10, 0.0  ;;  %v12896_v54 = vmax.f32 %v12894_v27, %v12895_v22  ;;  %v12898_v34 = vld [vmem:[#allocation112_spill] sm:$0xff]  ;;  %v5054_v5 = vadd.f32 %v12905_v1, %v12904_v53  ;;  %v12911_v37 = vld [vmem:[#allocation86_spill] sm:$0xff] }
 0x471   :  { %v5345_v35 = vmax.f32 %v5325_v57, 0.0  ;;  %v5326_v14 = vadd.f32 %v12077_v19, %v5295_v17  ;;  %v5277_v20 = vmax.f32 %v12890_v12, %v5154_v33  ;;  %v5155_v45 = vadd.f32 %v5114_v13, %v4946_v63  ;;  %v12899_v42 = vld [vmem:[#allocation116_spill] sm:$0xff]  ;;  %v12902_v63 = vld [vmem:[#allocation103_spill] sm:$0xff]  ;;  %v12903_v33 = vld [vmem:[#allocation74_spill] sm:$0xff] }
 0x472   :  { %v5296_v47 = vmax.f32 %v5276_v41, %v5256_v31  ;;  %v5116_v61 = vpop.f32.mrf.mxu0  ;;  %v5050_v25 = vadd.f32 %v12898_v34, %v12897_v38  ;;  %v5052_v52 = vadd.f32 %v12900_v29, %v12899_v42  ;;  %v4949_v57 = vadd.f32 %v12902_v63, %v12901_v8  ;;  %v12906_v41 = vld [vmem:[#allocation121_spill] sm:$0xff]  ;;  %v12907_v13 = vld [vmem:[#allocation120_spill] sm:$0xff]  ;;  %v12915_v38 = vld [vmem:[#allocation43_spill] sm:$0xff] }
 0x473   :  { %v5363_v0 = vpack.c.bf16 %v5345_v35, %v5343_v62  ;;  %v5346_v55 = vmax.f32 %v5326_v14, 0.0  ;;  %v5297_v4 = vmax.f32 %v5277_v20, %v5257_v11  ;;  %v5278_v23 = vmax.f32 %v12896_v54, %v5155_v45  ;;  %v7766_v62 = vld [vmem:[%s12445_s5 + $0x128] sm:$0xff]   ;;  %v12908_v14 = vld [vmem:[#allocation30_spill] sm:$0xff]  ;;  %v12910_v45 = vld [vmem:[#allocation109_spill] sm:$0xff] }
 0x474   :  { %v5327_v59 = vadd.f32 %v12062_v32, %v5296_v47  ;;  %v5156_v10 = vadd.f32 %v5116_v61, %v4947_v21  ;;  %v5120_v16 = vpop.f32.mrf.mxu0  ;;  %v5055_v35 = vadd.f32 %v12907_v13, %v12906_v41  ;;  %v5259_v56 = vadd.f32 %v12908_v14, %v5050_v25  ;;  %v12909_v20 = vld [vmem:[#allocation115_spill] sm:$0xff]  ;;  %v12922_v8 = vld [vmem:[#allocation104_spill] sm:$0xff]  ;;  %v12927_v14 = vld [vmem:[#allocation25_spill] sm:$0xff] }
 0x475   :  { %v5298_v17 = vmax.f32 %v5278_v23, %v5258_v7  ;;  %v5157_v31 = vadd.f32 %v5120_v16, %v12903_v33  ;;  %v5364_v11 = vpack.c.bf16 %v5346_v55, %v5344_v36  ;;  %v5260_v60 = vadd.f32 %v12910_v45, %v12909_v20  ;;  %v12143_v7 = vpop.f32.mrf.mxu1  ;;  %v12912_v21 = vld [vmem:[#allocation3_spill] sm:$0xff]  ;;  %v12926_v13 = vld [vmem:[#allocation88_spill] sm:$0xff] }
 0x476   :  { %v5279_v28 = vmax.f32 %v4306_v49, %v5156_v10  ;;  %v5122_v12 = vpop.f32.mrf.mxu0  ;;  %v12913_v36 = vmax.f32 %v12911_v37, %v12912_v21  ;;  %v5261_v55 = vadd.f32 %v12019_v26, %v5052_v52  ;;  %v5347_v27 = vmax.f32 %v5327_v59, 0.0  ;;  %v12914_v23 = vld [vmem:[#allocation87_spill] sm:$0xff]  ;;  %v7768_v10 = vld [vmem:[%s12445_s5 + $0x120] sm:$0xff]   ;;  %v12930_v37 = vld [vmem:[#allocation124_spill] sm:$0xff] }
 0x477   :  { %v5329_v15 = vadd.f32 %v12062_v32, %v5298_v17  ;;  %v5158_v61 = vadd.f32 %v5122_v12, %v4949_v57  ;;  %7069 = vmatprep.mubr.msk.bf16.mxu1 %vm467_vm0, %v5364_v11  ;;  %v5328_v3 = vadd.f32 %v12077_v19, %v5297_v4  ;;  %v12916_v34 = vmax.f32 %v12914_v23, %v12915_v38  ;;  %v12917_v42 = vld [vmem:[#allocation75_spill] sm:$0xff]  ;;  %v12919_v52 = vld [vmem:[#allocation122_spill] sm:$0xff]  ;;  %v7769_v38 = vld [vmem:[%s12445_s5 + $0xd8] sm:$0xff]  }
 0x478   :  { %v5280_v47 = vmax.f32 %v12913_v36, %v5157_v31  ;;  %v5299_v51 = vmax.f32 %v5279_v28, %v5259_v56  ;;  %v5124_v49 = vpop.f32.mrf.mxu0  ;;  %5613 = vmatmul.mubr.bf16.vlgmr.msra.gmra.mxu1 %v5363_v0  ;;  %v12918_v26 = vld [vmem:[#allocation123_spill] sm:$0xff]  ;;  %v12920_v4 = vld [vmem:[#allocation118_spill] sm:$0xff]  ;;  %v12923_v33 = vmov 0   ;;  %v12167_v31 = vpop.f32.mrf.mxu1  ;;  %v12928_v56 = vmax.f32 %v12926_v13, %v12927_v14 }
 0x479   :  { %v5349_v22 = vmax.f32 %v5329_v15, 0.0  ;;  %v5281_v25 = vmax.f32 %v12916_v34, %v5158_v61  ;;  %v5159_v29 = vadd.f32 %v5124_v49, %v12917_v42  ;;  %5831 = vmatpush1.bf16.msra.mxu1 %v7766_v62  ;;  %v5056_v59 = vadd.f32 %v12919_v52, %v12918_v26  ;;  %v12921_v0 = vld [vmem:[#allocation98_spill] sm:$0xff]  ;;  %v12925_v62 = vld [vmem:[#allocation77_spill] sm:$0xff]  ;;  %v12931_v36 = vld [vmem:[#allocation99_spill] sm:$0xff] }
 0x47a   :  { %v5300_v54 = vmax.f32 %v5280_v47, %v5260_v60  ;;  %v5262_v16 = vadd.f32 %v12047_v44, %v12920_v4  ;;  %v4951_v63 = vadd.f32 %v12922_v8, %v12921_v0  ;;  %v5330_v57 = vadd.f32 %v12077_v19, %v5299_v51  ;;  %v5126_v17 = vpop.f32.mrf.mxu0  ;;  %5832 = vmatprep.subr.bf16.mxu1 %v12923_v33  ;;  %v12924_v11 = vld [vmem:[#allocation10_spill] sm:$0xff]  ;;  %v12929_v15 = vld [vmem:[#allocation125_spill] sm:$0xff]  ;;  %v5243_v34 = vpop.f32.mrf.mxu1  ;;  %v12938_v8 = vld [vmem:[#allocation91_spill] sm:$0xff] }
 0x47b   :  { %v4952_v53 = vadd.f32 %v12925_v62, %v12924_v11  ;;  %v5365_v1 = vpack.c.bf16 %v5349_v22, %v5347_v27  ;;  %v5301_v41 = vmax.f32 %v5281_v25, %v5261_v55  ;;  %v5282_v28 = vmax.f32 %v12928_v56, %v5159_v29  ;;  %v12932_v47 = vld [vmem:[#allocation105_spill] sm:$0xff]  ;;  %v12933_v25 = vld [vmem:[#allocation70_spill] sm:$0xff] }
 0x47c   :  { %v5348_v44 = vmax.f32 %v5328_v3, 0.0  ;;  %v5350_v12 = vmax.f32 %v5330_v57, 0.0  ;;  %v5331_v20 = vadd.f32 %v12062_v32, %v5300_v54  ;;  %v5160_v45 = vadd.f32 %v5126_v17, %v4951_v63  ;;  %v5130_v60 = vpop.f32.mrf.mxu0  ;;  %v7770_v55 = vld [vmem:[%s12445_s5 + $0x118] sm:$0xff]   ;;  %v12934_v42 = vld [vmem:[#allocation78_spill] sm:$0xff] }
 0x47d   :  { %v5057_v21 = vadd.f32 %v12930_v37, %v12929_v15  ;;  %v4953_v61 = vadd.f32 %v12932_v47, %v12931_v36  ;;  %v5302_v51 = vmax.f32 %v5282_v28, %v5262_v16  ;;  %v5161_v49 = vadd.f32 %v5130_v60, %v4952_v53  ;;  %5833 = vmatpush1.bf16.msra.mxu1 %v7768_v10  ;;  %v12939_v63 = vld [vmem:[#allocation26_spill] sm:$0xff]  ;;  %v12945_v60 = vld [vmem:[#allocation92_spill] sm:$0xff] }
 0x47e   :  { %v5263_v27 = vadd.f32 %v12080_v24, %v5054_v5  ;;  %v5264_v3 = vadd.f32 %v12100_v6, %v5055_v35  ;;  %v5283_v22 = vmax.f32 %v4310_v40, %v5160_v45  ;;  %v5132_v54 = vpop.f32.mrf.mxu0  ;;  %v5366_v23 = vpack.c.bf16 %v5350_v12, %v5348_v44  ;;  %5834 = vmatprep.subr.bf16.mxu1 %v12923_v33  ;;  %v12935_v5 = vld [vmem:[#allocation90_spill] sm:$0xff]  ;;  %v12936_v6 = vld [vmem:[#allocation45_spill] sm:$0xff]  ;;  %v5245_v12 = vpop.f32.mrf.mxu1  ;;  %v12946_v15 = vld [vmem:[#allocation48_spill] sm:$0xff] }
 0x47f   :  { %v4954_v29 = vadd.f32 %v12934_v42, %v12933_v25  ;;  %v5333_v24 = vadd.f32 %v12062_v32, %v5302_v51  ;;  %v12937_v35 = vmax.f32 %v12935_v5, %v12936_v6  ;;  %v5162_v46 = vadd.f32 %v5132_v54, %v4953_v61  ;;  %v12942_v62 = vld [vmem:[#allocation126_spill] sm:$0xff]  ;;  %v7774_v42 = vld [vmem:[%s12445_s5 + $0x108] sm:$0xff]  }
 0x480   :  { %v5265_v30 = vadd.f32 %v12117_v48, %v5056_v59  ;;  %v5351_v40 = vmax.f32 %v5331_v20, 0.0  ;;  %v5332_v26 = vadd.f32 %v12077_v19, %v5301_v41  ;;  %v5303_v52 = vmax.f32 %v5283_v22, %v5263_v27  ;;  %7058 = vmatprep.mubr.msk.bf16.mxu0 %vm467_vm0, %v5366_v23  ;;  %v5134_v4 = vpop.f32.mrf.mxu0  ;;  %v7772_v48 = vld [vmem:[%s12445_s5 + $0x110] sm:$0xff]   ;;  %v12941_v59 = vld [vmem:[#allocation127_spill] sm:$0xff]  ;;  %v12944_v13 = vld [vmem:[#allocation106_spill] sm:$0xff] }
 0x481   :  { %v5284_v10 = vmax.f32 %v12937_v35, %v5161_v49  ;;  %v5353_v16 = vmax.f32 %v5333_v24, 0.0  ;;  %v12940_v57 = vmax.f32 %v12938_v8, %v12939_v63  ;;  %v5163_v11 = vadd.f32 %v5134_v4, %v4954_v29  ;;  %5509 = vmatmul.mubr.bf16.vlgmr.msra.gmra.mxu0 %v5365_v1  ;;  %5835 = vmatpush1.bf16.msra.mxu1 %v7770_v55  ;;  %v12943_v41 = vld [vmem:[#allocation100_spill] sm:$0xff]  ;;  %v12948_v27 = vld [vmem:[#allocation130_spill] sm:$0xff]  ;;  %v7773_v35 = vld [vmem:[%s12445_s5 + $0xc8] sm:$0xff]  }
 0x482   :  { %v5058_v53 = vadd.f32 %v12942_v62, %v12941_v59  ;;  %v4955_v14 = vadd.f32 %v12944_v13, %v12943_v41  ;;  %v5334_v56 = vadd.f32 %v12077_v19, %v5303_v52  ;;  %5705 = vmatpush1.bf16.msra.mxu0 %v7769_v38  ;;  %v5136_v28 = vpop.f32.mrf.mxu0  ;;  %5836 = vmatprep.subr.bf16.mxu1 %v12923_v33  ;;  %v7771_v1 = vld [vmem:[%s12445_s5 + $0xd0] sm:$0xff]   ;;  %v5352_v47 = vmax.f32 %v5332_v26, 0.0  ;;  %v12952_v38 = vld [vmem:[#allocation79_spill] sm:$0xff]  ;;  %v12954_v26 = vld [vmem:[#allocation94_spill] sm:$0xff] }
 0x483   :  { %v5304_v0 = vmax.f32 %v5284_v10, %v5264_v3  ;;  %v5285_v17 = vmax.f32 %v12940_v57, %v5162_v46  ;;  %v5266_v44 = vadd.f32 %v12143_v7, %v5057_v21  ;;  %v12216_v20 = vpack.c.bf16 %v5353_v16, %v5351_v40  ;;  %5706 = vmatprep.subr.bf16.mxu0 %v12923_v33  ;;  %v12949_v3 = vld [vmem:[#allocation128_spill] sm:$0xff]  ;;  %v12950_v7 = vld [vmem:[#allocation71_spill] sm:$0xff]  ;;  %v12953_v10 = vld [vmem:[#allocation129_spill] sm:$0xff] }
 0x484   :  { %v12947_v37 = vmax.f32 %v12945_v60, %v12946_v15  ;;  %v5354_v61 = vmax.f32 %v5334_v56, 0.0  ;;  %v5164_v49 = vadd.f32 %v5136_v28, %v4955_v14  ;;  %v5140_v55 = vpop.f32.mrf.mxu0  ;;  %v5060_v22 = vadd.f32 %v12949_v3, %v12948_v27  ;;  %v12951_v21 = vld [vmem:[#allocation107_spill] sm:$0xff]  ;;  %v12962_v14 = vld [vmem:[#allocation101_spill] sm:$0xff] }
 0x485   :  { %v5305_v45 = vmax.f32 %v5285_v17, %v5265_v30  ;;  %v5335_v51 = vadd.f32 %v12062_v32, %v5304_v0  ;;  %v4957_v54 = vadd.f32 %v12951_v21, %v12950_v7  ;;  %v5165_v25 = vadd.f32 %v5140_v55, %v12952_v38  ;;  %5837 = vmatpush1.bf16.msra.mxu1 %v7772_v48  ;;  %v5247_v30 = vpop.f32.mrf.mxu1  ;;  %v12957_v57 = vld [vmem:[#allocation95_spill] sm:$0xff]  ;;  %v12958_v17 = vld [vmem:[#allocation50_spill] sm:$0xff]  ;;  %v7778_v7 = vld [vmem:[%s12445_s5 + $0xf8] sm:$0xff]  }
 0x486   :  { %v5286_v36 = vmax.f32 %v12947_v37, %v5163_v11  ;;  %v5267_v29 = vadd.f32 %v12167_v31, %v5058_v53  ;;  %v5287_v24 = vmax.f32 %v4314_v50, %v5164_v49  ;;  %5707 = vmatpush1.bf16.msra.mxu0 %v7771_v1  ;;  %v5142_v5 = vpop.f32.mrf.mxu0  ;;  %v5368_v6 = vpack.c.bf16 %v5354_v61, %v5352_v47  ;;  %v12955_v31 = vld [vmem:[#allocation29_spill] sm:$0xff]  ;;  %v12960_v59 = vld [vmem:[#allocation35_spill] sm:$0xff]  ;;  %v7776_v53 = vld [vmem:[%s12445_s5 + $0x100] sm:$0xff]  }
 0x487   :  { %5838 = vmatprep.subr.bf16.mxu1 %v12923_v33  ;;  %v5268_v46 = vadd.f32 %v5243_v34, %v12953_v10  ;;  %v12956_v52 = vmax.f32 %v12954_v26, %v12955_v31  ;;  %v5166_v39 = vadd.f32 %v5142_v5, %v4957_v54  ;;  %5708 = vmatprep.subr.bf16.mxu0 %v12923_v33  ;;  %v5355_v50 = vmax.f32 %v5335_v51, 0.0  ;;  %v12961_v41 = vld [vmem:[#allocation131_spill] sm:$0xff]  ;;  %v12963_v37 = vld [vmem:[#allocation96_spill] sm:$0xff]  ;;  %v12967_v51 = vld [vmem:[#allocation102_spill] sm:$0xff] }
 0x488   :  { %v5306_v23 = vmax.f32 %v5286_v36, %v5266_v44  ;;  %v5269_v58 = vadd.f32 %v5245_v12, %v5060_v22  ;;  %v5336_v16 = vadd.f32 %v12077_v19, %v5305_v45  ;;  %v5307_v0 = vmax.f32 %v5287_v24, %v5267_v29  ;;  %7080 = vmatprep.mubr.msk.bf16.mxu0 %vm467_vm0, %v5368_v6  ;;  %v5144_v8 = vpop.f32.mrf.mxu0  ;;  %v7775_v44 = vld [vmem:[%s12445_s5 + $0xc0] sm:$0xff]   ;;  %v5249_v12 = vpop.f32.mrf.mxu1  ;;  %v7777_v38 = vld [vmem:[%s12445_s5 + $0xb8] sm:$0xff]   ;;  %v7785_v26 = vld [vmem:[%s12445_s5 + $0xe8] sm:$0xff]  }
 0x489   :  { %v5288_v4 = vmax.f32 %v12956_v52, %v5165_v25  ;;  %v12959_v11 = vmax.f32 %v12957_v57, %v12958_v17  ;;  %v5167_v62 = vadd.f32 %v5144_v8, %v12960_v59  ;;  %5839 = vmatpush1.bf16.msra.mxu1 %v7774_v42  ;;  %v5270_v13 = vadd.f32 %v5247_v30, %v12961_v41  ;;  %v12964_v36 = vld [vmem:[#allocation22_spill] sm:$0xff]  ;;  %v7782_v10 = vld [vmem:[%s12445_s5 + $0x138] sm:$0xff]   ;;  %v7784_v30 = vld [vmem:[%s12445_s5 + $0x130] sm:$0xff]  }
 0x48a   :  { %v5337_v40 = vadd.f32 %v12062_v32, %v5306_v23  ;;  %v4959_v56 = vadd.f32 %v12008_v2, %v12962_v14  ;;  %v5338_v28 = vadd.f32 %v12077_v19, %v5307_v0  ;;  %5709 = vmatpush1.bf16.msra.mxu0 %v7773_v35  ;;  %v5146_v1 = vpop.f32.mrf.mxu0  ;;  %5840 = vmatprep.subr.bf16.mxu1 %v12923_v33  ;;  %v12966_v2 = vld [vmem:[#allocation132_spill] sm:$0xff]  ;;  %v5356_v55 = vmax.f32 %v5336_v16, 0.0  ;;  %v7786_v31 = vld [vmem:[%s12445_s5 + $0xe0] sm:$0xff]   ;;  %v7787_v52 = vld [vmem:[%s12445_s5 + $0x178] sm:$0xff]  }
 0x48b   :  { %v5308_v34 = vmax.f32 %v5288_v4, %v5268_v46  ;;  %v5289_v48 = vmax.f32 %v12959_v11, %v5166_v39  ;;  %v12965_v47 = vmax.f32 %v12963_v37, %v12964_v36  ;;  %5710 = vmatprep.subr.bf16.mxu0 %v12923_v33  ;;  %v5062_v49 = vadd.f32 %v12967_v51, %v12966_v2  ;;  %v7788_v4 = vld [vmem:[%s12445_s5 + $0x170] sm:$0xff]   ;;  %v7789_v39 = vld [vmem:[%s12445_s5 + $0x168] sm:$0xff]   ;;  %v7794_v0 = vld [vmem:[%s12445_s5 + $0x140] sm:$0xff]  }
 0x48c   :  { %v5357_v63 = vmax.f32 %v5337_v40, 0.0  ;;  %v5358_v27 = vmax.f32 %v5338_v28, 0.0  ;;  %v5168_v3 = vadd.f32 %v5146_v1, %v4959_v56  ;;  %v7783_v40 = vld [vmem:[%s12445_s5 + $0xa0] sm:$0xff]   ;;  %v7793_v16 = vld [vmem:[%s12445_s5 + $0x148] sm:$0xff]   ;;  %v7797_v57 = vld [vmem:[%s12447_s7 + $0x38] sm:$0xff]  }
 0x48d   :  { %v5339_v60 = vadd.f32 %v12062_v32, %v5308_v34  ;;  %v5309_v15 = vmax.f32 %v5289_v48, %v5269_v58  ;;  %v5290_v61 = vmax.f32 %v12965_v47, %v5167_v62  ;;  %5841 = vmatpush1.bf16.msra.mxu1 %v7776_v53  ;;  %v5271_v21 = vadd.f32 %v5249_v12, %v5062_v49  ;;  %v7791_v58 = vld [vmem:[%s12445_s5 + $0x158] sm:$0xff]   ;;  %v7795_v8 = vld [vmem:[%s12445_s5 + $0x188] sm:$0xff]   ;;  %v7798_v17 = vld [vmem:[%s12447_s7 + $0x30] sm:$0xff]  }
 0x48e   :  { %v5369_v45 = vpack.c.bf16 %v5357_v63, %v5355_v50  ;;  %v5291_v54 = vmax.f32 %v4318_v18, %v5168_v3  ;;  %5711 = vmatpush1.bf16.msra.mxu0 %v7775_v44  ;;  %5842 = vmatprep.subr.bf16.mxu1 %v12923_v33  ;;  %v5370_v23 = vpack.c.bf16 %v5358_v27, %v5356_v55  ;;  %v7792_v50 = vld [vmem:[%s12445_s5 + $0x150] sm:$0xff]   ;;  %v7796_v63 = vld [vmem:[%s12445_s5 + $0x180] sm:$0xff]   ;;  %v8094_v34 = vmov 0.0   ;;  %v7801_v48 = vld [vmem:[%s12447_s7 + $0x18] sm:$0xff]  }
 0x48f   :  { %v5310_v22 = vmax.f32 %v5290_v61, %v5270_v13  ;;  %5712 = vmatprep.subr.bf16.mxu0 %v12923_v33  ;;  %v5340_v42 = vadd.f32 %v12077_v19, %v5309_v15  ;;  %v5359_v24 = vmax.f32 %v5339_v60, 0.0  ;;  %v7800_v11 = vld [vmem:[%s12447_s7 + $0x20] sm:$0xff]   ;;  %v7802_v59 = vld [vmem:[%s12447_s7 + $0x10] sm:$0xff]   ;;  %v7803_v62 = vld [vmem:[%s12447_s7 + $0x8] sm:$0xff]  }
 0x490   :  { %v5311_v29 = vmax.f32 %v5291_v54, %v5271_v21  ;;  %7091 = vmatprep.mubr.msk.bf16.mxu1 %vm467_vm0, %v5370_v23  ;;  %v7804_v53 = vld [vmem:[%s12447_s7] sm:$0xff]  }
 0x491   :  { %v5341_v25 = vadd.f32 %v12062_v32, %v5310_v22  ;;  %5843 = vmatpush1.bf16.msra.mxu1 %v7778_v7  ;;  %v7779_v32 = vld [vmem:[%s12445_s5 + $0xb0] sm:$0xff]   ;;  %v5360_v6 = vmax.f32 %v5340_v42, 0.0  ;;  %v7103_v21 = vld [vmem:[%s12449_s6] ss:$0 sm:$0xff] }
 0x492   :  { %v5342_v18 = vadd.f32 %v12077_v19, %v5311_v29  ;;  %5713 = vmatpush1.bf16.msra.mxu0 %v7777_v38  ;;  %5844 = vmatprep.subr.bf16.mxu1 %v12923_v33  ;;  %v7781_v19 = vld [vmem:[%s12445_s5 + $0xa8] sm:$0xff]  }
 0x493   :  { %v5361_v9 = vmax.f32 %v5341_v25, 0.0  ;;  %5714 = vmatprep.subr.bf16.mxu0 %v12923_v33 }
 0x494   :  { %v5362_v35 = vmax.f32 %v5342_v18, 0.0  ;;  %v7805_v18 = vld [vmem:[%s12448_s9 + $0x38] sm:$0xff]  }
 0x495   :  { %v5371_v5 = vpack.c.bf16 %v5361_v9, %v5359_v24  ;;  %5845 = vmatpush1.bf16.msra.mxu1 %v7780_v43 }
 0x496   :  { %5715 = vmatpush1.bf16.msra.mxu0 %v7779_v32  ;;  %5858 = vmatprep.subr.bf16.mxu1 %v12923_v33  ;;  %v5372_v46 = vpack.c.bf16 %v5362_v35, %v5360_v6  ;;  %v7807_v6 = vld [vmem:[%s12448_s9 + $0x28] sm:$0xff]   ;;  %v7808_v35 = vld [vmem:[%s12448_s9 + $0x20] sm:$0xff]  }
 0x497   :  { %5716 = vmatprep.subr.bf16.mxu0 %v12923_v33 }
 0x499   :  { %5859 = vmatpush2.bf16.msra.mxu1 %v7782_v10  ;;  %v7809_v10 = vld [vmem:[%s12448_s9 + $0x18] sm:$0xff]  }
 0x49a   :  { %5717 = vmatpush1.bf16.msra.mxu0 %v7781_v19  ;;  %5860 = vmatprep.subr.bf16.mxu1 %v12923_v33  ;;  %v7810_v19 = vld [vmem:[%s12448_s9 + $0x10] sm:$0xff]  }
 0x49b   :  { %5718 = vmatprep.subr.bf16.mxu0 %v12923_v33 }
 0x49d   :  { %5861 = vmatpush2.bf16.msra.mxu1 %v7784_v30  ;;  %v7812_v30 = vld [vmem:[%s12448_s9] sm:$0xff]  }
 0x49e   :  { %5719 = vmatpush1.bf16.msra.mxu0 %v7783_v40  ;;  %7140 = vmatprep.subr.bf16.mxu1 %v8094_v34  ;;  %v7104_v40 = vld [vmem:[%s12450_s8] ss:$0 sm:$0xff] }
 0x49f   :  { %5732 = vmatprep.subr.bf16.mxu0 %v12923_v33 }
 0x4a0   :  { %5863 = vmatmul.mubr.bf16.vlgmr.msra.gmra.mxu1 %v5369_v45 }
 0x4a1   :  { %7141 = vmatpush3.bf16.msra.mxu1 %v7797_v57  ;;  %7156 = vmatprep.mubr.msk.bf16.mxu1 %vm8095_vm2, %v8094_v34 }
 0x4a2   :  { %5733 = vmatpush2.bf16.msra.mxu0 %v7785_v26  ;;  %7142 = vmatprep.subr.bf16.mxu1 %v8094_v34 }
 0x4a3   :  { %5734 = vmatprep.subr.bf16.mxu0 %v12923_v33 }
 0x4a5   :  { %7143 = vmatpush3.bf16.msra.mxu1 %v7798_v17 }
 0x4a6   :  { %5735 = vmatpush2.bf16.msra.mxu0 %v7786_v31  ;;  %7144 = vmatprep.subr.bf16.mxu1 %v8094_v34 }
 0x4a7   :  { %5956 = vmatprep.subr.bf16.mxu0 %v12923_v33 }
 0x4a9   :  { %5737 = vmatmul.mubr.bf16.vlgmr.msra.gmra.mxu0 %v12216_v20  ;;  %v7790_v20 = vld [vmem:[%s12445_s5 + $0x160] sm:$0xff]  }
 0x4aa   :  { %5957 = vmatpush1.bf16.msra.mxu0 %v7787_v52  ;;  %7102 = vmatprep.mubr.msk.bf16.mxu0 %vm467_vm0, %v5372_v46  ;;  %v7811_v46 = vld [vmem:[%s12448_s9 + $0x8] sm:$0xff]  }
 0x4ab   :  { %5958 = vmatprep.subr.bf16.mxu0 %v12923_v33 }
 0x4ae   :  { %5959 = vmatpush1.bf16.msra.mxu0 %v7788_v4 }
 0x4af   :  { %5960 = vmatprep.subr.bf16.mxu0 %v12923_v33 }
 0x4b2   :  { %5961 = vmatpush1.bf16.msra.mxu0 %v7789_v39 }
 0x4b3   :  { %5962 = vmatprep.subr.bf16.mxu0 %v12923_v33 }
 0x4b6   :  { %5963 = vmatpush1.bf16.msra.mxu0 %v7790_v20 }
 0x4b7   :  { %5964 = vmatprep.subr.bf16.mxu0 %v12923_v33 }
 0x4ba   :  { %5965 = vmatpush1.bf16.msra.mxu0 %v7791_v58 }
 0x4bb   :  { %5966 = vmatprep.subr.bf16.mxu0 %v12923_v33 }
 0x4be   :  { %5967 = vmatpush1.bf16.msra.mxu0 %v7792_v50 }
 0x4bf   :  { %5968 = vmatprep.subr.bf16.mxu0 %v12923_v33 }
 0x4c2   :  { %5969 = vmatpush1.bf16.msra.mxu0 %v7793_v16 }
 0x4c3   :  { %5970 = vmatprep.subr.bf16.mxu0 %v12923_v33 }
 0x4c6   :  { %5971 = vmatpush1.bf16.msra.mxu0 %v7794_v0  ;;  %v7113_v0 = vld [vmem:[%s12451_s10] ss:$0 sm:$0xff] }
 0x4c7   :  { %5984 = vmatprep.subr.bf16.mxu0 %v12923_v33 }
 0x4ca   :  { %5985 = vmatpush2.bf16.msra.mxu0 %v7795_v8 }
 0x4cb   :  { %5986 = vmatprep.subr.bf16.mxu0 %v12923_v33  ;;  %v7799_v33 = vld [vmem:[%s12447_s7 + $0x28] sm:$0xff]  }
 0x4cc   :  { %7145 = vmatpush3.bf16.msra.mxu1 %v7799_v33 }
 0x4cd   :  { %7146 = vmatprep.subr.bf16.mxu1 %v8094_v34 }
 0x4ce   :  { %5987 = vmatpush2.bf16.msra.mxu0 %v7796_v63 }
 0x4d0   :  { %7147 = vmatpush3.bf16.msra.mxu1 %v7800_v11 }
 0x4d1   :  { %5989 = vmatmul.mubr.bf16.vlgmr.msra.gmra.mxu0 %v5371_v5  ;;  %7148 = vmatprep.subr.bf16.mxu1 %v8094_v34  ;;  %v7806_v5 = vld [vmem:[%s12448_s9 + $0x30] sm:$0xff]  }
 0x4d4   :  { %7149 = vmatpush3.bf16.msra.mxu1 %v7801_v48 }
 0x4d5   :  { %7150 = vmatprep.subr.bf16.mxu1 %v8094_v34 }
 0x4d8   :  { %7151 = vmatpush3.bf16.msra.mxu1 %v7802_v59 }
 0x4d9   :  { %7152 = vmatprep.subr.bf16.mxu1 %v8094_v34 }
 0x4dc   :  { %7153 = vmatpush3.bf16.msra.mxu1 %v7803_v62 }
 0x4dd   :  { %7154 = vmatprep.subr.bf16.mxu1 %v8094_v34 }
 0x4e0   :  { %7155 = vmatpush3.bf16.msra.mxu1 %v7804_v53 }
 0x4e1   :  { %7160 = vmatprep.subr.bf16.mxu1 %v8094_v34 }
 0x538   :  { %v5614_v41 = vpop.f32.mrf.mxu1 }
 0x53a   :  { %v5616_v13 = vpop.f32.mrf.mxu1 }
 0x53c   :  { %v5617_v14 = vpop.f32.mrf.mxu1 }
 0x53e   :  { %v5619_v56 = vpop.f32.mrf.mxu1 }
 0x541   :  { %v5510_v28 = vpop.f32.mrf.mxu0 }
 0x542   :  { %v5615_v1 = vadd.f32 %v5614_v41, %v5510_v28 }
 0x543   :  { %v5512_v44 = vpop.f32.mrf.mxu0 }
 0x545   :  { %v5513_v12 = vpop.f32.mrf.mxu0 }
 0x546   :  { %v5618_v45 = vadd.f32 %v5617_v14, %v5513_v12 }
 0x547   :  { %v5515_v60 = vpop.f32.mrf.mxu0 }
 0x560   :  { %v5864_v15 = vpop.f32.mrf.mxu1 }
 0x562   :  { %v5866_v37 = vpop.f32.mrf.mxu1 }
 0x564   :  { %v5867_v36 = vpop.f32.mrf.mxu1 }
 0x566   :  { %v5869_v47 = vpop.f32.mrf.mxu1 }
 0x569   :  { %v5738_v61 = vpop.f32.mrf.mxu0 }
 0x56a   :  { %v5745_v55 = vadd.f32 %v5738_v61, %v5615_v1 }
 0x56b   :  { %v5740_v2 = vpop.f32.mrf.mxu0 }
 0x56c   :  { %v5871_v3 = vadd.f32 %v5864_v15, %v5745_v55 }
 0x56d   :  { %v5741_v51 = vpop.f32.mrf.mxu0 }
 0x56e   :  { %v5746_v27 = vadd.f32 %v5741_v51, %v5618_v45 }
 0x56f   :  { %v5743_v49 = vpop.f32.mrf.mxu0 }
 0x570   :  { %v5872_v23 = vadd.f32 %v5867_v36, %v5746_v27 }
 0x591   :  { %v5990_v22 = vpop.f32.mrf.mxu0 }
 0x592   :  { %v5997_v7 = vadd.f32 %v5990_v22, %v5871_v3 }
 0x593   :  { %v5992_v54 = vpop.f32.mrf.mxu0 }
 0x594   :  { %v6006_v25 = vadd.f32 %v7103_v21, %v5997_v7 }
 0x595   :  { %v5993_v38 = vpop.f32.mrf.mxu0 }
 0x596   :  { %v5998_v42 = vadd.f32 %v5993_v38, %v5872_v23  ;;  %v6008_v9 = vmax.f32 %v6006_v25, 0.0 }
 0x597   :  { %v5995_v29 = vpop.f32.mrf.mxu0 }
 0x598   :  { %v6007_v24 = vadd.f32 %v7103_v21, %v5998_v42 }
 0x59a   :  { %v6009_v43 = vmax.f32 %v6007_v24, 0.0 }
 0x59c   :  { %v6010_v32 = vpack.c.bf16 %v6009_v43, %v6008_v9 }
 0x59e   :  { %7157 = vmatmul.mubr.bf16.vlgmr.msra.gmra.mxu1 %v6010_v32 }
 0x59f   :  { %7161 = vmatpush3.bf16.msra.mxu1 %v7805_v18  ;;  %7176 = vmatprep.mubr.msk.bf16.mxu1 %vm8095_vm2, %v8094_v34 }
 0x5a0   :  { %7162 = vmatprep.subr.bf16.mxu1 %v8094_v34 }
 0x5a3   :  { %7163 = vmatpush3.bf16.msra.mxu1 %v7806_v5 }
 0x5a4   :  { %7164 = vmatprep.subr.bf16.mxu1 %v8094_v34 }
 0x5a7   :  { %7165 = vmatpush3.bf16.msra.mxu1 %v7807_v6 }
 0x5a8   :  { %7166 = vmatprep.subr.bf16.mxu1 %v8094_v34 }
 0x5ab   :  { %7167 = vmatpush3.bf16.msra.mxu1 %v7808_v35 }
 0x5ac   :  { %7168 = vmatprep.subr.bf16.mxu1 %v8094_v34 }
 0x5af   :  { %7169 = vmatpush3.bf16.msra.mxu1 %v7809_v10 }
 0x5b0   :  { %7170 = vmatprep.subr.bf16.mxu1 %v8094_v34 }
 0x5b3   :  { %7171 = vmatpush3.bf16.msra.mxu1 %v7810_v19 }
 0x5b4   :  { %7172 = vmatprep.subr.bf16.mxu1 %v8094_v34 }
 0x5b7   :  { %7173 = vmatpush3.bf16.msra.mxu1 %v7811_v46 }
 0x5b8   :  { %7174 = vmatprep.subr.bf16.mxu1 %v8094_v34 }
 0x5bb   :  { %7175 = vmatpush3.bf16.msra.mxu1 %v7812_v30 }
 0x65e   :  { %v6116_v26 = vpop.f32.mrf.mxu1 }
 0x65f   :  { %v6117_v52 = vadd.f32 %v7104_v40, %v6116_v26 }
 0x660   :  { %v7158_v31 = vpop.f32.mrf.mxu1 }
 0x661   :  { %v6123_v58 = vmax.f32 %v6117_v52, 0.0 }
 0x662   :  { %v6119_v4 = vpop.f32.mrf.mxu1 }
 0x663   :  { %v6120_v39 = vadd.f32 %v7104_v40, %v6119_v4 }
 0x664   :  { %v7159_v20 = vpop.f32.mrf.mxu1 }
 0x665   :  { %v6124_v50 = vmax.f32 %v6120_v39, 0.0 }
 0x667   :  { %v6125_v16 = vpack.c.bf16 %v6124_v50, %v6123_v58 }
 0x669   :  { %7177 = vmatmul.mubr.bf16.vlgmr.msra.gmra.mxu1 %v6125_v16 }
 0x729   :  { %v6231_v8 = vpop.f32.mrf.mxu1 }
 0x72a   :  { %v6232_v63 = vadd.f32 %v7113_v0, %v6231_v8 }
 0x72b   :  { %v7178_v34 = vpop.f32.mrf.mxu1 }
 0x72c   :  { %6238 = vst [vmem:[%s12452_s11] sm:$0xff] %v6232_v63 }
 0x72d   :  { %v6234_v57 = vpop.f32.mrf.mxu1 }
 0x72e   :  { %v6235_v17 = vadd.f32 %v7113_v0, %v6234_v57 }
 0x72f   :  { %v7179_v33 = vpop.f32.mrf.mxu1 }
 0x730   :  { %6239 = vst [vmem:[%s12452_s11 + $0x8] sm:$0xff] %v6235_v17 }

</bundles_post_ra>
